<compile_context>
chip_gen: v6e
topology: v6e:2x2x1
jax: 0.10.0
libtpu: 0.0.40
codegen_flags: <defaults>
</compile_context>

<pallas_src>
import functools

import jax
import jax.numpy as jnp
from jax.experimental import pallas as pl
from jax.experimental.pallas import tpu as pltpu


_BN_EPS = 1e-5


def _cdiv(a, b):
    return -(-a // b)


def _round_up(x, m):
    return _cdiv(x, m) * m


def _flat_geom(hout, wrow, max_flat_tile):
    """Tile the flat output axis (length hout*wrow) into n_tiles x tile."""
    flat = hout * wrow
    n_tiles = _cdiv(flat, max_flat_tile)
    tile = _round_up(_cdiv(flat, n_tiles), 8)
    return tile, n_tiles, tile * n_tiles


# ----------------------------------------------------------------------------
# Pallas kernels
# ----------------------------------------------------------------------------
def _conv_kernel(x_ref, w_ref, s_ref, t_ref, *refs,
                 tap_offsets, tile, relu, has_residual, compute_dtype):
    """Flat conv: y = [relu]( (patch @ W) * scale + shift ) [+ residual]."""
    if has_residual:
        res_ref, o_ref = refs
    else:
        (o_ref,) = refs
    f0 = pl.multiple_of(pl.program_id(1) * tile, 8)
    taps = [x_ref[0, pl.ds(f0 + off, tile), :] for off in tap_offsets]
    patch = taps[0] if len(taps) == 1 else jnp.concatenate(taps, axis=-1)
    acc = jnp.dot(patch.astype(compute_dtype), w_ref[...],
                  preferred_element_type=jnp.float32)
    acc = acc * s_ref[...] + t_ref[...]
    if relu:
        acc = jnp.maximum(acc, 0.0)
    if has_residual:
        acc = acc + res_ref[0].astype(jnp.float32)
    o_ref[0] = acc.astype(o_ref.dtype)


def _dual_conv_kernel(x_ref, w1_ref, s1_ref, t1_ref, w2_ref, s2_ref, t2_ref,
                      o1_ref, o2_ref, *,
                      tap_offsets, center, tile, relu1, compute_dtype):
    """Fused: 3x3 conv (+BN+ReLU) and 1x1 conv off the same input tile."""
    f0 = pl.multiple_of(pl.program_id(1) * tile, 8)
    taps = [x_ref[0, pl.ds(f0 + off, tile), :] for off in tap_offsets]
    patch = jnp.concatenate(taps, axis=-1)
    acc1 = jnp.dot(patch.astype(compute_dtype), w1_ref[...],
                   preferred_element_type=jnp.float32)
    acc1 = acc1 * s1_ref[...] + t1_ref[...]
    if relu1:
        acc1 = jnp.maximum(acc1, 0.0)
    o1_ref[0] = acc1.astype(o1_ref.dtype)
    # 1x1 conv reads the interior of the padding: the centre tap of the 3x3.
    acc2 = jnp.dot(taps[center].astype(compute_dtype), w2_ref[...],
                   preferred_element_type=jnp.float32)
    acc2 = acc2 * s2_ref[...] + t2_ref[...]
    o2_ref[0] = acc2.astype(o2_ref.dtype)


def _bn_relu_kernel(x_ref, s_ref, t_ref, o_ref):
    # x_ref: [1, TRH, W*C] (lane-dense last dim), s/t: [1, W*C]
    y = x_ref[...].astype(jnp.float32) * s_ref[...] + t_ref[...]
    o_ref[...] = jnp.maximum(y, 0.0).astype(o_ref.dtype)


# ----------------------------------------------------------------------------
# Layout helpers (plain JAX glue)
# ----------------------------------------------------------------------------
def _space_to_depth(xp):
    """[N, Hp, Wp, C] (Hp, Wp even) -> [N, Hp/2, Wp/2, 4*C]."""
    n, hp, wp, c = xp.shape
    x = xp.reshape(n, hp // 2, 2, wp // 2, 2, c)
    x = x.transpose(0, 1, 3, 2, 4, 5)
    return x.reshape(n, hp // 2, wp // 2, 4 * c)


def _s2d_weights(w):
    """3x3/stride-2 conv weight -> equivalent 2x2/stride-1 weight on the
    space-to-depth input: [3,3,Cin,Cout] -> [2,2,4*Cin,Cout] (zero-filled)."""
    k, _, cin, cout = w.shape
    w2 = jnp.zeros((2, 2, 2, 2, cin, cout), w.dtype)
    for ky in range(k):
        dy, p = divmod(ky, 2)
        for kx in range(k):
            dx, q = divmod(kx, 2)
            w2 = w2.at[dy, dx, p, q].set(w[ky, kx])
    return w2.reshape(2, 2, 4 * cin, cout)


def _prep_conv(x, w, *, stride, padding, padding_mode, out_wrow, max_flat_tile):
    """Pad / normalize stride / flatten input for the flat-tap conv kernel."""
    n, _, _, cin = x.shape
    k = w.shape[0]
    cout = w.shape[-1]
    if padding > 0:
        mode = "reflect" if padding_mode == "reflect" else "constant"
        xp = jnp.pad(x, ((0, 0), (padding,) * 2, (padding,) * 2, (0, 0)),
                     mode=mode)
    else:
        xp = x
    hp, wp = xp.shape[1], xp.shape[2]
    hout = (hp - k) // stride + 1
    wout = (wp - k) // stride + 1
    if stride == 1:
        wf = w
        kh = kw = k
    elif stride == 2:
        if hp % 2:
            xp = jnp.pad(xp, ((0, 0), (0, 1), (0, 0), (0, 0)))
        if wp % 2:
            xp = jnp.pad(xp, ((0, 0), (0, 0), (0, 1), (0, 0)))
        xp = _space_to_depth(xp)
        wf = _s2d_weights(w)
        kh = kw = 2
        hp, wp, cin = xp.shape[1], xp.shape[2], xp.shape[3]
    else:
        raise NotImplementedError("stride must be 1 or 2")
    # Output row stride == input row stride (required by the flat-tap trick).
    wrow = max(out_wrow or 0, wout + kw - 1)
    if wp < wrow:
        xp = jnp.pad(xp, ((0, 0), (0, 0), (0, wrow - wp), (0, 0)))
    tile, n_tiles, flat_pad = _flat_geom(hout, wrow, max_flat_tile)
    flat_in = _round_up(flat_pad + (kh - 1) * wrow + (kw - 1), 8)
    xf = xp.reshape(n, hp * wrow, cin)
    if hp * wrow < flat_in:
        xf = jnp.pad(xf, ((0, 0), (0, flat_in - hp * wrow), (0, 0)))
    tap_offsets = tuple(ky * wrow + kx for ky in range(kh) for kx in range(kw))
    geom = dict(N=n, Cin=cin, Cout=cout, Hout=hout, Wout=wout, wrow=wrow,
                Kh=kh, Kw=kw, tile=tile, n_tiles=n_tiles,
                flat_pad=flat_pad, flat_in=flat_in, tap_offsets=tap_offsets)
    return xf, wf.reshape(kh * kw * cin, cout), geom


def _affine_params(b, bn, cout):
    """Per-channel (scale, shift): plain bias, or bias folded into BN."""
    if bn is None:
        scale = jnp.ones((cout,), jnp.float32)
        shift = b.astype(jnp.float32)
    else:
        s = bn["gamma"] / jnp.sqrt(bn["var"] + _BN_EPS)
        scale = s
        shift = bn["beta"] - bn["mean"] * s + b * s
    return (scale.reshape(1, cout).astype(jnp.float32),
            shift.reshape(1, cout).astype(jnp.float32))


def _unflatten(out_flat, g):
    n = out_flat.shape[0]
    hout, wout, wrow, cout = g["Hout"], g["Wout"], g["wrow"], g["Cout"]
    y = out_flat[:, :hout * wrow, :].reshape(n, hout, wrow, cout)
    return y[:, :, :wout, :]


def _vmem_limit(estimate):
    return int(min(64 * 2**20, max(4 * 2**20, estimate)))


# ----------------------------------------------------------------------------
# Pallas wrappers
# ----------------------------------------------------------------------------
def conv2d(x, w, b, *, stride=1, padding=1, padding_mode="zeros",
           bn=None, relu=False, residual_flat=None,
           out_wrow=None, flat_out=False,
           compute_dtype=jnp.float32, max_flat_tile=1024):
    """2-D conv (PyTorch cross-correlation) with optional fused BN+ReLU
    epilogue and fused residual add.  x: NHWC, w: [K,K,Cin,Cout], b: [Cout]."""
    n = x.shape[0]
    out_dtype = x.dtype
    xf, wflat, g = _prep_conv(x, w, stride=stride, padding=padding,
                              padding_mode=padding_mode, out_wrow=out_wrow,
                              max_flat_tile=max_flat_tile)
    cout, cin = g["Cout"], g["Cin"]
    tile, n_tiles = g["tile"], g["n_tiles"]
    flat_pad, flat_in = g["flat_pad"], g["flat_in"]
    kkc = wflat.shape[0]

    scale, shift = _affine_params(b, bn, cout)
    wflat = wflat.astype(compute_dtype)

    in_specs = [
        pl.BlockSpec((1, flat_in, cin), lambda i, t: (i, 0, 0)),
        pl.BlockSpec((kkc, cout), lambda i, t: (0, 0)),
        pl.BlockSpec((1, cout), lambda i, t: (0, 0)),
        pl.BlockSpec((1, cout), lambda i, t: (0, 0)),
    ]
    args = [xf, wflat, scale, shift]
    has_res = residual_flat is not None
    if has_res:
        assert residual_flat.shape == (n, flat_pad, cout), (
            residual_flat.shape, (n, flat_pad, cout))
        in_specs.append(pl.BlockSpec((1, tile, cout), lambda i, t: (i, t, 0)))
        args.append(residual_flat)

    kernel = functools.partial(
        _conv_kernel, tap_offsets=g["tap_offsets"], tile=tile,
        relu=bool(relu), has_residual=has_res, compute_dtype=compute_dtype)

    out_isz = jnp.dtype(out_dtype).itemsize
    flops = 2 * n * flat_pad * kkc * cout
    bytes_accessed = (xf.size * xf.dtype.itemsize
                      + wflat.size * wflat.dtype.itemsize
                      + (2 if has_res else 1) * n * flat_pad * cout * out_isz
                      + 2 * cout * 4)
    cost = pl.CostEstimate(flops=int(flops), transcendentals=0,
                           bytes_accessed=int(bytes_accessed))
    vmem_est = (2 * flat_in * cin * xf.dtype.itemsize
                + 2 * kkc * cout * wflat.dtype.itemsize
                + 2 * (2 + (2 if has_res else 0)) * tile * cout * 4
                + tile * (kkc + cout) * 4
                + (1 << 20))

    out_flat_arr = pl.pallas_call(
        kernel,
        out_shape=jax.ShapeDtypeStruct((n, flat_pad, cout), out_dtype),
        grid=(n, n_tiles),
        in_specs=in_specs,
        out_specs=pl.BlockSpec((1, tile, cout), lambda i, t: (i, t, 0)),
        compiler_params=pltpu.CompilerParams(
            dimension_semantics=("parallel", "parallel"),
            vmem_limit_bytes=_vmem_limit(vmem_est)),
        cost_estimate=cost,
    )(*args)

    if flat_out:
        return out_flat_arr
    return _unflatten(out_flat_arr, g)


def first_stage(x, params, *, compute_dtype=jnp.float32, max_flat_tile=1024):
    """One pallas_call computing both the first 3x3 reflect conv (+BN0+ReLU)
    and the 1x1 first_res_cov from a single read of x.  Returns the activation
    (NHWC) and the 1x1 output in flat layout (ready for residual fusion)."""
    n = x.shape[0]
    out_dtype = x.dtype
    w1, b1 = params["c1_w"], params["c1_b"]
    w2, b2 = params["idt0_w"], params["idt0_b"]
    assert w1.shape[-1] == w2.shape[-1]

    xf, w1flat, g = _prep_conv(x, w1, stride=1, padding=1,
                               padding_mode="reflect", out_wrow=None,
                               max_flat_tile=max_flat_tile)
    cout, cin = g["Cout"], g["Cin"]
    tile, n_tiles = g["tile"], g["n_tiles"]
    flat_pad, flat_in = g["flat_pad"], g["flat_in"]
    kkc = w1flat.shape[0]
    center = (g["Kh"] // 2) * g["Kw"] + (g["Kw"] // 2)

    s1, t1 = _affine_params(b1, params["bn0"], cout)
    s2, t2 = _affine_params(b2, None, cout)
    w1flat = w1flat.astype(compute_dtype)
    w2flat = w2.reshape(cin, cout).astype(compute_dtype)

    kernel = functools.partial(
        _dual_conv_kernel, tap_offsets=g["tap_offsets"], center=center,
        tile=tile, relu1=True, compute_dtype=compute_dtype)

    out_isz = jnp.dtype(out_dtype).itemsize
    flops = 2 * n * flat_pad * (kkc + cin) * cout
    bytes_accessed = (xf.size * xf.dtype.itemsize
                      + (w1flat.size + w2flat.size) * w1flat.dtype.itemsize
                      + 2 * n * flat_pad * cout * out_isz + 4 * cout * 4)
    cost = pl.CostEstimate(flops=int(flops), transcendentals=0,
                           bytes_accessed=int(bytes_accessed))
    vmem_est = (2 * flat_in * cin * xf.dtype.itemsize
                + 2 * (kkc + cin) * cout * w1flat.dtype.itemsize
                + 2 * 2 * 2 * tile * cout * 4
                + tile * (kkc + 2 * cout) * 4
                + (1 << 20))

    out1, out2 = pl.pallas_call(
        kernel,
        out_shape=(jax.ShapeDtypeStruct((n, flat_pad, cout), out_dtype),
                   jax.ShapeDtypeStruct((n, flat_pad, cout), out_dtype)),
        grid=(n, n_tiles),
        in_specs=[
            pl.BlockSpec((1, flat_in, cin), lambda i, t: (i, 0, 0)),
            pl.BlockSpec((kkc, cout), lambda i, t: (0, 0)),
            pl.BlockSpec((1, cout), lambda i, t: (0, 0)),
            pl.BlockSpec((1, cout), lambda i, t: (0, 0)),
            pl.BlockSpec((cin, cout), lambda i, t: (0, 0)),
            pl.BlockSpec((1, cout), lambda i, t: (0, 0)),
            pl.BlockSpec((1, cout), lambda i, t: (0, 0)),
        ],
        out_specs=(pl.BlockSpec((1, tile, cout), lambda i, t: (i, t, 0)),
                   pl.BlockSpec((1, tile, cout), lambda i, t: (i, t, 0))),
        compiler_params=pltpu.CompilerParams(
            dimension_semantics=("parallel", "parallel"),
            vmem_limit_bytes=_vmem_limit(vmem_est)),
        cost_estimate=cost,
    )(xf, w1flat, s1, t1, w2flat, s2, t2)
    return _unflatten(out1, g), out2


def bn_relu(x, gamma, beta, mean, var, eps=_BN_EPS):
    """Standalone inference BatchNorm2d + ReLU (used where the raw input is
    also needed).  Lane-dense layout: last dim is W*C."""
    n, h, w, c = x.shape
    s = gamma / jnp.sqrt(var + eps)
    t = beta - mean * s
    wc = w * c
    xf = x.reshape(n, h, wc)
    s_t = jnp.tile(s, w).reshape(1, wc).astype(jnp.float32)
    t_t = jnp.tile(t, w).reshape(1, wc).astype(jnp.float32)
    trh = 8 if h % 8 == 0 else h
    cost = pl.CostEstimate(flops=2 * x.size, transcendentals=0,
                           bytes_accessed=int(2 * x.size * x.dtype.itemsize))
    out = pl.pallas_call(
        _bn_relu_kernel,
        out_shape=jax.ShapeDtypeStruct((n, h, wc), x.dtype),
        grid=(n, h // trh),
        in_specs=[pl.BlockSpec((1, trh, wc), lambda i, r: (i, r, 0)),
                  pl.BlockSpec((1, wc), lambda i, r: (0, 0)),
                  pl.BlockSpec((1, wc), lambda i, r: (0, 0))],
        out_specs=pl.BlockSpec((1, trh, wc), lambda i, r: (i, r, 0)),
        compiler_params=pltpu.CompilerParams(
            dimension_semantics=("parallel", "parallel"),
            vmem_limit_bytes=8 * 2**20),
        cost_estimate=cost,
    )(xf, s_t, t_t)
    return out.reshape(n, h, w, c)


# ----------------------------------------------------------------------------
# Parameter init (deterministic, synthetic)
# ----------------------------------------------------------------------------
def _conv_init(key, k, cin, cout):
    kw_, kb = jax.random.split(key)
    w = 0.1 * jax.random.normal(kw_, (k, k, cin, cout), jnp.float32)
    b = 0.1 * jax.random.normal(kb, (cout,), jnp.float32)
    return w, b


def _bn_init(key, c):
    k1, k2, k3, k4 = jax.random.split(key, 4)
    return dict(
        gamma=1.0 + 0.1 * jax.random.normal(k1, (c,), jnp.float32),
        beta=0.1 * jax.random.normal(k2, (c,), jnp.float32),
        mean=0.1 * jax.random.normal(k3, (c,), jnp.float32),
        var=jnp.abs(1.0 + 0.1 * jax.random.normal(k4, (c,), jnp.float32)),
    )


def init_params(key, input_depth, depths):
    keys = jax.random.split(key, 4 + 5 * (len(depths) - 1))
    ki = iter(keys)
    p = {}
    # first_res_block: conv -> BN -> ReLU -> conv (reflect padding)
    p["c1_w"], p["c1_b"] = _conv_init(next(ki), 3, input_depth, depths[0])
    p["bn0"] = _bn_init(next(ki), depths[0])
    p["c2_w"], p["c2_b"] = _conv_init(next(ki), 3, depths[0], depths[0])
    # first_res_cov: 1x1 conv
    p["idt0_w"], p["idt0_b"] = _conv_init(next(ki), 1, input_depth, depths[0])
    # residual blocks
    p["blocks"] = []
    for i in range(len(depths) - 1):
        cin, cout = depths[i], depths[i + 1]
        bp = {}
        bp["bn_a"] = _bn_init(next(ki), cin)
        bp["ca_w"], bp["ca_b"] = _conv_init(next(ki), 3, cin, cout)   # stride 2
        bp["bn_b"] = _bn_init(next(ki), cout)
        bp["cb_w"], bp["cb_b"] = _conv_init(next(ki), 3, cout, cout)  # stride 1
        bp["idt_w"], bp["idt_b"] = _conv_init(next(ki), 3, cin, cout)  # stride 2
        p["blocks"].append(bp)
    return p


# ----------------------------------------------------------------------------
# Forward pass (mirrors ResUnetEncoder.forward)
# ----------------------------------------------------------------------------
def resunet_encoder(x, params, *, compute_dtype=jnp.float32,
                    max_flat_tile=1024):
    # Fused first stage: c1 conv + BN0 + ReLU, and 1x1 first_res_cov, off one
    # read of x.  x_idt stays in the flat layout of the c2 conv.
    act, xidt_flat = first_stage(x, params, compute_dtype=compute_dtype,
                                 max_flat_tile=max_flat_tile)
    # x_0 = first_res_block(x) + x_idt  (residual fused into the last conv)
    x0 = conv2d(act, params["c2_w"], params["c2_b"], stride=1, padding=1,
                padding_mode="reflect", residual_flat=xidt_flat,
                compute_dtype=compute_dtype, max_flat_tile=max_flat_tile)
    outs = [x0]
    for bp in params["blocks"]:
        xp_ = outs[-1]
        hn = (xp_.shape[1] + 2 - 3) // 2 + 1
        wn = (xp_.shape[2] + 2 - 3) // 2 + 1
        # Identity conv (3x3, stride 2) emitted directly in the flat layout of
        # the block's final conv so the residual add can be fused there.
        idt_flat = conv2d(xp_, bp["idt_w"], bp["idt_b"], stride=2, padding=1,
                          flat_out=True, out_wrow=wn + 2,
                          compute_dtype=compute_dtype,
                          max_flat_tile=max_flat_tile)
        a = bn_relu(xp_, **bp["bn_a"])                 # raw xp_ still needed
        a = conv2d(a, bp["ca_w"], bp["ca_b"], stride=2, padding=1,
                   bn=bp["bn_b"], relu=True,           # BN+ReLU fused epilogue
                   compute_dtype=compute_dtype, max_flat_tile=max_flat_tile)
        r = conv2d(a, bp["cb_w"], bp["cb_b"], stride=1, padding=1,
                   residual_flat=idt_flat,
                   compute_dtype=compute_dtype, max_flat_tile=max_flat_tile)
        assert r.shape == (xp_.shape[0], hn, wn, bp["cb_w"].shape[-1])
        outs.append(r)
    return tuple(outs)


# ----------------------------------------------------------------------------
# Pure-JAX reference (for correctness check)
# ----------------------------------------------------------------------------
def _ref_conv(x, w, b, stride=1, padding=1, padding_mode="zeros"):
    if padding > 0:
        mode = "reflect" if padding_mode == "reflect" else "constant"
        x = jnp.pad(x, ((0, 0), (padding,) * 2, (padding,) * 2, (0, 0)),
                    mode=mode)
    y = jax.lax.conv_general_dilated(
        x, w, window_strides=(stride, stride), padding="VALID",
        dimension_numbers=("NHWC", "HWIO", "NHWC"))
    return y + b


def _ref_bn_relu(x, gamma, beta, mean, var, eps=_BN_EPS):
    scale = gamma / jnp.sqrt(var + eps)
    shift = beta - mean * scale
    return jnp.maximum(x * scale + shift, 0.0)


def _ref_encoder(x, params):
    x_idt = _ref_conv(x, params["idt0_w"], params["idt0_b"], 1, 0)
    t = _ref_conv(x, params["c1_w"], params["c1_b"], 1, 1, "reflect")
    t = _ref_bn_relu(t, **params["bn0"])
    x0 = _ref_conv(t, params["c2_w"], params["c2_b"], 1, 1, "reflect") + x_idt
    outs = [x0]
    for bp in params["blocks"]:
        xp_ = outs[-1]
        idt = _ref_conv(xp_, bp["idt_w"], bp["idt_b"], 2, 1)
        a = _ref_bn_relu(xp_, **bp["bn_a"])
        a = _ref_conv(a, bp["ca_w"], bp["ca_b"], 2, 1)
        a = _ref_bn_relu(a, **bp["bn_b"])
        outs.append(_ref_conv(a, bp["cb_w"], bp["cb_b"], 1, 1) + idt)
    return tuple(outs)


# ----------------------------------------------------------------------------
if __name__ == "__main__":
    N, Cin, H, W = 2, 4, 16, 16
    depths = (8, 16, 32)

    key = jax.random.PRNGKey(0)
    x_nchw = jax.random.normal(key, (N, Cin, H, W), jnp.float32)  # PyTorch NCHW
    x = jnp.transpose(x_nchw, (0, 2, 3, 1))                       # -> NHWC

    params = init_params(jax.random.PRNGKey(1), Cin, depths)
    refs = _ref_encoder(x, params)

    # 1) f32, default tile budget.
    fwd = jax.jit(functools.partial(resunet_encoder, max_flat_tile=1024))
    outs = jax.block_until_ready(fwd(x, params))
    assert len(outs) == len(depths)
    for o, r in zip(outs, refs):
        assert o.shape == r.shape, (o.shape, r.shape)
        assert float(jnp.max(jnp.abs(o - r))) < 2e-3

    # 2) f32 with a small tile budget -> exercises the multi-tile spatial
    #    pipeline path (grid=(N, n_tiles>1) on the first convs).
    fwd_t = jax.jit(functools.partial(resunet_encoder, max_flat_tile=128))
    outs_t = jax.block_until_ready(fwd_t(x, params))
    for o, r in zip(outs_t, refs):
        assert float(jnp.max(jnp.abs(o - r))) < 2e-3

    # 3) bf16 MXU contraction (f32 accumulation), looser tolerance.
    fwd_bf = jax.jit(functools.partial(resunet_encoder,
                                       compute_dtype=jnp.bfloat16))
    outs_bf = jax.block_until_ready(fwd_bf(x, params))
    for o, r in zip(outs_bf, refs):
        assert float(jnp.max(jnp.abs(o - r))) < 2e-1

    print("KERNEL_OK")
</pallas_src>

<mosaic_0001>
module attributes {stable_mosaic.version = 11 : i64} {
  func.func @_conv_kernel(%arg0: i32, %arg1: i32, %arg2: memref<1x328x8xf32, #tpu.memory_space<vmem>>, %arg3: memref<72x8xf32, #tpu.memory_space<vmem>>, %arg4: memref<1x8xf32, #tpu.memory_space<vmem>>, %arg5: memref<1x8xf32, #tpu.memory_space<vmem>>, %arg6: memref<1x288x8xf32, #tpu.memory_space<vmem>>, %arg7: memref<1x288x8xf32, #tpu.memory_space<vmem>>) attributes {dimension_semantics = [#tpu.dimension_semantics<parallel>, #tpu.dimension_semantics<parallel>], iteration_bounds = array<i64: 2, 1>, scalar_prefetch = 0 : i64, scratch_operands = 0 : i64, tpu.core_type = #tpu.core_type<tc>, window_params = [{transform_indices = @transform_0, window_bounds = array<i64: 1, 328, 8>}, {pipeline_mode = #tpu.pipeline_mode<synchronous>, transform_indices = @transform_1, window_bounds = array<i64: 72, 8>}, {pipeline_mode = #tpu.pipeline_mode<synchronous>, transform_indices = @transform_2, window_bounds = array<i64: 1, 8>}, {pipeline_mode = #tpu.pipeline_mode<synchronous>, transform_indices = @transform_3, window_bounds = array<i64: 1, 8>}, {transform_indices = @transform_4, window_bounds = array<i64: 1, 288, 8>}, {transform_indices = @transform_5, window_bounds = array<i64: 1, 288, 8>}]} {
    %c288_i32 = arith.constant 288 : i32
    %0 = arith.muli %arg1, %c288_i32 : i32
    %1 = tpu.assume_multiple %0, 8 : i32
    %c0_i32 = arith.constant 0 : i32
    %2 = arith.addi %1, %c0_i32 : i32
    %c0 = arith.constant 0 : index
    %3 = arith.index_cast %2 : i32 to index
    %c0_0 = arith.constant 0 : index
    %4 = vector.load %arg2[%c0, %3, %c0_0] : memref<1x328x8xf32, #tpu.memory_space<vmem>>, vector<1x288x8xf32>
    %5 = vector.shape_cast %4 : vector<1x288x8xf32> to vector<288x8xf32>
    %c1_i32 = arith.constant 1 : i32
    %6 = arith.addi %1, %c1_i32 : i32
    %c0_1 = arith.constant 0 : index
    %7 = arith.index_cast %6 : i32 to index
    %c0_2 = arith.constant 0 : index
    %8 = vector.load %arg2[%c0_1, %7, %c0_2] : memref<1x328x8xf32, #tpu.memory_space<vmem>>, vector<1x288x8xf32>
    %9 = vector.shape_cast %8 : vector<1x288x8xf32> to vector<288x8xf32>
    %c2_i32 = arith.constant 2 : i32
    %10 = arith.addi %1, %c2_i32 : i32
    %c0_3 = arith.constant 0 : index
    %11 = arith.index_cast %10 : i32 to index
    %c0_4 = arith.constant 0 : index
    %12 = vector.load %arg2[%c0_3, %11, %c0_4] : memref<1x328x8xf32, #tpu.memory_space<vmem>>, vector<1x288x8xf32>
    %13 = vector.shape_cast %12 : vector<1x288x8xf32> to vector<288x8xf32>
    %c18_i32 = arith.constant 18 : i32
    %14 = arith.addi %1, %c18_i32 : i32
    %c0_5 = arith.constant 0 : index
    %15 = arith.index_cast %14 : i32 to index
    %c0_6 = arith.constant 0 : index
    %16 = vector.load %arg2[%c0_5, %15, %c0_6] : memref<1x328x8xf32, #tpu.memory_space<vmem>>, vector<1x288x8xf32>
    %17 = vector.shape_cast %16 : vector<1x288x8xf32> to vector<288x8xf32>
    %c19_i32 = arith.constant 19 : i32
    %18 = arith.addi %1, %c19_i32 : i32
    %c0_7 = arith.constant 0 : index
    %19 = arith.index_cast %18 : i32 to index
    %c0_8 = arith.constant 0 : index
    %20 = vector.load %arg2[%c0_7, %19, %c0_8] : memref<1x328x8xf32, #tpu.memory_space<vmem>>, vector<1x288x8xf32>
    %21 = vector.shape_cast %20 : vector<1x288x8xf32> to vector<288x8xf32>
    %c20_i32 = arith.constant 20 : i32
    %22 = arith.addi %1, %c20_i32 : i32
    %c0_9 = arith.constant 0 : index
    %23 = arith.index_cast %22 : i32 to index
    %c0_10 = arith.constant 0 : index
    %24 = vector.load %arg2[%c0_9, %23, %c0_10] : memref<1x328x8xf32, #tpu.memory_space<vmem>>, vector<1x288x8xf32>
    %25 = vector.shape_cast %24 : vector<1x288x8xf32> to vector<288x8xf32>
    %c36_i32 = arith.constant 36 : i32
    %26 = arith.addi %1, %c36_i32 : i32
    %c0_11 = arith.constant 0 : index
    %27 = arith.index_cast %26 : i32 to index
    %c0_12 = arith.constant 0 : index
    %28 = vector.load %arg2[%c0_11, %27, %c0_12] : memref<1x328x8xf32, #tpu.memory_space<vmem>>, vector<1x288x8xf32>
    %29 = vector.shape_cast %28 : vector<1x288x8xf32> to vector<288x8xf32>
    %c37_i32 = arith.constant 37 : i32
    %30 = arith.addi %1, %c37_i32 : i32
    %c0_13 = arith.constant 0 : index
    %31 = arith.index_cast %30 : i32 to index
    %c0_14 = arith.constant 0 : index
    %32 = vector.load %arg2[%c0_13, %31, %c0_14] : memref<1x328x8xf32, #tpu.memory_space<vmem>>, vector<1x288x8xf32>
    %33 = vector.shape_cast %32 : vector<1x288x8xf32> to vector<288x8xf32>
    %c38_i32 = arith.constant 38 : i32
    %34 = arith.addi %1, %c38_i32 : i32
    %c0_15 = arith.constant 0 : index
    %35 = arith.index_cast %34 : i32 to index
    %c0_16 = arith.constant 0 : index
    %36 = vector.load %arg2[%c0_15, %35, %c0_16] : memref<1x328x8xf32, #tpu.memory_space<vmem>>, vector<1x288x8xf32>
    %37 = vector.shape_cast %36 : vector<1x288x8xf32> to vector<288x8xf32>
    %38 = tpu.concatenate %5, %9, %13, %17, %21, %25, %29, %33, %37 in 1 : vector<288x8xf32>, vector<288x8xf32>, vector<288x8xf32>, vector<288x8xf32>, vector<288x8xf32>, vector<288x8xf32>, vector<288x8xf32>, vector<288x8xf32>, vector<288x8xf32> -> vector<288x72xf32>
    %c0_17 = arith.constant 0 : index
    %c0_18 = arith.constant 0 : index
    %39 = vector.load %arg3[%c0_17, %c0_18] : memref<72x8xf32, #tpu.memory_space<vmem>>, vector<72x8xf32>
    %cst = arith.constant dense<0.000000e+00> : vector<288x8xf32>
    %40 = tpu.matmul %38, %39, %cst {dimension_numbers = #tpu.dot_dimension_numbers<[1], [0], [0], [1], [0, 0, 1, 1], [], []>} : vector<288x72xf32>, vector<72x8xf32>, vector<288x8xf32> -> vector<288x8xf32>
    %c0_19 = arith.constant 0 : index
    %c0_20 = arith.constant 0 : index
    %41 = vector.load %arg4[%c0_19, %c0_20] : memref<1x8xf32, #tpu.memory_space<vmem>>, vector<1x8xf32>
    %42 = vector.broadcast %41 : vector<1x8xf32> to vector<288x8xf32>
    %43 = arith.mulf %40, %42 : vector<288x8xf32>
    %c0_21 = arith.constant 0 : index
    %c0_22 = arith.constant 0 : index
    %44 = vector.load %arg5[%c0_21, %c0_22] : memref<1x8xf32, #tpu.memory_space<vmem>>, vector<1x8xf32>
    %45 = vector.broadcast %44 : vector<1x8xf32> to vector<288x8xf32>
    %46 = arith.addf %43, %45 : vector<288x8xf32>
    %c0_23 = arith.constant 0 : index
    %c0_24 = arith.constant 0 : index
    %c0_25 = arith.constant 0 : index
    %47 = vector.load %arg6[%c0_23, %c0_24, %c0_25] : memref<1x288x8xf32, #tpu.memory_space<vmem>>, vector<1x288x8xf32>
    %48 = vector.shape_cast %47 : vector<1x288x8xf32> to vector<288x8xf32>
    %49 = arith.addf %46, %48 : vector<288x8xf32>
    %c0_26 = arith.constant 0 : index
    %c0_27 = arith.constant 0 : index
    %c0_28 = arith.constant 0 : index
    %50 = vector.load %arg7[%c0_26, %c0_27, %c0_28] : memref<1x288x8xf32, #tpu.memory_space<vmem>>, vector<1x288x8xf32>
    %51 = vector.shape_cast %50 : vector<1x288x8xf32> to vector<288x8xf32>
    %52 = vector.shape_cast %49 : vector<288x8xf32> to vector<1x288x8xf32>
    tpu.vector_store %arg7[%c0_26, %c0_27, %c0_28], %52 {strides = array<i32>} : memref<1x288x8xf32, #tpu.memory_space<vmem>>, vector<1x288x8xf32>,
    return
  }
  func.func @transform_0(%arg0: i32, %arg1: i32) -> (i32, i32, i32) {
    %c0_i32 = arith.constant 0 : i32
    %c0_i32_0 = arith.constant 0 : i32
    %c0_i32_1 = arith.constant 0 : i32
    return %arg0, %c0_i32, %c0_i32_0 : i32, i32, i32
  }
  func.func @transform_1(%arg0: i32, %arg1: i32) -> (i32, i32) {
    %c0_i32 = arith.constant 0 : i32
    %c0_i32_0 = arith.constant 0 : i32
    %c0_i32_1 = arith.constant 0 : i32
    return %c0_i32, %c0_i32_0 : i32, i32
  }
  func.func @transform_2(%arg0: i32, %arg1: i32) -> (i32, i32) {
    %c0_i32 = arith.constant 0 : i32
    %c0_i32_0 = arith.constant 0 : i32
    %c0_i32_1 = arith.constant 0 : i32
    return %c0_i32, %c0_i32_0 : i32, i32
  }
  func.func @transform_3(%arg0: i32, %arg1: i32) -> (i32, i32) {
    %c0_i32 = arith.constant 0 : i32
    %c0_i32_0 = arith.constant 0 : i32
    %c0_i32_1 = arith.constant 0 : i32
    return %c0_i32, %c0_i32_0 : i32, i32
  }
  func.func @transform_4(%arg0: i32, %arg1: i32) -> (i32, i32, i32) {
    %c0_i32 = arith.constant 0 : i32
    %c0_i32_0 = arith.constant 0 : i32
    return %arg0, %arg1, %c0_i32 : i32, i32, i32
  }
  func.func @transform_5(%arg0: i32, %arg1: i32) -> (i32, i32, i32) {
    %c0_i32 = arith.constant 0 : i32
    %c0_i32_0 = arith.constant 0 : i32
    return %arg0, %arg1, %c0_i32 : i32, i32, i32
  }
}

module attributes {stable_mosaic.version = 11 : i64} {
  func.func @_dual_conv_kernel(%arg0: i32, %arg1: i32, %arg2: memref<1x328x4xf32, #tpu.memory_space<vmem>>, %arg3: memref<36x8xf32, #tpu.memory_space<vmem>>, %arg4: memref<1x8xf32, #tpu.memory_space<vmem>>, %arg5: memref<1x8xf32, #tpu.memory_space<vmem>>, %arg6: memref<4x8xf32, #tpu.memory_space<vmem>>, %arg7: memref<1x8xf32, #tpu.memory_space<vmem>>, %arg8: memref<1x8xf32, #tpu.memory_space<vmem>>, %arg9: memref<1x288x8xf32, #tpu.memory_space<vmem>>, %arg10: memref<1x288x8xf32, #tpu.memory_space<vmem>>) attributes {dimension_semantics = [#tpu.dimension_semantics<parallel>, #tpu.dimension_semantics<parallel>], iteration_bounds = array<i64: 2, 1>, scalar_prefetch = 0 : i64, scratch_operands = 0 : i64, tpu.core_type = #tpu.core_type<tc>, window_params = [{transform_indices = @transform_0, window_bounds = array<i64: 1, 328, 4>}, {pipeline_mode = #tpu.pipeline_mode<synchronous>, transform_indices = @transform_1, window_bounds = array<i64: 36, 8>}, {pipeline_mode = #tpu.pipeline_mode<synchronous>, transform_indices = @transform_2, window_bounds = array<i64: 1, 8>}, {pipeline_mode = #tpu.pipeline_mode<synchronous>, transform_indices = @transform_3, window_bounds = array<i64: 1, 8>}, {pipeline_mode = #tpu.pipeline_mode<synchronous>, transform_indices = @transform_4, window_bounds = array<i64: 4, 8>}, {pipeline_mode = #tpu.pipeline_mode<synchronous>, transform_indices = @transform_5, window_bounds = array<i64: 1, 8>}, {pipeline_mode = #tpu.pipeline_mode<synchronous>, transform_indices = @transform_6, window_bounds = array<i64: 1, 8>}, {transform_indices = @transform_7, window_bounds = array<i64: 1, 288, 8>}, {transform_indices = @transform_8, window_bounds = array<i64: 1, 288, 8>}]} {
    %c288_i32 = arith.constant 288 : i32
    %0 = arith.muli %arg1, %c288_i32 : i32
    %1 = tpu.assume_multiple %0, 8 : i32
    %c0_i32 = arith.constant 0 : i32
    %2 = arith.addi %1, %c0_i32 : i32
    %c0 = arith.constant 0 : index
    %3 = arith.index_cast %2 : i32 to index
    %c0_0 = arith.constant 0 : index
    %4 = vector.load %arg2[%c0, %3, %c0_0] : memref<1x328x4xf32, #tpu.memory_space<vmem>>, vector<1x288x4xf32>
    %5 = vector.shape_cast %4 : vector<1x288x4xf32> to vector<288x4xf32>
    %c1_i32 = arith.constant 1 : i32
    %6 = arith.addi %1, %c1_i32 : i32
    %c0_1 = arith.constant 0 : index
    %7 = arith.index_cast %6 : i32 to index
    %c0_2 = arith.constant 0 : index
    %8 = vector.load %arg2[%c0_1, %7, %c0_2] : memref<1x328x4xf32, #tpu.memory_space<vmem>>, vector<1x288x4xf32>
    %9 = vector.shape_cast %8 : vector<1x288x4xf32> to vector<288x4xf32>
    %c2_i32 = arith.constant 2 : i32
    %10 = arith.addi %1, %c2_i32 : i32
    %c0_3 = arith.constant 0 : index
    %11 = arith.index_cast %10 : i32 to index
    %c0_4 = arith.constant 0 : index
    %12 = vector.load %arg2[%c0_3, %11, %c0_4] : memref<1x328x4xf32, #tpu.memory_space<vmem>>, vector<1x288x4xf32>
    %13 = vector.shape_cast %12 : vector<1x288x4xf32> to vector<288x4xf32>
    %c18_i32 = arith.constant 18 : i32
    %14 = arith.addi %1, %c18_i32 : i32
    %c0_5 = arith.constant 0 : index
    %15 = arith.index_cast %14 : i32 to index
    %c0_6 = arith.constant 0 : index
    %16 = vector.load %arg2[%c0_5, %15, %c0_6] : memref<1x328x4xf32, #tpu.memory_space<vmem>>, vector<1x288x4xf32>
    %17 = vector.shape_cast %16 : vector<1x288x4xf32> to vector<288x4xf32>
    %c19_i32 = arith.constant 19 : i32
    %18 = arith.addi %1, %c19_i32 : i32
    %c0_7 = arith.constant 0 : index
    %19 = arith.index_cast %18 : i32 to index
    %c0_8 = arith.constant 0 : index
    %20 = vector.load %arg2[%c0_7, %19, %c0_8] : memref<1x328x4xf32, #tpu.memory_space<vmem>>, vector<1x288x4xf32>
    %21 = vector.shape_cast %20 : vector<1x288x4xf32> to vector<288x4xf32>
    %c20_i32 = arith.constant 20 : i32
    %22 = arith.addi %1, %c20_i32 : i32
    %c0_9 = arith.constant 0 : index
    %23 = arith.index_cast %22 : i32 to index
    %c0_10 = arith.constant 0 : index
    %24 = vector.load %arg2[%c0_9, %23, %c0_10] : memref<1x328x4xf32, #tpu.memory_space<vmem>>, vector<1x288x4xf32>
    %25 = vector.shape_cast %24 : vector<1x288x4xf32> to vector<288x4xf32>
    %c36_i32 = arith.constant 36 : i32
    %26 = arith.addi %1, %c36_i32 : i32
    %c0_11 = arith.constant 0 : index
    %27 = arith.index_cast %26 : i32 to index
    %c0_12 = arith.constant 0 : index
    %28 = vector.load %arg2[%c0_11, %27, %c0_12] : memref<1x328x4xf32, #tpu.memory_space<vmem>>, vector<1x288x4xf32>
    %29 = vector.shape_cast %28 : vector<1x288x4xf32> to vector<288x4xf32>
    %c37_i32 = arith.constant 37 : i32
    %30 = arith.addi %1, %c37_i32 : i32
    %c0_13 = arith.constant 0 : index
    %31 = arith.index_cast %30 : i32 to index
    %c0_14 = arith.constant 0 : index
    %32 = vector.load %arg2[%c0_13, %31, %c0_14] : memref<1x328x4xf32, #tpu.memory_space<vmem>>, vector<1x288x4xf32>
    %33 = vector.shape_cast %32 : vector<1x288x4xf32> to vector<288x4xf32>
    %c38_i32 = arith.constant 38 : i32
    %34 = arith.addi %1, %c38_i32 : i32
    %c0_15 = arith.constant 0 : index
    %35 = arith.index_cast %34 : i32 to index
    %c0_16 = arith.constant 0 : index
    %36 = vector.load %arg2[%c0_15, %35, %c0_16] : memref<1x328x4xf32, #tpu.memory_space<vmem>>, vector<1x288x4xf32>
    %37 = vector.shape_cast %36 : vector<1x288x4xf32> to vector<288x4xf32>
    %38 = tpu.concatenate %5, %9, %13, %17, %21, %25, %29, %33, %37 in 1 : vector<288x4xf32>, vector<288x4xf32>, vector<288x4xf32>, vector<288x4xf32>, vector<288x4xf32>, vector<288x4xf32>, vector<288x4xf32>, vector<288x4xf32>, vector<288x4xf32> -> vector<288x36xf32>
    %c0_17 = arith.constant 0 : index
    %c0_18 = arith.constant 0 : index
    %39 = vector.load %arg3[%c0_17, %c0_18] : memref<36x8xf32, #tpu.memory_space<vmem>>, vector<36x8xf32>
    %cst = arith.constant dense<0.000000e+00> : vector<288x8xf32>
    %40 = tpu.matmul %38, %39, %cst {dimension_numbers = #tpu.dot_dimension_numbers<[1], [0], [0], [1], [0, 0, 1, 1], [], []>} : vector<288x36xf32>, vector<36x8xf32>, vector<288x8xf32> -> vector<288x8xf32>
    %c0_19 = arith.constant 0 : index
    %c0_20 = arith.constant 0 : index
    %41 = vector.load %arg4[%c0_19, %c0_20] : memref<1x8xf32, #tpu.memory_space<vmem>>, vector<1x8xf32>
    %42 = vector.broadcast %41 : vector<1x8xf32> to vector<288x8xf32>
    %43 = arith.mulf %40, %42 : vector<288x8xf32>
    %c0_21 = arith.constant 0 : index
    %c0_22 = arith.constant 0 : index
    %44 = vector.load %arg5[%c0_21, %c0_22] : memref<1x8xf32, #tpu.memory_space<vmem>>, vector<1x8xf32>
    %45 = vector.broadcast %44 : vector<1x8xf32> to vector<288x8xf32>
    %46 = arith.addf %43, %45 : vector<288x8xf32>
    %cst_23 = arith.constant 0.000000e+00 : f32
    %47 = vector.broadcast %cst_23 : f32 to vector<288x8xf32>
    %48 = arith.maximumf %46, %47 : vector<288x8xf32>
    %c0_24 = arith.constant 0 : index
    %c0_25 = arith.constant 0 : index
    %c0_26 = arith.constant 0 : index
    %49 = vector.load %arg9[%c0_24, %c0_25, %c0_26] : memref<1x288x8xf32, #tpu.memory_space<vmem>>, vector<1x288x8xf32>
    %50 = vector.shape_cast %49 : vector<1x288x8xf32> to vector<288x8xf32>
    %51 = vector.shape_cast %48 : vector<288x8xf32> to vector<1x288x8xf32>
    tpu.vector_store %arg9[%c0_24, %c0_25, %c0_26], %51 {strides = array<i32>} : memref<1x288x8xf32, #tpu.memory_space<vmem>>, vector<1x288x8xf32>,
    %c0_27 = arith.constant 0 : index
    %c0_28 = arith.constant 0 : index
    %52 = vector.load %arg6[%c0_27, %c0_28] : memref<4x8xf32, #tpu.memory_space<vmem>>, vector<4x8xf32>
    %cst_29 = arith.constant dense<0.000000e+00> : vector<288x8xf32>
    %53 = tpu.matmul %21, %52, %cst_29 {dimension_numbers = #tpu.dot_dimension_numbers<[1], [0], [0], [1], [0, 0, 1, 1], [], []>} : vector<288x4xf32>, vector<4x8xf32>, vector<288x8xf32> -> vector<288x8xf32>
    %c0_30 = arith.constant 0 : index
    %c0_31 = arith.constant 0 : index
    %54 = vector.load %arg7[%c0_30, %c0_31] : memref<1x8xf32, #tpu.memory_space<vmem>>, vector<1x8xf32>
    %55 = vector.broadcast %54 : vector<1x8xf32> to vector<288x8xf32>
    %56 = arith.mulf %53, %55 : vector<288x8xf32>
    %c0_32 = arith.constant 0 : index
    %c0_33 = arith.constant 0 : index
    %57 = vector.load %arg8[%c0_32, %c0_33] : memref<1x8xf32, #tpu.memory_space<vmem>>, vector<1x8xf32>
    %58 = vector.broadcast %57 : vector<1x8xf32> to vector<288x8xf32>
    %59 = arith.addf %56, %58 : vector<288x8xf32>
    %c0_34 = arith.constant 0 : index
    %c0_35 = arith.constant 0 : index
    %c0_36 = arith.constant 0 : index
    %60 = vector.load %arg10[%c0_34, %c0_35, %c0_36] : memref<1x288x8xf32, #tpu.memory_space<vmem>>, vector<1x288x8xf32>
    %61 = vector.shape_cast %60 : vector<1x288x8xf32> to vector<288x8xf32>
    %62 = vector.shape_cast %59 : vector<288x8xf32> to vector<1x288x8xf32>
    tpu.vector_store %arg10[%c0_34, %c0_35, %c0_36], %62 {strides = array<i32>} : memref<1x288x8xf32, #tpu.memory_space<vmem>>, vector<1x288x8xf32>,
    return
  }
  func.func @transform_0(%arg0: i32, %arg1: i32) -> (i32, i32, i32) {
    %c0_i32 = arith.constant 0 : i32
    %c0_i32_0 = arith.constant 0 : i32
    %c0_i32_1 = arith.constant 0 : i32
    return %arg0, %c0_i32, %c0_i32_0 : i32, i32, i32
  }
  func.func @transform_1(%arg0: i32, %arg1: i32) -> (i32, i32) {
    %c0_i32 = arith.constant 0 : i32
    %c0_i32_0 = arith.constant 0 : i32
    %c0_i32_1 = arith.constant 0 : i32
    return %c0_i32, %c0_i32_0 : i32, i32
  }
  func.func @transform_2(%arg0: i32, %arg1: i32) -> (i32, i32) {
    %c0_i32 = arith.constant 0 : i32
    %c0_i32_0 = arith.constant 0 : i32
    %c0_i32_1 = arith.constant 0 : i32
    return %c0_i32, %c0_i32_0 : i32, i32
  }
  func.func @transform_3(%arg0: i32, %arg1: i32) -> (i32, i32) {
    %c0_i32 = arith.constant 0 : i32
    %c0_i32_0 = arith.constant 0 : i32
    %c0_i32_1 = arith.constant 0 : i32
    return %c0_i32, %c0_i32_0 : i32, i32
  }
  func.func @transform_4(%arg0: i32, %arg1: i32) -> (i32, i32) {
    %c0_i32 = arith.constant 0 : i32
    %c0_i32_0 = arith.constant 0 : i32
    %c0_i32_1 = arith.constant 0 : i32
    return %c0_i32, %c0_i32_0 : i32, i32
  }
  func.func @transform_5(%arg0: i32, %arg1: i32) -> (i32, i32) {
    %c0_i32 = arith.constant 0 : i32
    %c0_i32_0 = arith.constant 0 : i32
    %c0_i32_1 = arith.constant 0 : i32
    return %c0_i32, %c0_i32_0 : i32, i32
  }
  func.func @transform_6(%arg0: i32, %arg1: i32) -> (i32, i32) {
    %c0_i32 = arith.constant 0 : i32
    %c0_i32_0 = arith.constant 0 : i32
    %c0_i32_1 = arith.constant 0 : i32
    return %c0_i32, %c0_i32_0 : i32, i32
  }
  func.func @transform_7(%arg0: i32, %arg1: i32) -> (i32, i32, i32) {
    %c0_i32 = arith.constant 0 : i32
    %c0_i32_0 = arith.constant 0 : i32
    return %arg0, %arg1, %c0_i32 : i32, i32, i32
  }
  func.func @transform_8(%arg0: i32, %arg1: i32) -> (i32, i32, i32) {
    %c0_i32 = arith.constant 0 : i32
    %c0_i32_0 = arith.constant 0 : i32
    return %arg0, %arg1, %c0_i32 : i32, i32, i32
  }
}

module attributes {stable_mosaic.version = 11 : i64} {
  func.func @_bn_relu_kernel(%arg0: i32, %arg1: i32, %arg2: memref<1x8x128xf32, #tpu.memory_space<vmem>>, %arg3: memref<1x128xf32, #tpu.memory_space<vmem>>, %arg4: memref<1x128xf32, #tpu.memory_space<vmem>>, %arg5: memref<1x8x128xf32, #tpu.memory_space<vmem>>) attributes {dimension_semantics = [#tpu.dimension_semantics<parallel>, #tpu.dimension_semantics<parallel>], iteration_bounds = array<i64: 2, 2>, scalar_prefetch = 0 : i64, scratch_operands = 0 : i64, tpu.core_type = #tpu.core_type<tc>, window_params = [{transform_indices = @transform_0, window_bounds = array<i64: 1, 8, 128>}, {pipeline_mode = #tpu.pipeline_mode<synchronous>, transform_indices = @transform_1, window_bounds = array<i64: 1, 128>}, {pipeline_mode = #tpu.pipeline_mode<synchronous>, transform_indices = @transform_2, window_bounds = array<i64: 1, 128>}, {transform_indices = @transform_3, window_bounds = array<i64: 1, 8, 128>}]} {
    %c0 = arith.constant 0 : index
    %c0_0 = arith.constant 0 : index
    %c0_1 = arith.constant 0 : index
    %0 = vector.load %arg2[%c0, %c0_0, %c0_1] : memref<1x8x128xf32, #tpu.memory_space<vmem>>, vector<1x8x128xf32>
    %c0_2 = arith.constant 0 : index
    %c0_3 = arith.constant 0 : index
    %1 = vector.load %arg3[%c0_2, %c0_3] : memref<1x128xf32, #tpu.memory_space<vmem>>, vector<1x128xf32>
    %2 = vector.shape_cast %1 : vector<1x128xf32> to vector<1x1x128xf32>
    %3 = vector.broadcast %2 : vector<1x1x128xf32> to vector<1x8x128xf32>
    %4 = arith.mulf %0, %3 : vector<1x8x128xf32>
    %c0_4 = arith.constant 0 : index
    %c0_5 = arith.constant 0 : index
    %5 = vector.load %arg4[%c0_4, %c0_5] : memref<1x128xf32, #tpu.memory_space<vmem>>, vector<1x128xf32>
    %6 = vector.shape_cast %5 : vector<1x128xf32> to vector<1x1x128xf32>
    %7 = vector.broadcast %6 : vector<1x1x128xf32> to vector<1x8x128xf32>
    %8 = arith.addf %4, %7 : vector<1x8x128xf32>
    %cst = arith.constant 0.000000e+00 : f32
    %9 = vector.broadcast %cst : f32 to vector<1x8x128xf32>
    %10 = arith.maximumf %8, %9 : vector<1x8x128xf32>
    %c0_6 = arith.constant 0 : index
    %c0_7 = arith.constant 0 : index
    %c0_8 = arith.constant 0 : index
    %11 = vector.load %arg5[%c0_6, %c0_7, %c0_8] : memref<1x8x128xf32, #tpu.memory_space<vmem>>, vector<1x8x128xf32>
    tpu.vector_store %arg5[%c0_6, %c0_7, %c0_8], %10 {strides = array<i32>} : memref<1x8x128xf32, #tpu.memory_space<vmem>>, vector<1x8x128xf32>,
    return
  }
  func.func @transform_0(%arg0: i32, %arg1: i32) -> (i32, i32, i32) {
    %c0_i32 = arith.constant 0 : i32
    %c0_i32_0 = arith.constant 0 : i32
    return %arg0, %arg1, %c0_i32 : i32, i32, i32
  }
  func.func @transform_1(%arg0: i32, %arg1: i32) -> (i32, i32) {
    %c0_i32 = arith.constant 0 : i32
    %c0_i32_0 = arith.constant 0 : i32
    %c0_i32_1 = arith.constant 0 : i32
    return %c0_i32, %c0_i32_0 : i32, i32
  }
  func.func @transform_2(%arg0: i32, %arg1: i32) -> (i32, i32) {
    %c0_i32 = arith.constant 0 : i32
    %c0_i32_0 = arith.constant 0 : i32
    %c0_i32_1 = arith.constant 0 : i32
    return %c0_i32, %c0_i32_0 : i32, i32
  }
  func.func @transform_3(%arg0: i32, %arg1: i32) -> (i32, i32, i32) {
    %c0_i32 = arith.constant 0 : i32
    %c0_i32_0 = arith.constant 0 : i32
    return %arg0, %arg1, %c0_i32 : i32, i32, i32
  }
}

module attributes {stable_mosaic.version = 11 : i64} {
  func.func @_conv_kernel(%arg0: i32, %arg1: i32, %arg2: memref<1x88x32xf32, #tpu.memory_space<vmem>>, %arg3: memref<128x16xf32, #tpu.memory_space<vmem>>, %arg4: memref<1x16xf32, #tpu.memory_space<vmem>>, %arg5: memref<1x16xf32, #tpu.memory_space<vmem>>, %arg6: memref<1x72x16xf32, #tpu.memory_space<vmem>>) attributes {dimension_semantics = [#tpu.dimension_semantics<parallel>, #tpu.dimension_semantics<parallel>], iteration_bounds = array<i64: 2, 1>, scalar_prefetch = 0 : i64, scratch_operands = 0 : i64, tpu.core_type = #tpu.core_type<tc>, window_params = [{transform_indices = @transform_0, window_bounds = array<i64: 1, 88, 32>}, {pipeline_mode = #tpu.pipeline_mode<synchronous>, transform_indices = @transform_1, window_bounds = array<i64: 128, 16>}, {pipeline_mode = #tpu.pipeline_mode<synchronous>, transform_indices = @transform_2, window_bounds = array<i64: 1, 16>}, {pipeline_mode = #tpu.pipeline_mode<synchronous>, transform_indices = @transform_3, window_bounds = array<i64: 1, 16>}, {transform_indices = @transform_4, window_bounds = array<i64: 1, 72, 16>}]} {
    %c72_i32 = arith.constant 72 : i32
    %0 = arith.muli %arg1, %c72_i32 : i32
    %1 = tpu.assume_multiple %0, 8 : i32
    %c0_i32 = arith.constant 0 : i32
    %2 = arith.addi %1, %c0_i32 : i32
    %c0 = arith.constant 0 : index
    %3 = arith.index_cast %2 : i32 to index
    %c0_0 = arith.constant 0 : index
    %4 = vector.load %arg2[%c0, %3, %c0_0] : memref<1x88x32xf32, #tpu.memory_space<vmem>>, vector<1x72x32xf32>
    %5 = vector.shape_cast %4 : vector<1x72x32xf32> to vector<72x32xf32>
    %c1_i32 = arith.constant 1 : i32
    %6 = arith.addi %1, %c1_i32 : i32
    %c0_1 = arith.constant 0 : index
    %7 = arith.index_cast %6 : i32 to index
    %c0_2 = arith.constant 0 : index
    %8 = vector.load %arg2[%c0_1, %7, %c0_2] : memref<1x88x32xf32, #tpu.memory_space<vmem>>, vector<1x72x32xf32>
    %9 = vector.shape_cast %8 : vector<1x72x32xf32> to vector<72x32xf32>
    %c9_i32 = arith.constant 9 : i32
    %10 = arith.addi %1, %c9_i32 : i32
    %c0_3 = arith.constant 0 : index
    %11 = arith.index_cast %10 : i32 to index
    %c0_4 = arith.constant 0 : index
    %12 = vector.load %arg2[%c0_3, %11, %c0_4] : memref<1x88x32xf32, #tpu.memory_space<vmem>>, vector<1x72x32xf32>
    %13 = vector.shape_cast %12 : vector<1x72x32xf32> to vector<72x32xf32>
    %c10_i32 = arith.constant 10 : i32
    %14 = arith.addi %1, %c10_i32 : i32
    %c0_5 = arith.constant 0 : index
    %15 = arith.index_cast %14 : i32 to index
    %c0_6 = arith.constant 0 : index
    %16 = vector.load %arg2[%c0_5, %15, %c0_6] : memref<1x88x32xf32, #tpu.memory_space<vmem>>, vector<1x72x32xf32>
    %17 = vector.shape_cast %16 : vector<1x72x32xf32> to vector<72x32xf32>
    %18 = tpu.concatenate %5, %9, %13, %17 in 1 : vector<72x32xf32>, vector<72x32xf32>, vector<72x32xf32>, vector<72x32xf32> -> vector<72x128xf32>
    %c0_7 = arith.constant 0 : index
    %c0_8 = arith.constant 0 : index
    %19 = vector.load %arg3[%c0_7, %c0_8] : memref<128x16xf32, #tpu.memory_space<vmem>>, vector<128x16xf32>
    %cst = arith.constant dense<0.000000e+00> : vector<72x16xf32>
    %20 = tpu.matmul %18, %19, %cst {dimension_numbers = #tpu.dot_dimension_numbers<[1], [0], [0], [1], [0, 0, 1, 1], [], []>} : vector<72x128xf32>, vector<128x16xf32>, vector<72x16xf32> -> vector<72x16xf32>
    %c0_9 = arith.constant 0 : index
    %c0_10 = arith.constant 0 : index
    %21 = vector.load %arg4[%c0_9, %c0_10] : memref<1x16xf32, #tpu.memory_space<vmem>>, vector<1x16xf32>
    %22 = vector.broadcast %21 : vector<1x16xf32> to vector<72x16xf32>
    %23 = arith.mulf %20, %22 : vector<72x16xf32>
    %c0_11 = arith.constant 0 : index
    %c0_12 = arith.constant 0 : index
    %24 = vector.load %arg5[%c0_11, %c0_12] : memref<1x16xf32, #tpu.memory_space<vmem>>, vector<1x16xf32>
    %25 = vector.broadcast %24 : vector<1x16xf32> to vector<72x16xf32>
    %26 = arith.addf %23, %25 : vector<72x16xf32>
    %cst_13 = arith.constant 0.000000e+00 : f32
    %27 = vector.broadcast %cst_13 : f32 to vector<72x16xf32>
    %28 = arith.maximumf %26, %27 : vector<72x16xf32>
    %c0_14 = arith.constant 0 : index
    %c0_15 = arith.constant 0 : index
    %c0_16 = arith.constant 0 : index
    %29 = vector.load %arg6[%c0_14, %c0_15, %c0_16] : memref<1x72x16xf32, #tpu.memory_space<vmem>>, vector<1x72x16xf32>
    %30 = vector.shape_cast %29 : vector<1x72x16xf32> to vector<72x16xf32>
    %31 = vector.shape_cast %28 : vector<72x16xf32> to vector<1x72x16xf32>
    tpu.vector_store %arg6[%c0_14, %c0_15, %c0_16], %31 {strides = array<i32>} : memref<1x72x16xf32, #tpu.memory_space<vmem>>, vector<1x72x16xf32>,
    return
  }
  func.func @transform_0(%arg0: i32, %arg1: i32) -> (i32, i32, i32) {
    %c0_i32 = arith.constant 0 : i32
    %c0_i32_0 = arith.constant 0 : i32
    %c0_i32_1 = arith.constant 0 : i32
    return %arg0, %c0_i32, %c0_i32_0 : i32, i32, i32
  }
  func.func @transform_1(%arg0: i32, %arg1: i32) -> (i32, i32) {
    %c0_i32 = arith.constant 0 : i32
    %c0_i32_0 = arith.constant 0 : i32
    %c0_i32_1 = arith.constant 0 : i32
    return %c0_i32, %c0_i32_0 : i32, i32
  }
  func.func @transform_2(%arg0: i32, %arg1: i32) -> (i32, i32) {
    %c0_i32 = arith.constant 0 : i32
    %c0_i32_0 = arith.constant 0 : i32
    %c0_i32_1 = arith.constant 0 : i32
    return %c0_i32, %c0_i32_0 : i32, i32
  }
  func.func @transform_3(%arg0: i32, %arg1: i32) -> (i32, i32) {
    %c0_i32 = arith.constant 0 : i32
    %c0_i32_0 = arith.constant 0 : i32
    %c0_i32_1 = arith.constant 0 : i32
    return %c0_i32, %c0_i32_0 : i32, i32
  }
  func.func @transform_4(%arg0: i32, %arg1: i32) -> (i32, i32, i32) {
    %c0_i32 = arith.constant 0 : i32
    %c0_i32_0 = arith.constant 0 : i32
    return %arg0, %arg1, %c0_i32 : i32, i32, i32
  }
}

module attributes {stable_mosaic.version = 11 : i64} {
  func.func @_conv_kernel(%arg0: i32, %arg1: i32, %arg2: memref<1x104x16xf32, #tpu.memory_space<vmem>>, %arg3: memref<144x16xf32, #tpu.memory_space<vmem>>, %arg4: memref<1x16xf32, #tpu.memory_space<vmem>>, %arg5: memref<1x16xf32, #tpu.memory_space<vmem>>, %arg6: memref<1x80x16xf32, #tpu.memory_space<vmem>>, %arg7: memref<1x80x16xf32, #tpu.memory_space<vmem>>) attributes {dimension_semantics = [#tpu.dimension_semantics<parallel>, #tpu.dimension_semantics<parallel>], iteration_bounds = array<i64: 2, 1>, scalar_prefetch = 0 : i64, scratch_operands = 0 : i64, tpu.core_type = #tpu.core_type<tc>, window_params = [{transform_indices = @transform_0, window_bounds = array<i64: 1, 104, 16>}, {pipeline_mode = #tpu.pipeline_mode<synchronous>, transform_indices = @transform_1, window_bounds = array<i64: 144, 16>}, {pipeline_mode = #tpu.pipeline_mode<synchronous>, transform_indices = @transform_2, window_bounds = array<i64: 1, 16>}, {pipeline_mode = #tpu.pipeline_mode<synchronous>, transform_indices = @transform_3, window_bounds = array<i64: 1, 16>}, {transform_indices = @transform_4, window_bounds = array<i64: 1, 80, 16>}, {transform_indices = @transform_5, window_bounds = array<i64: 1, 80, 16>}]} {
    %c80_i32 = arith.constant 80 : i32
    %0 = arith.muli %arg1, %c80_i32 : i32
    %1 = tpu.assume_multiple %0, 8 : i32
    %c0_i32 = arith.constant 0 : i32
    %2 = arith.addi %1, %c0_i32 : i32
    %c0 = arith.constant 0 : index
    %3 = arith.index_cast %2 : i32 to index
    %c0_0 = arith.constant 0 : index
    %4 = vector.load %arg2[%c0, %3, %c0_0] : memref<1x104x16xf32, #tpu.memory_space<vmem>>, vector<1x80x16xf32>
    %5 = vector.shape_cast %4 : vector<1x80x16xf32> to vector<80x16xf32>
    %c1_i32 = arith.constant 1 : i32
    %6 = arith.addi %1, %c1_i32 : i32
    %c0_1 = arith.constant 0 : index
    %7 = arith.index_cast %6 : i32 to index
    %c0_2 = arith.constant 0 : index
    %8 = vector.load %arg2[%c0_1, %7, %c0_2] : memref<1x104x16xf32, #tpu.memory_space<vmem>>, vector<1x80x16xf32>
    %9 = vector.shape_cast %8 : vector<1x80x16xf32> to vector<80x16xf32>
    %c2_i32 = arith.constant 2 : i32
    %10 = arith.addi %1, %c2_i32 : i32
    %c0_3 = arith.constant 0 : index
    %11 = arith.index_cast %10 : i32 to index
    %c0_4 = arith.constant 0 : index
    %12 = vector.load %arg2[%c0_3, %11, %c0_4] : memref<1x104x16xf32, #tpu.memory_space<vmem>>, vector<1x80x16xf32>
    %13 = vector.shape_cast %12 : vector<1x80x16xf32> to vector<80x16xf32>
    %c10_i32 = arith.constant 10 : i32
    %14 = arith.addi %1, %c10_i32 : i32
    %c0_5 = arith.constant 0 : index
    %15 = arith.index_cast %14 : i32 to index
    %c0_6 = arith.constant 0 : index
    %16 = vector.load %arg2[%c0_5, %15, %c0_6] : memref<1x104x16xf32, #tpu.memory_space<vmem>>, vector<1x80x16xf32>
    %17 = vector.shape_cast %16 : vector<1x80x16xf32> to vector<80x16xf32>
    %c11_i32 = arith.constant 11 : i32
    %18 = arith.addi %1, %c11_i32 : i32
    %c0_7 = arith.constant 0 : index
    %19 = arith.index_cast %18 : i32 to index
    %c0_8 = arith.constant 0 : index
    %20 = vector.load %arg2[%c0_7, %19, %c0_8] : memref<1x104x16xf32, #tpu.memory_space<vmem>>, vector<1x80x16xf32>
    %21 = vector.shape_cast %20 : vector<1x80x16xf32> to vector<80x16xf32>
    %c12_i32 = arith.constant 12 : i32
    %22 = arith.addi %1, %c12_i32 : i32
    %c0_9 = arith.constant 0 : index
    %23 = arith.index_cast %22 : i32 to index
    %c0_10 = arith.constant 0 : index
    %24 = vector.load %arg2[%c0_9, %23, %c0_10] : memref<1x104x16xf32, #tpu.memory_space<vmem>>, vector<1x80x16xf32>
    %25 = vector.shape_cast %24 : vector<1x80x16xf32> to vector<80x16xf32>
    %c20_i32 = arith.constant 20 : i32
    %26 = arith.addi %1, %c20_i32 : i32
    %c0_11 = arith.constant 0 : index
    %27 = arith.index_cast %26 : i32 to index
    %c0_12 = arith.constant 0 : index
    %28 = vector.load %arg2[%c0_11, %27, %c0_12] : memref<1x104x16xf32, #tpu.memory_space<vmem>>, vector<1x80x16xf32>
    %29 = vector.shape_cast %28 : vector<1x80x16xf32> to vector<80x16xf32>
    %c21_i32 = arith.constant 21 : i32
    %30 = arith.addi %1, %c21_i32 : i32
    %c0_13 = arith.constant 0 : index
    %31 = arith.index_cast %30 : i32 to index
    %c0_14 = arith.constant 0 : index
    %32 = vector.load %arg2[%c0_13, %31, %c0_14] : memref<1x104x16xf32, #tpu.memory_space<vmem>>, vector<1x80x16xf32>
    %33 = vector.shape_cast %32 : vector<1x80x16xf32> to vector<80x16xf32>
    %c22_i32 = arith.constant 22 : i32
    %34 = arith.addi %1, %c22_i32 : i32
    %c0_15 = arith.constant 0 : index
    %35 = arith.index_cast %34 : i32 to index
    %c0_16 = arith.constant 0 : index
    %36 = vector.load %arg2[%c0_15, %35, %c0_16] : memref<1x104x16xf32, #tpu.memory_space<vmem>>, vector<1x80x16xf32>
    %37 = vector.shape_cast %36 : vector<1x80x16xf32> to vector<80x16xf32>
    %38 = tpu.concatenate %5, %9, %13, %17, %21, %25, %29, %33, %37 in 1 : vector<80x16xf32>, vector<80x16xf32>, vector<80x16xf32>, vector<80x16xf32>, vector<80x16xf32>, vector<80x16xf32>, vector<80x16xf32>, vector<80x16xf32>, vector<80x16xf32> -> vector<80x144xf32>
    %c0_17 = arith.constant 0 : index
    %c0_18 = arith.constant 0 : index
    %39 = vector.load %arg3[%c0_17, %c0_18] : memref<144x16xf32, #tpu.memory_space<vmem>>, vector<144x16xf32>
    %cst = arith.constant dense<0.000000e+00> : vector<80x16xf32>
    %40 = tpu.matmul %38, %39, %cst {dimension_numbers = #tpu.dot_dimension_numbers<[1], [0], [0], [1], [0, 0, 1, 1], [], []>} : vector<80x144xf32>, vector<144x16xf32>, vector<80x16xf32> -> vector<80x16xf32>
    %c0_19 = arith.constant 0 : index
    %c0_20 = arith.constant 0 : index
    %41 = vector.load %arg4[%c0_19, %c0_20] : memref<1x16xf32, #tpu.memory_space<vmem>>, vector<1x16xf32>
    %42 = vector.broadcast %41 : vector<1x16xf32> to vector<80x16xf32>
    %43 = arith.mulf %40, %42 : vector<80x16xf32>
    %c0_21 = arith.constant 0 : index
    %c0_22 = arith.constant 0 : index
    %44 = vector.load %arg5[%c0_21, %c0_22] : memref<1x16xf32, #tpu.memory_space<vmem>>, vector<1x16xf32>
    %45 = vector.broadcast %44 : vector<1x16xf32> to vector<80x16xf32>
    %46 = arith.addf %43, %45 : vector<80x16xf32>
    %c0_23 = arith.constant 0 : index
    %c0_24 = arith.constant 0 : index
    %c0_25 = arith.constant 0 : index
    %47 = vector.load %arg6[%c0_23, %c0_24, %c0_25] : memref<1x80x16xf32, #tpu.memory_space<vmem>>, vector<1x80x16xf32>
    %48 = vector.shape_cast %47 : vector<1x80x16xf32> to vector<80x16xf32>
    %49 = arith.addf %46, %48 : vector<80x16xf32>
    %c0_26 = arith.constant 0 : index
    %c0_27 = arith.constant 0 : index
    %c0_28 = arith.constant 0 : index
    %50 = vector.load %arg7[%c0_26, %c0_27, %c0_28] : memref<1x80x16xf32, #tpu.memory_space<vmem>>, vector<1x80x16xf32>
    %51 = vector.shape_cast %50 : vector<1x80x16xf32> to vector<80x16xf32>
    %52 = vector.shape_cast %49 : vector<80x16xf32> to vector<1x80x16xf32>
    tpu.vector_store %arg7[%c0_26, %c0_27, %c0_28], %52 {strides = array<i32>} : memref<1x80x16xf32, #tpu.memory_space<vmem>>, vector<1x80x16xf32>,
    return
  }
  func.func @transform_0(%arg0: i32, %arg1: i32) -> (i32, i32, i32) {
    %c0_i32 = arith.constant 0 : i32
    %c0_i32_0 = arith.constant 0 : i32
    %c0_i32_1 = arith.constant 0 : i32
    return %arg0, %c0_i32, %c0_i32_0 : i32, i32, i32
  }
  func.func @transform_1(%arg0: i32, %arg1: i32) -> (i32, i32) {
    %c0_i32 = arith.constant 0 : i32
    %c0_i32_0 = arith.constant 0 : i32
    %c0_i32_1 = arith.constant 0 : i32
    return %c0_i32, %c0_i32_0 : i32, i32
  }
  func.func @transform_2(%arg0: i32, %arg1: i32) -> (i32, i32) {
    %c0_i32 = arith.constant 0 : i32
    %c0_i32_0 = arith.constant 0 : i32
    %c0_i32_1 = arith.constant 0 : i32
    return %c0_i32, %c0_i32_0 : i32, i32
  }
  func.func @transform_3(%arg0: i32, %arg1: i32) -> (i32, i32) {
    %c0_i32 = arith.constant 0 : i32
    %c0_i32_0 = arith.constant 0 : i32
    %c0_i32_1 = arith.constant 0 : i32
    return %c0_i32, %c0_i32_0 : i32, i32
  }
  func.func @transform_4(%arg0: i32, %arg1: i32) -> (i32, i32, i32) {
    %c0_i32 = arith.constant 0 : i32
    %c0_i32_0 = arith.constant 0 : i32
    return %arg0, %arg1, %c0_i32 : i32, i32, i32
  }
  func.func @transform_5(%arg0: i32, %arg1: i32) -> (i32, i32, i32) {
    %c0_i32 = arith.constant 0 : i32
    %c0_i32_0 = arith.constant 0 : i32
    return %arg0, %arg1, %c0_i32 : i32, i32, i32
  }
}

module attributes {stable_mosaic.version = 11 : i64} {
  func.func @_bn_relu_kernel(%arg0: i32, %arg1: i32, %arg2: memref<1x8x128xf32, #tpu.memory_space<vmem>>, %arg3: memref<1x128xf32, #tpu.memory_space<vmem>>, %arg4: memref<1x128xf32, #tpu.memory_space<vmem>>, %arg5: memref<1x8x128xf32, #tpu.memory_space<vmem>>) attributes {dimension_semantics = [#tpu.dimension_semantics<parallel>, #tpu.dimension_semantics<parallel>], iteration_bounds = array<i64: 2, 1>, scalar_prefetch = 0 : i64, scratch_operands = 0 : i64, tpu.core_type = #tpu.core_type<tc>, window_params = [{transform_indices = @transform_0, window_bounds = array<i64: 1, 8, 128>}, {pipeline_mode = #tpu.pipeline_mode<synchronous>, transform_indices = @transform_1, window_bounds = array<i64: 1, 128>}, {pipeline_mode = #tpu.pipeline_mode<synchronous>, transform_indices = @transform_2, window_bounds = array<i64: 1, 128>}, {transform_indices = @transform_3, window_bounds = array<i64: 1, 8, 128>}]} {
    %c0 = arith.constant 0 : index
    %c0_0 = arith.constant 0 : index
    %c0_1 = arith.constant 0 : index
    %0 = vector.load %arg2[%c0, %c0_0, %c0_1] : memref<1x8x128xf32, #tpu.memory_space<vmem>>, vector<1x8x128xf32>
    %c0_2 = arith.constant 0 : index
    %c0_3 = arith.constant 0 : index
    %1 = vector.load %arg3[%c0_2, %c0_3] : memref<1x128xf32, #tpu.memory_space<vmem>>, vector<1x128xf32>
    %2 = vector.shape_cast %1 : vector<1x128xf32> to vector<1x1x128xf32>
    %3 = vector.broadcast %2 : vector<1x1x128xf32> to vector<1x8x128xf32>
    %4 = arith.mulf %0, %3 : vector<1x8x128xf32>
    %c0_4 = arith.constant 0 : index
    %c0_5 = arith.constant 0 : index
    %5 = vector.load %arg4[%c0_4, %c0_5] : memref<1x128xf32, #tpu.memory_space<vmem>>, vector<1x128xf32>
    %6 = vector.shape_cast %5 : vector<1x128xf32> to vector<1x1x128xf32>
    %7 = vector.broadcast %6 : vector<1x1x128xf32> to vector<1x8x128xf32>
    %8 = arith.addf %4, %7 : vector<1x8x128xf32>
    %cst = arith.constant 0.000000e+00 : f32
    %9 = vector.broadcast %cst : f32 to vector<1x8x128xf32>
    %10 = arith.maximumf %8, %9 : vector<1x8x128xf32>
    %c0_6 = arith.constant 0 : index
    %c0_7 = arith.constant 0 : index
    %c0_8 = arith.constant 0 : index
    %11 = vector.load %arg5[%c0_6, %c0_7, %c0_8] : memref<1x8x128xf32, #tpu.memory_space<vmem>>, vector<1x8x128xf32>
    tpu.vector_store %arg5[%c0_6, %c0_7, %c0_8], %10 {strides = array<i32>} : memref<1x8x128xf32, #tpu.memory_space<vmem>>, vector<1x8x128xf32>,
    return
  }
  func.func @transform_0(%arg0: i32, %arg1: i32) -> (i32, i32, i32) {
    %c0_i32 = arith.constant 0 : i32
    %c0_i32_0 = arith.constant 0 : i32
    return %arg0, %arg1, %c0_i32 : i32, i32, i32
  }
  func.func @transform_1(%arg0: i32, %arg1: i32) -> (i32, i32) {
    %c0_i32 = arith.constant 0 : i32
    %c0_i32_0 = arith.constant 0 : i32
    %c0_i32_1 = arith.constant 0 : i32
    return %c0_i32, %c0_i32_0 : i32, i32
  }
  func.func @transform_2(%arg0: i32, %arg1: i32) -> (i32, i32) {
    %c0_i32 = arith.constant 0 : i32
    %c0_i32_0 = arith.constant 0 : i32
    %c0_i32_1 = arith.constant 0 : i32
    return %c0_i32, %c0_i32_0 : i32, i32
  }
  func.func @transform_3(%arg0: i32, %arg1: i32) -> (i32, i32, i32) {
    %c0_i32 = arith.constant 0 : i32
    %c0_i32_0 = arith.constant 0 : i32
    return %arg0, %arg1, %c0_i32 : i32, i32, i32
  }
}

module attributes {stable_mosaic.version = 11 : i64} {
  func.func @_conv_kernel(%arg0: i32, %arg1: i32, %arg2: memref<1x96x32xf32, #tpu.memory_space<vmem>>, %arg3: memref<128x16xf32, #tpu.memory_space<vmem>>, %arg4: memref<1x16xf32, #tpu.memory_space<vmem>>, %arg5: memref<1x16xf32, #tpu.memory_space<vmem>>, %arg6: memref<1x80x16xf32, #tpu.memory_space<vmem>>) attributes {dimension_semantics = [#tpu.dimension_semantics<parallel>, #tpu.dimension_semantics<parallel>], iteration_bounds = array<i64: 2, 1>, scalar_prefetch = 0 : i64, scratch_operands = 0 : i64, tpu.core_type = #tpu.core_type<tc>, window_params = [{transform_indices = @transform_0, window_bounds = array<i64: 1, 96, 32>}, {pipeline_mode = #tpu.pipeline_mode<synchronous>, transform_indices = @transform_1, window_bounds = array<i64: 128, 16>}, {pipeline_mode = #tpu.pipeline_mode<synchronous>, transform_indices = @transform_2, window_bounds = array<i64: 1, 16>}, {pipeline_mode = #tpu.pipeline_mode<synchronous>, transform_indices = @transform_3, window_bounds = array<i64: 1, 16>}, {transform_indices = @transform_4, window_bounds = array<i64: 1, 80, 16>}]} {
    %c80_i32 = arith.constant 80 : i32
    %0 = arith.muli %arg1, %c80_i32 : i32
    %1 = tpu.assume_multiple %0, 8 : i32
    %c0_i32 = arith.constant 0 : i32
    %2 = arith.addi %1, %c0_i32 : i32
    %c0 = arith.constant 0 : index
    %3 = arith.index_cast %2 : i32 to index
    %c0_0 = arith.constant 0 : index
    %4 = vector.load %arg2[%c0, %3, %c0_0] : memref<1x96x32xf32, #tpu.memory_space<vmem>>, vector<1x80x32xf32>
    %5 = vector.shape_cast %4 : vector<1x80x32xf32> to vector<80x32xf32>
    %c1_i32 = arith.constant 1 : i32
    %6 = arith.addi %1, %c1_i32 : i32
    %c0_1 = arith.constant 0 : index
    %7 = arith.index_cast %6 : i32 to index
    %c0_2 = arith.constant 0 : index
    %8 = vector.load %arg2[%c0_1, %7, %c0_2] : memref<1x96x32xf32, #tpu.memory_space<vmem>>, vector<1x80x32xf32>
    %9 = vector.shape_cast %8 : vector<1x80x32xf32> to vector<80x32xf32>
    %c10_i32 = arith.constant 10 : i32
    %10 = arith.addi %1, %c10_i32 : i32
    %c0_3 = arith.constant 0 : index
    %11 = arith.index_cast %10 : i32 to index
    %c0_4 = arith.constant 0 : index
    %12 = vector.load %arg2[%c0_3, %11, %c0_4] : memref<1x96x32xf32, #tpu.memory_space<vmem>>, vector<1x80x32xf32>
    %13 = vector.shape_cast %12 : vector<1x80x32xf32> to vector<80x32xf32>
    %c11_i32 = arith.constant 11 : i32
    %14 = arith.addi %1, %c11_i32 : i32
    %c0_5 = arith.constant 0 : index
    %15 = arith.index_cast %14 : i32 to index
    %c0_6 = arith.constant 0 : index
    %16 = vector.load %arg2[%c0_5, %15, %c0_6] : memref<1x96x32xf32, #tpu.memory_space<vmem>>, vector<1x80x32xf32>
    %17 = vector.shape_cast %16 : vector<1x80x32xf32> to vector<80x32xf32>
    %18 = tpu.concatenate %5, %9, %13, %17 in 1 : vector<80x32xf32>, vector<80x32xf32>, vector<80x32xf32>, vector<80x32xf32> -> vector<80x128xf32>
    %c0_7 = arith.constant 0 : index
    %c0_8 = arith.constant 0 : index
    %19 = vector.load %arg3[%c0_7, %c0_8] : memref<128x16xf32, #tpu.memory_space<vmem>>, vector<128x16xf32>
    %cst = arith.constant dense<0.000000e+00> : vector<80x16xf32>
    %20 = tpu.matmul %18, %19, %cst {dimension_numbers = #tpu.dot_dimension_numbers<[1], [0], [0], [1], [0, 0, 1, 1], [], []>} : vector<80x128xf32>, vector<128x16xf32>, vector<80x16xf32> -> vector<80x16xf32>
    %c0_9 = arith.constant 0 : index
    %c0_10 = arith.constant 0 : index
    %21 = vector.load %arg4[%c0_9, %c0_10] : memref<1x16xf32, #tpu.memory_space<vmem>>, vector<1x16xf32>
    %22 = vector.broadcast %21 : vector<1x16xf32> to vector<80x16xf32>
    %23 = arith.mulf %20, %22 : vector<80x16xf32>
    %c0_11 = arith.constant 0 : index
    %c0_12 = arith.constant 0 : index
    %24 = vector.load %arg5[%c0_11, %c0_12] : memref<1x16xf32, #tpu.memory_space<vmem>>, vector<1x16xf32>
    %25 = vector.broadcast %24 : vector<1x16xf32> to vector<80x16xf32>
    %26 = arith.addf %23, %25 : vector<80x16xf32>
    %c0_13 = arith.constant 0 : index
    %c0_14 = arith.constant 0 : index
    %c0_15 = arith.constant 0 : index
    %27 = vector.load %arg6[%c0_13, %c0_14, %c0_15] : memref<1x80x16xf32, #tpu.memory_space<vmem>>, vector<1x80x16xf32>
    %28 = vector.shape_cast %27 : vector<1x80x16xf32> to vector<80x16xf32>
    %29 = vector.shape_cast %26 : vector<80x16xf32> to vector<1x80x16xf32>
    tpu.vector_store %arg6[%c0_13, %c0_14, %c0_15], %29 {strides = array<i32>} : memref<1x80x16xf32, #tpu.memory_space<vmem>>, vector<1x80x16xf32>,
    return
  }
  func.func @transform_0(%arg0: i32, %arg1: i32) -> (i32, i32, i32) {
    %c0_i32 = arith.constant 0 : i32
    %c0_i32_0 = arith.constant 0 : i32
    %c0_i32_1 = arith.constant 0 : i32
    return %arg0, %c0_i32, %c0_i32_0 : i32, i32, i32
  }
  func.func @transform_1(%arg0: i32, %arg1: i32) -> (i32, i32) {
    %c0_i32 = arith.constant 0 : i32
    %c0_i32_0 = arith.constant 0 : i32
    %c0_i32_1 = arith.constant 0 : i32
    return %c0_i32, %c0_i32_0 : i32, i32
  }
  func.func @transform_2(%arg0: i32, %arg1: i32) -> (i32, i32) {
    %c0_i32 = arith.constant 0 : i32
    %c0_i32_0 = arith.constant 0 : i32
    %c0_i32_1 = arith.constant 0 : i32
    return %c0_i32, %c0_i32_0 : i32, i32
  }
  func.func @transform_3(%arg0: i32, %arg1: i32) -> (i32, i32) {
    %c0_i32 = arith.constant 0 : i32
    %c0_i32_0 = arith.constant 0 : i32
    %c0_i32_1 = arith.constant 0 : i32
    return %c0_i32, %c0_i32_0 : i32, i32
  }
  func.func @transform_4(%arg0: i32, %arg1: i32) -> (i32, i32, i32) {
    %c0_i32 = arith.constant 0 : i32
    %c0_i32_0 = arith.constant 0 : i32
    return %arg0, %arg1, %c0_i32 : i32, i32, i32
  }
}

module attributes {stable_mosaic.version = 11 : i64} {
  func.func @_conv_kernel(%arg0: i32, %arg1: i32, %arg2: memref<1x32x64xf32, #tpu.memory_space<vmem>>, %arg3: memref<256x32xf32, #tpu.memory_space<vmem>>, %arg4: memref<1x32xf32, #tpu.memory_space<vmem>>, %arg5: memref<1x32xf32, #tpu.memory_space<vmem>>, %arg6: memref<1x24x32xf32, #tpu.memory_space<vmem>>) attributes {dimension_semantics = [#tpu.dimension_semantics<parallel>, #tpu.dimension_semantics<parallel>], iteration_bounds = array<i64: 2, 1>, scalar_prefetch = 0 : i64, scratch_operands = 0 : i64, tpu.core_type = #tpu.core_type<tc>, window_params = [{transform_indices = @transform_0, window_bounds = array<i64: 1, 32, 64>}, {pipeline_mode = #tpu.pipeline_mode<synchronous>, transform_indices = @transform_1, window_bounds = array<i64: 256, 32>}, {pipeline_mode = #tpu.pipeline_mode<synchronous>, transform_indices = @transform_2, window_bounds = array<i64: 1, 32>}, {pipeline_mode = #tpu.pipeline_mode<synchronous>, transform_indices = @transform_3, window_bounds = array<i64: 1, 32>}, {transform_indices = @transform_4, window_bounds = array<i64: 1, 24, 32>}]} {
    %c24_i32 = arith.constant 24 : i32
    %0 = arith.muli %arg1, %c24_i32 : i32
    %1 = tpu.assume_multiple %0, 8 : i32
    %c0_i32 = arith.constant 0 : i32
    %2 = arith.addi %1, %c0_i32 : i32
    %c0 = arith.constant 0 : index
    %3 = arith.index_cast %2 : i32 to index
    %c0_0 = arith.constant 0 : index
    %4 = vector.load %arg2[%c0, %3, %c0_0] : memref<1x32x64xf32, #tpu.memory_space<vmem>>, vector<1x24x64xf32>
    %5 = vector.shape_cast %4 : vector<1x24x64xf32> to vector<24x64xf32>
    %c1_i32 = arith.constant 1 : i32
    %6 = arith.addi %1, %c1_i32 : i32
    %c0_1 = arith.constant 0 : index
    %7 = arith.index_cast %6 : i32 to index
    %c0_2 = arith.constant 0 : index
    %8 = vector.load %arg2[%c0_1, %7, %c0_2] : memref<1x32x64xf32, #tpu.memory_space<vmem>>, vector<1x24x64xf32>
    %9 = vector.shape_cast %8 : vector<1x24x64xf32> to vector<24x64xf32>
    %c5_i32 = arith.constant 5 : i32
    %10 = arith.addi %1, %c5_i32 : i32
    %c0_3 = arith.constant 0 : index
    %11 = arith.index_cast %10 : i32 to index
    %c0_4 = arith.constant 0 : index
    %12 = vector.load %arg2[%c0_3, %11, %c0_4] : memref<1x32x64xf32, #tpu.memory_space<vmem>>, vector<1x24x64xf32>
    %13 = vector.shape_cast %12 : vector<1x24x64xf32> to vector<24x64xf32>
    %c6_i32 = arith.constant 6 : i32
    %14 = arith.addi %1, %c6_i32 : i32
    %c0_5 = arith.constant 0 : index
    %15 = arith.index_cast %14 : i32 to index
    %c0_6 = arith.constant 0 : index
    %16 = vector.load %arg2[%c0_5, %15, %c0_6] : memref<1x32x64xf32, #tpu.memory_space<vmem>>, vector<1x24x64xf32>
    %17 = vector.shape_cast %16 : vector<1x24x64xf32> to vector<24x64xf32>
    %18 = tpu.concatenate %5, %9, %13, %17 in 1 : vector<24x64xf32>, vector<24x64xf32>, vector<24x64xf32>, vector<24x64xf32> -> vector<24x256xf32>
    %c0_7 = arith.constant 0 : index
    %c0_8 = arith.constant 0 : index
    %19 = vector.load %arg3[%c0_7, %c0_8] : memref<256x32xf32, #tpu.memory_space<vmem>>, vector<256x32xf32>
    %cst = arith.constant dense<0.000000e+00> : vector<24x32xf32>
    %20 = tpu.matmul %18, %19, %cst {dimension_numbers = #tpu.dot_dimension_numbers<[1], [0], [0], [1], [0, 0, 1, 1], [], []>} : vector<24x256xf32>, vector<256x32xf32>, vector<24x32xf32> -> vector<24x32xf32>
    %c0_9 = arith.constant 0 : index
    %c0_10 = arith.constant 0 : index
    %21 = vector.load %arg4[%c0_9, %c0_10] : memref<1x32xf32, #tpu.memory_space<vmem>>, vector<1x32xf32>
    %22 = vector.broadcast %21 : vector<1x32xf32> to vector<24x32xf32>
    %23 = arith.mulf %20, %22 : vector<24x32xf32>
    %c0_11 = arith.constant 0 : index
    %c0_12 = arith.constant 0 : index
    %24 = vector.load %arg5[%c0_11, %c0_12] : memref<1x32xf32, #tpu.memory_space<vmem>>, vector<1x32xf32>
    %25 = vector.broadcast %24 : vector<1x32xf32> to vector<24x32xf32>
    %26 = arith.addf %23, %25 : vector<24x32xf32>
    %cst_13 = arith.constant 0.000000e+00 : f32
    %27 = vector.broadcast %cst_13 : f32 to vector<24x32xf32>
    %28 = arith.maximumf %26, %27 : vector<24x32xf32>
    %c0_14 = arith.constant 0 : index
    %c0_15 = arith.constant 0 : index
    %c0_16 = arith.constant 0 : index
    %29 = vector.load %arg6[%c0_14, %c0_15, %c0_16] : memref<1x24x32xf32, #tpu.memory_space<vmem>>, vector<1x24x32xf32>
    %30 = vector.shape_cast %29 : vector<1x24x32xf32> to vector<24x32xf32>
    %31 = vector.shape_cast %28 : vector<24x32xf32> to vector<1x24x32xf32>
    tpu.vector_store %arg6[%c0_14, %c0_15, %c0_16], %31 {strides = array<i32>} : memref<1x24x32xf32, #tpu.memory_space<vmem>>, vector<1x24x32xf32>,
    return
  }
  func.func @transform_0(%arg0: i32, %arg1: i32) -> (i32, i32, i32) {
    %c0_i32 = arith.constant 0 : i32
    %c0_i32_0 = arith.constant 0 : i32
    %c0_i32_1 = arith.constant 0 : i32
    return %arg0, %c0_i32, %c0_i32_0 : i32, i32, i32
  }
  func.func @transform_1(%arg0: i32, %arg1: i32) -> (i32, i32) {
    %c0_i32 = arith.constant 0 : i32
    %c0_i32_0 = arith.constant 0 : i32
    %c0_i32_1 = arith.constant 0 : i32
    return %c0_i32, %c0_i32_0 : i32, i32
  }
  func.func @transform_2(%arg0: i32, %arg1: i32) -> (i32, i32) {
    %c0_i32 = arith.constant 0 : i32
    %c0_i32_0 = arith.constant 0 : i32
    %c0_i32_1 = arith.constant 0 : i32
    return %c0_i32, %c0_i32_0 : i32, i32
  }
  func.func @transform_3(%arg0: i32, %arg1: i32) -> (i32, i32) {
    %c0_i32 = arith.constant 0 : i32
    %c0_i32_0 = arith.constant 0 : i32
    %c0_i32_1 = arith.constant 0 : i32
    return %c0_i32, %c0_i32_0 : i32, i32
  }
  func.func @transform_4(%arg0: i32, %arg1: i32) -> (i32, i32, i32) {
    %c0_i32 = arith.constant 0 : i32
    %c0_i32_0 = arith.constant 0 : i32
    return %arg0, %arg1, %c0_i32 : i32, i32, i32
  }
}

module attributes {stable_mosaic.version = 11 : i64} {
  func.func @_conv_kernel(%arg0: i32, %arg1: i32, %arg2: memref<1x32x64xf32, #tpu.memory_space<vmem>>, %arg3: memref<256x32xf32, #tpu.memory_space<vmem>>, %arg4: memref<1x32xf32, #tpu.memory_space<vmem>>, %arg5: memref<1x32xf32, #tpu.memory_space<vmem>>, %arg6: memref<1x24x32xf32, #tpu.memory_space<vmem>>) attributes {dimension_semantics = [#tpu.dimension_semantics<parallel>, #tpu.dimension_semantics<parallel>], iteration_bounds = array<i64: 2, 1>, scalar_prefetch = 0 : i64, scratch_operands = 0 : i64, tpu.core_type = #tpu.core_type<tc>, window_params = [{transform_indices = @transform_0, window_bounds = array<i64: 1, 32, 64>}, {pipeline_mode = #tpu.pipeline_mode<synchronous>, transform_indices = @transform_1, window_bounds = array<i64: 256, 32>}, {pipeline_mode = #tpu.pipeline_mode<synchronous>, transform_indices = @transform_2, window_bounds = array<i64: 1, 32>}, {pipeline_mode = #tpu.pipeline_mode<synchronous>, transform_indices = @transform_3, window_bounds = array<i64: 1, 32>}, {transform_indices = @transform_4, window_bounds = array<i64: 1, 24, 32>}]} {
    %c24_i32 = arith.constant 24 : i32
    %0 = arith.muli %arg1, %c24_i32 : i32
    %1 = tpu.assume_multiple %0, 8 : i32
    %c0_i32 = arith.constant 0 : i32
    %2 = arith.addi %1, %c0_i32 : i32
    %c0 = arith.constant 0 : index
    %3 = arith.index_cast %2 : i32 to index
    %c0_0 = arith.constant 0 : index
    %4 = vector.load %arg2[%c0, %3, %c0_0] : memref<1x32x64xf32, #tpu.memory_space<vmem>>, vector<1x24x64xf32>
    %5 = vector.shape_cast %4 : vector<1x24x64xf32> to vector<24x64xf32>
    %c1_i32 = arith.constant 1 : i32
    %6 = arith.addi %1, %c1_i32 : i32
    %c0_1 = arith.constant 0 : index
    %7 = arith.index_cast %6 : i32 to index
    %c0_2 = arith.constant 0 : index
    %8 = vector.load %arg2[%c0_1, %7, %c0_2] : memref<1x32x64xf32, #tpu.memory_space<vmem>>, vector<1x24x64xf32>
    %9 = vector.shape_cast %8 : vector<1x24x64xf32> to vector<24x64xf32>
    %c6_i32 = arith.constant 6 : i32
    %10 = arith.addi %1, %c6_i32 : i32
    %c0_3 = arith.constant 0 : index
    %11 = arith.index_cast %10 : i32 to index
    %c0_4 = arith.constant 0 : index
    %12 = vector.load %arg2[%c0_3, %11, %c0_4] : memref<1x32x64xf32, #tpu.memory_space<vmem>>, vector<1x24x64xf32>
    %13 = vector.shape_cast %12 : vector<1x24x64xf32> to vector<24x64xf32>
    %c7_i32 = arith.constant 7 : i32
    %14 = arith.addi %1, %c7_i32 : i32
    %c0_5 = arith.constant 0 : index
    %15 = arith.index_cast %14 : i32 to index
    %c0_6 = arith.constant 0 : index
    %16 = vector.load %arg2[%c0_5, %15, %c0_6] : memref<1x32x64xf32, #tpu.memory_space<vmem>>, vector<1x24x64xf32>
    %17 = vector.shape_cast %16 : vector<1x24x64xf32> to vector<24x64xf32>
    %18 = tpu.concatenate %5, %9, %13, %17 in 1 : vector<24x64xf32>, vector<24x64xf32>, vector<24x64xf32>, vector<24x64xf32> -> vector<24x256xf32>
    %c0_7 = arith.constant 0 : index
    %c0_8 = arith.constant 0 : index
    %19 = vector.load %arg3[%c0_7, %c0_8] : memref<256x32xf32, #tpu.memory_space<vmem>>, vector<256x32xf32>
    %cst = arith.constant dense<0.000000e+00> : vector<24x32xf32>
    %20 = tpu.matmul %18, %19, %cst {dimension_numbers = #tpu.dot_dimension_numbers<[1], [0], [0], [1], [0, 0, 1, 1], [], []>} : vector<24x256xf32>, vector<256x32xf32>, vector<24x32xf32> -> vector<24x32xf32>
    %c0_9 = arith.constant 0 : index
    %c0_10 = arith.constant 0 : index
    %21 = vector.load %arg4[%c0_9, %c0_10] : memref<1x32xf32, #tpu.memory_space<vmem>>, vector<1x32xf32>
    %22 = vector.broadcast %21 : vector<1x32xf32> to vector<24x32xf32>
    %23 = arith.mulf %20, %22 : vector<24x32xf32>
    %c0_11 = arith.constant 0 : index
    %c0_12 = arith.constant 0 : index
    %24 = vector.load %arg5[%c0_11, %c0_12] : memref<1x32xf32, #tpu.memory_space<vmem>>, vector<1x32xf32>
    %25 = vector.broadcast %24 : vector<1x32xf32> to vector<24x32xf32>
    %26 = arith.addf %23, %25 : vector<24x32xf32>
    %c0_13 = arith.constant 0 : index
    %c0_14 = arith.constant 0 : index
    %c0_15 = arith.constant 0 : index
    %27 = vector.load %arg6[%c0_13, %c0_14, %c0_15] : memref<1x24x32xf32, #tpu.memory_space<vmem>>, vector<1x24x32xf32>
    %28 = vector.shape_cast %27 : vector<1x24x32xf32> to vector<24x32xf32>
    %29 = vector.shape_cast %26 : vector<24x32xf32> to vector<1x24x32xf32>
    tpu.vector_store %arg6[%c0_13, %c0_14, %c0_15], %29 {strides = array<i32>} : memref<1x24x32xf32, #tpu.memory_space<vmem>>, vector<1x24x32xf32>,
    return
  }
  func.func @transform_0(%arg0: i32, %arg1: i32) -> (i32, i32, i32) {
    %c0_i32 = arith.constant 0 : i32
    %c0_i32_0 = arith.constant 0 : i32
    %c0_i32_1 = arith.constant 0 : i32
    return %arg0, %c0_i32, %c0_i32_0 : i32, i32, i32
  }
  func.func @transform_1(%arg0: i32, %arg1: i32) -> (i32, i32) {
    %c0_i32 = arith.constant 0 : i32
    %c0_i32_0 = arith.constant 0 : i32
    %c0_i32_1 = arith.constant 0 : i32
    return %c0_i32, %c0_i32_0 : i32, i32
  }
  func.func @transform_2(%arg0: i32, %arg1: i32) -> (i32, i32) {
    %c0_i32 = arith.constant 0 : i32
    %c0_i32_0 = arith.constant 0 : i32
    %c0_i32_1 = arith.constant 0 : i32
    return %c0_i32, %c0_i32_0 : i32, i32
  }
  func.func @transform_3(%arg0: i32, %arg1: i32) -> (i32, i32) {
    %c0_i32 = arith.constant 0 : i32
    %c0_i32_0 = arith.constant 0 : i32
    %c0_i32_1 = arith.constant 0 : i32
    return %c0_i32, %c0_i32_0 : i32, i32
  }
  func.func @transform_4(%arg0: i32, %arg1: i32) -> (i32, i32, i32) {
    %c0_i32 = arith.constant 0 : i32
    %c0_i32_0 = arith.constant 0 : i32
    return %arg0, %arg1, %c0_i32 : i32, i32, i32
  }
}

module attributes {stable_mosaic.version = 11 : i64} {
  func.func @_conv_kernel(%arg0: i32, %arg1: i32, %arg2: memref<1x40x32xf32, #tpu.memory_space<vmem>>, %arg3: memref<288x32xf32, #tpu.memory_space<vmem>>, %arg4: memref<1x32xf32, #tpu.memory_space<vmem>>, %arg5: memref<1x32xf32, #tpu.memory_space<vmem>>, %arg6: memref<1x24x32xf32, #tpu.memory_space<vmem>>, %arg7: memref<1x24x32xf32, #tpu.memory_space<vmem>>) attributes {dimension_semantics = [#tpu.dimension_semantics<parallel>, #tpu.dimension_semantics<parallel>], iteration_bounds = array<i64: 2, 1>, scalar_prefetch = 0 : i64, scratch_operands = 0 : i64, tpu.core_type = #tpu.core_type<tc>, window_params = [{transform_indices = @transform_0, window_bounds = array<i64: 1, 40, 32>}, {pipeline_mode = #tpu.pipeline_mode<synchronous>, transform_indices = @transform_1, window_bounds = array<i64: 288, 32>}, {pipeline_mode = #tpu.pipeline_mode<synchronous>, transform_indices = @transform_2, window_bounds = array<i64: 1, 32>}, {pipeline_mode = #tpu.pipeline_mode<synchronous>, transform_indices = @transform_3, window_bounds = array<i64: 1, 32>}, {transform_indices = @transform_4, window_bounds = array<i64: 1, 24, 32>}, {transform_indices = @transform_5, window_bounds = array<i64: 1, 24, 32>}]} {
    %c24_i32 = arith.constant 24 : i32
    %0 = arith.muli %arg1, %c24_i32 : i32
    %1 = tpu.assume_multiple %0, 8 : i32
    %c0_i32 = arith.constant 0 : i32
    %2 = arith.addi %1, %c0_i32 : i32
    %c0 = arith.constant 0 : index
    %3 = arith.index_cast %2 : i32 to index
    %c0_0 = arith.constant 0 : index
    %4 = vector.load %arg2[%c0, %3, %c0_0] : memref<1x40x32xf32, #tpu.memory_space<vmem>>, vector<1x24x32xf32>
    %5 = vector.shape_cast %4 : vector<1x24x32xf32> to vector<24x32xf32>
    %c1_i32 = arith.constant 1 : i32
    %6 = arith.addi %1, %c1_i32 : i32
    %c0_1 = arith.constant 0 : index
    %7 = arith.index_cast %6 : i32 to index
    %c0_2 = arith.constant 0 : index
    %8 = vector.load %arg2[%c0_1, %7, %c0_2] : memref<1x40x32xf32, #tpu.memory_space<vmem>>, vector<1x24x32xf32>
    %9 = vector.shape_cast %8 : vector<1x24x32xf32> to vector<24x32xf32>
    %c2_i32 = arith.constant 2 : i32
    %10 = arith.addi %1, %c2_i32 : i32
    %c0_3 = arith.constant 0 : index
    %11 = arith.index_cast %10 : i32 to index
    %c0_4 = arith.constant 0 : index
    %12 = vector.load %arg2[%c0_3, %11, %c0_4] : memref<1x40x32xf32, #tpu.memory_space<vmem>>, vector<1x24x32xf32>
    %13 = vector.shape_cast %12 : vector<1x24x32xf32> to vector<24x32xf32>
    %c6_i32 = arith.constant 6 : i32
    %14 = arith.addi %1, %c6_i32 : i32
    %c0_5 = arith.constant 0 : index
    %15 = arith.index_cast %14 : i32 to index
    %c0_6 = arith.constant 0 : index
    %16 = vector.load %arg2[%c0_5, %15, %c0_6] : memref<1x40x32xf32, #tpu.memory_space<vmem>>, vector<1x24x32xf32>
    %17 = vector.shape_cast %16 : vector<1x24x32xf32> to vector<24x32xf32>
    %c7_i32 = arith.constant 7 : i32
    %18 = arith.addi %1, %c7_i32 : i32
    %c0_7 = arith.constant 0 : index
    %19 = arith.index_cast %18 : i32 to index
    %c0_8 = arith.constant 0 : index
    %20 = vector.load %arg2[%c0_7, %19, %c0_8] : memref<1x40x32xf32, #tpu.memory_space<vmem>>, vector<1x24x32xf32>
    %21 = vector.shape_cast %20 : vector<1x24x32xf32> to vector<24x32xf32>
    %c8_i32 = arith.constant 8 : i32
    %22 = arith.addi %1, %c8_i32 : i32
    %c0_9 = arith.constant 0 : index
    %23 = arith.index_cast %22 : i32 to index
    %c0_10 = arith.constant 0 : index
    %24 = vector.load %arg2[%c0_9, %23, %c0_10] : memref<1x40x32xf32, #tpu.memory_space<vmem>>, vector<1x24x32xf32>
    %25 = vector.shape_cast %24 : vector<1x24x32xf32> to vector<24x32xf32>
    %c12_i32 = arith.constant 12 : i32
    %26 = arith.addi %1, %c12_i32 : i32
    %c0_11 = arith.constant 0 : index
    %27 = arith.index_cast %26 : i32 to index
    %c0_12 = arith.constant 0 : index
    %28 = vector.load %arg2[%c0_11, %27, %c0_12] : memref<1x40x32xf32, #tpu.memory_space<vmem>>, vector<1x24x32xf32>
    %29 = vector.shape_cast %28 : vector<1x24x32xf32> to vector<24x32xf32>
    %c13_i32 = arith.constant 13 : i32
    %30 = arith.addi %1, %c13_i32 : i32
    %c0_13 = arith.constant 0 : index
    %31 = arith.index_cast %30 : i32 to index
    %c0_14 = arith.constant 0 : index
    %32 = vector.load %arg2[%c0_13, %31, %c0_14] : memref<1x40x32xf32, #tpu.memory_space<vmem>>, vector<1x24x32xf32>
    %33 = vector.shape_cast %32 : vector<1x24x32xf32> to vector<24x32xf32>
    %c14_i32 = arith.constant 14 : i32
    %34 = arith.addi %1, %c14_i32 : i32
    %c0_15 = arith.constant 0 : index
    %35 = arith.index_cast %34 : i32 to index
    %c0_16 = arith.constant 0 : index
    %36 = vector.load %arg2[%c0_15, %35, %c0_16] : memref<1x40x32xf32, #tpu.memory_space<vmem>>, vector<1x24x32xf32>
    %37 = vector.shape_cast %36 : vector<1x24x32xf32> to vector<24x32xf32>
    %38 = tpu.concatenate %5, %9, %13, %17, %21, %25, %29, %33, %37 in 1 : vector<24x32xf32>, vector<24x32xf32>, vector<24x32xf32>, vector<24x32xf32>, vector<24x32xf32>, vector<24x32xf32>, vector<24x32xf32>, vector<24x32xf32>, vector<24x32xf32> -> vector<24x288xf32>
    %c0_17 = arith.constant 0 : index
    %c0_18 = arith.constant 0 : index
    %39 = vector.load %arg3[%c0_17, %c0_18] : memref<288x32xf32, #tpu.memory_space<vmem>>, vector<288x32xf32>
    %cst = arith.constant dense<0.000000e+00> : vector<24x32xf32>
    %40 = tpu.matmul %38, %39, %cst {dimension_numbers = #tpu.dot_dimension_numbers<[1], [0], [0], [1], [0, 0, 1, 1], [], []>} : vector<24x288xf32>, vector<288x32xf32>, vector<24x32xf32> -> vector<24x32xf32>
    %c0_19 = arith.constant 0 : index
    %c0_20 = arith.constant 0 : index
    %41 = vector.load %arg4[%c0_19, %c0_20] : memref<1x32xf32, #tpu.memory_space<vmem>>, vector<1x32xf32>
    %42 = vector.broadcast %41 : vector<1x32xf32> to vector<24x32xf32>
    %43 = arith.mulf %40, %42 : vector<24x32xf32>
    %c0_21 = arith.constant 0 : index
    %c0_22 = arith.constant 0 : index
    %44 = vector.load %arg5[%c0_21, %c0_22] : memref<1x32xf32, #tpu.memory_space<vmem>>, vector<1x32xf32>
    %45 = vector.broadcast %44 : vector<1x32xf32> to vector<24x32xf32>
    %46 = arith.addf %43, %45 : vector<24x32xf32>
    %c0_23 = arith.constant 0 : index
    %c0_24 = arith.constant 0 : index
    %c0_25 = arith.constant 0 : index
    %47 = vector.load %arg6[%c0_23, %c0_24, %c0_25] : memref<1x24x32xf32, #tpu.memory_space<vmem>>, vector<1x24x32xf32>
    %48 = vector.shape_cast %47 : vector<1x24x32xf32> to vector<24x32xf32>
    %49 = arith.addf %46, %48 : vector<24x32xf32>
    %c0_26 = arith.constant 0 : index
    %c0_27 = arith.constant 0 : index
    %c0_28 = arith.constant 0 : index
    %50 = vector.load %arg7[%c0_26, %c0_27, %c0_28] : memref<1x24x32xf32, #tpu.memory_space<vmem>>, vector<1x24x32xf32>
    %51 = vector.shape_cast %50 : vector<1x24x32xf32> to vector<24x32xf32>
    %52 = vector.shape_cast %49 : vector<24x32xf32> to vector<1x24x32xf32>
    tpu.vector_store %arg7[%c0_26, %c0_27, %c0_28], %52 {strides = array<i32>} : memref<1x24x32xf32, #tpu.memory_space<vmem>>, vector<1x24x32xf32>,
    return
  }
  func.func @transform_0(%arg0: i32, %arg1: i32) -> (i32, i32, i32) {
    %c0_i32 = arith.constant 0 : i32
    %c0_i32_0 = arith.constant 0 : i32
    %c0_i32_1 = arith.constant 0 : i32
    return %arg0, %c0_i32, %c0_i32_0 : i32, i32, i32
  }
  func.func @transform_1(%arg0: i32, %arg1: i32) -> (i32, i32) {
    %c0_i32 = arith.constant 0 : i32
    %c0_i32_0 = arith.constant 0 : i32
    %c0_i32_1 = arith.constant 0 : i32
    return %c0_i32, %c0_i32_0 : i32, i32
  }
  func.func @transform_2(%arg0: i32, %arg1: i32) -> (i32, i32) {
    %c0_i32 = arith.constant 0 : i32
    %c0_i32_0 = arith.constant 0 : i32
    %c0_i32_1 = arith.constant 0 : i32
    return %c0_i32, %c0_i32_0 : i32, i32
  }
  func.func @transform_3(%arg0: i32, %arg1: i32) -> (i32, i32) {
    %c0_i32 = arith.constant 0 : i32
    %c0_i32_0 = arith.constant 0 : i32
    %c0_i32_1 = arith.constant 0 : i32
    return %c0_i32, %c0_i32_0 : i32, i32
  }
  func.func @transform_4(%arg0: i32, %arg1: i32) -> (i32, i32, i32) {
    %c0_i32 = arith.constant 0 : i32
    %c0_i32_0 = arith.constant 0 : i32
    return %arg0, %arg1, %c0_i32 : i32, i32, i32
  }
  func.func @transform_5(%arg0: i32, %arg1: i32) -> (i32, i32, i32) {
    %c0_i32 = arith.constant 0 : i32
    %c0_i32_0 = arith.constant 0 : i32
    return %arg0, %arg1, %c0_i32 : i32, i32, i32
  }
}

</mosaic_0001>

<bundles_post_ra>
// kernel: tile.23
= control target key start
LH: loop header
LB: loop body
LE: loop exit
PB: predicated region body
PF: predicated region fallthrough
CT: control target
= control target key end

     0   :  { %s28_s0 = inlined_call_operand.vmem [shape: f32[8], index: 0, kind: input, shape index: {}]   ;;  %s29_s1 = inlined_call_operand.vmem [shape: f32[16,8], index: 1, kind: output, shape index: {}]  }
   0x1   :  { %v4_v0 = vld [vmem:[%s28_s0] ss:$0 sm:$0xff] }
   0x2   :  { %5 = vst [vmem:[%s29_s1] sm:$0xff] %v4_v0  ;;  %8 = vst [vmem:[%s29_s1 + $0x8] sm:$0xff] %v4_v0 }

// kernel: tile.24
= control target key start
LH: loop header
LB: loop body
LE: loop exit
PB: predicated region body
PF: predicated region fallthrough
CT: control target
= control target key end

     0   :  { %s133_s10 = smov 120   ;;  %s134_s11 = smov 104   ;;  %vm3_vm0 = vcmask 64512   ;;  %vm9_vm1 = vcmask 1048512   ;;  %vm15_vm2 = vcmask 982912   ;;  %vm21_vm3 = vcmask 917312   ;;  %s209_s0 = inlined_call_operand.vmem [shape: f32[16,8], index: 0, kind: input, shape index: {}]   ;;  %s210_s1 = inlined_call_operand.vmem [shape: f32[1,128], index: 1, kind: output, shape index: {}]  }
   0x1   :  { %v103_v0 = vld [vmem:[%s209_s0 + $0xf] sm:$0x1]   ;;  %v105_v1 = vld [vmem:[%s209_s0 + $0xd] sm:$0x1]   ;;  %v104_v2 = vld [vmem:[%s209_s0 + $0xe] sm:$0x1]  }
   0x2   :  { %7 = vrot.lane.b32.xlu0 %v103_v0, %s133_s10  ;;  %19 = vrot.lane.b32.xlu1 %v105_v1, %s134_s11  ;;  %v106_v3 = vld [vmem:[%s209_s0 + $0xc] sm:$0x1]   ;;  %s135_s16 = smov 112   ;;  %s136_s17 = smov 96   ;;  %v107_v4 = vld [vmem:[%s209_s0 + $0xb] sm:$0x1]  }
   0x3   :  { %v108_v5 = vld [vmem:[%s209_s0 + $0xa] sm:$0x1]   ;;  %v2_v6 = vld [vmem:[%s209_s0] sm:$0x1]   ;;  %s137_s24 = smov 88   ;;  %s138_s25 = smov 80  }
   0x4   :  { %4 = vst.msk [vmem:[#allocation0] sm:$0x1] %vm3_vm0, %v2_v6   ;;  %v109_v7 = vld [vmem:[%s209_s0 + $0x9] sm:$0x1]   ;;  %v110_v8 = vld [vmem:[%s209_s0 + $0x8] sm:$0x1]  }
   0x5   :  { %s139_s30 = smov 72   ;;  %s140_s2 = smov 64   ;;  %v111_v9 = vld [vmem:[%s209_s0 + $0x7] sm:$0x1]   ;;  %v112_v10 = vld [vmem:[%s209_s0 + $0x6] sm:$0x1]  }
   0x6   :  { %13 = vrot.lane.b32.xlu0 %v104_v2, %s135_s16  ;;  %25 = vrot.lane.b32.xlu1 %v106_v3, %s136_s17  ;;  %s141_s7 = smov 56   ;;  %s142_s8 = smov 48   ;;  %v113_v11 = vld [vmem:[%s209_s0 + $0x5] sm:$0x1]   ;;  %v114_v12 = vld [vmem:[%s209_s0 + $0x4] sm:$0x1]  }
   0x7   :  { %s143_s13 = smov 40   ;;  %s144_s14 = smov 32   ;;  %v115_v13 = vld [vmem:[%s209_s0 + $0x3] sm:$0x1]   ;;  %v116_v14 = vld [vmem:[%s209_s0 + $0x2] sm:$0x1]  }
   0x8   :  { %s145_s19 = smov 24   ;;  %s146_s20 = smov 16   ;;  %v117_v15 = vld [vmem:[%s209_s0 + $0x1] sm:$0x1]   ;;  %vm27_vm4 = vcmask 851712   ;;  %vm33_vm5 = vcmask 786112  }
   0x9   :  { %s147_s0 = smov 8   ;;  %vm39_vm6 = vcmask 720512   ;;  %vm45_vm7 = vcmask 654912   ;;  %vm51_vm8 = vcmask 589312   ;;  %vm57_vm9 = vcmask 523712  }
   0xa   :  { %31 = vrot.lane.b32.xlu0 %v107_v4, %s137_s24  ;;  %37 = vrot.lane.b32.xlu1 %v108_v5, %s138_s25  ;;  %vm63_vm10 = vcmask 458112   ;;  %vm69_vm11 = vcmask 392512   ;;  %vm75_vm12 = vcmask 326912   ;;  %vm81_vm13 = vcmask 261312  }
   0xb   :  { %vm87_vm14 = vcmask 195712   ;;  %vm93_vm15 = vcmask 130112  }
   0xe   :  { %43 = vrot.lane.b32.xlu0 %v109_v7, %s139_s30  ;;  %49 = vrot.lane.b32.xlu1 %v110_v8, %s140_s2 }
  0x12   :  { %55 = vrot.lane.b32.xlu0 %v111_v9, %s141_s7  ;;  %61 = vrot.lane.b32.xlu1 %v112_v10, %s142_s8 }
  0x16   :  { %67 = vrot.lane.b32.xlu0 %v113_v11, %s143_s13  ;;  %73 = vrot.lane.b32.xlu1 %v114_v12, %s144_s14 }
  0x1a   :  { %79 = vrot.lane.b32.xlu0 %v115_v13, %s145_s19  ;;  %85 = vrot.lane.b32.xlu1 %v116_v14, %s146_s20 }
  0x1e   :  { %91 = vrot.lane.b32.xlu0 %v117_v15, %s147_s0 }
  0x74   :  { %v8_v16 = vpop.permute.xlu0 %7   ;;  %v20_v17 = vpop.permute.xlu1 %19  }
  0x75   :  { %10 = vst.msk [vmem:[#allocation0] sm:$0x1] %vm9_vm1, %v8_v16  }
  0x78   :  { %v14_v18 = vpop.permute.xlu0 %13   ;;  %v26_v19 = vpop.permute.xlu1 %25  }
  0x79   :  { %16 = vst.msk [vmem:[#allocation0] sm:$0x1] %vm15_vm2, %v14_v18  }
  0x7a   :  { %22 = vst.msk [vmem:[#allocation0] sm:$0x1] %vm21_vm3, %v20_v17  }
  0x7b   :  { %28 = vst.msk [vmem:[#allocation0] sm:$0x1] %vm27_vm4, %v26_v19  }
  0x7c   :  { %v32_v20 = vpop.permute.xlu0 %31   ;;  %v38_v21 = vpop.permute.xlu1 %37  }
  0x7d   :  { %34 = vst.msk [vmem:[#allocation0] sm:$0x1] %vm33_vm5, %v32_v20  }
  0x7e   :  { %40 = vst.msk [vmem:[#allocation0] sm:$0x1] %vm39_vm6, %v38_v21  }
  0x80   :  { %v44_v22 = vpop.permute.xlu0 %43   ;;  %v50_v23 = vpop.permute.xlu1 %49  }
  0x81   :  { %46 = vst.msk [vmem:[#allocation0] sm:$0x1] %vm45_vm7, %v44_v22  }
  0x82   :  { %52 = vst.msk [vmem:[#allocation0] sm:$0x1] %vm51_vm8, %v50_v23  }
  0x84   :  { %v56_v24 = vpop.permute.xlu0 %55   ;;  %v62_v25 = vpop.permute.xlu1 %61  }
  0x85   :  { %58 = vst.msk [vmem:[#allocation0] sm:$0x1] %vm57_vm9, %v56_v24  }
  0x86   :  { %64 = vst.msk [vmem:[#allocation0] sm:$0x1] %vm63_vm10, %v62_v25  }
  0x88   :  { %v68_v26 = vpop.permute.xlu0 %67   ;;  %v74_v27 = vpop.permute.xlu1 %73  }
  0x89   :  { %70 = vst.msk [vmem:[#allocation0] sm:$0x1] %vm69_vm11, %v68_v26  }
  0x8a   :  { %76 = vst.msk [vmem:[#allocation0] sm:$0x1] %vm75_vm12, %v74_v27  }
  0x8c   :  { %v80_v28 = vpop.permute.xlu0 %79   ;;  %v86_v29 = vpop.permute.xlu1 %85  }
  0x8d   :  { %82 = vst.msk [vmem:[#allocation0] sm:$0x1] %vm81_vm13, %v80_v28  }
  0x8e   :  { %88 = vst.msk [vmem:[#allocation0] sm:$0x1] %vm87_vm14, %v86_v29  }
  0x90   :  { %v92_v30 = vpop.permute.xlu0 %91  }
  0x91   :  { %94 = vst.msk [vmem:[#allocation0] sm:$0x1] %vm93_vm15, %v92_v30  }
  0x98   :  { %v99_v31 = vld [vmem:[#allocation0] sm:$0x1] }
  0x99   :  { %102 = vst [vmem:[%s210_s1] sm:$0x1] %v99_v31 }

// kernel: resunet_encoder.13
= control target key start
LH: loop header
LB: loop body
LE: loop exit
PB: predicated region body
PF: predicated region fallthrough
CT: control target
= control target key end

     0   :  { %s420_s12 = smov 0   ;;  %s422_s13 = smov 0   ;;  %s471_s0 = inlined_call_operand.vmem [shape: f32[2,16,128], index: 0, kind: input, shape index: {}]   ;;  %s472_s1 = inlined_call_operand.vmem [shape: f32[1,128], index: 1, kind: input, shape index: {}]   ;;  %s473_s2 = inlined_call_operand.vmem [shape: f32[1,128], index: 2, kind: input, shape index: {}]   ;;  %s474_s3 = inlined_call_operand.vmem [shape: f32[2,16,128], index: 3, kind: output, shape index: {}]  }
   0x1   :  { %s424_s14 = smov 0   ;;  %s426_s15 = smov 0  }
   0x2   :  { %s428_s16 = smov 0  }
   0x3 LB: > { %s22_s17 = sadd.s32 1, %s390_s14  ;;  %s25_s18 = sadd.s32 1, %s394_s15  ;;  %s398_s16 = sphi %s428_s16, %s13_s16   ;;  %s394_s15 = sphi %s426_s15, %s478_s15   ;;  %s390_s14 = sphi %s424_s14, %s477_s14   ;;  %s386_s13 = sphi %s422_s13, %s476_s13   ;;  %s382_s12 = sphi %s420_s12, %s475_s12  }
   0x4   : > { %p23_p0 = scmp.ge.s32.totalorder %s22_s17, 2  ;;  %p311_p1 = scmp.ge.s32.totalorder %s398_s16, 1 }
   0x5   : > { %p156_p2 = scmp.lt.s32.totalorder %s398_s16, 5 }
   0x6   : > { %s480_s17 = smov (%p23_p0, %s22_s17), 0  ;;  %s482_s18 = smov (!%p23_p0, %s25_s18), %s394_s15 }
   0x7   : > { %p157_p3 = pnand %p311_p1, %p156_p2  ;;  %p27_p4 = scmp.ge.s32.totalorder %s482_s18, 2 }
   0x8   : > { %p186_p5 = scmp.lt.s32.totalorder (!%p157_p3), %s386_s13, 1  ;;  %p188_p6 = scmp.lt.s32.totalorder (!%p157_p3), %s382_s12, 1 }
   0x9   : > { %s484_s18 = smov (%p27_p4, %s482_s18), 0  ;;  %160 = sbr.rel (%p157_p3) target bundleno = 27 (0x1b), region = 32 }
   0xe   : > { %s486_s13 = smov (!%p186_p5, %s386_s13), 1  ;;  %s488_s12 = smov (!%p188_p6, %s382_s12), 1  ;;  %v316_v0 = vld [vmem:[%s472_s1] ss:$0 sm:$0xff] }
   0xf   : > { %s312_s19 = sshll.u32 %s486_s13, 1  ;;  %v317_v2 = vld [vmem:[%s473_s2] ss:$0 sm:$0xff] }
  0x10   : > { %s191_s20 = sadd.s32 %s312_s19, %s488_s12 }
  0x11   : > { %s313_s21 = sshll.u32 %s191_s20, 3 }
  0x12   : > { %s193_s26 = scalar_lea.vmem %s471_s0, %s313_s21  ;;  %s201_s4 = scalar_lea.vmem %s474_s3, %s313_s21 }
  0x13   : > { %v202_v1 = vld [vmem:[%s193_s26] sm:$0xff] }
  0x14   : > { %v210_v3 = vmul.f32 %v316_v0, %v202_v1 }
  0x16   : > { %v218_v4 = vadd.f32 %v317_v2, %v210_v3 }
  0x18   : > { %v219_v5 = vmax.f32 %v218_v4, 0.0 }
  0x1a   : > { %220 = vst [vmem:[%s201_s4] sm:$0xff] %v219_v5 }
  0x1b PF: > { %s13_s16 = sadd.s32 1, %s398_s16   ;;  %s475_s12 = smov %s390_s14 }
  0x1c   : > { %p10_p7 = scmp.ge.s32.totalorder %s13_s16, 6   ;;  %s476_s13 = smov %s394_s15 }
  0x1d   : > { %s477_s14 = smov %s480_s17  ;;  %s478_s15 = smov %s484_s18 }
  0x1e   :  { %12 = sbr.rel (!%p10_p7) target bundleno = 3 (0x3), region = 62 }

// kernel: resunet_encoder.10
= control target key start
LH: loop header
LB: loop body
LE: loop exit
PB: predicated region body
PF: predicated region fallthrough
CT: control target
= control target key end

     0   :  { %s3964_s27 = smov 0   ;;  %s3966_s28 = smov 0   ;;  %s5859_s0 = inlined_call_operand.vmem [shape: f32[2,328,4], index: 0, kind: input, shape index: {}]   ;;  %s5860_s1 = inlined_call_operand.vmem [shape: f32[36,8], index: 1, kind: input, shape index: {}]   ;;  %s5861_s2 = inlined_call_operand.vmem [shape: f32[1,8], index: 2, kind: input, shape index: {}]   ;;  %s5862_s3 = inlined_call_operand.vmem [shape: f32[1,8], index: 3, kind: input, shape index: {}]   ;;  %s5863_s4 = inlined_call_operand.vmem [shape: f32[4,8], index: 4, kind: input, shape index: {}]   ;;  %s5864_s5 = inlined_call_operand.vmem [shape: f32[1,8], index: 5, kind: input, shape index: {}]   ;;  %s5865_s6 = inlined_call_operand.vmem [shape: f32[1,8], index: 6, kind: input, shape index: {}]   ;;  %s5866_s7 = inlined_call_operand.vmem [shape: f32[2,288,8], index: 7, kind: output, shape index: {0}]   ;;  %s5867_s8 = inlined_call_operand.vmem [shape: f32[2,288,8], index: 8, kind: output, shape index: {1}]  }
   0x1   :  { %s3968_s29 = smov 0  }
   0x2 LB: > { %s31_s30 = sadd.s32 1, %s3905_s28  ;;  %p3268_p0 = scmp.ge.s32.totalorder %s3909_s29, 1  ;;  %s3909_s29 = sphi %s3968_s29, %s19_s29   ;;  %s3905_s28 = sphi %s3966_s28, %s6021_s28   ;;  %s3901_s27 = sphi %s3964_s27, %s6020_s27  }
   0x3   : > { %p33_p1 = scmp.ge.s32.totalorder %s31_s30, 2  ;;  %p281_p2 = scmp.lt.s32.totalorder %s3909_s29, 3 }
   0x5   : > { %s6023_s30 = smov (%p33_p1, %s31_s30), 0  ;;  %p282_p3 = pnand %p3268_p0, %p281_p2 }
   0x7   : > { %285 = sbr.rel (%p282_p3) target bundleno = 910 (0x38e), region = 48 }
   0xc   : > { %p328_p4 = scmp.lt.s32.totalorder %s3901_s27, 1  ;;  %s3911_s13 = smov 4   ;;  %vm1847_vm0 = vcmask 31744   ;;  %vm2257_vm1 = vcmask 1043456   ;;  %vm1884_vm2 = vcmask 64512   ;;  %vm1921_vm3 = vcmask 97280  }
   0xd   : > { %s3912_s14 = smov 8   ;;  %s3913_s15 = smov 12   ;;  %vm1958_vm4 = vcmask 130048   ;;  %vm1995_vm5 = vcmask 162816   ;;  %vm2032_vm6 = vcmask 195584   ;;  %vm2069_vm7 = vcmask 228352  }
   0xe   : > { %s6025_s27 = smov (!%p328_p4, %s3901_s27), 1  ;;  %s3914_s16 = smov 16   ;;  %vm2106_vm8 = vcmask 261120   ;;  %vm2148_vm9 = vcmask 293888  }
   0xf   : > { %s3838_s9 = smul.u32 328, %s6025_s27  ;;  %s3915_s25 = smov 20  }
  0x10   : > { %s3916_s10 = smov 24   ;;  %s3917_s11 = smov 28  }
  0x11   : > { %s3988_s12 = scalar_lea.vmem %s5859_s0, %s3838_s9  ;;  %s3839_s18 = smul.u32 288, %s6025_s27 }
  0x12   : > { %v3274_v0 = vld [vmem:[%s3988_s12 + $0x11] sm:$0xff]  ;;  %v3272_v1 = vld [vmem:[%s3988_s12 + $0x1] sm:$0xff]  ;;  %v3275_v2 = vld [vmem:[%s3988_s12 + $0x19] sm:$0xff] }
  0x13   : > { %735 = vrot.lane.b32.xlu1 %v3274_v0, %s3911_s13  ;;  %731 = vrot.lane.b32.xlu0 %v3272_v1, %s3911_s13  ;;  %v3273_v3 = vld [vmem:[%s3988_s12 + $0x9] sm:$0xff]  ;;  %v3276_v5 = vld [vmem:[%s3988_s12 + $0x21] sm:$0xff]  ;;  %s5385_s23 = scalar_lea.vmem %s5866_s7, %s3839_s18 }
  0x14   : > { %v3277_v4 = vld [vmem:[%s3988_s12 + $0x29] sm:$0xff]  ;;  %v3279_v6 = vld [vmem:[%s3988_s12 + $0x39] sm:$0xff]  ;;  %v3278_v7 = vld [vmem:[%s3988_s12 + $0x31] sm:$0xff] }
  0x15   : > { %v3281_v8 = vld [vmem:[%s3988_s12 + $0x49] sm:$0xff]  ;;  %v3280_v9 = vld [vmem:[%s3988_s12 + $0x41] sm:$0xff]  ;;  %v3283_v10 = vld [vmem:[%s3988_s12 + $0x59] sm:$0xff] }
  0x16   : > { %v3282_v11 = vld [vmem:[%s3988_s12 + $0x51] sm:$0xff]  ;;  %v3285_v12 = vld [vmem:[%s3988_s12 + $0x69] sm:$0xff]  ;;  %v3284_v13 = vld [vmem:[%s3988_s12 + $0x61] sm:$0xff] }
  0x17   : > { %737 = vrot.lane.b32.xlu1 %v3275_v2, %s3911_s13  ;;  %733 = vrot.lane.b32.xlu0 %v3273_v3, %s3911_s13  ;;  %v3287_v14 = vld [vmem:[%s3988_s12 + $0x79] sm:$0xff]  ;;  %v3286_v15 = vld [vmem:[%s3988_s12 + $0x71] sm:$0xff] }
  0x18   : > { %v3289_v16 = vld [vmem:[%s3988_s12 + $0x89] sm:$0xff]  ;;  %v3288_v17 = vld [vmem:[%s3988_s12 + $0x81] sm:$0xff]  ;;  %v3291_v18 = vld [vmem:[%s3988_s12 + $0x99] sm:$0xff] }
  0x19   : > { %v3290_v19 = vld [vmem:[%s3988_s12 + $0x91] sm:$0xff]  ;;  %v3293_v20 = vld [vmem:[%s3988_s12 + $0xa9] sm:$0xff]  ;;  %v3292_v21 = vld [vmem:[%s3988_s12 + $0xa1] sm:$0xff] }
  0x1a   : > { %v3295_v22 = vld [vmem:[%s3988_s12 + $0xb9] sm:$0xff]  ;;  %v3294_v23 = vld [vmem:[%s3988_s12 + $0xb1] sm:$0xff]  ;;  %v3297_v24 = vld [vmem:[%s3988_s12 + $0xc9] sm:$0xff] }
  0x1b   : > { %741 = vrot.lane.b32.xlu1 %v3277_v4, %s3911_s13  ;;  %739 = vrot.lane.b32.xlu0 %v3276_v5, %s3911_s13  ;;  %v3296_v25 = vld [vmem:[%s3988_s12 + $0xc1] sm:$0xff]  ;;  %v3299_v26 = vld [vmem:[%s3988_s12 + $0xd9] sm:$0xff] }
  0x1c   : > { %v3298_v27 = vld [vmem:[%s3988_s12 + $0xd1] sm:$0xff]  ;;  %v3301_v28 = vld [vmem:[%s3988_s12 + $0xe9] sm:$0xff]  ;;  %v3300_v29 = vld [vmem:[%s3988_s12 + $0xe1] sm:$0xff] }
  0x1d   : > { %v3303_v30 = vld [vmem:[%s3988_s12 + $0xf9] sm:$0xff]  ;;  %v3302_v31 = vld [vmem:[%s3988_s12 + $0xf1] sm:$0xff]  ;;  %v3305_v32 = vld [vmem:[%s3988_s12 + $0x109] sm:$0xff] }
  0x1e   : > { %v3304_v33 = vld [vmem:[%s3988_s12 + $0x101] sm:$0xff]  ;;  %v3307_v34 = vld [vmem:[%s3988_s12 + $0x119] sm:$0xff]  ;;  %v3306_v35 = vld [vmem:[%s3988_s12 + $0x111] sm:$0xff] }
  0x1f   : > { %745 = vrot.lane.b32.xlu1 %v3279_v6, %s3911_s13  ;;  %743 = vrot.lane.b32.xlu0 %v3278_v7, %s3911_s13  ;;  %v3309_v36 = vld [vmem:[%s3988_s12 + $0xa] sm:$0xff]  ;;  %v3308_v37 = vld [vmem:[%s3988_s12 + $0x2] sm:$0xff] }
  0x20   : > { %v4067_v38 = vld [vmem:[%s3988_s12 + $0x1a] sm:$0xff]  ;;  %v4070_v39 = vld [vmem:[%s3988_s12 + $0x12] sm:$0xff]  ;;  %v4077_v40 = vld [vmem:[%s3988_s12 + $0x2a] sm:$0xff] }
  0x21   : > { %v4080_v41 = vld [vmem:[%s3988_s12 + $0x22] sm:$0xff]  ;;  %v4087_v42 = vld [vmem:[%s3988_s12 + $0x3a] sm:$0xff]  ;;  %v4090_v43 = vld [vmem:[%s3988_s12 + $0x32] sm:$0xff] }
  0x22   : > { %v4097_v44 = vld [vmem:[%s3988_s12 + $0x4a] sm:$0xff]  ;;  %v4100_v45 = vld [vmem:[%s3988_s12 + $0x42] sm:$0xff]  ;;  %v4107_v46 = vld [vmem:[%s3988_s12 + $0x13] sm:$0xff] }
  0x23   : > { %749 = vrot.lane.b32.xlu1 %v3281_v8, %s3911_s13  ;;  %747 = vrot.lane.b32.xlu0 %v3280_v9, %s3911_s13  ;;  %v4110_v47 = vld [vmem:[%s3988_s12 + $0x5a] sm:$0xff]  ;;  %v4113_v48 = vld [vmem:[%s3988_s12 + $0x52] sm:$0xff] }
  0x24   : > { %3784 = vmatprep.mubr.msk.f32.mxu1 %vm1847_vm0, %v4107_v46  ;;  %v4122_v49 = vld [vmem:[%s3988_s12 + $0x6a] sm:$0xff]  ;;  %v4125_v50 = vld [vmem:[%s3988_s12 + $0x62] sm:$0xff]  ;;  %v4132_v51 = vld [vmem:[%s3988_s12 + $0x7a] sm:$0xff] }
  0x25   : > { %v4135_v52 = vld [vmem:[%s3988_s12 + $0x72] sm:$0xff]  ;;  %v4142_v53 = vld [vmem:[%s3988_s12 + $0x8a] sm:$0xff]  ;;  %v4145_v54 = vld [vmem:[%s3988_s12 + $0x82] sm:$0xff] }
  0x26   : > { %v4152_v55 = vld [vmem:[%s3988_s12 + $0x9a] sm:$0xff]  ;;  %v4155_v56 = vld [vmem:[%s3988_s12 + $0x92] sm:$0xff]  ;;  %v4162_v57 = vld [vmem:[%s3988_s12 + $0xaa] sm:$0xff] }
  0x27   : > { %753 = vrot.lane.b32.xlu1 %v3283_v10, %s3911_s13  ;;  %751 = vrot.lane.b32.xlu0 %v3282_v11, %s3911_s13  ;;  %v4165_v58 = vld [vmem:[%s3988_s12 + $0xa2] sm:$0xff]  ;;  %v4172_v59 = vld [vmem:[%s3988_s12 + $0xba] sm:$0xff] }
  0x28   : > { %v4175_v60 = vld [vmem:[%s3988_s12 + $0xb2] sm:$0xff]  ;;  %v4186_v63 = vld [vmem:[%s3988_s12 + $0xca] sm:$0xff]  ;;  %v4189_v0 = vld [vmem:[%s3988_s12 + $0xc2] sm:$0xff] }
  0x29   : > { %v4200_v3 = vld [vmem:[%s3988_s12 + $0xda] sm:$0xff]  ;;  %v4203_v4 = vld [vmem:[%s3988_s12 + $0xd2] sm:$0xff]  ;;  %v4214_v7 = vld [vmem:[%s3988_s12 + $0xea] sm:$0xff] }
  0x2a   : > { %v4217_v8 = vld [vmem:[%s3988_s12 + $0xe2] sm:$0xff]  ;;  %v4228_v11 = vld [vmem:[%s3988_s12 + $0xfa] sm:$0xff] }
  0x2b   : > { %757 = vrot.lane.b32.xlu1 %v3285_v12, %s3911_s13  ;;  %755 = vrot.lane.b32.xlu0 %v3284_v13, %s3911_s13  ;;  %v4231_v12 = vld [vmem:[%s3988_s12 + $0xf2] sm:$0xff] }
  0x2f   : > { %761 = vrot.lane.b32.xlu1 %v3287_v14, %s3911_s13  ;;  %759 = vrot.lane.b32.xlu0 %v3286_v15, %s3911_s13  ;;  %v4242_v15 = vld [vmem:[%s3988_s12 + $0x10a] sm:$0xff] }
  0x33   : > { %765 = vrot.lane.b32.xlu1 %v3289_v16, %s3911_s13  ;;  %763 = vrot.lane.b32.xlu0 %v3288_v17, %s3911_s13  ;;  %v4245_v16 = vld [vmem:[%s3988_s12 + $0x102] sm:$0xff] }
  0x37   : > { %769 = vrot.lane.b32.xlu1 %v3291_v18, %s3911_s13  ;;  %767 = vrot.lane.b32.xlu0 %v3290_v19, %s3911_s13  ;;  %v4256_v19 = vld [vmem:[%s3988_s12 + $0x11a] sm:$0xff] }
  0x3b   : > { %773 = vrot.lane.b32.xlu1 %v3293_v20, %s3911_s13  ;;  %771 = vrot.lane.b32.xlu0 %v3292_v21, %s3911_s13  ;;  %v4259_v20 = vld [vmem:[%s3988_s12 + $0x112] sm:$0xff] }
  0x3f   : > { %777 = vrot.lane.b32.xlu1 %v3295_v22, %s3911_s13  ;;  %775 = vrot.lane.b32.xlu0 %v3294_v23, %s3911_s13 }
  0x43   : > { %781 = vrot.lane.b32.xlu1 %v3297_v24, %s3911_s13  ;;  %779 = vrot.lane.b32.xlu0 %v3296_v25, %s3911_s13 }
  0x47   : > { %785 = vrot.lane.b32.xlu1 %v3299_v26, %s3911_s13  ;;  %783 = vrot.lane.b32.xlu0 %v3298_v27, %s3911_s13 }
  0x4b   : > { %789 = vrot.lane.b32.xlu1 %v3301_v28, %s3911_s13  ;;  %787 = vrot.lane.b32.xlu0 %v3300_v29, %s3911_s13 }
  0x4f   : > { %793 = vrot.lane.b32.xlu1 %v3303_v30, %s3911_s13  ;;  %791 = vrot.lane.b32.xlu0 %v3302_v31, %s3911_s13 }
  0x53   : > { %797 = vrot.lane.b32.xlu1 %v3305_v32, %s3911_s13  ;;  %795 = vrot.lane.b32.xlu0 %v3304_v33, %s3911_s13 }
  0x57   : > { %801 = vrot.lane.b32.xlu1 %v3307_v34, %s3911_s13  ;;  %799 = vrot.lane.b32.xlu0 %v3306_v35, %s3911_s13  ;;  %s3918_s13 = smov 32  }
  0x5b   : > { %877 = vrot.lane.b32.xlu1 %v3309_v36, %s3912_s14  ;;  %875 = vrot.lane.b32.xlu0 %v3308_v37, %s3912_s14 }
  0x5f   : > { %881 = vrot.lane.b32.xlu1 %v4067_v38, %s3912_s14  ;;  %879 = vrot.lane.b32.xlu0 %v4070_v39, %s3912_s14 }
  0x63   : > { %885 = vrot.lane.b32.xlu1 %v4077_v40, %s3912_s14  ;;  %883 = vrot.lane.b32.xlu0 %v4080_v41, %s3912_s14 }
  0x67   : > { %889 = vrot.lane.b32.xlu1 %v4087_v42, %s3912_s14  ;;  %887 = vrot.lane.b32.xlu0 %v4090_v43, %s3912_s14 }
  0x6b   : > { %893 = vrot.lane.b32.xlu1 %v4097_v44, %s3912_s14  ;;  %891 = vrot.lane.b32.xlu0 %v4100_v45, %s3912_s14 }
  0x6f   : > { %897 = vrot.lane.b32.xlu1 %v4110_v47, %s3912_s14  ;;  %895 = vrot.lane.b32.xlu0 %v4113_v48, %s3912_s14 }
  0x73   : > { %901 = vrot.lane.b32.xlu1 %v4122_v49, %s3912_s14  ;;  %899 = vrot.lane.b32.xlu0 %v4125_v50, %s3912_s14 }
  0x77   : > { %905 = vrot.lane.b32.xlu1 %v4132_v51, %s3912_s14  ;;  %903 = vrot.lane.b32.xlu0 %v4135_v52, %s3912_s14 }
  0x7b   : > { %909 = vrot.lane.b32.xlu1 %v4142_v53, %s3912_s14  ;;  %907 = vrot.lane.b32.xlu0 %v4145_v54, %s3912_s14 }
  0x7f   : > { %913 = vrot.lane.b32.xlu1 %v4152_v55, %s3912_s14  ;;  %911 = vrot.lane.b32.xlu0 %v4155_v56, %s3912_s14 }
  0x83   : > { %917 = vrot.lane.b32.xlu1 %v4162_v57, %s3912_s14  ;;  %915 = vrot.lane.b32.xlu0 %v4165_v58, %s3912_s14 }
  0x85   : > { %v4177_v61 = vpop.permute.xlu1 %735  ;;  %v4179_v62 = vpop.permute.xlu0 %731 }
  0x87   : > { %921 = vrot.lane.b32.xlu1 %v4172_v59, %s3912_s14  ;;  %919 = vrot.lane.b32.xlu0 %v4175_v60, %s3912_s14 }
  0x89   : > { %v4191_v1 = vpop.permute.xlu1 %737  ;;  %v4193_v2 = vpop.permute.xlu0 %733 }
  0x8b   : > { %925 = vrot.lane.b32.xlu1 %v4186_v63, %s3912_s14  ;;  %923 = vrot.lane.b32.xlu0 %v4189_v0, %s3912_s14 }
  0x8d   : > { %v4205_v5 = vpop.permute.xlu1 %741  ;;  %v4207_v6 = vpop.permute.xlu0 %739 }
  0x8f   : > { %929 = vrot.lane.b32.xlu1 %v4200_v3, %s3912_s14  ;;  %927 = vrot.lane.b32.xlu0 %v4203_v4, %s3912_s14 }
  0x91   : > { %v4219_v9 = vpop.permute.xlu1 %745  ;;  %v4221_v10 = vpop.permute.xlu0 %743 }
  0x93   : > { %933 = vrot.lane.b32.xlu1 %v4214_v7, %s3912_s14  ;;  %931 = vrot.lane.b32.xlu0 %v4217_v8, %s3912_s14 }
  0x95   : > { %v4233_v13 = vpop.permute.xlu1 %749  ;;  %v4235_v14 = vpop.permute.xlu0 %747 }
  0x97   : > { %937 = vrot.lane.b32.xlu1 %v4228_v11, %s3912_s14  ;;  %935 = vrot.lane.b32.xlu0 %v4231_v12, %s3912_s14 }
  0x99   : > { %v4247_v17 = vpop.permute.xlu1 %753  ;;  %v4249_v18 = vpop.permute.xlu0 %751 }
  0x9b   : > { %941 = vrot.lane.b32.xlu1 %v4242_v15, %s3912_s14  ;;  %939 = vrot.lane.b32.xlu0 %v4245_v16, %s3912_s14 }
  0x9d   : > { %v4261_v21 = vpop.permute.xlu1 %757  ;;  %v4263_v22 = vpop.permute.xlu0 %755 }
  0x9e   : > { %5870 = vst [vmem:[#allocation2_spill] sm:$0xff] %v4261_v21  ;;  %v3502_v21 = vld [vmem:[%s3988_s12 + $0x95] sm:$0xff] }
  0x9f   : > { %945 = vrot.lane.b32.xlu1 %v4256_v19, %s3912_s14  ;;  %943 = vrot.lane.b32.xlu0 %v4259_v20, %s3912_s14 }
  0xa1   : > { %v4269_v23 = vpop.permute.xlu1 %761  ;;  %v4271_v24 = vpop.permute.xlu0 %759 }
  0xa2   : > { %5871 = vst [vmem:[#allocation3_spill] sm:$0xff] %v4269_v23  ;;  %5872 = vst [vmem:[#allocation4_spill] sm:$0xff] %v4271_v24  ;;  %v4700_v23 = vld [vmem:[%s3988_s12 + $0x8b] sm:$0xff] }
  0xa3   : > { %1021 = vrot.lane.b32.xlu1 %v4067_v38, %s3913_s15  ;;  %1019 = vrot.lane.b32.xlu0 %v4070_v39, %s3913_s15  ;;  %5942 = vst [vmem:[#allocation74_spill] sm:$0xff] %v4700_v23 }
  0xa5   : > { %v4277_v25 = vpop.permute.xlu1 %765  ;;  %v4279_v26 = vpop.permute.xlu0 %763 }
  0xa6   : > { %5873 = vst [vmem:[#allocation5_spill] sm:$0xff] %v4277_v25  ;;  %5874 = vst [vmem:[#allocation6_spill] sm:$0xff] %v4279_v26  ;;  %v3501_v26 = vld [vmem:[%s3988_s12 + $0x8d] sm:$0xff] }
  0xa7   : > { %1025 = vrot.lane.b32.xlu1 %v4077_v40, %s3913_s15  ;;  %1023 = vrot.lane.b32.xlu0 %v4080_v41, %s3913_s15 }
  0xa9   : > { %v4285_v27 = vpop.permute.xlu1 %769  ;;  %v4287_v28 = vpop.permute.xlu0 %767 }
  0xaa   : > { %5875 = vst [vmem:[#allocation7_spill] sm:$0xff] %v4285_v27  ;;  %5876 = vst [vmem:[#allocation8_spill] sm:$0xff] %v4287_v28  ;;  %v3531_v28 = vld [vmem:[%s3988_s12 + $0x5e] sm:$0xff] }
  0xab   : > { %1029 = vrot.lane.b32.xlu1 %v4087_v42, %s3913_s15  ;;  %1027 = vrot.lane.b32.xlu0 %v4090_v43, %s3913_s15 }
  0xad   : > { %v4293_v29 = vpop.permute.xlu1 %773  ;;  %v4295_v30 = vpop.permute.xlu0 %771 }
  0xae   : > { %5877 = vst [vmem:[#allocation9_spill] sm:$0xff] %v4293_v29  ;;  %5878 = vst [vmem:[#allocation10_spill] sm:$0xff] %v4295_v30  ;;  %v3529_v29 = vld [vmem:[%s3988_s12 + $0x4e] sm:$0xff] }
  0xaf   : > { %1033 = vrot.lane.b32.xlu1 %v4097_v44, %s3913_s15  ;;  %1031 = vrot.lane.b32.xlu0 %v4100_v45, %s3913_s15 }
  0xb1   : > { %v4301_v31 = vpop.permute.xlu1 %777  ;;  %v4303_v32 = vpop.permute.xlu0 %775 }
  0xb2   : > { %5879 = vst [vmem:[#allocation11_spill] sm:$0xff] %v4301_v31  ;;  %5880 = vst [vmem:[#allocation12_spill] sm:$0xff] %v4303_v32 }
  0xb3   : > { %1037 = vrot.lane.b32.xlu1 %v4110_v47, %s3913_s15  ;;  %1035 = vrot.lane.b32.xlu0 %v4113_v48, %s3913_s15 }
  0xb5   : > { %v4309_v33 = vpop.permute.xlu1 %781  ;;  %v4311_v34 = vpop.permute.xlu0 %779 }
  0xb6   : > { %5881 = vst [vmem:[#allocation13_spill] sm:$0xff] %v4309_v33  ;;  %5882 = vst [vmem:[#allocation14_spill] sm:$0xff] %v4311_v34  ;;  %v3527_v33 = vld [vmem:[%s3988_s12 + $0x3e] sm:$0xff] }
  0xb7   : > { %1041 = vrot.lane.b32.xlu1 %v4122_v49, %s3913_s15  ;;  %1039 = vrot.lane.b32.xlu0 %v4125_v50, %s3913_s15 }
  0xb9   : > { %v4317_v35 = vpop.permute.xlu1 %785  ;;  %v4319_v36 = vpop.permute.xlu0 %783 }
  0xba   : > { %5883 = vst [vmem:[#allocation15_spill] sm:$0xff] %v4317_v35  ;;  %5884 = vst [vmem:[#allocation16_spill] sm:$0xff] %v4319_v36 }
  0xbb   : > { %1045 = vrot.lane.b32.xlu1 %v4132_v51, %s3913_s15  ;;  %1043 = vrot.lane.b32.xlu0 %v4135_v52, %s3913_s15 }
  0xbd   : > { %v4325_v37 = vpop.permute.xlu1 %789  ;;  %v4327_v38 = vpop.permute.xlu0 %787 }
  0xbe   : > { %5885 = vst [vmem:[#allocation17_spill] sm:$0xff] %v4325_v37  ;;  %5886 = vst [vmem:[#allocation18_spill] sm:$0xff] %v4327_v38  ;;  %v3416_v37 = vld [vmem:[%s3988_s12 + $0x14] sm:$0xff] }
  0xbf   : > { %1049 = vrot.lane.b32.xlu1 %v4142_v53, %s3913_s15  ;;  %1047 = vrot.lane.b32.xlu0 %v4145_v54, %s3913_s15 }
  0xc1   : > { %v4333_v39 = vpop.permute.xlu1 %793  ;;  %v4335_v40 = vpop.permute.xlu0 %791 }
  0xc2   : > { %5887 = vst [vmem:[#allocation19_spill] sm:$0xff] %v4333_v39  ;;  %5888 = vst [vmem:[#allocation20_spill] sm:$0xff] %v4335_v40  ;;  %v3417_v40 = vld [vmem:[%s3988_s12 + $0x1c] sm:$0xff] }
  0xc3   : > { %1053 = vrot.lane.b32.xlu1 %v4152_v55, %s3913_s15  ;;  %1051 = vrot.lane.b32.xlu0 %v4155_v56, %s3913_s15 }
  0xc5   : > { %v4341_v41 = vpop.permute.xlu1 %797  ;;  %v4343_v42 = vpop.permute.xlu0 %795 }
  0xc6   : > { %5889 = vst [vmem:[#allocation21_spill] sm:$0xff] %v4341_v41  ;;  %5890 = vst [vmem:[#allocation22_spill] sm:$0xff] %v4343_v42  ;;  %v3392_v42 = vld [vmem:[%s3988_s12 + $0x73] sm:$0xff] }
  0xc7   : > { %1057 = vrot.lane.b32.xlu1 %v4162_v57, %s3913_s15  ;;  %1055 = vrot.lane.b32.xlu0 %v4165_v58, %s3913_s15  ;;  %v3379_v58 = vld [vmem:[%s3988_s12 + $0x12a] sm:$0xff] }
  0xc9   : > { %v4349_v43 = vpop.permute.xlu1 %801  ;;  %v4351_v44 = vpop.permute.xlu0 %799 }
  0xca   : > { %5891 = vst [vmem:[#allocation23_spill] sm:$0xff] %v4349_v43  ;;  %5892 = vst [vmem:[#allocation24_spill] sm:$0xff] %v4351_v44 }
  0xcb   : > { %1061 = vrot.lane.b32.xlu1 %v4172_v59, %s3913_s15  ;;  %1059 = vrot.lane.b32.xlu0 %v4175_v60, %s3913_s15  ;;  %v3378_v59 = vld [vmem:[%s3988_s12 + $0x122] sm:$0xff] }
  0xcd   : > { %v4357_v45 = vpop.permute.xlu1 %877  ;;  %v4359_v47 = vpop.permute.xlu0 %875 }
  0xcf   : > { %1065 = vrot.lane.b32.xlu1 %v4186_v63, %s3913_s15  ;;  %1063 = vrot.lane.b32.xlu0 %v4189_v0, %s3913_s15  ;;  %v3381_v0 = vld [vmem:[%s3988_s12 + $0x1b] sm:$0xff] }
  0xd1   : > { %v4365_v48 = vpop.permute.xlu1 %881  ;;  %v4367_v49 = vpop.permute.xlu0 %879 }
  0xd3   : > { %1069 = vrot.lane.b32.xlu1 %v4200_v3, %s3913_s15  ;;  %1067 = vrot.lane.b32.xlu0 %v4203_v4, %s3913_s15 }
  0xd5   : > { %v4373_v50 = vpop.permute.xlu1 %885  ;;  %v4375_v51 = vpop.permute.xlu0 %883 }
  0xd7   : > { %1073 = vrot.lane.b32.xlu1 %v4214_v7, %s3913_s15  ;;  %1071 = vrot.lane.b32.xlu0 %v4217_v8, %s3913_s15  ;;  %v3383_v7 = vld [vmem:[%s3988_s12 + $0x2b] sm:$0xff]  ;;  %v3382_v8 = vld [vmem:[%s3988_s12 + $0x23] sm:$0xff] }
  0xd9   : > { %v4381_v52 = vpop.permute.xlu1 %889  ;;  %v4383_v53 = vpop.permute.xlu0 %887 }
  0xdb   : > { %1077 = vrot.lane.b32.xlu1 %v4228_v11, %s3913_s15  ;;  %1075 = vrot.lane.b32.xlu0 %v4231_v12, %s3913_s15 }
  0xdd   : > { %v4389_v54 = vpop.permute.xlu1 %893  ;;  %v4391_v55 = vpop.permute.xlu0 %891 }
  0xdf   : > { %1081 = vrot.lane.b32.xlu1 %v4242_v15, %s3913_s15  ;;  %1079 = vrot.lane.b32.xlu0 %v4245_v16, %s3913_s15  ;;  %v3385_v15 = vld [vmem:[%s3988_s12 + $0x3b] sm:$0xff]  ;;  %v3384_v16 = vld [vmem:[%s3988_s12 + $0x33] sm:$0xff] }
  0xe1   : > { %v4397_v56 = vpop.permute.xlu1 %897  ;;  %v4399_v57 = vpop.permute.xlu0 %895 }
  0xe3   : > { %1085 = vrot.lane.b32.xlu1 %v4256_v19, %s3913_s15  ;;  %1083 = vrot.lane.b32.xlu0 %v4259_v20, %s3913_s15 }
  0xe5   : > { %v4407_v60 = vpop.permute.xlu1 %901  ;;  %v4409_v63 = vpop.permute.xlu0 %899 }
  0xe6   : > { %5893 = vst [vmem:[#allocation25_spill] sm:$0xff] %v4407_v60  ;;  %5894 = vst [vmem:[#allocation26_spill] sm:$0xff] %v4409_v63 }
  0xe7   : > { %1089 = vrot.lane.b32.xlu1 %v3379_v58, %s3913_s15  ;;  %1087 = vrot.lane.b32.xlu0 %v3378_v59, %s3913_s15  ;;  %v3386_v58 = vld [vmem:[%s3988_s12 + $0x43] sm:$0xff] }
  0xe9   : > { %v4414_v3 = vpop.permute.xlu1 %905  ;;  %v4416_v4 = vpop.permute.xlu0 %903 }
  0xea   : > { %5895 = vst [vmem:[#allocation27_spill] sm:$0xff] %v4414_v3  ;;  %5896 = vst [vmem:[#allocation28_spill] sm:$0xff] %v4416_v4 }
  0xeb   : > { %1165 = vrot.lane.b32.xlu1 %v3381_v0, %s3914_s16  ;;  %1163 = vrot.lane.b32.xlu0 %v4107_v46, %s3914_s16  ;;  %v3387_v46 = vld [vmem:[%s3988_s12 + $0x4b] sm:$0xff] }
  0xed   : > { %v4423_v11 = vpop.permute.xlu1 %909  ;;  %v4425_v12 = vpop.permute.xlu0 %907 }
  0xee   : > { %5897 = vst [vmem:[#allocation29_spill] sm:$0xff] %v4423_v11  ;;  %5898 = vst [vmem:[#allocation30_spill] sm:$0xff] %v4425_v12 }
  0xef   : > { %1169 = vrot.lane.b32.xlu1 %v3383_v7, %s3914_s16  ;;  %1167 = vrot.lane.b32.xlu0 %v3382_v8, %s3914_s16  ;;  %v3389_v7 = vld [vmem:[%s3988_s12 + $0x5b] sm:$0xff]  ;;  %v3388_v8 = vld [vmem:[%s3988_s12 + $0x53] sm:$0xff] }
  0xf1   : > { %v4431_v19 = vpop.permute.xlu1 %913  ;;  %v4433_v20 = vpop.permute.xlu0 %911 }
  0xf2   : > { %5899 = vst [vmem:[#allocation31_spill] sm:$0xff] %v4431_v19  ;;  %5900 = vst [vmem:[#allocation32_spill] sm:$0xff] %v4433_v20 }
  0xf3   : > { %1173 = vrot.lane.b32.xlu1 %v3385_v15, %s3914_s16  ;;  %1171 = vrot.lane.b32.xlu0 %v3384_v16, %s3914_s16  ;;  %v3391_v15 = vld [vmem:[%s3988_s12 + $0x6b] sm:$0xff]  ;;  %v3390_v16 = vld [vmem:[%s3988_s12 + $0x63] sm:$0xff] }
  0xf5   : > { %v4439_v59 = vpop.permute.xlu1 %917  ;;  %v4441_v0 = vpop.permute.xlu0 %915 }
  0xf6   : > { %5901 = vst [vmem:[#allocation33_spill] sm:$0xff] %v4439_v59  ;;  %5902 = vst [vmem:[#allocation34_spill] sm:$0xff] %v4441_v0 }
  0xf7   : > { %1177 = vrot.lane.b32.xlu1 %v3387_v46, %s3914_s16  ;;  %1175 = vrot.lane.b32.xlu0 %v3386_v58, %s3914_s16  ;;  %v2147_v58 = vld [vmem:[%s5860_s1 + $0x20] sm:$0xf] }
  0xf8   : > { %3718 = vmatprep.subr.msk.mxu0 %vm2257_vm1, %v2147_v58 }
  0xf9   : > { %v4447_v44 = vpop.permute.xlu1 %921  ;;  %v4449_v43 = vpop.permute.xlu0 %919  ;;  %3719 = vmatpush3.msk.msra.mxu0 %vm2257_vm1, %v2147_v58 }
  0xfa   : > { %5903 = vst [vmem:[#allocation35_spill] sm:$0xff] %v4447_v44  ;;  %5904 = vst [vmem:[#allocation36_spill] sm:$0xff] %v4449_v43 }
  0xfb   : > { %1181 = vrot.lane.b32.xlu1 %v3389_v7, %s3914_s16  ;;  %1179 = vrot.lane.b32.xlu0 %v3388_v8, %s3914_s16  ;;  %v3393_v7 = vld [vmem:[%s3988_s12 + $0x7b] sm:$0xff] }
  0xfd   : > { %v4455_v41 = vpop.permute.xlu1 %925  ;;  %v4457_v46 = vpop.permute.xlu0 %923 }
  0xfe   : > { %5905 = vst [vmem:[#allocation37_spill] sm:$0xff] %v4455_v41  ;;  %5906 = vst [vmem:[#allocation38_spill] sm:$0xff] %v4457_v46 }
  0xff   : > { %1185 = vrot.lane.b32.xlu1 %v3391_v15, %s3914_s16  ;;  %1183 = vrot.lane.b32.xlu0 %v3390_v16, %s3914_s16  ;;  %v2146_v15 = vld [vmem:[%s5860_s1 + $0x18] sm:$0xff]  ;;  %v2145_v16 = vld [vmem:[%s5860_s1 + $0x10] sm:$0xff] }
 0x100   : > { %3720 = vmatprep.subr.mxu0 %v2146_v15 }
 0x101   : > { %v4467_v8 = vpop.permute.xlu1 %929  ;;  %v4469_v39 = vpop.permute.xlu0 %927  ;;  %3721 = vmatpush3.msra.mxu0 %v2146_v15  ;;  %v2143_v15 = vld [vmem:[%s5860_s1] sm:$0xff] }
 0x102   : > { %5907 = vst [vmem:[#allocation39_spill] sm:$0xff] %v4467_v8  ;;  %5908 = vst [vmem:[#allocation40_spill] sm:$0xff] %v4469_v39  ;;  %3722 = vmatprep.subr.mxu0 %v2145_v16  ;;  %v3452_v8 = vld [vmem:[%s3988_s12 + $0x24] sm:$0xff] }
 0x103   : > { %1189 = vrot.lane.b32.xlu1 %v3393_v7, %s3914_s16  ;;  %1187 = vrot.lane.b32.xlu0 %v3392_v42, %s3914_s16  ;;  %v2144_v7 = vld [vmem:[%s5860_s1 + $0x8] sm:$0xff] }
 0x104   : > { %v3453_v42 = vld [vmem:[%s3988_s12 + $0x2c] sm:$0xff]  ;;  %3723 = vmatpush3.msra.mxu0 %v2145_v16 }
 0x105   : > { %v4482_v38 = vpop.permute.xlu1 %933  ;;  %v4484_v58 = vpop.permute.xlu0 %931  ;;  %3724 = vmatprep.subr.mxu0 %v2144_v7 }
 0x106   : > { %5909 = vst [vmem:[#allocation41_spill] sm:$0xff] %v4482_v38  ;;  %5910 = vst [vmem:[#allocation42_spill] sm:$0xff] %v4484_v58  ;;  %3725 = vmatpush3.msra.mxu0 %v2144_v7  ;;  %v3524_v7 = vld [vmem:[%s3988_s12 + $0x26] sm:$0xff] }
 0x107   : > { %1309 = vrot.lane.b32.xlu1 %v3417_v40, %s3915_s25  ;;  %1307 = vrot.lane.b32.xlu0 %v3416_v37, %s3915_s25  ;;  %v3489_v37 = vld [vmem:[%s3988_s12 + $0x2d] sm:$0xff]  ;;  %v3488_v40 = vld [vmem:[%s3988_s12 + $0x25] sm:$0xff] }
 0x108   : > { %3726 = vmatprep.subr.mxu0 %v2143_v15 }
 0x109   : > { %v4493_v35 = vpop.permute.xlu1 %937  ;;  %v4495_v38 = vpop.permute.xlu0 %935  ;;  %3727 = vmatpush3.msra.mxu0 %v2143_v15 }
 0x10a   : > { %5911 = vst [vmem:[#allocation43_spill] sm:$0xff] %v4493_v35  ;;  %5912 = vst [vmem:[#allocation44_spill] sm:$0xff] %v4495_v38 }
 0x10b   : > { %1453 = vrot.lane.b32.xlu1 %v3453_v42, %s3916_s10  ;;  %1451 = vrot.lane.b32.xlu0 %v3452_v8, %s3916_s10 }
 0x10d   : > { %v4504_v16 = vpop.permute.xlu1 %941  ;;  %v4506_v35 = vpop.permute.xlu0 %939 }
 0x10e   : > { %5913 = vst [vmem:[#allocation45_spill] sm:$0xff] %v4504_v16  ;;  %5914 = vst [vmem:[#allocation46_spill] sm:$0xff] %v4506_v35  ;;  %v3525_v16 = vld [vmem:[%s3988_s12 + $0x2e] sm:$0xff] }
 0x10f   : > { %1597 = vrot.lane.b32.xlu1 %v3489_v37, %s3917_s11  ;;  %1595 = vrot.lane.b32.xlu0 %v3488_v40, %s3917_s11  ;;  %v3455_v37 = vld [vmem:[%s3988_s12 + $0x3c] sm:$0xff]  ;;  %v3454_v40 = vld [vmem:[%s3988_s12 + $0x34] sm:$0xff] }
 0x111   : > { %v4511_v38 = vpop.permute.xlu1 %945  ;;  %v4513_v58 = vpop.permute.xlu0 %943 }
 0x112   : > { %5915 = vst [vmem:[#allocation47_spill] sm:$0xff] %v4511_v38  ;;  %5916 = vst [vmem:[#allocation48_spill] sm:$0xff] %v4513_v58 }
 0x113   : > { %1311 = vrot.lane.b32.xlu1 %v3452_v8, %s3915_s25  ;;  %1739 = vrot.lane.b32.xlu0 %v3524_v7, %s3918_s13  ;;  %v3491_v8 = vld [vmem:[%s3988_s12 + $0x3d] sm:$0xff]  ;;  %v3490_v7 = vld [vmem:[%s3988_s12 + $0x35] sm:$0xff] }
 0x115   : > { %v4518_v15 = vpop.permute.xlu1 %1021  ;;  %v4520_v35 = vpop.permute.xlu0 %1019 }
 0x117   : > { %1313 = vrot.lane.b32.xlu1 %v3453_v42, %s3915_s25  ;;  %1741 = vrot.lane.b32.xlu0 %v3525_v16, %s3918_s13  ;;  %v3526_v16 = vld [vmem:[%s3988_s12 + $0x36] sm:$0xff] }
 0x119   : > { %v4526_v58 = vpop.permute.xlu1 %1025  ;;  %v4528_v38 = vpop.permute.xlu0 %1023 }
 0x11b   : > { %1457 = vrot.lane.b32.xlu1 %v3455_v37, %s3916_s10  ;;  %1455 = vrot.lane.b32.xlu0 %v3454_v40, %s3916_s10 }
 0x11d   : > { %v4534_v39 = vpop.permute.xlu1 %1029  ;;  %v4536_v42 = vpop.permute.xlu0 %1027 }
 0x11f   : > { %1601 = vrot.lane.b32.xlu1 %v3491_v8, %s3917_s11  ;;  %1599 = vrot.lane.b32.xlu0 %v3490_v7, %s3917_s11  ;;  %v3457_v8 = vld [vmem:[%s3988_s12 + $0x4c] sm:$0xff]  ;;  %v3456_v7 = vld [vmem:[%s3988_s12 + $0x44] sm:$0xff] }
 0x121   : > { %v4541_v36 = vpop.permute.xlu1 %1033  ;;  %v4543_v41 = vpop.permute.xlu0 %1031 }
 0x123   : > { %1315 = vrot.lane.b32.xlu1 %v3454_v40, %s3915_s25  ;;  %1743 = vrot.lane.b32.xlu0 %v3526_v16, %s3918_s13  ;;  %v3493_v40 = vld [vmem:[%s3988_s12 + $0x4d] sm:$0xff]  ;;  %v3492_v16 = vld [vmem:[%s3988_s12 + $0x45] sm:$0xff] }
 0x125   : > { %v4548_v46 = vpop.permute.xlu1 %1037  ;;  %v4550_v34 = vpop.permute.xlu0 %1035 }
 0x127   : > { %1317 = vrot.lane.b32.xlu1 %v3455_v37, %s3915_s25  ;;  %1745 = vrot.lane.b32.xlu0 %v3527_v33, %s3918_s13  ;;  %v3528_v33 = vld [vmem:[%s3988_s12 + $0x46] sm:$0xff] }
 0x129   : > { %v4556_v44 = vpop.permute.xlu1 %1041  ;;  %v4558_v31 = vpop.permute.xlu0 %1039 }
 0x12b   : > { %1461 = vrot.lane.b32.xlu1 %v3457_v8, %s3916_s10  ;;  %1459 = vrot.lane.b32.xlu0 %v3456_v7, %s3916_s10 }
 0x12d   : > { %v4564_v43 = vpop.permute.xlu1 %1045  ;;  %v4566_v37 = vpop.permute.xlu0 %1043 }
 0x12e   : > { %5917 = vst [vmem:[#allocation49_spill] sm:$0xff] %v4564_v43  ;;  %5918 = vst [vmem:[#allocation50_spill] sm:$0xff] %v4566_v37 }
 0x12f   : > { %1605 = vrot.lane.b32.xlu1 %v3493_v40, %s3917_s11  ;;  %1603 = vrot.lane.b32.xlu0 %v3492_v16, %s3917_s11  ;;  %v3459_v40 = vld [vmem:[%s3988_s12 + $0x5c] sm:$0xff]  ;;  %v3458_v16 = vld [vmem:[%s3988_s12 + $0x54] sm:$0xff] }
 0x131   : > { %v4571_v32 = vpop.permute.xlu1 %1049  ;;  %v4573_v59 = vpop.permute.xlu0 %1047 }
 0x132   : > { %5919 = vst [vmem:[#allocation51_spill] sm:$0xff] %v4571_v32  ;;  %5920 = vst [vmem:[#allocation52_spill] sm:$0xff] %v4573_v59 }
 0x133   : > { %1319 = vrot.lane.b32.xlu1 %v3456_v7, %s3915_s25  ;;  %1747 = vrot.lane.b32.xlu0 %v3528_v33, %s3918_s13  ;;  %v3495_v7 = vld [vmem:[%s3988_s12 + $0x5d] sm:$0xff]  ;;  %v3494_v33 = vld [vmem:[%s3988_s12 + $0x55] sm:$0xff] }
 0x135   : > { %v4578_v0 = vpop.permute.xlu1 %1053  ;;  %v4580_v30 = vpop.permute.xlu0 %1051 }
 0x136   : > { %5921 = vst [vmem:[#allocation53_spill] sm:$0xff] %v4578_v0  ;;  %5922 = vst [vmem:[#allocation54_spill] sm:$0xff] %v4580_v30 }
 0x137   : > { %1321 = vrot.lane.b32.xlu1 %v3457_v8, %s3915_s25  ;;  %1749 = vrot.lane.b32.xlu0 %v3529_v29, %s3918_s13  ;;  %v3530_v29 = vld [vmem:[%s3988_s12 + $0x56] sm:$0xff] }
 0x139   : > { %v4586_v19 = vpop.permute.xlu1 %1057  ;;  %v4588_v27 = vpop.permute.xlu0 %1055 }
 0x13a   : > { %5923 = vst [vmem:[#allocation55_spill] sm:$0xff] %v4586_v19  ;;  %5924 = vst [vmem:[#allocation56_spill] sm:$0xff] %v4588_v27 }
 0x13b   : > { %1465 = vrot.lane.b32.xlu1 %v3459_v40, %s3916_s10  ;;  %1463 = vrot.lane.b32.xlu0 %v3458_v16, %s3916_s10 }
 0x13d   : > { %v4594_v20 = vpop.permute.xlu1 %1061  ;;  %v4596_v8 = vpop.permute.xlu0 %1059 }
 0x13e   : > { %5925 = vst [vmem:[#allocation57_spill] sm:$0xff] %v4594_v20  ;;  %5926 = vst [vmem:[#allocation58_spill] sm:$0xff] %v4596_v8 }
 0x13f   : > { %1609 = vrot.lane.b32.xlu1 %v3495_v7, %s3917_s11  ;;  %1607 = vrot.lane.b32.xlu0 %v3494_v33, %s3917_s11  ;;  %v3461_v7 = vld [vmem:[%s3988_s12 + $0x6c] sm:$0xff]  ;;  %v3460_v33 = vld [vmem:[%s3988_s12 + $0x64] sm:$0xff] }
 0x141   : > { %v4601_v19 = vpop.permute.xlu1 %1065  ;;  %v4603_v27 = vpop.permute.xlu0 %1063 }
 0x142   : > { %5927 = vst [vmem:[#allocation59_spill] sm:$0xff] %v4601_v19  ;;  %5928 = vst [vmem:[#allocation60_spill] sm:$0xff] %v4603_v27 }
 0x143   : > { %1323 = vrot.lane.b32.xlu1 %v3458_v16, %s3915_s25  ;;  %1751 = vrot.lane.b32.xlu0 %v3530_v29, %s3918_s13  ;;  %v3497_v16 = vld [vmem:[%s3988_s12 + $0x6d] sm:$0xff]  ;;  %v3496_v29 = vld [vmem:[%s3988_s12 + $0x65] sm:$0xff] }
 0x145   : > { %v4608_v0 = vpop.permute.xlu1 %1069  ;;  %v4610_v20 = vpop.permute.xlu0 %1067 }
 0x146   : > { %5929 = vst [vmem:[#allocation61_spill] sm:$0xff] %v4608_v0  ;;  %5930 = vst [vmem:[#allocation62_spill] sm:$0xff] %v4610_v20  ;;  %v3533_v20 = vld [vmem:[%s3988_s12 + $0x6e] sm:$0xff] }
 0x147   : > { %1325 = vrot.lane.b32.xlu1 %v3459_v40, %s3915_s25  ;;  %1753 = vrot.lane.b32.xlu0 %v3531_v28, %s3918_s13  ;;  %v3532_v28 = vld [vmem:[%s3988_s12 + $0x66] sm:$0xff] }
 0x149   : > { %v4616_v19 = vpop.permute.xlu1 %1073  ;;  %v4618_v27 = vpop.permute.xlu0 %1071 }
 0x14a   : > { %5931 = vst [vmem:[#allocation63_spill] sm:$0xff] %v4616_v19  ;;  %5932 = vst [vmem:[#allocation64_spill] sm:$0xff] %v4618_v27 }
 0x14b   : > { %1469 = vrot.lane.b32.xlu1 %v3461_v7, %s3916_s10  ;;  %1467 = vrot.lane.b32.xlu0 %v3460_v33, %s3916_s10 }
 0x14d   : > { %v4624_v0 = vpop.permute.xlu1 %1077  ;;  %v4626_v40 = vpop.permute.xlu0 %1075 }
 0x14e   : > { %5933 = vst [vmem:[#allocation65_spill] sm:$0xff] %v4624_v0  ;;  %5934 = vst [vmem:[#allocation66_spill] sm:$0xff] %v4626_v40 }
 0x14f   : > { %1613 = vrot.lane.b32.xlu1 %v3497_v16, %s3917_s11  ;;  %1611 = vrot.lane.b32.xlu0 %v3496_v29, %s3917_s11  ;;  %v3463_v16 = vld [vmem:[%s3988_s12 + $0x7c] sm:$0xff]  ;;  %v3462_v29 = vld [vmem:[%s3988_s12 + $0x74] sm:$0xff] }
 0x151   : > { %v4631_v19 = vpop.permute.xlu1 %1081  ;;  %v4633_v27 = vpop.permute.xlu0 %1079 }
 0x152   : > { %5935 = vst [vmem:[#allocation67_spill] sm:$0xff] %v4631_v19  ;;  %5936 = vst [vmem:[#allocation68_spill] sm:$0xff] %v4633_v27 }
 0x153   : > { %1327 = vrot.lane.b32.xlu1 %v3460_v33, %s3915_s25  ;;  %1755 = vrot.lane.b32.xlu0 %v3532_v28, %s3918_s13  ;;  %v3499_v33 = vld [vmem:[%s3988_s12 + $0x7d] sm:$0xff]  ;;  %v3498_v28 = vld [vmem:[%s3988_s12 + $0x75] sm:$0xff] }
 0x155   : > { %v4638_v8 = vpop.permute.xlu1 %1085  ;;  %v4640_v0 = vpop.permute.xlu0 %1083 }
 0x156   : > { %5937 = vst [vmem:[#allocation69_spill] sm:$0xff] %v4638_v8  ;;  %5938 = vst [vmem:[#allocation70_spill] sm:$0xff] %v4640_v0  ;;  %v3535_v0 = vld [vmem:[%s3988_s12 + $0x7e] sm:$0xff] }
 0x157   : > { %1329 = vrot.lane.b32.xlu1 %v3461_v7, %s3915_s25  ;;  %1757 = vrot.lane.b32.xlu0 %v3533_v20, %s3918_s13  ;;  %v3534_v20 = vld [vmem:[%s3988_s12 + $0x76] sm:$0xff] }
 0x159   : > { %v4646_v19 = vpop.permute.xlu1 %1089  ;;  %v4648_v27 = vpop.permute.xlu0 %1087 }
 0x15a   : > { %5939 = vst [vmem:[#allocation71_spill] sm:$0xff] %v4646_v19  ;;  %5940 = vst [vmem:[#allocation72_spill] sm:$0xff] %v4648_v27 }
 0x15b   : > { %1473 = vrot.lane.b32.xlu1 %v3463_v16, %s3916_s10  ;;  %1471 = vrot.lane.b32.xlu0 %v3462_v29, %s3916_s10 }
 0x15d   : > { %v4654_v8 = vpop.permute.xlu1 %1165  ;;  %v1164_v7 = vpop.permute.xlu0 %1163 }
 0x15f   : > { %1617 = vrot.lane.b32.xlu1 %v3499_v33, %s3917_s11  ;;  %1615 = vrot.lane.b32.xlu0 %v3498_v28, %s3917_s11  ;;  %v3465_v33 = vld [vmem:[%s3988_s12 + $0x8c] sm:$0xff]  ;;  %v3464_v28 = vld [vmem:[%s3988_s12 + $0x84] sm:$0xff] }
 0x161   : > { %v4659_v19 = vpop.permute.xlu1 %1169  ;;  %v4661_v27 = vpop.permute.xlu0 %1167 }
 0x163   : > { %1331 = vrot.lane.b32.xlu1 %v3462_v29, %s3915_s25  ;;  %1759 = vrot.lane.b32.xlu0 %v3534_v20, %s3918_s13  ;;  %v4681_v29 = vld [vmem:[%s3988_s12 + $0x83] sm:$0xff] }
 0x164   : > { %5941 = vst [vmem:[#allocation73_spill] sm:$0xff] %v4681_v29  ;;  %v3500_v20 = vld [vmem:[%s3988_s12 + $0x85] sm:$0xff] }
 0x165   : > { %v4666_v40 = vpop.permute.xlu1 %1173  ;;  %v4668_v11 = vpop.permute.xlu0 %1171 }
 0x167   : > { %1333 = vrot.lane.b32.xlu1 %v3463_v16, %s3915_s25  ;;  %1761 = vrot.lane.b32.xlu0 %v3535_v0, %s3918_s13  ;;  %v3536_v0 = vld [vmem:[%s3988_s12 + $0x86] sm:$0xff] }
 0x169   : > { %v4674_v25 = vpop.permute.xlu1 %1177  ;;  %v4676_v30 = vpop.permute.xlu0 %1175 }
 0x16b   : > { %1477 = vrot.lane.b32.xlu1 %v3465_v33, %s3916_s10  ;;  %1475 = vrot.lane.b32.xlu0 %v3464_v28, %s3916_s10 }
 0x16d   : > { %v4684_v12 = vpop.permute.xlu1 %1181  ;;  %v4686_v16 = vpop.permute.xlu0 %1179 }
 0x16f   : > { %1191 = vrot.lane.b32.xlu1 %v4681_v29, %s3914_s16  ;;  %1619 = vrot.lane.b32.xlu0 %v3500_v20, %s3917_s11  ;;  %v3537_v20 = vld [vmem:[%s3988_s12 + $0x8e] sm:$0xff] }
 0x171   : > { %v4693_v32 = vpop.permute.xlu1 %1185  ;;  %v4695_v3 = vpop.permute.xlu0 %1183 }
 0x173   : > { %1763 = vrot.lane.b32.xlu1 %v3536_v0, %s3918_s13  ;;  %1621 = vrot.lane.b32.xlu0 %v3501_v26, %s3917_s11  ;;  %v355_v26 = vld [vmem:[%s3988_s12] sm:$0xff] }
 0x174   : > { %v3467_v0 = vld [vmem:[%s3988_s12 + $0x9c] sm:$0xff] }
 0x175   : > { %v4702_v59 = vpop.permute.xlu1 %1189  ;;  %v4704_v29 = vpop.permute.xlu0 %1187 }
 0x176   : > { %5943 = vst [vmem:[#allocation75_spill] sm:$0xff] %v4702_v59  ;;  %5944 = vst [vmem:[#allocation76_spill] sm:$0xff] %v4704_v29  ;;  %v3466_v59 = vld [vmem:[%s3988_s12 + $0x94] sm:$0xff] }
 0x177   : > { %1335 = vrot.lane.b32.xlu1 %v3464_v28, %s3915_s25  ;;  %1193 = vrot.lane.b32.xlu0 %v4700_v23, %s3914_s16  ;;  %v1848_v28 = vsel %vm1847_vm0, %v355_v26, %v4179_v62  ;;  %v4723_v23 = vld [vmem:[%s3988_s12 + $0x93] sm:$0xff] }
 0x179   : > { %v1310_v4 = vpop.permute.xlu1 %1309  ;;  %v1308_v24 = vpop.permute.xlu0 %1307 }
 0x17b   : > { %1337 = vrot.lane.b32.xlu1 %v3465_v33, %s3915_s25  ;;  %1765 = vrot.lane.b32.xlu0 %v3537_v20, %s3918_s13  ;;  %v356_v33 = vld [vmem:[%s3988_s12 + $0x8] sm:$0xff]  ;;  %v1885_v20 = vsel %vm1884_vm2, %v1848_v28, %v4359_v47 }
 0x17c   : > { %v1922_v29 = vsel %vm1921_vm3, %v1885_v20, %v4520_v35  ;;  %v1849_v63 = vsel %vm1847_vm0, %v356_v33, %v4193_v2  ;;  %v3538_v20 = vld [vmem:[%s3988_s12 + $0x96] sm:$0xff] }
 0x17d   : > { %v1454_v43 = vpop.permute.xlu1 %1453  ;;  %v1452_v60 = vpop.permute.xlu0 %1451  ;;  %v1959_v37 = vsel %vm1958_vm4, %v1922_v29, %v1164_v7  ;;  %v1886_v35 = vsel %vm1884_vm2, %v1849_v63, %v4357_v45  ;;  %v3503_v7 = vld [vmem:[%s3988_s12 + $0x9d] sm:$0xff] }
 0x17e   : > { %v1996_v47 = vsel %vm1995_vm5, %v1959_v37, %v1308_v24  ;;  %v1923_v29 = vsel %vm1921_vm3, %v1886_v35, %v4518_v15  ;;  %v4752_v15 = vld [vmem:[%s3988_s12 + $0x9b] sm:$0xff] }
 0x17f   : > { %1481 = vrot.lane.b32.xlu1 %v3467_v0, %s3916_s10  ;;  %1479 = vrot.lane.b32.xlu0 %v3466_v59, %s3916_s10  ;;  %v2033_v28 = vsel %vm2032_vm6, %v1996_v47, %v1452_v60 }
 0x181   : > { %v1598_v62 = vpop.permute.xlu1 %1597  ;;  %v1596_v26 = vpop.permute.xlu0 %1595 }
 0x182   : > { %v2070_v2 = vsel %vm2069_vm7, %v2033_v28, %v1596_v26 }
 0x183   : > { %1195 = vrot.lane.b32.xlu1 %v4723_v23, %s3914_s16  ;;  %1623 = vrot.lane.b32.xlu0 %v3502_v21, %s3917_s11  ;;  %v1960_v21 = vsel %vm1958_vm4, %v1923_v29, %v4654_v8  ;;  %v3468_v29 = vld [vmem:[%s3988_s12 + $0xa4] sm:$0xff] }
 0x184   : > { %v1997_v63 = vsel %vm1995_vm5, %v1960_v21, %v1310_v4  ;;  %v357_v4 = vld [vmem:[%s3988_s12 + $0x10] sm:$0xff] }
 0x185   : > { %v1312_v24 = vpop.permute.xlu1 %1311  ;;  %v1740_v37 = vpop.permute.xlu0 %1739  ;;  %v2034_v60 = vsel %vm2032_vm6, %v1997_v63, %v1454_v43  ;;  %v3539_v43 = vld [vmem:[%s3988_s12 + $0x9e] sm:$0xff] }
 0x186   : > { %v2107_v45 = vsel %vm2106_vm8, %v2070_v2, %v1740_v37  ;;  %v2071_v33 = vsel %vm2069_vm7, %v2034_v60, %v1598_v62  ;;  %v1850_v62 = vsel %vm1847_vm0, %v357_v4, %v4177_v61  ;;  %v4784_v63 = vld [vmem:[%s3988_s12 + $0xa3] sm:$0xff] }
 0x187   : > { %1767 = vrot.lane.b32.xlu1 %v3538_v20, %s3918_s13  ;;  %1625 = vrot.lane.b32.xlu0 %v3503_v7, %s3917_s11  ;;  %v358_v20 = vld [vmem:[%s3988_s12 + $0x18] sm:$0xff]  ;;  %v3469_v7 = vld [vmem:[%s3988_s12 + $0xac] sm:$0xff] }
 0x188   : > { %3728 = vmatprep.mubr.msk.f32.mxu0 %vm2148_vm9, %v2107_v45  ;;  %v3504_v60 = vld [vmem:[%s3988_s12 + $0xa5] sm:$0xff] }
 0x189   : > { %v1314_v8 = vpop.permute.xlu1 %1313  ;;  %v1742_v26 = vpop.permute.xlu0 %1741  ;;  %v3540_v4 = vld [vmem:[%s3988_s12 + $0xa6] sm:$0xff] }
 0x18a   : > { %v2108_v47 = vsel %vm2106_vm8, %v2071_v33, %v1742_v26 }
 0x18b   : > { %1339 = vrot.lane.b32.xlu1 %v3466_v59, %s3915_s25  ;;  %1197 = vrot.lane.b32.xlu0 %v4752_v15, %s3914_s16  ;;  %v1887_v59 = vsel %vm1884_vm2, %v1850_v62, %v4367_v49 }
 0x18c   : > { %3729 = vmatmul.mubr.msk.f32.vlgmr.msra.gmra.mxu0 %vm2148_vm9, %v2108_v47  ;;  %v1924_v2 = vsel %vm1921_vm3, %v1887_v59, %v4528_v38 }
 0x18d   : > { %v1458_v35 = vpop.permute.xlu1 %1457  ;;  %v1456_v28 = vpop.permute.xlu0 %1455  ;;  %v1961_v61 = vsel %vm1958_vm4, %v1924_v2, %v4661_v27 }
 0x18e   : > { %v1998_v45 = vsel %vm1995_vm5, %v1961_v61, %v1312_v24 }
 0x18f   : > { %1341 = vrot.lane.b32.xlu1 %v3467_v0, %s3915_s25  ;;  %1769 = vrot.lane.b32.xlu0 %v3539_v43, %s3918_s13  ;;  %v1851_v0 = vsel %vm1847_vm0, %v358_v20, %v4191_v1  ;;  %v2035_v38 = vsel %vm2032_vm6, %v1998_v45, %v1456_v28  ;;  %v3505_v43 = vld [vmem:[%s3988_s12 + $0xad] sm:$0xff] }
 0x190   : > { %v1888_v49 = vsel %vm1884_vm2, %v1851_v0, %v4365_v48  ;;  %v3541_v0 = vld [vmem:[%s3988_s12 + $0xae] sm:$0xff] }
 0x191   : > { %v1602_v37 = vpop.permute.xlu1 %1601  ;;  %v1600_v21 = vpop.permute.xlu0 %1599  ;;  %v1925_v27 = vsel %vm1921_vm3, %v1888_v49, %v4526_v58 }
 0x192   : > { %v2072_v1 = vsel %vm2069_vm7, %v2035_v38, %v1600_v21  ;;  %v1962_v26 = vsel %vm1958_vm4, %v1925_v27, %v4659_v19  ;;  %v3471_v27 = vld [vmem:[%s3988_s12 + $0xbc] sm:$0xff] }
 0x193   : > { %1485 = vrot.lane.b32.xlu1 %v3469_v7, %s3916_s10  ;;  %1483 = vrot.lane.b32.xlu0 %v3468_v29, %s3916_s10  ;;  %v1999_v48 = vsel %vm1995_vm5, %v1962_v26, %v1314_v8  ;;  %v359_v8 = vld [vmem:[%s3988_s12 + $0x20] sm:$0xff] }
 0x194   : > { %v2036_v58 = vsel %vm2032_vm6, %v1999_v48, %v1458_v35  ;;  %v4808_v35 = vld [vmem:[%s3988_s12 + $0xab] sm:$0xff]  ;;  %v1852_v21 = vsel %vm1847_vm0, %v359_v8, %v4207_v6  ;;  %v3506_v48 = vld [vmem:[%s3988_s12 + $0xb5] sm:$0xff] }
 0x195   : > { %v1316_v24 = vpop.permute.xlu1 %1315  ;;  %v1744_v33 = vpop.permute.xlu0 %1743  ;;  %v2073_v28 = vsel %vm2069_vm7, %v2036_v58, %v1602_v37  ;;  %v360_v37 = vld [vmem:[%s3988_s12 + $0x28] sm:$0xff]  ;;  %v1889_v61 = vsel %vm1884_vm2, %v1852_v21, %v4375_v51 }
 0x196   : > { %v2109_v47 = vsel %vm2106_vm8, %v2072_v1, %v1744_v33  ;;  %v1926_v45 = vsel %vm1921_vm3, %v1889_v61, %v4536_v42  ;;  %v3470_v1 = vld [vmem:[%s3988_s12 + $0xb4] sm:$0xff] }
 0x197   : > { %1199 = vrot.lane.b32.xlu1 %v4784_v63, %s3914_s16  ;;  %1627 = vrot.lane.b32.xlu0 %v3504_v60, %s3917_s11  ;;  %v1963_v6 = vsel %vm1958_vm4, %v1926_v45, %v4668_v11 }
 0x198   : > { %3731 = vmatprep.mubr.msk.f32.mxu0 %vm2148_vm9, %v2109_v47  ;;  %v2000_v60 = vsel %vm1995_vm5, %v1963_v6, %v1316_v24  ;;  %v4845_v47 = vld [vmem:[%s3988_s12 + $0xb3] sm:$0xff]  ;;  %v3543_v6 = vld [vmem:[%s3988_s12 + $0xbe] sm:$0xff] }
 0x199   : > { %v1318_v19 = vpop.permute.xlu1 %1317  ;;  %v1746_v62 = vpop.permute.xlu0 %1745 }
 0x19a   : > { %v2110_v20 = vsel %vm2106_vm8, %v2073_v28, %v1746_v62  ;;  %v361_v28 = vld [vmem:[%s3988_s12 + $0x30] sm:$0xff]  ;;  %v3507_v62 = vld [vmem:[%s3988_s12 + $0xbd] sm:$0xff] }
 0x19b   : > { %1771 = vrot.lane.b32.xlu1 %v3540_v4, %s3918_s13  ;;  %1629 = vrot.lane.b32.xlu0 %v3505_v43, %s3917_s11 }
 0x19c   : > { %3732 = vmatmul.mubr.msk.f32.gmra.mxu0 %vm2148_vm9, %v2110_v20 }
 0x19d   : > { %v1462_v59 = vpop.permute.xlu1 %1461  ;;  %v1460_v2 = vpop.permute.xlu0 %1459 }
 0x19e   : > { %v2037_v42 = vsel %vm2032_vm6, %v2000_v60, %v1460_v2  ;;  %v362_v2 = vld [vmem:[%s3988_s12 + $0x38] sm:$0xff] }
 0x19f   : > { %1343 = vrot.lane.b32.xlu1 %v3468_v29, %s3915_s25  ;;  %1201 = vrot.lane.b32.xlu0 %v4808_v35, %s3914_s16  ;;  %v1853_v29 = vsel %vm1847_vm0, %v360_v37, %v4205_v5  ;;  %v4865_v37 = vld [vmem:[%s3988_s12 + $0xbb] sm:$0xff] }
 0x1a0   : > { %v1890_v51 = vsel %vm1884_vm2, %v1853_v29, %v4373_v50 }
 0x1a1   : > { %v1606_v49 = vpop.permute.xlu1 %1605  ;;  %v1604_v38 = vpop.permute.xlu0 %1603  ;;  %v1927_v11 = vsel %vm1921_vm3, %v1890_v51, %v4534_v39 }
 0x1a2   : > { %v2074_v5 = vsel %vm2069_vm7, %v2037_v42, %v1604_v38 }
 0x1a3   : > { %1345 = vrot.lane.b32.xlu1 %v3469_v7, %s3915_s25  ;;  %1773 = vrot.lane.b32.xlu0 %v3541_v0, %s3918_s13  ;;  %v1964_v7 = vsel %vm1958_vm4, %v1927_v11, %v4666_v40  ;;  %v3472_v11 = vld [vmem:[%s3988_s12 + $0xc4] sm:$0xff] }
 0x1a4   : > { %v2001_v50 = vsel %vm1995_vm5, %v1964_v7, %v1318_v19  ;;  %v3542_v19 = vld [vmem:[%s3988_s12 + $0xb6] sm:$0xff]  ;;  %v4901_v7 = vld [vmem:[%s3988_s12 + $0xc3] sm:$0xff] }
 0x1a5   : > { %v1320_v33 = vpop.permute.xlu1 %1319  ;;  %v1748_v24 = vpop.permute.xlu0 %1747  ;;  %v2038_v39 = vsel %vm2032_vm6, %v2001_v50, %v1462_v59  ;;  %v1854_v59 = vsel %vm1847_vm0, %v361_v28, %v4221_v10  ;;  %v1855_v10 = vsel %vm1847_vm0, %v362_v2, %v4219_v9 }
 0x1a6   : > { %v2111_v26 = vsel %vm2106_vm8, %v2074_v5, %v1748_v24  ;;  %v2075_v40 = vsel %vm2069_vm7, %v2038_v39, %v1606_v49  ;;  %v1891_v21 = vsel %vm1884_vm2, %v1854_v59, %v4383_v53  ;;  %v4927_v59 = vld [vmem:[%s3988_s12 + $0xcb] sm:$0xff] }
 0x1a7   : > { %1489 = vrot.lane.b32.xlu1 %v3471_v27, %s3916_s10  ;;  %1487 = vrot.lane.b32.xlu0 %v3470_v1, %s3916_s10  ;;  %v1928_v61 = vsel %vm1921_vm3, %v1891_v21, %v4543_v41  ;;  %v1892_v41 = vsel %vm1884_vm2, %v1855_v10, %v4381_v52  ;;  %v3473_v52 = vld [vmem:[%s3988_s12 + $0xcc] sm:$0xff] }
 0x1a8   : > { %3734 = vmatprep.mubr.msk.f32.mxu0 %vm2148_vm9, %v2111_v26  ;;  %v1965_v49 = vsel %vm1958_vm4, %v1928_v61, %v4676_v30  ;;  %v1929_v30 = vsel %vm1921_vm3, %v1892_v41, %v4541_v36  ;;  %v3508_v26 = vld [vmem:[%s3988_s12 + $0xc5] sm:$0xff]  ;;  %v365_v41 = vld [vmem:[%s3988_s12 + $0x50] sm:$0xff] }
 0x1a9   : > { %v1322_v58 = vpop.permute.xlu1 %1321  ;;  %v1750_v4 = vpop.permute.xlu0 %1749  ;;  %v2002_v38 = vsel %vm1995_vm5, %v1965_v49, %v1320_v33  ;;  %v1966_v51 = vsel %vm1958_vm4, %v1929_v30, %v4674_v25 }
 0x1aa   : > { %v2112_v43 = vsel %vm2106_vm8, %v2075_v40, %v1750_v4  ;;  %v364_v40 = vld [vmem:[%s3988_s12 + $0x48] sm:$0xff] }
 0x1ab   : > { %1203 = vrot.lane.b32.xlu1 %v4845_v47, %s3914_s16  ;;  %1631 = vrot.lane.b32.xlu0 %v3506_v48, %s3917_s11  ;;  %v3544_v4 = vld [vmem:[%s3988_s12 + $0xc6] sm:$0xff] }
 0x1ac   : > { %3735 = vmatmul.mubr.msk.f32.gmra.mxu0 %vm2148_vm9, %v2112_v43  ;;  %v3509_v43 = vld [vmem:[%s3988_s12 + $0xcd] sm:$0xff] }
 0x1ad   : > { %v1466_v20 = vpop.permute.xlu1 %1465  ;;  %v1464_v8 = vpop.permute.xlu0 %1463 }
 0x1ae   : > { %v2039_v53 = vsel %vm2032_vm6, %v2002_v38, %v1464_v8 }
 0x1af   : > { %1775 = vrot.lane.b32.xlu1 %v3542_v19, %s3918_s13  ;;  %1633 = vrot.lane.b32.xlu0 %v3507_v62, %s3917_s11 }
 0x1b1   : > { %v1610_v0 = vpop.permute.xlu1 %1609  ;;  %v1608_v45 = vpop.permute.xlu0 %1607 }
 0x1b2   : > { %v2076_v9 = vsel %vm2069_vm7, %v2039_v53, %v1608_v45  ;;  %v3545_v45 = vld [vmem:[%s3988_s12 + $0xce] sm:$0xff]  ;;  %v3475_v53 = vld [vmem:[%s3988_s12 + $0xdc] sm:$0xff] }
 0x1b3   : > { %1347 = vrot.lane.b32.xlu1 %v3470_v1, %s3915_s25  ;;  %1205 = vrot.lane.b32.xlu0 %v4865_v37, %s3914_s16  ;;  %v2003_v1 = vsel %vm1995_vm5, %v1966_v51, %v1322_v58 }
 0x1b4   : > { %v2040_v36 = vsel %vm2032_vm6, %v2003_v1, %v1466_v20  ;;  %v1857_v20 = vsel %vm1847_vm0, %v364_v40, %v4233_v13  ;;  %v3510_v1 = vld [vmem:[%s3988_s12 + $0xd5] sm:$0xff] }
 0x1b5   : > { %v1324_v29 = vpop.permute.xlu1 %1323  ;;  %v1752_v60 = vpop.permute.xlu0 %1751  ;;  %v2077_v5 = vsel %vm2069_vm7, %v2040_v36, %v1610_v0 }
 0x1b6   : > { %v2113_v42 = vsel %vm2106_vm8, %v2076_v9, %v1752_v60  ;;  %v366_v60 = vld [vmem:[%s3988_s12 + $0x58] sm:$0xff] }
 0x1b7   : > { %1349 = vrot.lane.b32.xlu1 %v3471_v27, %s3915_s25  ;;  %1777 = vrot.lane.b32.xlu0 %v3543_v6, %s3918_s13  ;;  %v363_v27 = vld [vmem:[%s3988_s12 + $0x40] sm:$0xff]  ;;  %v3474_v6 = vld [vmem:[%s3988_s12 + $0xd4] sm:$0xff] }
 0x1b8   : > { %3737 = vmatprep.mubr.msk.f32.mxu0 %vm2148_vm9, %v2113_v42  ;;  %v1856_v48 = vsel %vm1847_vm0, %v363_v27, %v4235_v14  ;;  %v4958_v42 = vld [vmem:[%s3988_s12 + $0xd3] sm:$0xff] }
 0x1b9   : > { %v1326_v25 = vpop.permute.xlu1 %1325  ;;  %v1754_v33 = vpop.permute.xlu0 %1753  ;;  %v1893_v58 = vsel %vm1884_vm2, %v1856_v48, %v4391_v55  ;;  %v1894_v55 = vsel %vm1884_vm2, %v1857_v20, %v4389_v54  ;;  %v5945_v20 = vld [vmem:[#allocation26_spill] sm:$0xff] }
 0x1ba   : > { %v2114_v24 = vsel %vm2106_vm8, %v2077_v5, %v1754_v33  ;;  %v1930_v28 = vsel %vm1921_vm3, %v1893_v58, %v4550_v34  ;;  %v1859_v5 = vsel %vm1847_vm0, %v366_v60, %v4247_v17  ;;  %v3546_v33 = vld [vmem:[%s3988_s12 + $0xd6] sm:$0xff]  ;;  %v3513_v60 = vld [vmem:[%s3988_s12 + $0xed] sm:$0xff] }
 0x1bb   : > { %1493 = vrot.lane.b32.xlu1 %v3473_v52, %s3916_s10  ;;  %1491 = vrot.lane.b32.xlu0 %v3472_v11, %s3916_s10  ;;  %v1967_v14 = vsel %vm1958_vm4, %v1930_v28, %v4686_v16  ;;  %v1931_v16 = vsel %vm1921_vm3, %v1894_v55, %v4548_v46  ;;  %v3547_v28 = vld [vmem:[%s3988_s12 + $0xde] sm:$0xff]  ;;  %v3477_v55 = vld [vmem:[%s3988_s12 + $0xec] sm:$0xff] }
 0x1bc   : > { %3738 = vmatmul.mubr.msk.f32.gmra.mxu0 %vm2148_vm9, %v2114_v24  ;;  %v2004_v8 = vsel %vm1995_vm5, %v1967_v14, %v1324_v29  ;;  %v1968_v61 = vsel %vm1958_vm4, %v1931_v16, %v4684_v12  ;;  %v1858_v29 = vsel %vm1847_vm0, %v365_v41, %v4249_v18  ;;  %v3511_v24 = vld [vmem:[%s3988_s12 + $0xdd] sm:$0xff] }
 0x1bd   : > { %v1470_v50 = vpop.permute.xlu1 %1469  ;;  %v1468_v39 = vpop.permute.xlu0 %1467  ;;  %v2005_v54 = vsel %vm1995_vm5, %v1968_v61, %v1326_v25  ;;  %v1895_v51 = vsel %vm1884_vm2, %v1858_v29, %v4399_v57  ;;  %v1896_v57 = vsel %vm1884_vm2, %v1859_v5, %v4397_v56  ;;  %v5946_v16 = vld [vmem:[#allocation50_spill] sm:$0xff]  ;;  %v5947_v61 = vld [vmem:[#allocation76_spill] sm:$0xff] }
 0x1be   : > { %v2041_v34 = vsel %vm2032_vm6, %v2004_v8, %v1468_v39  ;;  %v2042_v46 = vsel %vm2032_vm6, %v2005_v54, %v1470_v50  ;;  %v1932_v36 = vsel %vm1921_vm3, %v1895_v51, %v4558_v31  ;;  %v368_v54 = vld [vmem:[%s3988_s12 + $0x68] sm:$0xff]  ;;  %v5950_v51 = vld [vmem:[#allocation49_spill] sm:$0xff] }
 0x1bf   : > { %1207 = vrot.lane.b32.xlu1 %v4901_v7, %s3914_s16  ;;  %1635 = vrot.lane.b32.xlu0 %v3508_v26, %s3917_s11  ;;  %v1969_v18 = vsel %vm1958_vm4, %v1932_v36, %v4695_v3  ;;  %v1933_v3 = vsel %vm1921_vm3, %v1896_v57, %v4556_v44  ;;  %v4988_v44 = vld [vmem:[%s3988_s12 + $0xdb] sm:$0xff]  ;;  %v3548_v29 = vld [vmem:[%s3988_s12 + $0xe6] sm:$0xff] }
 0x1c0   : > { %v1970_v50 = vsel %vm1958_vm4, %v1933_v3, %v4693_v32  ;;  %v5040_v57 = vld [vmem:[%s3988_s12 + $0xeb] sm:$0xff] }
 0x1c1   : > { %v1614_v19 = vpop.permute.xlu1 %1613  ;;  %v1612_v62 = vpop.permute.xlu0 %1611 }
 0x1c2   : > { %v2078_v2 = vsel %vm2069_vm7, %v2041_v34, %v1612_v62  ;;  %v2079_v49 = vsel %vm2069_vm7, %v2042_v46, %v1614_v19  ;;  %v3476_v34 = vld [vmem:[%s3988_s12 + $0xe4] sm:$0xff] }
 0x1c3   : > { %1779 = vrot.lane.b32.xlu1 %v3544_v4, %s3918_s13  ;;  %1637 = vrot.lane.b32.xlu0 %v3509_v43, %s3917_s11  ;;  %v367_v43 = vld [vmem:[%s3988_s12 + $0x60] sm:$0xff] }
 0x1c4   : > { %v1860_v14 = vsel %vm1847_vm0, %v367_v43, %v4263_v22 }
 0x1c5   : > { %v1328_v13 = vpop.permute.xlu1 %1327  ;;  %v1756_v21 = vpop.permute.xlu0 %1755  ;;  %v1897_v8 = vsel %vm1884_vm2, %v1860_v14, %v5945_v20  ;;  %v370_v20 = vld [vmem:[%s3988_s12 + $0x78] sm:$0xff] }
 0x1c6   : > { %v2115_v0 = vsel %vm2106_vm8, %v2078_v2, %v1756_v21  ;;  %v2006_v25 = vsel %vm1995_vm5, %v1969_v18, %v1328_v13  ;;  %v1934_v2 = vsel %vm1921_vm3, %v1897_v8, %v5946_v16 }
 0x1c7   : > { %1351 = vrot.lane.b32.xlu1 %v3472_v11, %s3915_s25  ;;  %1209 = vrot.lane.b32.xlu0 %v4927_v59, %s3914_s16 }
 0x1c8   : > { %3740 = vmatprep.mubr.msk.f32.mxu0 %vm2148_vm9, %v2115_v0  ;;  %v1971_v0 = vsel %vm1958_vm4, %v1934_v2, %v5947_v61  ;;  %v5955_v61 = vld [vmem:[#allocation3_spill] sm:$0xff] }
 0x1c9   : > { %v1330_v12 = vpop.permute.xlu1 %1329  ;;  %v1758_v10 = vpop.permute.xlu0 %1757 }
 0x1ca   : > { %v2116_v38 = vsel %vm2106_vm8, %v2079_v49, %v1758_v10  ;;  %v2007_v56 = vsel %vm1995_vm5, %v1970_v50, %v1330_v12  ;;  %v3512_v49 = vld [vmem:[%s3988_s12 + $0xe5] sm:$0xff] }
 0x1cb   : > { %1353 = vrot.lane.b32.xlu1 %v3473_v52, %s3915_s25  ;;  %1781 = vrot.lane.b32.xlu0 %v3545_v45, %s3918_s13  ;;  %v5016_v45 = vld [vmem:[%s3988_s12 + $0xe3] sm:$0xff] }
 0x1cc   : > { %3741 = vmatmul.mubr.msk.f32.gmra.mxu0 %vm2148_vm9, %v2116_v38 }
 0x1cd   : > { %v1474_v30 = vpop.permute.xlu1 %1473  ;;  %v1472_v9 = vpop.permute.xlu0 %1471 }
 0x1ce   : > { %v2043_v31 = vsel %vm2032_vm6, %v2006_v25, %v1472_v9  ;;  %v2044_v48 = vsel %vm2032_vm6, %v2007_v56, %v1474_v30  ;;  %v5949_v30 = vld [vmem:[#allocation25_spill] sm:$0xff] }
 0x1cf   : > { %1497 = vrot.lane.b32.xlu1 %v3475_v53, %s3916_s10  ;;  %1495 = vrot.lane.b32.xlu0 %v3474_v6, %s3916_s10 }
 0x1d1   : > { %v1618_v52 = vpop.permute.xlu1 %1617  ;;  %v1616_v11 = vpop.permute.xlu0 %1615 }
 0x1d2   : > { %v2080_v17 = vsel %vm2069_vm7, %v2043_v31, %v1616_v11  ;;  %v2081_v40 = vsel %vm2069_vm7, %v2044_v48, %v1618_v52  ;;  %v5951_v11 = vld [vmem:[#allocation75_spill] sm:$0xff]  ;;  %v5953_v48 = vld [vmem:[#allocation28_spill] sm:$0xff] }
 0x1d3   : > { %1211 = vrot.lane.b32.xlu1 %v4958_v42, %s3914_s16  ;;  %1639 = vrot.lane.b32.xlu0 %v3510_v1, %s3917_s11 }
 0x1d5   : > { %v1332_v27 = vpop.permute.xlu1 %1331  ;;  %v1760_v26 = vpop.permute.xlu0 %1759 }
 0x1d6   : > { %v2117_v39 = vsel %vm2106_vm8, %v2080_v17, %v1760_v26  ;;  %v2008_v22 = vsel %vm1995_vm5, %v1971_v0, %v1332_v27  ;;  %v369_v17 = vld [vmem:[%s3988_s12 + $0x70] sm:$0xff]  ;;  %v1863_v0 = vsel %vm1847_vm0, %v370_v20, %v5955_v61  ;;  %v3516_v20 = vld [vmem:[%s3988_s12 + $0x105] sm:$0xff] }
 0x1d7   : > { %1783 = vrot.lane.b32.xlu1 %v3546_v33, %s3918_s13  ;;  %1641 = vrot.lane.b32.xlu0 %v3511_v24, %s3917_s11  ;;  %v3549_v27 = vld [vmem:[%s3988_s12 + $0xee] sm:$0xff] }
 0x1d8   : > { %3743 = vmatprep.mubr.msk.f32.mxu0 %vm2148_vm9, %v2117_v39  ;;  %v5952_v39 = vld [vmem:[#allocation4_spill] sm:$0xff] }
 0x1d9   : > { %v1334_v32 = vpop.permute.xlu1 %1333  ;;  %v1762_v58 = vpop.permute.xlu0 %1761  ;;  %v1862_v56 = vsel %vm1847_vm0, %v369_v17, %v5952_v39  ;;  %v5959_v17 = vld [vmem:[#allocation30_spill] sm:$0xff]  ;;  %v3875_v39 = vld [vmem:[%s3988_s12 + $0x33] sm:$0xff] }
 0x1da   : > { %v2118_v4 = vsel %vm2106_vm8, %v2081_v40, %v1762_v58  ;;  %v1899_v40 = vsel %vm1884_vm2, %v1862_v56, %v5953_v48  ;;  %v3478_v58 = vld [vmem:[%s3988_s12 + $0xf4] sm:$0xff]  ;;  %v5960_v56 = vld [vmem:[#allocation54_spill] sm:$0xff] }
 0x1db   : > { %1355 = vrot.lane.b32.xlu1 %v3474_v6, %s3915_s25  ;;  %1213 = vrot.lane.b32.xlu0 %v4988_v44, %s3914_s16 }
 0x1dc   : > { %3744 = vmatmul.mubr.msk.f32.gmra.mxu0 %vm2148_vm9, %v2118_v4  ;;  %v5954_v4 = vld [vmem:[#allocation52_spill] sm:$0xff] }
 0x1dd   : > { %v1478_v19 = vpop.permute.xlu1 %1477  ;;  %v1476_v62 = vpop.permute.xlu0 %1475  ;;  %v1936_v43 = vsel %vm1921_vm3, %v1899_v40, %v5954_v4  ;;  %v3876_v4 = vld [vmem:[%s3988_s12 + $0x3b] sm:$0xff] }
 0x1de   : > { %v2045_v46 = vsel %vm2032_vm6, %v2008_v22, %v1476_v62  ;;  %v5956_v22 = vld [vmem:[#allocation27_spill] sm:$0xff] }
 0x1df   : > { %1357 = vrot.lane.b32.xlu1 %v3475_v53, %s3915_s25  ;;  %1785 = vrot.lane.b32.xlu0 %v3547_v28, %s3918_s13  ;;  %v5948_v53 = vld [vmem:[#allocation2_spill] sm:$0xff] }
 0x1e0   : > { %v1861_v6 = vsel %vm1847_vm0, %v368_v54, %v5948_v53  ;;  %v1900_v54 = vsel %vm1884_vm2, %v1863_v0, %v5956_v22  ;;  %v5962_v0 = vld [vmem:[#allocation29_spill] sm:$0xff] }
 0x1e1   : > { %v1192_v13 = vpop.permute.xlu1 %1191  ;;  %v1620_v21 = vpop.permute.xlu0 %1619  ;;  %v1898_v9 = vsel %vm1884_vm2, %v1861_v6, %v5949_v30  ;;  %v2664_v6 = vld [vmem:[%s5863_s4] sm:$0xf] }
 0x1e2   : > { %v2082_v12 = vsel %vm2069_vm7, %v2045_v46, %v1620_v21  ;;  %v1935_v1 = vsel %vm1921_vm3, %v1898_v9, %v5950_v51  ;;  %v1973_v62 = vsel %vm1958_vm4, %v1936_v43, %v1192_v13  ;;  %v3550_v46 = vld [vmem:[%s3988_s12 + $0xf6] sm:$0xff]  ;;  %3782 = vmatprep.subr.msk.mxu1 %vm2257_vm1, %v2664_v6 }
 0x1e3   : > { %1501 = vrot.lane.b32.xlu1 %v3477_v55, %s3916_s10  ;;  %1499 = vrot.lane.b32.xlu0 %v3476_v34, %s3916_s10  ;;  %v1972_v18 = vsel %vm1958_vm4, %v1935_v1, %v5951_v11  ;;  %v371_v11 = vld [vmem:[%s3988_s12 + $0x80] sm:$0xff] }
 0x1e4   : > { %v2009_v5 = vsel %vm1995_vm5, %v1972_v18, %v1334_v32  ;;  %v3479_v32 = vld [vmem:[%s3988_s12 + $0xfc] sm:$0xff]  ;;  %3783 = vmatpush3.msk.msra.mxu1 %vm2257_vm1, %v2664_v6 }
 0x1e5   : > { %v1764_v10 = vpop.permute.xlu1 %1763  ;;  %v1622_v38 = vpop.permute.xlu0 %1621  ;;  %v2046_v25 = vsel %vm2032_vm6, %v2009_v5, %v1478_v19  ;;  %v3551_v18 = vld [vmem:[%s3988_s12 + $0xfe] sm:$0xff] }
 0x1e6   : > { %v2119_v41 = vsel %vm2106_vm8, %v2082_v12, %v1764_v10  ;;  %v2083_v31 = vsel %vm2069_vm7, %v2046_v25, %v1622_v38  ;;  %v5957_v12 = vld [vmem:[#allocation51_spill] sm:$0xff] }
 0x1e7   : > { %1215 = vrot.lane.b32.xlu1 %v5016_v45, %s3914_s16  ;;  %1643 = vrot.lane.b32.xlu0 %v3512_v49, %s3917_s11  ;;  %v3515_v49 = vld [vmem:[%s3988_s12 + $0xfd] sm:$0xff]  ;;  %v1937_v10 = vsel %vm1921_vm3, %v1900_v54, %v5957_v12  ;;  %v3552_v54 = vld [vmem:[%s3988_s12 + $0x106] sm:$0xff] }
 0x1e8   : > { %3746 = vmatprep.mubr.msk.f32.mxu0 %vm2148_vm9, %v2119_v41  ;;  %v3873_v5 = vld [vmem:[%s3988_s12 + $0x23] sm:$0xff]  ;;  %v5963_v12 = vld [vmem:[#allocation53_spill] sm:$0xff] }
 0x1e9   : > { %v1336_v36 = vpop.permute.xlu1 %1335  ;;  %v1194_v52 = vpop.permute.xlu0 %1193 }
 0x1ea   : > { %v2010_v14 = vsel %vm1995_vm5, %v1973_v62, %v1336_v36  ;;  %v1974_v53 = vsel %vm1958_vm4, %v1937_v10, %v1194_v52  ;;  %v3872_v52 = vld [vmem:[%s3988_s12 + $0x1b] sm:$0xff] }
 0x1eb   : > { %1787 = vrot.lane.b32.xlu1 %v3548_v29, %s3918_s13  ;;  %1645 = vrot.lane.b32.xlu0 %v3513_v60, %s3917_s11  ;;  %v5095_v29 = vld [vmem:[%s3988_s12 + $0xfb] sm:$0xff] }
 0x1ec   : > { %3785 = vmatmul.mubr.msk.f32.vlgmr.msra.gmra.mxu1 %vm1847_vm0, %v3872_v52 }
 0x1ed   : > { %v1338_v33 = vpop.permute.xlu1 %1337  ;;  %v1766_v24 = vpop.permute.xlu0 %1765  ;;  %3787 = vmatprep.mubr.msk.f32.mxu1 %vm1847_vm0, %v3873_v5  ;;  %v373_v5 = vld [vmem:[%s3988_s12 + $0x90] sm:$0xff] }
 0x1ee   : > { %v2120_v3 = vsel %vm2106_vm8, %v2083_v31, %v1766_v24  ;;  %v2011_v30 = vsel %vm1995_vm5, %v1974_v53, %v1338_v33  ;;  %v3874_v33 = vld [vmem:[%s3988_s12 + $0x2b] sm:$0xff]  ;;  %v5958_v24 = vld [vmem:[#allocation6_spill] sm:$0xff] }
 0x1ef   : > { %1359 = vrot.lane.b32.xlu1 %v3476_v34, %s3915_s25  ;;  %1217 = vrot.lane.b32.xlu0 %v5040_v57, %s3914_s16  ;;  %v3514_v34 = vld [vmem:[%s3988_s12 + $0xf5] sm:$0xff] }
 0x1f0   : > { %3747 = vmatmul.mubr.msk.f32.gmra.mxu0 %vm2148_vm9, %v2120_v3  ;;  %3788 = vmatmul.mubr.msk.f32.gmra.mxu1 %vm1847_vm0, %v3874_v33  ;;  %v1864_v3 = vsel %vm1847_vm0, %v371_v11, %v5958_v24 }
 0x1f1   : > { %v1482_v26 = vpop.permute.xlu1 %1481  ;;  %v1480_v50 = vpop.permute.xlu0 %1479  ;;  %3790 = vmatprep.mubr.msk.f32.mxu1 %vm1847_vm0, %v3875_v39 }
 0x1f2   : > { %v2047_v8 = vsel %vm2032_vm6, %v2010_v14, %v1480_v50  ;;  %v2048_v9 = vsel %vm2032_vm6, %v2011_v30, %v1482_v26  ;;  %v5120_v26 = vld [vmem:[%s3988_s12 + $0x10c] sm:$0xff]  ;;  %v3480_v50 = vld [vmem:[%s3988_s12 + $0x104] sm:$0xff]  ;;  %v3880_v30 = vld [vmem:[%s3988_s12 + $0x5b] sm:$0xff] }
 0x1f3   : > { %1361 = vrot.lane.b32.xlu1 %v3477_v55, %s3915_s25  ;;  %1789 = vrot.lane.b32.xlu0 %v3549_v27, %s3918_s13  ;;  %v5067_v55 = vld [vmem:[%s3988_s12 + $0xf3] sm:$0xff]  ;;  %v1901_v27 = vsel %vm1884_vm2, %v1864_v3, %v5959_v17  ;;  %v5139_v14 = vld [vmem:[%s3988_s12 + $0x103] sm:$0xff] }
 0x1f4   : > { %v1938_v48 = vsel %vm1921_vm3, %v1901_v27, %v5960_v56  ;;  %3791 = vmatmul.mubr.msk.f32.gmra.mxu1 %vm1847_vm0, %v3876_v4  ;;  %v3884_v3 = vld [vmem:[%s3988_s12 + $0x7b] sm:$0xff]  ;;  %v5964_v17 = vld [vmem:[#allocation8_spill] sm:$0xff] }
 0x1f5   : > { %v1196_v28 = vpop.permute.xlu1 %1195  ;;  %v1624_v19 = vpop.permute.xlu0 %1623  ;;  %v1866_v27 = vsel %vm1847_vm0, %v373_v5, %v5964_v17  ;;  %v3483_v56 = vld [vmem:[%s3988_s12 + $0x11c] sm:$0xff]  ;;  %v3485_v5 = vld [vmem:[%s3988_s12 + $0x12c] sm:$0xff] }
 0x1f6   : > { %v2084_v16 = vsel %vm2069_vm7, %v2047_v8, %v1624_v19  ;;  %v372_v19 = vld [vmem:[%s3988_s12 + $0x88] sm:$0xff] }
 0x1f7   : > { %1505 = vrot.lane.b32.xlu1 %v3479_v32, %s3916_s10  ;;  %1503 = vrot.lane.b32.xlu0 %v3478_v58, %s3916_s10  ;;  %v376_v17 = vld [vmem:[%s3988_s12 + $0xa8] sm:$0xff] }
 0x1f9   : > { %v1768_v2 = vpop.permute.xlu1 %1767  ;;  %v1626_v21 = vpop.permute.xlu0 %1625 }
 0x1fa   : > { %v2121_v13 = vsel %vm2106_vm8, %v2084_v16, %v1768_v2  ;;  %v2085_v60 = vsel %vm2069_vm7, %v2048_v9, %v1626_v21  ;;  %v3878_v21 = vld [vmem:[%s3988_s12 + $0x4b] sm:$0xff] }
 0x1fb   : > { %1219 = vrot.lane.b32.xlu1 %v5067_v55, %s3914_s16  ;;  %1647 = vrot.lane.b32.xlu0 %v3514_v34, %s3917_s11 }
 0x1fc   : > { %3749 = vmatprep.mubr.msk.f32.mxu0 %vm2148_vm9, %v2121_v13  ;;  %v5961_v13 = vld [vmem:[#allocation5_spill] sm:$0xff] }
 0x1fd   : > { %v1340_v38 = vpop.permute.xlu1 %1339  ;;  %v5084_v41 = vpop.permute.xlu0 %1197  ;;  %v1865_v61 = vsel %vm1847_vm0, %v372_v19, %v5961_v13 }
 0x1fe   : > { %v1902_v22 = vsel %vm1884_vm2, %v1865_v61, %v5962_v0  ;;  %v5969_v61 = vld [vmem:[#allocation7_spill] sm:$0xff] }
 0x1ff   : > { %1791 = vrot.lane.b32.xlu1 %v3550_v46, %s3918_s13  ;;  %1649 = vrot.lane.b32.xlu0 %v3515_v49, %s3917_s11  ;;  %v3517_v46 = vld [vmem:[%s3988_s12 + $0x10d] sm:$0xff]  ;;  %v1939_v10 = vsel %vm1921_vm3, %v1902_v22, %v5963_v12 }
 0x200   : > { %v3879_v49 = vld [vmem:[%s3988_s12 + $0x53] sm:$0xff]  ;;  %v1976_v6 = vsel %vm1958_vm4, %v1939_v10, %v5084_v41  ;;  %v5970_v22 = vld [vmem:[#allocation31_spill] sm:$0xff] }
 0x201   : > { %v1342_v51 = vpop.permute.xlu1 %1341  ;;  %v1770_v1 = vpop.permute.xlu0 %1769 }
 0x202   : > { %v2122_v36 = vsel %vm2106_vm8, %v2085_v60, %v1770_v1  ;;  %v2013_v9 = vsel %vm1995_vm5, %v1976_v6, %v1342_v51  ;;  %v5173_v1 = vld [vmem:[%s3988_s12 + $0x10b] sm:$0xff] }
 0x203   : > { %1363 = vrot.lane.b32.xlu1 %v3478_v58, %s3915_s25  ;;  %1221 = vrot.lane.b32.xlu0 %v5095_v29, %s3914_s16  ;;  %v1975_v58 = vsel %vm1958_vm4, %v1938_v48, %v1196_v28  ;;  %v3877_v28 = vld [vmem:[%s3988_s12 + $0x43] sm:$0xff]  ;;  %v3482_v48 = vld [vmem:[%s3988_s12 + $0x114] sm:$0xff] }
 0x204   : > { %3750 = vmatmul.mubr.msk.f32.gmra.mxu0 %vm2148_vm9, %v2122_v36  ;;  %v2012_v43 = vsel %vm1995_vm5, %v1975_v58, %v1340_v38  ;;  %3793 = vmatprep.mubr.msk.f32.mxu1 %vm1847_vm0, %v3877_v28  ;;  %v3881_v36 = vld [vmem:[%s3988_s12 + $0x63] sm:$0xff]  ;;  %v5967_v58 = vld [vmem:[#allocation56_spill] sm:$0xff]  ;;  %v374_v28 = vld [vmem:[%s3988_s12 + $0x98] sm:$0xff] }
 0x205   : > { %v1486_v25 = vpop.permute.xlu1 %1485  ;;  %v1484_v31 = vpop.permute.xlu0 %1483  ;;  %3794 = vmatmul.mubr.msk.f32.gmra.mxu1 %vm1847_vm0, %v3878_v21  ;;  %v1867_v0 = vsel %vm1847_vm0, %v374_v28, %v5969_v61  ;;  %v3557_v61 = vld [vmem:[%s3988_s12 + $0x12e] sm:$0xff] }
 0x206   : > { %v2049_v62 = vsel %vm2032_vm6, %v2012_v43, %v1484_v31  ;;  %3796 = vmatprep.mubr.msk.f32.mxu1 %vm1847_vm0, %v3879_v49  ;;  %v2050_v60 = vsel %vm2032_vm6, %v2013_v9, %v1486_v25  ;;  %v3553_v25 = vld [vmem:[%s3988_s12 + $0x10e] sm:$0xff] }
 0x207   : > { %1365 = vrot.lane.b32.xlu1 %v3479_v32, %s3915_s25  ;;  %1793 = vrot.lane.b32.xlu0 %v3551_v18, %s3918_s13  ;;  %v3882_v18 = vld [vmem:[%s3988_s12 + $0x6b] sm:$0xff]  ;;  %v3883_v31 = vld [vmem:[%s3988_s12 + $0x73] sm:$0xff] }
 0x209   : > { %v5127_v40 = vpop.permute.xlu1 %1199  ;;  %v1628_v32 = vpop.permute.xlu0 %1627  ;;  %3797 = vmatmul.mubr.msk.f32.gmra.mxu1 %vm1847_vm0, %v3880_v30  ;;  %v5246_v30 = vld [vmem:[%s3988_s12 + $0x11b] sm:$0xff] }
 0x20a   : > { %v2086_v8 = vsel %vm2069_vm7, %v2049_v62, %v1628_v32  ;;  %3799 = vmatprep.mubr.msk.f32.mxu1 %vm1847_vm0, %v3881_v36  ;;  %v5966_v32 = vld [vmem:[#allocation73_spill] sm:$0xff]  ;;  %v5968_v62 = vld [vmem:[#allocation74_spill] sm:$0xff] }
 0x20b   : > { %1509 = vrot.lane.b32.xlu1 %v5120_v26, %s3916_s10  ;;  %1507 = vrot.lane.b32.xlu0 %v3480_v50, %s3916_s10  ;;  %v375_v36 = vld [vmem:[%s3988_s12 + $0xa0] sm:$0xff] }
 0x20d   : > { %v1772_v34 = vpop.permute.xlu1 %1771  ;;  %v1630_v16 = vpop.permute.xlu0 %1629  ;;  %3800 = vmatmul.mubr.msk.f32.gmra.mxu1 %vm1847_vm0, %v3882_v18 }
 0x20e   : > { %v2123_v2 = vsel %vm2106_vm8, %v2086_v8, %v1772_v34  ;;  %v2087_v41 = vsel %vm2069_vm7, %v2050_v60, %v1630_v16  ;;  %3802 = vmatprep.mubr.msk.f32.mxu1 %vm1847_vm0, %v3883_v31  ;;  %v5214_v34 = vld [vmem:[%s3988_s12 + $0x113] sm:$0xff] }
 0x20f   : > { %1223 = vrot.lane.b32.xlu1 %v5139_v14, %s3914_s16  ;;  %1651 = vrot.lane.b32.xlu0 %v3516_v20, %s3917_s11  ;;  %v3518_v16 = vld [vmem:[%s3988_s12 + $0x115] sm:$0xff] }
 0x210   : > { %3752 = vmatprep.mubr.msk.f32.mxu0 %vm2148_vm9, %v2123_v2 }
 0x211   : > { %v1344_v38 = vpop.permute.xlu1 %1343  ;;  %v5162_v53 = vpop.permute.xlu0 %1201  ;;  %3803 = vmatmul.mubr.msk.f32.gmra.mxu1 %vm1847_vm0, %v3884_v3 }
 0x212   : > { %3805 = vmatprep.mubr.msk.f32.mxu1 %vm1847_vm0, %v5966_v32  ;;  %v5975_v32 = vld [vmem:[#allocation9_spill] sm:$0xff] }
 0x213   : > { %1795 = vrot.lane.b32.xlu1 %v3552_v54, %s3918_s13  ;;  %1653 = vrot.lane.b32.xlu0 %v3517_v46, %s3917_s11  ;;  %v3554_v54 = vld [vmem:[%s3988_s12 + $0x116] sm:$0xff] }
 0x214   : > { %v3519_v46 = vld [vmem:[%s3988_s12 + $0x11d] sm:$0xff] }
 0x215   : > { %v1346_v52 = vpop.permute.xlu1 %1345  ;;  %v1774_v11 = vpop.permute.xlu0 %1773  ;;  %3806 = vmatmul.mubr.msk.f32.gmra.mxu1 %vm1847_vm0, %v5968_v62 }
 0x216   : > { %v2124_v51 = vsel %vm2106_vm8, %v2087_v41, %v1774_v11  ;;  %3808 = vmatprep.mubr.msk.f32.mxu1 %vm1847_vm0, %v4723_v23  ;;  %v1904_v23 = vsel %vm1884_vm2, %v1867_v0, %v5970_v22  ;;  %v5972_v11 = vld [vmem:[#allocation10_spill] sm:$0xff]  ;;  %v5978_v22 = vld [vmem:[#allocation12_spill] sm:$0xff] }
 0x217   : > { %1367 = vrot.lane.b32.xlu1 %v3480_v50, %s3915_s25  ;;  %1225 = vrot.lane.b32.xlu0 %v5173_v1, %s3914_s16  ;;  %v5965_v50 = vld [vmem:[#allocation32_spill] sm:$0xff] }
 0x218   : > { %3753 = vmatmul.mubr.msk.f32.gmra.mxu0 %vm2148_vm9, %v2124_v51  ;;  %v1903_v39 = vsel %vm1884_vm2, %v1866_v27, %v5965_v50  ;;  %v5973_v51 = vld [vmem:[#allocation34_spill] sm:$0xff] }
 0x219   : > { %v1490_v33 = vpop.permute.xlu1 %1489  ;;  %v1488_v24 = vpop.permute.xlu0 %1487  ;;  %v1940_v4 = vsel %vm1921_vm3, %v1903_v39, %v5967_v58  ;;  %3809 = vmatmul.mubr.msk.f32.gmra.mxu1 %vm1847_vm0, %v4752_v15  ;;  %v5971_v15 = vld [vmem:[#allocation55_spill] sm:$0xff]  ;;  %v1869_v58 = vsel %vm1847_vm0, %v376_v17, %v5975_v32 }
 0x21a   : > { %3811 = vmatprep.mubr.msk.f32.mxu1 %vm1847_vm0, %v4784_v63  ;;  %v1941_v49 = vsel %vm1921_vm3, %v1904_v23, %v5971_v15  ;;  %v3414_v27 = vld [vmem:[%s3988_s12 + $0x123] sm:$0xff]  ;;  %v5979_v23 = vld [vmem:[#allocation36_spill] sm:$0xff] }
 0x21b   : > { %1369 = vrot.lane.b32.xlu1 %v5120_v26, %s3915_s25  ;;  %1797 = vrot.lane.b32.xlu0 %v3553_v25, %s3918_s13  ;;  %v1977_v26 = vsel %vm1958_vm4, %v1940_v4, %v5127_v40  ;;  %v5974_v25 = vld [vmem:[#allocation58_spill] sm:$0xff]  ;;  %v5976_v4 = vld [vmem:[#allocation33_spill] sm:$0xff]  ;;  %v5980_v15 = vld [vmem:[#allocation60_spill] sm:$0xff] }
 0x21c   : > { %v2014_v20 = vsel %vm1995_vm5, %v1977_v26, %v1344_v38  ;;  %v1978_v38 = vsel %vm1958_vm4, %v1941_v49, %v5162_v53  ;;  %v3520_v50 = vld [vmem:[%s3988_s12 + $0x125] sm:$0xff]  ;;  %v5977_v26 = vld [vmem:[#allocation57_spill] sm:$0xff] }
 0x21d   : > { %v1204_v43 = vpop.permute.xlu1 %1203  ;;  %v1632_v19 = vpop.permute.xlu0 %1631  ;;  %v2051_v8 = vsel %vm2032_vm6, %v2014_v20, %v1488_v24  ;;  %3812 = vmatmul.mubr.msk.f32.gmra.mxu1 %vm1847_vm0, %v4808_v35  ;;  %v2015_v6 = vsel %vm1995_vm5, %v1978_v38, %v1346_v52 }
 0x21e   : > { %v2088_v40 = vsel %vm2069_vm7, %v2051_v8, %v1632_v19  ;;  %v2052_v63 = vsel %vm2032_vm6, %v2015_v6, %v1490_v33  ;;  %3814 = vmatprep.mubr.msk.f32.mxu1 %vm1847_vm0, %v4845_v47  ;;  %v3555_v47 = vld [vmem:[%s3988_s12 + $0x11e] sm:$0xff]  ;;  %v3521_v19 = vld [vmem:[%s3988_s12 + $0x12d] sm:$0xff] }
 0x21f   : > { %1513 = vrot.lane.b32.xlu1 %v3483_v56, %s3916_s10  ;;  %1511 = vrot.lane.b32.xlu0 %v3482_v48, %s3916_s10 }
 0x221   : > { %v1776_v2 = vpop.permute.xlu1 %1775  ;;  %v1634_v21 = vpop.permute.xlu0 %1633  ;;  %3815 = vmatmul.mubr.msk.f32.gmra.mxu1 %vm1847_vm0, %v4865_v37  ;;  %v1868_v37 = vsel %vm1847_vm0, %v375_v36, %v5972_v11 }
 0x222   : > { %v2125_v13 = vsel %vm2106_vm8, %v2088_v40, %v1776_v2  ;;  %v2089_v9 = vsel %vm2069_vm7, %v2052_v63, %v1634_v21  ;;  %3817 = vmatprep.mubr.msk.f32.mxu1 %vm1847_vm0, %v4901_v7  ;;  %v1905_v18 = vsel %vm1884_vm2, %v1868_v37, %v5973_v51  ;;  %v3484_v7 = vld [vmem:[%s3988_s12 + $0x124] sm:$0xff]  ;;  %v378_v63 = vld [vmem:[%s3988_s12 + $0xb8] sm:$0xff] }
 0x223   : > { %1227 = vrot.lane.b32.xlu1 %v5214_v34, %s3914_s16  ;;  %1655 = vrot.lane.b32.xlu0 %v3518_v16, %s3917_s11  ;;  %v3415_v16 = vld [vmem:[%s3988_s12 + $0x12b] sm:$0xff] }
 0x224   : > { %3755 = vmatprep.mubr.msk.f32.mxu0 %vm2148_vm9, %v2125_v13  ;;  %v377_v13 = vld [vmem:[%s3988_s12 + $0xb0] sm:$0xff]  ;;  %v5982_v37 = vld [vmem:[#allocation35_spill] sm:$0xff] }
 0x225   : > { %v1348_v12 = vpop.permute.xlu1 %1347  ;;  %v1206_v10 = vpop.permute.xlu0 %1205  ;;  %3818 = vmatmul.mubr.msk.f32.gmra.mxu1 %vm1847_vm0, %v4927_v59  ;;  %v1942_v59 = vsel %vm1921_vm3, %v1905_v18, %v5974_v25  ;;  %v3558_v25 = vld [vmem:[%s3988_s12 + $0x136] sm:$0xff] }
 0x226   : > { %3820 = vmatprep.mubr.msk.f32.mxu1 %vm1847_vm0, %v4958_v42  ;;  %v1979_v24 = vsel %vm1958_vm4, %v1942_v59, %v1204_v43  ;;  %v3556_v43 = vld [vmem:[%s3988_s12 + $0x126] sm:$0xff] }
 0x227   : > { %1799 = vrot.lane.b32.xlu1 %v3554_v54, %s3918_s13  ;;  %1657 = vrot.lane.b32.xlu0 %v3519_v46, %s3917_s11  ;;  %v2016_v3 = vsel %vm1995_vm5, %v1979_v24, %v1348_v12  ;;  %v3487_v46 = vld [vmem:[%s3988_s12 + $0x13c] sm:$0xff]  ;;  %v5983_v59 = vld [vmem:[#allocation59_spill] sm:$0xff] }
 0x229   : > { %v1350_v53 = vpop.permute.xlu1 %1349  ;;  %v1778_v60 = vpop.permute.xlu0 %1777  ;;  %3821 = vmatmul.mubr.msk.f32.gmra.mxu1 %vm1847_vm0, %v4988_v44 }
 0x22a   : > { %v2126_v35 = vsel %vm2106_vm8, %v2089_v9, %v1778_v60  ;;  %3823 = vmatprep.mubr.msk.f32.mxu1 %vm1847_vm0, %v5016_v45  ;;  %v1906_v45 = vsel %vm1884_vm2, %v1869_v58, %v5976_v4  ;;  %v3523_v9 = vld [vmem:[%s3988_s12 + $0x13d] sm:$0xff] }
 0x22b   : > { %1371 = vrot.lane.b32.xlu1 %v3482_v48, %s3915_s25  ;;  %1229 = vrot.lane.b32.xlu0 %v5246_v30, %s3914_s16 }
 0x22c   : > { %3756 = vmatmul.mubr.msk.f32.gmra.mxu0 %vm2148_vm9, %v2126_v35 }
 0x22d   : > { %v1494_v41 = vpop.permute.xlu1 %1493  ;;  %v1492_v52 = vpop.permute.xlu0 %1491  ;;  %3824 = vmatmul.mubr.msk.f32.gmra.mxu1 %vm1847_vm0, %v5040_v57  ;;  %v1943_v57 = vsel %vm1921_vm3, %v1906_v45, %v5977_v26 }
 0x22e   : > { %v2053_v42 = vsel %vm2032_vm6, %v2016_v3, %v1492_v52  ;;  %3826 = vmatprep.mubr.msk.f32.mxu1 %vm1847_vm0, %v5067_v55  ;;  %v1980_v28 = vsel %vm1958_vm4, %v1943_v57, %v1206_v10  ;;  %v5981_v52 = vld [vmem:[#allocation11_spill] sm:$0xff] }
 0x22f   : > { %1373 = vrot.lane.b32.xlu1 %v3483_v56, %s3915_s25  ;;  %1801 = vrot.lane.b32.xlu0 %v3555_v47, %s3918_s13  ;;  %v2017_v8 = vsel %vm1995_vm5, %v1980_v28, %v1350_v53  ;;  %v3522_v53 = vld [vmem:[%s3988_s12 + $0x135] sm:$0xff]  ;;  %v1871_v11 = vsel %vm1847_vm0, %v378_v63, %v5981_v52  ;;  %v5985_v28 = vld [vmem:[#allocation38_spill] sm:$0xff] }
 0x230   : > { %v2054_v55 = vsel %vm2032_vm6, %v2017_v8, %v1494_v41  ;;  %v5353_v41 = vld [vmem:[%s5861_s2] ss:$0 sm:$0xff]  ;;  %v1908_v51 = vsel %vm1884_vm2, %v1871_v11, %v5982_v37 }
 0x231   : > { %v1208_v31 = vpop.permute.xlu1 %1207  ;;  %v1636_v33 = vpop.permute.xlu0 %1635  ;;  %3827 = vmatmul.mubr.msk.f32.gmra.mxu1 %vm1847_vm0, %v5095_v29 }
 0x232   : > { %v2090_v39 = vsel %vm2069_vm7, %v2053_v42, %v1636_v33  ;;  %3829 = vmatprep.mubr.msk.f32.mxu1 %vm1847_vm0, %v5139_v14 }
 0x233   : > { %1517 = vrot.lane.b32.xlu1 %v3485_v5, %s3916_s10  ;;  %1515 = vrot.lane.b32.xlu0 %v3484_v7, %s3916_s10 }
 0x235   : > { %v1780_v56 = vpop.permute.xlu1 %1779  ;;  %v1638_v44 = vpop.permute.xlu0 %1637  ;;  %3830 = vmatmul.mubr.msk.f32.gmra.mxu1 %vm1847_vm0, %v5173_v1  ;;  %v1870_v1 = vsel %vm1847_vm0, %v377_v13, %v5978_v22  ;;  %v380_v13 = vld [vmem:[%s3988_s12 + $0xc8] sm:$0xff] }
 0x236   : > { %v2127_v48 = vsel %vm2106_vm8, %v2090_v39, %v1780_v56  ;;  %v2091_v40 = vsel %vm2069_vm7, %v2054_v55, %v1638_v44  ;;  %3832 = vmatprep.mubr.msk.f32.mxu1 %vm1847_vm0, %v5214_v34  ;;  %v1907_v54 = vsel %vm1884_vm2, %v1870_v1, %v5979_v23  ;;  %v3486_v34 = vld [vmem:[%s3988_s12 + $0x134] sm:$0xff]  ;;  %v5986_v55 = vld [vmem:[#allocation62_spill] sm:$0xff] }
 0x237   : > { %1231 = vrot.lane.b32.xlu1 %v3414_v27, %s3914_s16  ;;  %1659 = vrot.lane.b32.xlu0 %v3520_v50, %s3917_s11  ;;  %v1944_v49 = vsel %vm1921_vm3, %v1907_v54, %v5980_v15 }
 0x238   : > { %3758 = vmatprep.mubr.msk.f32.mxu0 %vm2148_vm9, %v2127_v48  ;;  %v1981_v38 = vsel %vm1958_vm4, %v1944_v49, %v1208_v31  ;;  %v1945_v31 = vsel %vm1921_vm3, %v1908_v51, %v5983_v59 }
 0x239   : > { %v1352_v62 = vpop.permute.xlu1 %1351  ;;  %v1210_v20 = vpop.permute.xlu0 %1209  ;;  %3833 = vmatmul.mubr.msk.f32.gmra.mxu1 %vm1847_vm0, %v5246_v30 }
 0x23a   : > { %3835 = vmatprep.mubr.msk.f32.mxu1 %vm1847_vm0, %v3414_v27  ;;  %v2018_v6 = vsel %vm1995_vm5, %v1981_v38, %v1352_v62  ;;  %v1982_v17 = vsel %vm1958_vm4, %v1945_v31, %v1210_v20  ;;  %v5984_v62 = vld [vmem:[#allocation14_spill] sm:$0xff]  ;;  %v5990_v31 = vld [vmem:[#allocation16_spill] sm:$0xff] }
 0x23b   : > { %1803 = vrot.lane.b32.xlu1 %v3556_v43, %s3918_s13  ;;  %1661 = vrot.lane.b32.xlu0 %v3521_v19, %s3917_s11  ;;  %v379_v19 = vld [vmem:[%s3988_s12 + $0xc0] sm:$0xff] }
 0x23c   : > { %v1872_v20 = vsel %vm1847_vm0, %v379_v19, %v5984_v62 }
 0x23d   : > { %v1354_v2 = vpop.permute.xlu1 %1353  ;;  %v1782_v21 = vpop.permute.xlu0 %1781  ;;  %3836 = vmatmul.mubr.msk.f32.gmra.mxu1 %vm1847_vm0, %v3415_v16  ;;  %v1909_v8 = vsel %vm1884_vm2, %v1872_v20, %v5985_v28 }
 0x23e   : > { %v2128_v29 = vsel %vm2106_vm8, %v2091_v40, %v1782_v21  ;;  %v2019_v27 = vsel %vm1995_vm5, %v1982_v17, %v1354_v2 }
 0x23f   : > { %1375 = vrot.lane.b32.xlu1 %v3484_v7, %s3915_s25  ;;  %1233 = vrot.lane.b32.xlu0 %v3415_v16, %s3914_s16  ;;  %v3559_v7 = vld [vmem:[%s3988_s12 + $0x13e] sm:$0xff]  ;;  %v1946_v16 = vsel %vm1921_vm3, %v1909_v8, %v5986_v55  ;;  %v5993_v8 = vld [vmem:[#allocation15_spill] sm:$0xff] }
 0x240   : > { %3759 = vmatmul.mubr.msk.f32.gmra.mxu0 %vm2148_vm9, %v2128_v29 }
 0x241   : > { %v1498_v14 = vpop.permute.xlu1 %1497  ;;  %v1496_v0 = vpop.permute.xlu0 %1495 }
 0x242   : > { %v2055_v30 = vsel %vm2032_vm6, %v2018_v6, %v1496_v0  ;;  %v2056_v56 = vsel %vm2032_vm6, %v2019_v27, %v1498_v14  ;;  %v5989_v6 = vld [vmem:[#allocation61_spill] sm:$0xff] }
 0x243   : > { %1377 = vrot.lane.b32.xlu1 %v3485_v5, %s3915_s25  ;;  %1805 = vrot.lane.b32.xlu0 %v3557_v61, %s3918_s13  ;;  %v5365_v5 = vld [vmem:[%s5862_s3] ss:$0 sm:$0xff] }
 0x245   : > { %v1212_v12 = vpop.permute.xlu1 %1211  ;;  %v1640_v10 = vpop.permute.xlu0 %1639 }
 0x246   : > { %v2092_v60 = vsel %vm2069_vm7, %v2055_v30, %v1640_v10  ;;  %v1983_v21 = vsel %vm1958_vm4, %v1946_v16, %v1212_v12  ;;  %v5988_v10 = vld [vmem:[#allocation37_spill] sm:$0xff] }
 0x247   : > { %1521 = vrot.lane.b32.xlu1 %v3487_v46, %s3916_s10  ;;  %1519 = vrot.lane.b32.xlu0 %v3486_v34, %s3916_s10  ;;  %v5987_v34 = vld [vmem:[#allocation13_spill] sm:$0xff] }
 0x248   : > { %v1873_v15 = vsel %vm1847_vm0, %v380_v13, %v5987_v34  ;;  %v383_v34 = vld [vmem:[%s3988_s12 + $0xe0] sm:$0xff] }
 0x249   : > { %v1784_v35 = vpop.permute.xlu1 %1783  ;;  %v1642_v36 = vpop.permute.xlu0 %1641  ;;  %v1910_v38 = vsel %vm1884_vm2, %v1873_v15, %v5988_v10 }
 0x24a   : > { %v2129_v47 = vsel %vm2106_vm8, %v2092_v60, %v1784_v35  ;;  %v2093_v44 = vsel %vm2069_vm7, %v2056_v56, %v1642_v36  ;;  %v1947_v63 = vsel %vm1921_vm3, %v1910_v38, %v5989_v6  ;;  %v5996_v6 = vld [vmem:[#allocation18_spill] sm:$0xff] }
 0x24b   : > { %1665 = vrot.lane.b32.xlu1 %v3523_v9, %s3917_s11  ;;  %1663 = vrot.lane.b32.xlu0 %v3522_v53, %s3917_s11  ;;  %s5616_s11 = scalar_lea.vmem %s5867_s8, %s3839_s18 }
 0x24c   : > { %v3730_v18 = vpop.f32.mrf.mxu0  ;;  %3761 = vmatprep.mubr.msk.f32.mxu0 %vm2148_vm9, %v2129_v47 }
 0x24d   : > { %v2514_v33 = vmul.f32 %v3730_v18, %v5353_v41  ;;  %v1356_v24 = vpop.permute.xlu1 %1355  ;;  %v1214_v3 = vpop.permute.xlu0 %1213 }
 0x24e   : > { %v2327_v42 = vpop.f32.mrf.mxu0  ;;  %v2020_v29 = vsel %vm1995_vm5, %v1983_v21, %v1356_v24  ;;  %v1984_v35 = vsel %vm1958_vm4, %v1947_v63, %v1214_v3  ;;  %v5991_v24 = vld [vmem:[#allocation40_spill] sm:$0xff]  ;;  %v5995_v21 = vld [vmem:[#allocation63_spill] sm:$0xff]  ;;  %v1876_v63 = vsel %vm1847_vm0, %v383_v34, %v5996_v6 }
 0x24f   : > { %v2557_v50 = vadd.f32 %v5365_v5, %v2514_v33  ;;  %v2513_v39 = vmul.f32 %v5353_v41, %v2327_v42  ;;  %1809 = vrot.lane.b32.xlu1 %v3559_v7, %s3918_s13  ;;  %1807 = vrot.lane.b32.xlu0 %v3558_v25, %s3918_s13  ;;  %v381_v7 = vld [vmem:[%s3988_s12 + $0xd0] sm:$0xff] }
 0x250   : > { %v1874_v33 = vsel %vm1847_vm0, %v381_v7, %v5990_v31  ;;  %v5992_v42 = vld [vmem:[#allocation64_spill] sm:$0xff] }
 0x251   : > { %v2593_v48 = vmax.f32 %v2557_v50, 0.0  ;;  %v2556_v32 = vadd.f32 %v5365_v5, %v2513_v39  ;;  %v1358_v58 = vpop.permute.xlu1 %1357  ;;  %v1786_v4 = vpop.permute.xlu0 %1785  ;;  %v1911_v3 = vsel %vm1884_vm2, %v1874_v33, %v5991_v24 }
 0x252   : > { %v2130_v45 = vsel %vm2106_vm8, %v2093_v44, %v1786_v4  ;;  %v2021_v36 = vsel %vm1995_vm5, %v1984_v35, %v1358_v58  ;;  %v1948_v27 = vsel %vm1921_vm3, %v1911_v3, %v5992_v42  ;;  %v5998_v35 = vld [vmem:[#allocation66_spill] sm:$0xff] }
 0x253   : > { %2629 = vst.msk [vmem:[%s5385_s23 + $0x8] sm:$0xff] %vm1884_vm2, %v2593_v48  ;;  %v2592_v43 = vmax.f32 %v2556_v32, 0.0  ;;  %3762 = vmatmul.mubr.msk.f32.gmra.mxu0 %vm2148_vm9, %v2130_v45  ;;  %v382_v45 = vld [vmem:[%s3988_s12 + $0xd8] sm:$0xff] }
 0x254   : > { %v1875_v55 = vsel %vm1847_vm0, %v382_v45, %v5993_v8 }
 0x255   : > { %2628 = vst.msk [vmem:[%s5385_s23] sm:$0xff] %vm1884_vm2, %v2592_v43  ;;  %v1502_v26 = vpop.permute.xlu1 %1501  ;;  %v1500_v57 = vpop.permute.xlu0 %1499 }
 0x256   : > { %v2057_v61 = vsel %vm2032_vm6, %v2020_v29, %v1500_v57  ;;  %v2058_v52 = vsel %vm2032_vm6, %v2021_v36, %v1502_v26 }
 0x259   : > { %v1216_v40 = vpop.permute.xlu1 %1215  ;;  %v1644_v2 = vpop.permute.xlu0 %1643 }
 0x25a   : > { %v2094_v0 = vsel %vm2069_vm7, %v2057_v61, %v1644_v2  ;;  %v1985_v44 = vsel %vm1958_vm4, %v1948_v27, %v1216_v40  ;;  %v5994_v40 = vld [vmem:[#allocation39_spill] sm:$0xff]  ;;  %v6000_v27 = vld [vmem:[#allocation41_spill] sm:$0xff] }
 0x25b   : > { %v1912_v2 = vsel %vm1884_vm2, %v1875_v55, %v5994_v40  ;;  %v385_v55 = vld [vmem:[%s3988_s12 + $0xf0] sm:$0xff] }
 0x25c   : > { %v3733_v14 = vpop.f32.mrf.mxu0  ;;  %v1949_v29 = vsel %vm1921_vm3, %v1912_v2, %v5995_v21 }
 0x25d   : > { %v2516_v22 = vmul.f32 %v3733_v14, %v5353_v41  ;;  %v1788_v1 = vpop.permute.xlu1 %1787  ;;  %v1646_v23 = vpop.permute.xlu0 %1645 }
 0x25e   : > { %v2131_v54 = vsel %vm2106_vm8, %v2094_v0, %v1788_v1  ;;  %v2337_v46 = vpop.f32.mrf.mxu0  ;;  %v2095_v11 = vsel %vm2069_vm7, %v2058_v52, %v1646_v23 }
 0x25f   : > { %v2559_v49 = vadd.f32 %v5365_v5, %v2516_v22  ;;  %v2515_v12 = vmul.f32 %v5353_v41, %v2337_v46  ;;  %3764 = vmatprep.mubr.msk.f32.mxu0 %vm2148_vm9, %v2131_v54 }
 0x261   : > { %v2595_v30 = vmax.f32 %v2559_v49, 0.0  ;;  %v2558_v9 = vadd.f32 %v5365_v5, %v2515_v12  ;;  %v1360_v53 = vpop.permute.xlu1 %1359  ;;  %v1218_v60 = vpop.permute.xlu0 %1217 }
 0x262   : > { %v2022_v32 = vsel %vm1995_vm5, %v1985_v44, %v1360_v53  ;;  %v1986_v14 = vsel %vm1958_vm4, %v1949_v29, %v1218_v60  ;;  %v5997_v53 = vld [vmem:[#allocation42_spill] sm:$0xff]  ;;  %v6002_v29 = vld [vmem:[#allocation20_spill] sm:$0xff] }
 0x263   : > { %2631 = vst.msk [vmem:[%s5385_s23 + $0x18] sm:$0xff] %vm1884_vm2, %v2595_v30  ;;  %v2594_v47 = vmax.f32 %v2558_v9, 0.0  ;;  %v1913_v60 = vsel %vm1884_vm2, %v1876_v63, %v5997_v53  ;;  %v6005_v63 = vld [vmem:[#allocation19_spill] sm:$0xff] }
 0x264   : > { %v1950_v36 = vsel %vm1921_vm3, %v1913_v60, %v5998_v35  ;;  %v6007_v35 = vld [vmem:[#allocation67_spill] sm:$0xff] }
 0x265   : > { %2630 = vst.msk [vmem:[%s5385_s23 + $0x10] sm:$0xff] %vm1884_vm2, %v2594_v47  ;;  %v1362_v37 = vpop.permute.xlu1 %1361  ;;  %v1790_v51 = vpop.permute.xlu0 %1789 }
 0x266   : > { %v2132_v18 = vsel %vm2106_vm8, %v2095_v11, %v1790_v51  ;;  %v2023_v0 = vsel %vm1995_vm5, %v1986_v14, %v1362_v37  ;;  %v6003_v14 = vld [vmem:[#allocation44_spill] sm:$0xff] }
 0x267   : > { %3765 = vmatmul.mubr.msk.f32.gmra.mxu0 %vm2148_vm9, %v2132_v18 }
 0x269   : > { %v1506_v25 = vpop.permute.xlu1 %1505  ;;  %v1504_v59 = vpop.permute.xlu0 %1503 }
 0x26a   : > { %v2059_v43 = vsel %vm2032_vm6, %v2022_v32, %v1504_v59  ;;  %v2060_v22 = vsel %vm2032_vm6, %v2023_v0, %v1506_v25  ;;  %v384_v25 = vld [vmem:[%s3988_s12 + $0xe8] sm:$0xff] }
 0x26c   : > { %v3736_v17 = vpop.f32.mrf.mxu0 }
 0x26d   : > { %v2518_v50 = vmul.f32 %v3736_v17, %v5353_v41  ;;  %v1220_v39 = vpop.permute.xlu1 %1219  ;;  %v1648_v56 = vpop.permute.xlu0 %1647  ;;  %v5999_v17 = vld [vmem:[#allocation17_spill] sm:$0xff] }
 0x26e   : > { %v2347_v48 = vpop.f32.mrf.mxu0  ;;  %v2096_v26 = vsel %vm2069_vm7, %v2059_v43, %v1648_v56  ;;  %v1987_v51 = vsel %vm1958_vm4, %v1950_v36, %v1220_v39  ;;  %v1877_v42 = vsel %vm1847_vm0, %v384_v25, %v5999_v17  ;;  %v6001_v39 = vld [vmem:[#allocation65_spill] sm:$0xff] }
 0x26f   : > { %v2561_v58 = vadd.f32 %v5365_v5, %v2518_v50  ;;  %v2517_v4 = vmul.f32 %v5353_v41, %v2347_v48  ;;  %v1914_v50 = vsel %vm1884_vm2, %v1877_v42, %v6000_v27 }
 0x270   : > { %v1951_v56 = vsel %vm1921_vm3, %v1914_v50, %v6001_v39  ;;  %v387_v50 = vld [vmem:[%s3988_s12 + $0x100] sm:$0xff] }
 0x271   : > { %v2597_v19 = vmax.f32 %v2561_v58, 0.0  ;;  %v2560_v57 = vadd.f32 %v5365_v5, %v2517_v4  ;;  %v1792_v62 = vpop.permute.xlu1 %1791  ;;  %v1650_v20 = vpop.permute.xlu0 %1649 }
 0x272   : > { %v2133_v28 = vsel %vm2106_vm8, %v2096_v26, %v1792_v62  ;;  %v2097_v1 = vsel %vm2069_vm7, %v2060_v22, %v1650_v20  ;;  %v6004_v22 = vld [vmem:[#allocation68_spill] sm:$0xff] }
 0x273   : > { %2633 = vst.msk [vmem:[%s5385_s23 + $0x28] sm:$0xff] %vm1884_vm2, %v2597_v19  ;;  %v2596_v16 = vmax.f32 %v2560_v57, 0.0  ;;  %3767 = vmatprep.mubr.msk.f32.mxu0 %vm2148_vm9, %v2133_v28 }
 0x275   : > { %2632 = vst.msk [vmem:[%s5385_s23 + $0x20] sm:$0xff] %vm1884_vm2, %v2596_v16  ;;  %v1364_v13 = vpop.permute.xlu1 %1363  ;;  %v1222_v61 = vpop.permute.xlu0 %1221 }
 0x276   : > { %v2024_v18 = vsel %vm1995_vm5, %v1987_v51, %v1364_v13  ;;  %v1988_v32 = vsel %vm1958_vm4, %v1951_v56, %v1222_v61  ;;  %v1878_v13 = vsel %vm1847_vm0, %v385_v55, %v6002_v29 }
 0x277   : > { %v1915_v0 = vsel %vm1884_vm2, %v1878_v13, %v6003_v14 }
 0x279   : > { %v1366_v23 = vpop.permute.xlu1 %1365  ;;  %v1794_v54 = vpop.permute.xlu0 %1793 }
 0x27a   : > { %v2134_v46 = vsel %vm2106_vm8, %v2097_v1, %v1794_v54  ;;  %v2025_v58 = vsel %vm1995_vm5, %v1988_v32, %v1366_v23  ;;  %v1952_v1 = vsel %vm1921_vm3, %v1915_v0, %v6004_v22  ;;  %v6009_v32 = vld [vmem:[#allocation46_spill] sm:$0xff] }
 0x27b   : > { %3768 = vmatmul.mubr.msk.f32.gmra.mxu0 %vm2148_vm9, %v2134_v46 }
 0x27c   : > { %v3739_v15 = vpop.f32.mrf.mxu0 }
 0x27d   : > { %v2520_v49 = vmul.f32 %v3739_v15, %v5353_v41  ;;  %v1510_v12 = vpop.permute.xlu1 %1509  ;;  %v1508_v10 = vpop.permute.xlu0 %1507  ;;  %v386_v15 = vld [vmem:[%s3988_s12 + $0xf8] sm:$0xff] }
 0x27e   : > { %v2357_v38 = vpop.f32.mrf.mxu0  ;;  %v2061_v59 = vsel %vm2032_vm6, %v2024_v18, %v1508_v10  ;;  %v2062_v4 = vsel %vm2032_vm6, %v2025_v58, %v1510_v12 }
 0x27f   : > { %v2563_v30 = vadd.f32 %v5365_v5, %v2520_v49  ;;  %v2519_v9 = vmul.f32 %v5353_v41, %v2357_v38 }
 0x281   : > { %v2599_v47 = vmax.f32 %v2563_v30, 0.0  ;;  %v2562_v52 = vadd.f32 %v5365_v5, %v2519_v9  ;;  %v1224_v11 = vpop.permute.xlu1 %1223  ;;  %v1652_v37 = vpop.permute.xlu0 %1651  ;;  %v1879_v30 = vsel %vm1847_vm0, %v386_v15, %v6005_v63  ;;  %v6006_v9 = vld [vmem:[#allocation43_spill] sm:$0xff] }
 0x282   : > { %v2098_v31 = vsel %vm2069_vm7, %v2061_v59, %v1652_v37  ;;  %v1989_v46 = vsel %vm1958_vm4, %v1952_v1, %v1224_v11  ;;  %v1916_v53 = vsel %vm1884_vm2, %v1879_v30, %v6006_v9 }
 0x283   : > { %2635 = vst.msk [vmem:[%s5385_s23 + $0x38] sm:$0xff] %vm1884_vm2, %v2599_v47  ;;  %v2598_v7 = vmax.f32 %v2562_v52, 0.0  ;;  %v1953_v36 = vsel %vm1921_vm3, %v1916_v53, %v6007_v35  ;;  %v390_v53 = vld [vmem:[%s3988_s12 + $0x118] sm:$0xff] }
 0x285   : > { %2634 = vst.msk [vmem:[%s5385_s23 + $0x30] sm:$0xff] %vm1884_vm2, %v2598_v7  ;;  %v1796_v33 = vpop.permute.xlu1 %1795  ;;  %v1654_v24 = vpop.permute.xlu0 %1653 }
 0x286   : > { %v2135_v3 = vsel %vm2106_vm8, %v2098_v31, %v1796_v33  ;;  %v2099_v43 = vsel %vm2069_vm7, %v2062_v4, %v1654_v24  ;;  %v6010_v4 = vld [vmem:[#allocation70_spill] sm:$0xff] }
 0x287   : > { %3770 = vmatprep.mubr.msk.f32.mxu0 %vm2148_vm9, %v2135_v3 }
 0x289   : > { %v1368_v44 = vpop.permute.xlu1 %1367  ;;  %v1226_v48 = vpop.permute.xlu0 %1225 }
 0x28a   : > { %v2026_v34 = vsel %vm1995_vm5, %v1989_v46, %v1368_v44  ;;  %v1990_v37 = vsel %vm1958_vm4, %v1953_v36, %v1226_v48  ;;  %v6008_v44 = vld [vmem:[#allocation22_spill] sm:$0xff] }
 0x28b   : > { %v1880_v48 = vsel %vm1847_vm0, %v387_v50, %v6008_v44 }
 0x28c   : > { %v3742_v45 = vpop.f32.mrf.mxu0  ;;  %v1917_v58 = vsel %vm1884_vm2, %v1880_v48, %v6009_v32 }
 0x28d   : > { %v2522_v19 = vmul.f32 %v3742_v45, %v5353_v41  ;;  %v1370_v26 = vpop.permute.xlu1 %1369  ;;  %v1798_v57 = vpop.permute.xlu0 %1797  ;;  %v1954_v45 = vsel %vm1921_vm3, %v1917_v58, %v6010_v4 }
 0x28e   : > { %v2136_v62 = vsel %vm2106_vm8, %v2099_v43, %v1798_v57  ;;  %v2367_v20 = vpop.f32.mrf.mxu0  ;;  %v2027_v18 = vsel %vm1995_vm5, %v1990_v37, %v1370_v26 }
 0x28f   : > { %v2565_v28 = vadd.f32 %v5365_v5, %v2522_v19  ;;  %v2521_v8 = vmul.f32 %v5353_v41, %v2367_v20  ;;  %3771 = vmatmul.mubr.msk.f32.gmra.mxu0 %vm2148_vm9, %v2136_v62  ;;  %v388_v62 = vld [vmem:[%s3988_s12 + $0x108] sm:$0xff] }
 0x291   : > { %v2601_v16 = vmax.f32 %v2565_v28, 0.0  ;;  %v2564_v40 = vadd.f32 %v5365_v5, %v2521_v8  ;;  %v1514_v2 = vpop.permute.xlu1 %1513  ;;  %v1512_v21 = vpop.permute.xlu0 %1511 }
 0x292   : > { %v2063_v49 = vsel %vm2032_vm6, %v2026_v34, %v1512_v21  ;;  %v2064_v59 = vsel %vm2032_vm6, %v2027_v18, %v1514_v2  ;;  %v6012_v21 = vld [vmem:[#allocation45_spill] sm:$0xff] }
 0x293   : > { %2637 = vst.msk [vmem:[%s5385_s23 + $0x48] sm:$0xff] %vm1884_vm2, %v2601_v16  ;;  %v2600_v61 = vmax.f32 %v2564_v40, 0.0  ;;  %v6011_v40 = vld [vmem:[#allocation21_spill] sm:$0xff] }
 0x294   : > { %v1881_v2 = vsel %vm1847_vm0, %v388_v62, %v6011_v40 }
 0x295   : > { %2636 = vst.msk [vmem:[%s5385_s23 + $0x40] sm:$0xff] %vm1884_vm2, %v2600_v61  ;;  %v1228_v23 = vpop.permute.xlu1 %1227  ;;  %v1656_v54 = vpop.permute.xlu0 %1655  ;;  %v1918_v29 = vsel %vm1884_vm2, %v1881_v2, %v6012_v21  ;;  %v6013_v61 = vld [vmem:[#allocation69_spill] sm:$0xff] }
 0x296   : > { %v2100_v12 = vsel %vm2069_vm7, %v2063_v49, %v1656_v54  ;;  %v1991_v26 = vsel %vm1958_vm4, %v1954_v45, %v1228_v23  ;;  %v1955_v14 = vsel %vm1921_vm3, %v1918_v29, %v6013_v61 }
 0x299   : > { %v1800_v10 = vpop.permute.xlu1 %1799  ;;  %v1658_v38 = vpop.permute.xlu0 %1657 }
 0x29a   : > { %v2137_v6 = vsel %vm2106_vm8, %v2100_v12, %v1800_v10  ;;  %v2101_v31 = vsel %vm2069_vm7, %v2064_v59, %v1658_v38  ;;  %v6018_v59 = vld [vmem:[#allocation71_spill] sm:$0xff] }
 0x29b   : > { %3773 = vmatprep.mubr.msk.f32.mxu0 %vm2148_vm9, %v2137_v6 }
 0x29c   : > { %v3745_v60 = vpop.f32.mrf.mxu0 }
 0x29d   : > { %v2524_v47 = vmul.f32 %v3745_v60, %v5353_v41  ;;  %v1372_v52 = vpop.permute.xlu1 %1371  ;;  %v1230_v11 = vpop.permute.xlu0 %1229  ;;  %v389_v60 = vld [vmem:[%s3988_s12 + $0x110] sm:$0xff] }
 0x29e   : > { %v2377_v51 = vpop.f32.mrf.mxu0  ;;  %v2028_v57 = vsel %vm1995_vm5, %v1991_v26, %v1372_v52  ;;  %v1992_v23 = vsel %vm1958_vm4, %v1955_v14, %v1230_v11  ;;  %v6015_v11 = vld [vmem:[#allocation24_spill] sm:$0xff]  ;;  %v5601_v26 = vld [vmem:[%s5864_s5] ss:$0 sm:$0xff] }
 0x29f   : > { %v2567_v7 = vadd.f32 %v5365_v5, %v2524_v47  ;;  %v2523_v25 = vmul.f32 %v5353_v41, %v2377_v51  ;;  %v6014_v47 = vld [vmem:[#allocation23_spill] sm:$0xff]  ;;  %v1882_v37 = vsel %vm1847_vm0, %v389_v60, %v6015_v11 }
 0x2a0   : > { %v1883_v52 = vsel %vm1847_vm0, %v390_v53, %v6014_v47  ;;  %v6016_v51 = vld [vmem:[#allocation47_spill] sm:$0xff] }
 0x2a1   : > { %v2603_v33 = vmax.f32 %v2567_v7, 0.0  ;;  %v2566_v24 = vadd.f32 %v5365_v5, %v2523_v25  ;;  %v1374_v3 = vpop.permute.xlu1 %1373  ;;  %v1802_v17 = vpop.permute.xlu0 %1801  ;;  %v1920_v18 = vsel %vm1884_vm2, %v1883_v52, %v6016_v51  ;;  %v6017_v7 = vld [vmem:[#allocation48_spill] sm:$0xff] }
 0x2a2   : > { %v2138_v42 = vsel %vm2106_vm8, %v2101_v31, %v1802_v17  ;;  %v2029_v46 = vsel %vm1995_vm5, %v1992_v23, %v1374_v3  ;;  %v1919_v25 = vsel %vm1884_vm2, %v1882_v37, %v6017_v7  ;;  %v1957_v31 = vsel %vm1921_vm3, %v1920_v18, %v6018_v59 }
 0x2a3   : > { %2639 = vst.msk [vmem:[%s5385_s23 + $0x58] sm:$0xff] %vm1884_vm2, %v2603_v33  ;;  %v2602_v27 = vmax.f32 %v2566_v24, 0.0  ;;  %3774 = vmatmul.mubr.msk.f32.gmra.mxu0 %vm2148_vm9, %v2138_v42  ;;  %v6019_v33 = vld [vmem:[#allocation72_spill] sm:$0xff] }
 0x2a4   : > { %v1956_v24 = vsel %vm1921_vm3, %v1919_v25, %v6019_v33 }
 0x2a5   : > { %2638 = vst.msk [vmem:[%s5385_s23 + $0x50] sm:$0xff] %vm1884_vm2, %v2602_v27  ;;  %v1518_v39 = vpop.permute.xlu1 %1517  ;;  %v1516_v56 = vpop.permute.xlu0 %1515 }
 0x2a6   : > { %v2065_v20 = vsel %vm2032_vm6, %v2028_v57, %v1516_v56  ;;  %v2066_v49 = vsel %vm2032_vm6, %v2029_v46, %v1518_v39 }
 0x2a9   : > { %v1232_v43 = vpop.permute.xlu1 %1231  ;;  %v1660_v19 = vpop.permute.xlu0 %1659 }
 0x2aa   : > { %v2102_v28 = vsel %vm2069_vm7, %v2065_v20, %v1660_v19  ;;  %v1993_v42 = vsel %vm1958_vm4, %v1956_v24, %v1232_v43  ;;  %v5608_v20 = vld [vmem:[%s5865_s6] ss:$0 sm:$0xff] }
 0x2ac   : > { %v3786_v19 = vpop.f32.mrf.mxu1 }
 0x2ad   : > { %v1804_v8 = vpop.permute.xlu1 %1803  ;;  %v1662_v55 = vpop.permute.xlu0 %1661  ;;  %v2993_v62 = vmul.f32 %v3786_v19, %v5601_v26 }
 0x2ae   : > { %v2139_v16 = vsel %vm2106_vm8, %v2102_v28, %v1804_v8  ;;  %v2103_v12 = vsel %vm2069_vm7, %v2066_v49, %v1662_v55  ;;  %v2806_v28 = vpop.f32.mrf.mxu1 }
 0x2af   : > { %3776 = vmatprep.mubr.msk.f32.mxu0 %vm2148_vm9, %v2139_v16  ;;  %v2992_v55 = vmul.f32 %v5601_v26, %v2806_v28  ;;  %v3036_v40 = vadd.f32 %v5608_v20, %v2993_v62 }
 0x2b0   : > { %v3748_v13 = vpop.f32.mrf.mxu0  ;;  %v3789_v2 = vpop.f32.mrf.mxu1 }
 0x2b1   : > { %v2526_v0 = vmul.f32 %v3748_v13, %v5353_v41  ;;  %v1376_v22 = vpop.permute.xlu1 %1375  ;;  %v1234_v1 = vpop.permute.xlu0 %1233  ;;  %v3035_v13 = vadd.f32 %v5608_v20, %v2992_v55  ;;  %v2995_v61 = vmul.f32 %v3789_v2, %v5601_v26  ;;  %3072 = vst.msk [vmem:[%s5616_s11 + $0x8] sm:$0xff] %vm1884_vm2, %v3036_v40 }
 0x2b2   : > { %v2387_v54 = vpop.f32.mrf.mxu0  ;;  %v1994_v27 = vsel %vm1958_vm4, %v1957_v31, %v1234_v1  ;;  %v2030_v50 = vsel %vm1995_vm5, %v1993_v42, %v1376_v22  ;;  %v2816_v14 = vpop.f32.mrf.mxu1 }
 0x2b3   : > { %v2569_v34 = vadd.f32 %v5365_v5, %v2526_v0  ;;  %v2525_v15 = vmul.f32 %v5353_v41, %v2387_v54  ;;  %3071 = vst.msk [vmem:[%s5616_s11] sm:$0xff] %vm1884_vm2, %v3035_v13  ;;  %v3038_v1 = vadd.f32 %v5608_v20, %v2995_v61  ;;  %v2994_v23 = vmul.f32 %v5601_v26, %v2816_v14 }
 0x2b4   : > { %v3792_v54 = vpop.f32.mrf.mxu1 }
 0x2b5   : > { %v2605_v10 = vmax.f32 %v2569_v34, 0.0  ;;  %v2568_v38 = vadd.f32 %v5365_v5, %v2525_v15  ;;  %v1378_v6 = vpop.permute.xlu1 %1377  ;;  %v1806_v63 = vpop.permute.xlu0 %1805  ;;  %3074 = vst.msk [vmem:[%s5616_s11 + $0x18] sm:$0xff] %vm1884_vm2, %v3038_v1  ;;  %v3037_v34 = vadd.f32 %v5608_v20, %v2994_v23  ;;  %v2997_v15 = vmul.f32 %v3792_v54, %v5601_v26 }
 0x2b6   : > { %v2140_v30 = vsel %vm2106_vm8, %v2103_v12, %v1806_v63  ;;  %v2031_v39 = vsel %vm1995_vm5, %v1994_v27, %v1378_v6  ;;  %v2826_v49 = vpop.f32.mrf.mxu1 }
 0x2b7   : > { %2641 = vst.msk [vmem:[%s5385_s23 + $0x68] sm:$0xff] %vm1884_vm2, %v2605_v10  ;;  %v2604_v9 = vmax.f32 %v2568_v38, 0.0  ;;  %3777 = vmatmul.mubr.msk.f32.gmra.mxu0 %vm2148_vm9, %v2140_v30  ;;  %3073 = vst.msk [vmem:[%s5616_s11 + $0x10] sm:$0xff] %vm1884_vm2, %v3037_v34  ;;  %v3040_v12 = vadd.f32 %v5608_v20, %v2997_v15  ;;  %v2996_v10 = vmul.f32 %v5601_v26, %v2826_v49 }
 0x2b9   : > { %2640 = vst.msk [vmem:[%s5385_s23 + $0x60] sm:$0xff] %vm1884_vm2, %v2604_v9  ;;  %v1522_v35 = vpop.permute.xlu1 %1521  ;;  %v1520_v36 = vpop.permute.xlu0 %1519  ;;  %3076 = vst.msk [vmem:[%s5616_s11 + $0x28] sm:$0xff] %vm1884_vm2, %v3040_v12  ;;  %v3039_v6 = vadd.f32 %v5608_v20, %v2996_v10 }
 0x2ba   : > { %v2068_v56 = vsel %vm2032_vm6, %v2031_v39, %v1522_v35  ;;  %v2067_v44 = vsel %vm2032_vm6, %v2030_v50, %v1520_v36 }
 0x2bb   : > { %3075 = vst.msk [vmem:[%s5616_s11 + $0x20] sm:$0xff] %vm1884_vm2, %v3039_v6 }
 0x2bd   : > { %v1666_v3 = vpop.permute.xlu1 %1665  ;;  %v1664_v17 = vpop.permute.xlu0 %1663 }
 0x2be   : > { %v2105_v48 = vsel %vm2069_vm7, %v2068_v56, %v1666_v3  ;;  %v2104_v32 = vsel %vm2069_vm7, %v2067_v44, %v1664_v17 }
 0x2c1   : > { %v1810_v58 = vpop.permute.xlu1 %1809  ;;  %v1808_v4 = vpop.permute.xlu0 %1807 }
 0x2c2   : > { %v2142_v45 = vsel %vm2106_vm8, %v2105_v48, %v1810_v58  ;;  %v2141_v43 = vsel %vm2106_vm8, %v2104_v32, %v1808_v4 }
 0x2c3   : > { %3779 = vmatprep.mubr.msk.f32.mxu0 %vm2148_vm9, %v2141_v43 }
 0x2c4   : > { %v3751_v57 = vpop.f32.mrf.mxu0  ;;  %3780 = vmatmul.mubr.msk.f32.gmra.mxu0 %vm2148_vm9, %v2142_v45 }
 0x2c5   : > { %v2528_v8 = vmul.f32 %v3751_v57, %v5353_v41  ;;  %v3795_v38 = vpop.f32.mrf.mxu1 }
 0x2c6   : > { %v2397_v16 = vpop.f32.mrf.mxu0  ;;  %v2999_v63 = vmul.f32 %v3795_v38, %v5601_v26 }
 0x2c7   : > { %v2571_v21 = vadd.f32 %v5365_v5, %v2528_v8  ;;  %v2527_v29 = vmul.f32 %v5353_v41, %v2397_v16  ;;  %v2836_v30 = vpop.f32.mrf.mxu1 }
 0x2c8   : > { %v3042_v9 = vadd.f32 %v5608_v20, %v2999_v63  ;;  %v2998_v53 = vmul.f32 %v5601_v26, %v2836_v30 }
 0x2c9   : > { %v2607_v0 = vmax.f32 %v2571_v21, 0.0  ;;  %v2570_v22 = vadd.f32 %v5365_v5, %v2527_v29  ;;  %v3798_v60 = vpop.f32.mrf.mxu1 }
 0x2ca   : > { %3078 = vst.msk [vmem:[%s5616_s11 + $0x38] sm:$0xff] %vm1884_vm2, %v3042_v9  ;;  %v3041_v35 = vadd.f32 %v5608_v20, %v2998_v53  ;;  %v3001_v36 = vmul.f32 %v3798_v60, %v5601_v26 }
 0x2cb   : > { %2643 = vst.msk [vmem:[%s5385_s23 + $0x78] sm:$0xff] %vm1884_vm2, %v2607_v0  ;;  %v2606_v46 = vmax.f32 %v2570_v22, 0.0  ;;  %v2846_v47 = vpop.f32.mrf.mxu1 }
 0x2cc   : > { %3077 = vst.msk [vmem:[%s5616_s11 + $0x30] sm:$0xff] %vm1884_vm2, %v3041_v35  ;;  %v3000_v52 = vmul.f32 %v5601_v26, %v2846_v47  ;;  %v3044_v11 = vadd.f32 %v5608_v20, %v3001_v36 }
 0x2cd   : > { %2642 = vst.msk [vmem:[%s5385_s23 + $0x70] sm:$0xff] %vm1884_vm2, %v2606_v46  ;;  %v3801_v37 = vpop.f32.mrf.mxu1 }
 0x2ce   : > { %v3043_v51 = vadd.f32 %v5608_v20, %v3000_v52  ;;  %3080 = vst.msk [vmem:[%s5616_s11 + $0x48] sm:$0xff] %vm1884_vm2, %v3044_v11  ;;  %v3003_v7 = vmul.f32 %v3801_v37, %v5601_v26 }
 0x2cf   : > { %v2856_v25 = vpop.f32.mrf.mxu1 }
 0x2d0   : > { %3079 = vst.msk [vmem:[%s5616_s11 + $0x40] sm:$0xff] %vm1884_vm2, %v3043_v51  ;;  %v3002_v31 = vmul.f32 %v5601_v26, %v2856_v25  ;;  %v3046_v24 = vadd.f32 %v5608_v20, %v3003_v7 }
 0x2d1   : > { %v3804_v3 = vpop.f32.mrf.mxu1 }
 0x2d2   : > { %v3045_v27 = vadd.f32 %v5608_v20, %v3002_v31  ;;  %v3005_v50 = vmul.f32 %v3804_v3, %v5601_v26  ;;  %3082 = vst.msk [vmem:[%s5616_s11 + $0x58] sm:$0xff] %vm1884_vm2, %v3046_v24 }
 0x2d3   : > { %v2866_v39 = vpop.f32.mrf.mxu1 }
 0x2d4   : > { %3081 = vst.msk [vmem:[%s5616_s11 + $0x50] sm:$0xff] %vm1884_vm2, %v3045_v27  ;;  %v3048_v48 = vadd.f32 %v5608_v20, %v3005_v50  ;;  %v3004_v32 = vmul.f32 %v5601_v26, %v2866_v39 }
 0x2d5   : > { %v3807_v58 = vpop.f32.mrf.mxu1 }
 0x2d6   : > { %3084 = vst.msk [vmem:[%s5616_s11 + $0x68] sm:$0xff] %vm1884_vm2, %v3048_v48  ;;  %v3047_v45 = vadd.f32 %v5608_v20, %v3004_v32  ;;  %v3007_v43 = vmul.f32 %v3807_v58, %v5601_v26 }
 0x2d7   : > { %v2876_v19 = vpop.f32.mrf.mxu1 }
 0x2d8   : > { %v3754_v18 = vpop.f32.mrf.mxu0  ;;  %3083 = vst.msk [vmem:[%s5616_s11 + $0x60] sm:$0xff] %vm1884_vm2, %v3047_v45  ;;  %v3050_v57 = vadd.f32 %v5608_v20, %v3007_v43  ;;  %v3006_v62 = vmul.f32 %v5601_v26, %v2876_v19 }
 0x2d9   : > { %v2530_v59 = vmul.f32 %v3754_v18, %v5353_v41  ;;  %v3810_v28 = vpop.f32.mrf.mxu1 }
 0x2da   : > { %v2407_v33 = vpop.f32.mrf.mxu0  ;;  %3086 = vst.msk [vmem:[%s5616_s11 + $0x78] sm:$0xff] %vm1884_vm2, %v3050_v57  ;;  %v3049_v8 = vadd.f32 %v5608_v20, %v3006_v62  ;;  %v3009_v55 = vmul.f32 %v3810_v28, %v5601_v26 }
 0x2db   : > { %v2573_v17 = vadd.f32 %v5365_v5, %v2530_v59  ;;  %v2529_v42 = vmul.f32 %v5353_v41, %v2407_v33  ;;  %v2886_v16 = vpop.f32.mrf.mxu1 }
 0x2dc   : > { %3085 = vst.msk [vmem:[%s5616_s11 + $0x70] sm:$0xff] %vm1884_vm2, %v3049_v8  ;;  %v3052_v40 = vadd.f32 %v5608_v20, %v3009_v55  ;;  %v3008_v2 = vmul.f32 %v5601_v26, %v2886_v16 }
 0x2dd   : > { %v2609_v56 = vmax.f32 %v2573_v17, 0.0  ;;  %v2572_v44 = vadd.f32 %v5365_v5, %v2529_v42  ;;  %v3813_v21 = vpop.f32.mrf.mxu1 }
 0x2de   : > { %3088 = vst.msk [vmem:[%s5616_s11 + $0x88] sm:$0xff] %vm1884_vm2, %v3052_v40  ;;  %v3051_v29 = vadd.f32 %v5608_v20, %v3008_v2  ;;  %v3011_v13 = vmul.f32 %v3813_v21, %v5601_v26 }
 0x2df   : > { %2645 = vst.msk [vmem:[%s5385_s23 + $0x88] sm:$0xff] %vm1884_vm2, %v2609_v56  ;;  %v2608_v4 = vmax.f32 %v2572_v44, 0.0  ;;  %v2896_v61 = vpop.f32.mrf.mxu1 }
 0x2e0   : > { %3087 = vst.msk [vmem:[%s5616_s11 + $0x80] sm:$0xff] %vm1884_vm2, %v3051_v29  ;;  %v3010_v14 = vmul.f32 %v5601_v26, %v2896_v61  ;;  %v3054_v0 = vadd.f32 %v5608_v20, %v3011_v13 }
 0x2e1   : > { %2644 = vst.msk [vmem:[%s5385_s23 + $0x80] sm:$0xff] %vm1884_vm2, %v2608_v4  ;;  %v3816_v22 = vpop.f32.mrf.mxu1 }
 0x2e2   : > { %v3053_v1 = vadd.f32 %v5608_v20, %v3010_v14  ;;  %3090 = vst.msk [vmem:[%s5616_s11 + $0x98] sm:$0xff] %vm1884_vm2, %v3054_v0  ;;  %v3013_v54 = vmul.f32 %v3816_v22, %v5601_v26 }
 0x2e3   : > { %v2906_v46 = vpop.f32.mrf.mxu1 }
 0x2e4   : > { %3089 = vst.msk [vmem:[%s5616_s11 + $0x90] sm:$0xff] %vm1884_vm2, %v3053_v1  ;;  %v3012_v15 = vmul.f32 %v5601_v26, %v2906_v46  ;;  %v3056_v12 = vadd.f32 %v5608_v20, %v3013_v54 }
 0x2e5   : > { %v3819_v10 = vpop.f32.mrf.mxu1 }
 0x2e6   : > { %v3055_v63 = vadd.f32 %v5608_v20, %v3012_v15  ;;  %v3015_v30 = vmul.f32 %v3819_v10, %v5601_v26  ;;  %3092 = vst.msk [vmem:[%s5616_s11 + $0xa8] sm:$0xff] %vm1884_vm2, %v3056_v12 }
 0x2e7   : > { %v2916_v9 = vpop.f32.mrf.mxu1 }
 0x2e8   : > { %3091 = vst.msk [vmem:[%s5616_s11 + $0xa0] sm:$0xff] %vm1884_vm2, %v3055_v63  ;;  %v3058_v35 = vadd.f32 %v5608_v20, %v3015_v30  ;;  %v3014_v36 = vmul.f32 %v5601_v26, %v2916_v9 }
 0x2e9   : > { %v3822_v47 = vpop.f32.mrf.mxu1 }
 0x2ea   : > { %3094 = vst.msk [vmem:[%s5616_s11 + $0xb8] sm:$0xff] %vm1884_vm2, %v3058_v35  ;;  %v3057_v11 = vadd.f32 %v5608_v20, %v3014_v36  ;;  %v3017_v37 = vmul.f32 %v3822_v47, %v5601_v26 }
 0x2eb   : > { %v2926_v51 = vpop.f32.mrf.mxu1 }
 0x2ec   : > { %v3757_v23 = vpop.f32.mrf.mxu0  ;;  %3093 = vst.msk [vmem:[%s5616_s11 + $0xb0] sm:$0xff] %vm1884_vm2, %v3057_v11  ;;  %v3060_v18 = vadd.f32 %v5608_v20, %v3017_v37  ;;  %v3016_v7 = vmul.f32 %v5601_v26, %v2926_v51 }
 0x2ed   : > { %v2532_v34 = vmul.f32 %v3757_v23, %v5353_v41  ;;  %v3825_v25 = vpop.f32.mrf.mxu1 }
 0x2ee   : > { %v2417_v49 = vpop.f32.mrf.mxu0  ;;  %3096 = vst.msk [vmem:[%s5616_s11 + $0xc8] sm:$0xff] %vm1884_vm2, %v3060_v18  ;;  %v3059_v59 = vadd.f32 %v5608_v20, %v3016_v7  ;;  %v3019_v31 = vmul.f32 %v3825_v25, %v5601_v26 }
 0x2ef   : > { %v2575_v38 = vadd.f32 %v5365_v5, %v2532_v34  ;;  %v2531_v6 = vmul.f32 %v5353_v41, %v2417_v49  ;;  %v2936_v33 = vpop.f32.mrf.mxu1 }
 0x2f0   : > { %3095 = vst.msk [vmem:[%s5616_s11 + $0xc0] sm:$0xff] %vm1884_vm2, %v3059_v59  ;;  %v3062_v24 = vadd.f32 %v5608_v20, %v3019_v31  ;;  %v3018_v3 = vmul.f32 %v5601_v26, %v2936_v33 }
 0x2f1   : > { %v2611_v53 = vmax.f32 %v2575_v38, 0.0  ;;  %v2574_v60 = vadd.f32 %v5365_v5, %v2531_v6  ;;  %v3828_v17 = vpop.f32.mrf.mxu1 }
 0x2f2   : > { %3098 = vst.msk [vmem:[%s5616_s11 + $0xd8] sm:$0xff] %vm1884_vm2, %v3062_v24  ;;  %v3061_v42 = vadd.f32 %v5608_v20, %v3018_v3  ;;  %v3021_v27 = vmul.f32 %v3828_v17, %v5601_v26 }
 0x2f3   : > { %2647 = vst.msk [vmem:[%s5385_s23 + $0x98] sm:$0xff] %vm1884_vm2, %v2611_v53  ;;  %v2610_v52 = vmax.f32 %v2574_v60, 0.0  ;;  %v2946_v50 = vpop.f32.mrf.mxu1 }
 0x2f4   : > { %3097 = vst.msk [vmem:[%s5616_s11 + $0xd0] sm:$0xff] %vm1884_vm2, %v3061_v42  ;;  %v3020_v39 = vmul.f32 %v5601_v26, %v2946_v50  ;;  %v3064_v56 = vadd.f32 %v5608_v20, %v3021_v27 }
 0x2f5   : > { %2646 = vst.msk [vmem:[%s5385_s23 + $0x90] sm:$0xff] %vm1884_vm2, %v2610_v52  ;;  %v3831_v44 = vpop.f32.mrf.mxu1 }
 0x2f6   : > { %v3063_v48 = vadd.f32 %v5608_v20, %v3020_v39  ;;  %3100 = vst.msk [vmem:[%s5616_s11 + $0xe8] sm:$0xff] %vm1884_vm2, %v3064_v56  ;;  %v3023_v58 = vmul.f32 %v3831_v44, %v5601_v26 }
 0x2f7   : > { %v2956_v4 = vpop.f32.mrf.mxu1 }
 0x2f8   : > { %3099 = vst.msk [vmem:[%s5616_s11 + $0xe0] sm:$0xff] %vm1884_vm2, %v3063_v48  ;;  %v3022_v43 = vmul.f32 %v5601_v26, %v2956_v4  ;;  %v3066_v57 = vadd.f32 %v5608_v20, %v3023_v58 }
 0x2f9   : > { %v3834_v62 = vpop.f32.mrf.mxu1 }
 0x2fa   : > { %v3065_v55 = vadd.f32 %v5608_v20, %v3022_v43  ;;  %v3025_v16 = vmul.f32 %v3834_v62, %v5601_v26  ;;  %3102 = vst.msk [vmem:[%s5616_s11 + $0xf8] sm:$0xff] %vm1884_vm2, %v3066_v57 }
 0x2fb   : > { %v2966_v40 = vpop.f32.mrf.mxu1 }
 0x2fc   : > { %3101 = vst.msk [vmem:[%s5616_s11 + $0xf0] sm:$0xff] %vm1884_vm2, %v3065_v55  ;;  %v3068_v29 = vadd.f32 %v5608_v20, %v3025_v16  ;;  %v3024_v13 = vmul.f32 %v5601_v26, %v2966_v40  ;;  %v3885_v40 = vld [vmem:[%s5861_s2] ss:$0 sm:$0xff] }
 0x2fd   : > { %v3837_v61 = vpop.f32.mrf.mxu1 }
 0x2fe   : > { %3104 = vst.msk [vmem:[%s5616_s11 + $0x108] sm:$0xff] %vm1884_vm2, %v3068_v29  ;;  %v3067_v0 = vadd.f32 %v5608_v20, %v3024_v13  ;;  %v3027_v22 = vmul.f32 %v3837_v61, %v5601_v26 }
 0x2ff   : > { %v2976_v1 = vpop.f32.mrf.mxu1 }
 0x300   : > { %v3760_v32 = vpop.f32.mrf.mxu0  ;;  %3103 = vst.msk [vmem:[%s5616_s11 + $0x100] sm:$0xff] %vm1884_vm2, %v3067_v0  ;;  %v3026_v23 = vmul.f32 %v5601_v26, %v2976_v1  ;;  %v3070_v54 = vadd.f32 %v5608_v20, %v3027_v22 }
 0x301   : > { %v2534_v45 = vmul.f32 %v3760_v32, %v5353_v41 }
 0x302   : > { %v2427_v19 = vpop.f32.mrf.mxu0  ;;  %v3069_v46 = vadd.f32 %v5608_v20, %v3026_v23  ;;  %3106 = vst.msk [vmem:[%s5616_s11 + $0x118] sm:$0xff] %vm1884_vm2, %v3070_v54 }
 0x303   : > { %v2577_v28 = vadd.f32 %v5365_v5, %v2534_v45  ;;  %v2533_v8 = vmul.f32 %v5353_v41, %v2427_v19 }
 0x304   : > { %3105 = vst.msk [vmem:[%s5616_s11 + $0x110] sm:$0xff] %vm1884_vm2, %v3069_v46 }
 0x305   : > { %v2613_v2 = vmax.f32 %v2577_v28, 0.0  ;;  %v2576_v21 = vadd.f32 %v5365_v5, %v2533_v8 }
 0x307   : > { %2649 = vst.msk [vmem:[%s5385_s23 + $0xa8] sm:$0xff] %vm1884_vm2, %v2613_v2  ;;  %v2612_v14 = vmax.f32 %v2576_v21, 0.0 }
 0x309   : > { %2648 = vst.msk [vmem:[%s5385_s23 + $0xa0] sm:$0xff] %vm1884_vm2, %v2612_v14 }
 0x313   : > { %v3763_v34 = vpop.f32.mrf.mxu0 }
 0x314   : > { %v2536_v15 = vmul.f32 %v3763_v34, %v5353_v41 }
 0x315   : > { %v2437_v49 = vpop.f32.mrf.mxu0 }
 0x316   : > { %v2579_v12 = vadd.f32 %v5365_v5, %v2536_v15  ;;  %v2535_v10 = vmul.f32 %v5353_v41, %v2437_v49 }
 0x318   : > { %v2615_v38 = vmax.f32 %v2579_v12, 0.0  ;;  %v2578_v26 = vadd.f32 %v5365_v5, %v2535_v10 }
 0x31a   : > { %2651 = vst.msk [vmem:[%s5385_s23 + $0xb8] sm:$0xff] %vm1884_vm2, %v2615_v38  ;;  %v2614_v20 = vmax.f32 %v2578_v26, 0.0 }
 0x31c   : > { %2650 = vst.msk [vmem:[%s5385_s23 + $0xb0] sm:$0xff] %vm1884_vm2, %v2614_v20 }
 0x327   : > { %v3766_v6 = vpop.f32.mrf.mxu0 }
 0x328   : > { %v2538_v63 = vmul.f32 %v3766_v6, %v5353_v41 }
 0x329   : > { %v2447_v30 = vpop.f32.mrf.mxu0 }
 0x32a   : > { %v2581_v9 = vadd.f32 %v5365_v5, %v2538_v63  ;;  %v2537_v53 = vmul.f32 %v5353_v41, %v2447_v30 }
 0x32c   : > { %v2617_v60 = vmax.f32 %v2581_v9, 0.0  ;;  %v2580_v35 = vadd.f32 %v5365_v5, %v2537_v53 }
 0x32e   : > { %2653 = vst.msk [vmem:[%s5385_s23 + $0xc8] sm:$0xff] %vm1884_vm2, %v2617_v60  ;;  %v2616_v36 = vmax.f32 %v2580_v35, 0.0 }
 0x330   : > { %2652 = vst.msk [vmem:[%s5385_s23 + $0xc0] sm:$0xff] %vm1884_vm2, %v2616_v36 }
 0x33b   : > { %v3769_v47 = vpop.f32.mrf.mxu0 }
 0x33c   : > { %v2540_v52 = vmul.f32 %v3769_v47, %v5353_v41 }
 0x33d   : > { %v2457_v11 = vpop.f32.mrf.mxu0 }
 0x33e   : > { %v2583_v37 = vadd.f32 %v5365_v5, %v2540_v52  ;;  %v2539_v51 = vmul.f32 %v5353_v41, %v2457_v11 }
 0x340   : > { %v2619_v18 = vmax.f32 %v2583_v37, 0.0  ;;  %v2582_v7 = vadd.f32 %v5365_v5, %v2539_v51 }
 0x342   : > { %2655 = vst.msk [vmem:[%s5385_s23 + $0xd8] sm:$0xff] %vm1884_vm2, %v2619_v18  ;;  %v2618_v25 = vmax.f32 %v2582_v7, 0.0 }
 0x344   : > { %2654 = vst.msk [vmem:[%s5385_s23 + $0xd0] sm:$0xff] %vm1884_vm2, %v2618_v25 }
 0x34f   : > { %v3772_v59 = vpop.f32.mrf.mxu0 }
 0x350   : > { %v2542_v31 = vmul.f32 %v3772_v59, %v5353_v41 }
 0x351   : > { %v2467_v33 = vpop.f32.mrf.mxu0 }
 0x352   : > { %v2585_v24 = vadd.f32 %v5365_v5, %v2542_v31  ;;  %v2541_v3 = vmul.f32 %v5353_v41, %v2467_v33 }
 0x354   : > { %v2621_v17 = vmax.f32 %v2585_v24, 0.0  ;;  %v2584_v42 = vadd.f32 %v5365_v5, %v2541_v3 }
 0x356   : > { %2657 = vst.msk [vmem:[%s5385_s23 + $0xe8] sm:$0xff] %vm1884_vm2, %v2621_v17  ;;  %v2620_v27 = vmax.f32 %v2584_v42, 0.0 }
 0x358   : > { %2656 = vst.msk [vmem:[%s5385_s23 + $0xe0] sm:$0xff] %vm1884_vm2, %v2620_v27 }
 0x363   : > { %v3775_v50 = vpop.f32.mrf.mxu0 }
 0x364   : > { %v2544_v39 = vmul.f32 %v3775_v50, %v5353_v41 }
 0x365   : > { %v2477_v56 = vpop.f32.mrf.mxu0 }
 0x366   : > { %v2587_v44 = vadd.f32 %v5365_v5, %v2544_v39  ;;  %v2543_v48 = vmul.f32 %v5353_v41, %v2477_v56 }
 0x368   : > { %v2623_v32 = vmax.f32 %v2587_v44, 0.0  ;;  %v2586_v58 = vadd.f32 %v5365_v5, %v2543_v48 }
 0x36a   : > { %2659 = vst.msk [vmem:[%s5385_s23 + $0xf8] sm:$0xff] %vm1884_vm2, %v2623_v32  ;;  %v2622_v4 = vmax.f32 %v2586_v58, 0.0 }
 0x36c   : > { %2658 = vst.msk [vmem:[%s5385_s23 + $0xf0] sm:$0xff] %vm1884_vm2, %v2622_v4 }
 0x377   : > { %v3778_v45 = vpop.f32.mrf.mxu0 }
 0x378   : > { %v2546_v43 = vmul.f32 %v3778_v45, %v5353_v41 }
 0x379   : > { %v2487_v19 = vpop.f32.mrf.mxu0 }
 0x37a   : > { %v2589_v57 = vadd.f32 %v5365_v5, %v2546_v43  ;;  %v2545_v62 = vmul.f32 %v5353_v41, %v2487_v19  ;;  %v3886_v41 = vld [vmem:[%s5862_s3] ss:$0 sm:$0xff] }
 0x37c   : > { %v2625_v28 = vmax.f32 %v2589_v57, 0.0  ;;  %v2588_v8 = vadd.f32 %v5365_v5, %v2545_v62 }
 0x37e   : > { %2661 = vst.msk [vmem:[%s5385_s23 + $0x108] sm:$0xff] %vm1884_vm2, %v2625_v28  ;;  %v2624_v55 = vmax.f32 %v2588_v8, 0.0 }
 0x380   : > { %2660 = vst.msk [vmem:[%s5385_s23 + $0x100] sm:$0xff] %vm1884_vm2, %v2624_v55 }
 0x384   : > { %v3781_v16 = vpop.f32.mrf.mxu0 }
 0x385   : > { %v2548_v2 = vmul.f32 %v3885_v40, %v3781_v16 }
 0x386   : > { %v2497_v21 = vpop.f32.mrf.mxu0 }
 0x387   : > { %v2591_v29 = vadd.f32 %v3886_v41, %v2548_v2  ;;  %v2547_v13 = vmul.f32 %v3885_v40, %v2497_v21 }
 0x389   : > { %v2627_v61 = vmax.f32 %v2591_v29, 0.0  ;;  %v2590_v5 = vadd.f32 %v3886_v41, %v2547_v13 }
 0x38b   : > { %2663 = vst.msk [vmem:[%s5385_s23 + $0x118] sm:$0xff] %vm1884_vm2, %v2627_v61  ;;  %v2626_v14 = vmax.f32 %v2590_v5, 0.0 }
 0x38d   : > { %2662 = vst.msk [vmem:[%s5385_s23 + $0x110] sm:$0xff] %vm1884_vm2, %v2626_v14 }
 0x38e PF: > { %s19_s29 = sadd.s32 1, %s3909_s29   ;;  %s6020_s27 = smov %s3905_s28 }
 0x38f   : > { %p16_p5 = scmp.ge.s32.totalorder %s19_s29, 4   ;;  %s6021_s28 = smov %s6023_s30 }
 0x391   :  { %18 = sbr.rel (!%p16_p5) target bundleno = 2 (0x2), region = 99 }

// kernel: resunet_encoder.11
= control target key start
LH: loop header
LB: loop body
LE: loop exit
PB: predicated region body
PF: predicated region fallthrough
CT: control target
= control target key end

     0   :  { %s3323_s18 = smov 0   ;;  %s3325_s19 = smov 0   ;;  %s5147_s0 = inlined_call_operand.vmem [shape: f32[2,328,8], index: 0, kind: input, shape index: {}]   ;;  %s5148_s1 = inlined_call_operand.vmem [shape: f32[72,8], index: 1, kind: input, shape index: {}]   ;;  %s5149_s2 = inlined_call_operand.vmem [shape: f32[1,8], index: 2, kind: input, shape index: {}]   ;;  %s5150_s3 = inlined_call_operand.vmem [shape: f32[1,8], index: 3, kind: input, shape index: {}]   ;;  %s5151_s4 = inlined_call_operand.vmem [shape: f32[2,288,8], index: 4, kind: input, shape index: {}]   ;;  %s5152_s5 = inlined_call_operand.vmem [shape: f32[2,288,8], index: 5, kind: output, shape index: {}]  }
   0x1   :  { %s3327_s20 = smov 0  }
   0x2 LB: > { %s27_s21 = sadd.s32 1, %s3279_s19  ;;  %p2760_p0 = scmp.ge.s32.totalorder %s3283_s20, 1  ;;  %s3283_s20 = sphi %s3327_s20, %s15_s20   ;;  %s3279_s19 = sphi %s3325_s19, %s5344_s19   ;;  %s3275_s18 = sphi %s3323_s18, %s5343_s18  }
   0x3   : > { %p29_p1 = scmp.ge.s32.totalorder %s27_s21, 2  ;;  %p218_p2 = scmp.lt.s32.totalorder %s3283_s20, 3 }
   0x5   : > { %s5346_s21 = smov (%p29_p1, %s27_s21), 0  ;;  %p219_p3 = pnand %p2760_p0, %p218_p2 }
   0x7   : > { %222 = sbr.rel (%p219_p3) target bundleno = 910 (0x38e), region = 40 }
   0xc   : > { %p259_p4 = scmp.lt.s32.totalorder %s3275_s18, 1  ;;  %s3285_s26 = smov 8   ;;  %vm1778_vm0 = vcmask 64512   ;;  %vm1815_vm1 = vcmask 130048   ;;  %vm1852_vm2 = vcmask 195584   ;;  %vm1889_vm3 = vcmask 261120  }
   0xd   : > { %s3286_s27 = smov 16   ;;  %s3287_s28 = smov 24   ;;  %vm1926_vm4 = vcmask 326656   ;;  %vm1963_vm5 = vcmask 392192   ;;  %vm2000_vm6 = vcmask 457728   ;;  %vm2037_vm7 = vcmask 523264  }
   0xe   : > { %s5348_s18 = smov (!%p259_p4, %s3275_s18), 1  ;;  %s3288_s29 = smov 32   ;;  %vm2083_vm8 = vcmask 588800  }
   0xf   : > { %s3227_s22 = smul.u32 328, %s5348_s18  ;;  %s3289_s30 = smov 40  }
  0x10   : > { %s3290_s14 = smov 48   ;;  %s3292_s8 = smov 64  }
  0x11   : > { %s3347_s25 = scalar_lea.vmem %s5147_s0, %s3227_s22 }
  0x12   : > { %v2766_v0 = vld [vmem:[%s3347_s25 + $0x11] sm:$0xff]  ;;  %v2764_v1 = vld [vmem:[%s3347_s25 + $0x1] sm:$0xff]  ;;  %v2767_v2 = vld [vmem:[%s3347_s25 + $0x19] sm:$0xff] }
  0x13   : > { %666 = vrot.lane.b32.xlu1 %v2766_v0, %s3285_s26  ;;  %662 = vrot.lane.b32.xlu0 %v2764_v1, %s3285_s26  ;;  %v2765_v3 = vld [vmem:[%s3347_s25 + $0x9] sm:$0xff]  ;;  %v2768_v5 = vld [vmem:[%s3347_s25 + $0x21] sm:$0xff] }
  0x14   : > { %v2769_v4 = vld [vmem:[%s3347_s25 + $0x29] sm:$0xff]  ;;  %v2771_v6 = vld [vmem:[%s3347_s25 + $0x39] sm:$0xff]  ;;  %v2770_v7 = vld [vmem:[%s3347_s25 + $0x31] sm:$0xff] }
  0x15   : > { %v2773_v8 = vld [vmem:[%s3347_s25 + $0x49] sm:$0xff]  ;;  %v2772_v9 = vld [vmem:[%s3347_s25 + $0x41] sm:$0xff]  ;;  %v2775_v10 = vld [vmem:[%s3347_s25 + $0x59] sm:$0xff] }
  0x16   : > { %v2774_v11 = vld [vmem:[%s3347_s25 + $0x51] sm:$0xff]  ;;  %v2777_v12 = vld [vmem:[%s3347_s25 + $0x69] sm:$0xff]  ;;  %v2776_v13 = vld [vmem:[%s3347_s25 + $0x61] sm:$0xff] }
  0x17   : > { %668 = vrot.lane.b32.xlu1 %v2767_v2, %s3285_s26  ;;  %664 = vrot.lane.b32.xlu0 %v2765_v3, %s3285_s26  ;;  %v2779_v14 = vld [vmem:[%s3347_s25 + $0x79] sm:$0xff]  ;;  %v2778_v15 = vld [vmem:[%s3347_s25 + $0x71] sm:$0xff] }
  0x18   : > { %v2781_v16 = vld [vmem:[%s3347_s25 + $0x89] sm:$0xff]  ;;  %v2780_v17 = vld [vmem:[%s3347_s25 + $0x81] sm:$0xff]  ;;  %v2783_v18 = vld [vmem:[%s3347_s25 + $0x99] sm:$0xff] }
  0x19   : > { %v2782_v19 = vld [vmem:[%s3347_s25 + $0x91] sm:$0xff]  ;;  %v2785_v20 = vld [vmem:[%s3347_s25 + $0xa9] sm:$0xff]  ;;  %v2784_v21 = vld [vmem:[%s3347_s25 + $0xa1] sm:$0xff] }
  0x1a   : > { %v2787_v22 = vld [vmem:[%s3347_s25 + $0xb9] sm:$0xff]  ;;  %v2786_v23 = vld [vmem:[%s3347_s25 + $0xb1] sm:$0xff]  ;;  %v2789_v24 = vld [vmem:[%s3347_s25 + $0xc9] sm:$0xff] }
  0x1b   : > { %672 = vrot.lane.b32.xlu1 %v2769_v4, %s3285_s26  ;;  %670 = vrot.lane.b32.xlu0 %v2768_v5, %s3285_s26  ;;  %v2788_v25 = vld [vmem:[%s3347_s25 + $0xc1] sm:$0xff]  ;;  %v2791_v26 = vld [vmem:[%s3347_s25 + $0xd9] sm:$0xff] }
  0x1c   : > { %v2790_v27 = vld [vmem:[%s3347_s25 + $0xd1] sm:$0xff]  ;;  %v2793_v28 = vld [vmem:[%s3347_s25 + $0xe9] sm:$0xff]  ;;  %v2792_v29 = vld [vmem:[%s3347_s25 + $0xe1] sm:$0xff] }
  0x1d   : > { %v2795_v30 = vld [vmem:[%s3347_s25 + $0xf9] sm:$0xff]  ;;  %v2794_v31 = vld [vmem:[%s3347_s25 + $0xf1] sm:$0xff]  ;;  %v2797_v32 = vld [vmem:[%s3347_s25 + $0x109] sm:$0xff] }
  0x1e   : > { %v2796_v33 = vld [vmem:[%s3347_s25 + $0x101] sm:$0xff]  ;;  %v2799_v34 = vld [vmem:[%s3347_s25 + $0x119] sm:$0xff]  ;;  %v2798_v35 = vld [vmem:[%s3347_s25 + $0x111] sm:$0xff] }
  0x1f   : > { %676 = vrot.lane.b32.xlu1 %v2771_v6, %s3285_s26  ;;  %674 = vrot.lane.b32.xlu0 %v2770_v7, %s3285_s26  ;;  %v2801_v36 = vld [vmem:[%s3347_s25 + $0xa] sm:$0xff]  ;;  %v2800_v37 = vld [vmem:[%s3347_s25 + $0x2] sm:$0xff] }
  0x20   : > { %v3426_v38 = vld [vmem:[%s3347_s25 + $0x1a] sm:$0xff]  ;;  %v3429_v39 = vld [vmem:[%s3347_s25 + $0x12] sm:$0xff]  ;;  %v3436_v40 = vld [vmem:[%s3347_s25 + $0x2a] sm:$0xff] }
  0x21   : > { %v3439_v41 = vld [vmem:[%s3347_s25 + $0x22] sm:$0xff]  ;;  %v3446_v42 = vld [vmem:[%s3347_s25 + $0x3a] sm:$0xff]  ;;  %v3449_v43 = vld [vmem:[%s3347_s25 + $0x32] sm:$0xff] }
  0x22   : > { %v3456_v44 = vld [vmem:[%s3347_s25 + $0x4a] sm:$0xff]  ;;  %v3459_v45 = vld [vmem:[%s3347_s25 + $0x42] sm:$0xff]  ;;  %v3466_v46 = vld [vmem:[%s3347_s25 + $0x5a] sm:$0xff] }
  0x23   : > { %680 = vrot.lane.b32.xlu1 %v2773_v8, %s3285_s26  ;;  %678 = vrot.lane.b32.xlu0 %v2772_v9, %s3285_s26  ;;  %v3469_v47 = vld [vmem:[%s3347_s25 + $0x52] sm:$0xff]  ;;  %v3476_v48 = vld [vmem:[%s3347_s25 + $0x6a] sm:$0xff] }
  0x24   : > { %v3479_v49 = vld [vmem:[%s3347_s25 + $0x62] sm:$0xff]  ;;  %v3486_v50 = vld [vmem:[%s3347_s25 + $0x7a] sm:$0xff]  ;;  %v3489_v51 = vld [vmem:[%s3347_s25 + $0x72] sm:$0xff] }
  0x25   : > { %v3496_v52 = vld [vmem:[%s3347_s25 + $0x8a] sm:$0xff]  ;;  %v3499_v53 = vld [vmem:[%s3347_s25 + $0x82] sm:$0xff]  ;;  %v3506_v54 = vld [vmem:[%s3347_s25 + $0x9a] sm:$0xff] }
  0x26   : > { %v3509_v55 = vld [vmem:[%s3347_s25 + $0x92] sm:$0xff]  ;;  %v3516_v56 = vld [vmem:[%s3347_s25 + $0xaa] sm:$0xff]  ;;  %v3519_v57 = vld [vmem:[%s3347_s25 + $0xa2] sm:$0xff] }
  0x27   : > { %684 = vrot.lane.b32.xlu1 %v2775_v10, %s3285_s26  ;;  %682 = vrot.lane.b32.xlu0 %v2774_v11, %s3285_s26  ;;  %v3526_v58 = vld [vmem:[%s3347_s25 + $0xba] sm:$0xff]  ;;  %v3529_v59 = vld [vmem:[%s3347_s25 + $0xb2] sm:$0xff] }
  0x28   : > { %v3540_v62 = vld [vmem:[%s3347_s25 + $0xca] sm:$0xff]  ;;  %v3543_v63 = vld [vmem:[%s3347_s25 + $0xc2] sm:$0xff]  ;;  %v3554_v2 = vld [vmem:[%s3347_s25 + $0xda] sm:$0xff] }
  0x29   : > { %v3557_v3 = vld [vmem:[%s3347_s25 + $0xd2] sm:$0xff]  ;;  %v3568_v6 = vld [vmem:[%s3347_s25 + $0xea] sm:$0xff]  ;;  %v3571_v7 = vld [vmem:[%s3347_s25 + $0xe2] sm:$0xff] }
  0x2a   : > { %v3582_v10 = vld [vmem:[%s3347_s25 + $0xfa] sm:$0xff]  ;;  %v3585_v11 = vld [vmem:[%s3347_s25 + $0xf2] sm:$0xff] }
  0x2b   : > { %688 = vrot.lane.b32.xlu1 %v2777_v12, %s3285_s26  ;;  %686 = vrot.lane.b32.xlu0 %v2776_v13, %s3285_s26 }
  0x2f   : > { %692 = vrot.lane.b32.xlu1 %v2779_v14, %s3285_s26  ;;  %690 = vrot.lane.b32.xlu0 %v2778_v15, %s3285_s26  ;;  %v3596_v14 = vld [vmem:[%s3347_s25 + $0x10a] sm:$0xff]  ;;  %v3599_v15 = vld [vmem:[%s3347_s25 + $0x102] sm:$0xff] }
  0x33   : > { %696 = vrot.lane.b32.xlu1 %v2781_v16, %s3285_s26  ;;  %694 = vrot.lane.b32.xlu0 %v2780_v17, %s3285_s26 }
  0x37   : > { %700 = vrot.lane.b32.xlu1 %v2783_v18, %s3285_s26  ;;  %698 = vrot.lane.b32.xlu0 %v2782_v19, %s3285_s26  ;;  %v3610_v18 = vld [vmem:[%s3347_s25 + $0x11a] sm:$0xff]  ;;  %v3613_v19 = vld [vmem:[%s3347_s25 + $0x112] sm:$0xff] }
  0x3b   : > { %704 = vrot.lane.b32.xlu1 %v2785_v20, %s3285_s26  ;;  %702 = vrot.lane.b32.xlu0 %v2784_v21, %s3285_s26 }
  0x3f   : > { %708 = vrot.lane.b32.xlu1 %v2787_v22, %s3285_s26  ;;  %706 = vrot.lane.b32.xlu0 %v2786_v23, %s3285_s26 }
  0x43   : > { %712 = vrot.lane.b32.xlu1 %v2789_v24, %s3285_s26  ;;  %710 = vrot.lane.b32.xlu0 %v2788_v25, %s3285_s26 }
  0x47   : > { %716 = vrot.lane.b32.xlu1 %v2791_v26, %s3285_s26  ;;  %714 = vrot.lane.b32.xlu0 %v2790_v27, %s3285_s26 }
  0x4b   : > { %720 = vrot.lane.b32.xlu1 %v2793_v28, %s3285_s26  ;;  %718 = vrot.lane.b32.xlu0 %v2792_v29, %s3285_s26 }
  0x4f   : > { %724 = vrot.lane.b32.xlu1 %v2795_v30, %s3285_s26  ;;  %722 = vrot.lane.b32.xlu0 %v2794_v31, %s3285_s26 }
  0x53   : > { %728 = vrot.lane.b32.xlu1 %v2797_v32, %s3285_s26  ;;  %726 = vrot.lane.b32.xlu0 %v2796_v33, %s3285_s26 }
  0x57   : > { %732 = vrot.lane.b32.xlu1 %v2799_v34, %s3285_s26  ;;  %730 = vrot.lane.b32.xlu0 %v2798_v35, %s3285_s26  ;;  %s3291_s26 = smov 56  }
  0x5b   : > { %808 = vrot.lane.b32.xlu1 %v2801_v36, %s3286_s27  ;;  %806 = vrot.lane.b32.xlu0 %v2800_v37, %s3286_s27 }
  0x5f   : > { %812 = vrot.lane.b32.xlu1 %v3426_v38, %s3286_s27  ;;  %810 = vrot.lane.b32.xlu0 %v3429_v39, %s3286_s27 }
  0x63   : > { %816 = vrot.lane.b32.xlu1 %v3436_v40, %s3286_s27  ;;  %814 = vrot.lane.b32.xlu0 %v3439_v41, %s3286_s27 }
  0x67   : > { %820 = vrot.lane.b32.xlu1 %v3446_v42, %s3286_s27  ;;  %818 = vrot.lane.b32.xlu0 %v3449_v43, %s3286_s27 }
  0x6b   : > { %824 = vrot.lane.b32.xlu1 %v3456_v44, %s3286_s27  ;;  %822 = vrot.lane.b32.xlu0 %v3459_v45, %s3286_s27 }
  0x6f   : > { %828 = vrot.lane.b32.xlu1 %v3466_v46, %s3286_s27  ;;  %826 = vrot.lane.b32.xlu0 %v3469_v47, %s3286_s27 }
  0x73   : > { %832 = vrot.lane.b32.xlu1 %v3476_v48, %s3286_s27  ;;  %830 = vrot.lane.b32.xlu0 %v3479_v49, %s3286_s27 }
  0x77   : > { %836 = vrot.lane.b32.xlu1 %v3486_v50, %s3286_s27  ;;  %834 = vrot.lane.b32.xlu0 %v3489_v51, %s3286_s27 }
  0x7b   : > { %840 = vrot.lane.b32.xlu1 %v3496_v52, %s3286_s27  ;;  %838 = vrot.lane.b32.xlu0 %v3499_v53, %s3286_s27 }
  0x7f   : > { %844 = vrot.lane.b32.xlu1 %v3506_v54, %s3286_s27  ;;  %842 = vrot.lane.b32.xlu0 %v3509_v55, %s3286_s27 }
  0x83   : > { %848 = vrot.lane.b32.xlu1 %v3516_v56, %s3286_s27  ;;  %846 = vrot.lane.b32.xlu0 %v3519_v57, %s3286_s27 }
  0x85   : > { %v3531_v60 = vpop.permute.xlu1 %666  ;;  %v3533_v61 = vpop.permute.xlu0 %662 }
  0x87   : > { %852 = vrot.lane.b32.xlu1 %v3526_v58, %s3286_s27  ;;  %850 = vrot.lane.b32.xlu0 %v3529_v59, %s3286_s27 }
  0x89   : > { %v3545_v0 = vpop.permute.xlu1 %668  ;;  %v3547_v1 = vpop.permute.xlu0 %664 }
  0x8b   : > { %856 = vrot.lane.b32.xlu1 %v3540_v62, %s3286_s27  ;;  %854 = vrot.lane.b32.xlu0 %v3543_v63, %s3286_s27 }
  0x8d   : > { %v3559_v4 = vpop.permute.xlu1 %672  ;;  %v3561_v5 = vpop.permute.xlu0 %670 }
  0x8f   : > { %860 = vrot.lane.b32.xlu1 %v3554_v2, %s3286_s27  ;;  %858 = vrot.lane.b32.xlu0 %v3557_v3, %s3286_s27 }
  0x91   : > { %v3573_v8 = vpop.permute.xlu1 %676  ;;  %v3575_v9 = vpop.permute.xlu0 %674 }
  0x92   : > { %5153 = vst [vmem:[#allocation2_spill] sm:$0xff] %v3573_v8  ;;  %5154 = vst [vmem:[#allocation3_spill] sm:$0xff] %v3575_v9 }
  0x93   : > { %864 = vrot.lane.b32.xlu1 %v3568_v6, %s3286_s27  ;;  %862 = vrot.lane.b32.xlu0 %v3571_v7, %s3286_s27 }
  0x95   : > { %v3587_v12 = vpop.permute.xlu1 %680  ;;  %v3589_v13 = vpop.permute.xlu0 %678 }
  0x96   : > { %5155 = vst [vmem:[#allocation4_spill] sm:$0xff] %v3587_v12  ;;  %5156 = vst [vmem:[#allocation5_spill] sm:$0xff] %v3589_v13 }
  0x97   : > { %868 = vrot.lane.b32.xlu1 %v3582_v10, %s3286_s27  ;;  %866 = vrot.lane.b32.xlu0 %v3585_v11, %s3286_s27 }
  0x99   : > { %v3601_v16 = vpop.permute.xlu1 %684  ;;  %v3603_v17 = vpop.permute.xlu0 %682 }
  0x9a   : > { %5157 = vst [vmem:[#allocation6_spill] sm:$0xff] %v3601_v16  ;;  %5158 = vst [vmem:[#allocation7_spill] sm:$0xff] %v3603_v17  ;;  %v2078_v16 = vld [vmem:[%s5148_s1 + $0x20] sm:$0xff] }
  0x9b   : > { %872 = vrot.lane.b32.xlu1 %v3596_v14, %s3286_s27  ;;  %870 = vrot.lane.b32.xlu0 %v3599_v15, %s3286_s27 }
  0x9d   : > { %v3615_v20 = vpop.permute.xlu1 %688  ;;  %v3617_v21 = vpop.permute.xlu0 %686 }
  0x9e   : > { %5159 = vst [vmem:[#allocation8_spill] sm:$0xff] %v3615_v20  ;;  %5160 = vst [vmem:[#allocation9_spill] sm:$0xff] %v3617_v21  ;;  %v2900_v20 = vld [vmem:[%s3347_s25 + $0xf3] sm:$0xff] }
  0x9f   : > { %876 = vrot.lane.b32.xlu1 %v3610_v18, %s3286_s27  ;;  %874 = vrot.lane.b32.xlu0 %v3613_v19, %s3286_s27 }
  0xa1   : > { %v3623_v22 = vpop.permute.xlu1 %692  ;;  %v3625_v23 = vpop.permute.xlu0 %690 }
  0xa2   : > { %5161 = vst [vmem:[#allocation10_spill] sm:$0xff] %v3623_v22  ;;  %5162 = vst [vmem:[#allocation11_spill] sm:$0xff] %v3625_v23  ;;  %v2892_v23 = vld [vmem:[%s3347_s25 + $0xb3] sm:$0xff] }
  0xa3   : > { %952 = vrot.lane.b32.xlu1 %v3426_v38, %s3287_s28  ;;  %950 = vrot.lane.b32.xlu0 %v3429_v39, %s3287_s28 }
  0xa5   : > { %v3631_v24 = vpop.permute.xlu1 %696  ;;  %v3633_v25 = vpop.permute.xlu0 %694 }
  0xa6   : > { %5163 = vst [vmem:[#allocation12_spill] sm:$0xff] %v3631_v24  ;;  %5164 = vst [vmem:[#allocation13_spill] sm:$0xff] %v3633_v25  ;;  %v2886_v25 = vld [vmem:[%s3347_s25 + $0x83] sm:$0xff] }
  0xa7   : > { %956 = vrot.lane.b32.xlu1 %v3436_v40, %s3287_s28  ;;  %954 = vrot.lane.b32.xlu0 %v3439_v41, %s3287_s28 }
  0xa9   : > { %v3639_v26 = vpop.permute.xlu1 %700  ;;  %v3641_v27 = vpop.permute.xlu0 %698 }
  0xab   : > { %960 = vrot.lane.b32.xlu1 %v3446_v42, %s3287_s28  ;;  %958 = vrot.lane.b32.xlu0 %v3449_v43, %s3287_s28 }
  0xad   : > { %v3647_v28 = vpop.permute.xlu1 %704  ;;  %v3649_v29 = vpop.permute.xlu0 %702 }
  0xaf   : > { %964 = vrot.lane.b32.xlu1 %v3456_v44, %s3287_s28  ;;  %962 = vrot.lane.b32.xlu0 %v3459_v45, %s3287_s28 }
  0xb1   : > { %v3655_v30 = vpop.permute.xlu1 %708  ;;  %v3657_v31 = vpop.permute.xlu0 %706 }
  0xb3   : > { %968 = vrot.lane.b32.xlu1 %v3466_v46, %s3287_s28  ;;  %966 = vrot.lane.b32.xlu0 %v3469_v47, %s3287_s28 }
  0xb5   : > { %v3663_v32 = vpop.permute.xlu1 %712  ;;  %v3665_v33 = vpop.permute.xlu0 %710 }
  0xb6   : > { %5165 = vst [vmem:[#allocation14_spill] sm:$0xff] %v3663_v32  ;;  %5166 = vst [vmem:[#allocation15_spill] sm:$0xff] %v3665_v33 }
  0xb7   : > { %972 = vrot.lane.b32.xlu1 %v3476_v48, %s3287_s28  ;;  %970 = vrot.lane.b32.xlu0 %v3479_v49, %s3287_s28 }
  0xb9   : > { %v3671_v34 = vpop.permute.xlu1 %716  ;;  %v3673_v35 = vpop.permute.xlu0 %714 }
  0xba   : > { %5167 = vst [vmem:[#allocation16_spill] sm:$0xff] %v3671_v34  ;;  %5168 = vst [vmem:[#allocation17_spill] sm:$0xff] %v3673_v35 }
  0xbb   : > { %976 = vrot.lane.b32.xlu1 %v3486_v50, %s3287_s28  ;;  %974 = vrot.lane.b32.xlu0 %v3489_v51, %s3287_s28 }
  0xbd   : > { %v3679_v36 = vpop.permute.xlu1 %720  ;;  %v3681_v37 = vpop.permute.xlu0 %718 }
  0xbe   : > { %5169 = vst [vmem:[#allocation18_spill] sm:$0xff] %v3679_v36  ;;  %5170 = vst [vmem:[#allocation19_spill] sm:$0xff] %v3681_v37  ;;  %v3921_v36 = vld [vmem:[%s3347_s25 + $0xb4] sm:$0xff] }
  0xbf   : > { %980 = vrot.lane.b32.xlu1 %v3496_v52, %s3287_s28  ;;  %978 = vrot.lane.b32.xlu0 %v3499_v53, %s3287_s28  ;;  %v2981_v37 = vld [vmem:[%s3347_s25 + $0x2d] sm:$0xff] }
  0xc1   : > { %v3687_v38 = vpop.permute.xlu1 %724  ;;  %v3689_v39 = vpop.permute.xlu0 %722 }
  0xc2   : > { %5171 = vst [vmem:[#allocation20_spill] sm:$0xff] %v3687_v38  ;;  %5172 = vst [vmem:[#allocation21_spill] sm:$0xff] %v3689_v39 }
  0xc3   : > { %984 = vrot.lane.b32.xlu1 %v3506_v54, %s3287_s28  ;;  %982 = vrot.lane.b32.xlu0 %v3509_v55, %s3287_s28 }
  0xc5   : > { %v3695_v40 = vpop.permute.xlu1 %728  ;;  %v3697_v41 = vpop.permute.xlu0 %726 }
  0xc6   : > { %5173 = vst [vmem:[#allocation22_spill] sm:$0xff] %v3695_v40  ;;  %5174 = vst [vmem:[#allocation23_spill] sm:$0xff] %v3697_v41  ;;  %v2888_v40 = vld [vmem:[%s3347_s25 + $0x93] sm:$0xff]  ;;  %v2890_v41 = vld [vmem:[%s3347_s25 + $0xa3] sm:$0xff] }
  0xc7   : > { %988 = vrot.lane.b32.xlu1 %v3516_v56, %s3287_s28  ;;  %986 = vrot.lane.b32.xlu0 %v3519_v57, %s3287_s28  ;;  %v2871_v56 = vld [vmem:[%s3347_s25 + $0x12a] sm:$0xff]  ;;  %v2870_v57 = vld [vmem:[%s3347_s25 + $0x122] sm:$0xff] }
  0xc9   : > { %v3703_v42 = vpop.permute.xlu1 %732  ;;  %v3705_v43 = vpop.permute.xlu0 %730 }
  0xca   : > { %5175 = vst [vmem:[#allocation24_spill] sm:$0xff] %v3703_v42  ;;  %5176 = vst [vmem:[#allocation25_spill] sm:$0xff] %v3705_v43  ;;  %v2882_v42 = vld [vmem:[%s3347_s25 + $0x63] sm:$0xff] }
  0xcb   : > { %992 = vrot.lane.b32.xlu1 %v3526_v58, %s3287_s28  ;;  %990 = vrot.lane.b32.xlu0 %v3529_v59, %s3287_s28 }
  0xcd   : > { %v3711_v44 = vpop.permute.xlu1 %808  ;;  %v3713_v45 = vpop.permute.xlu0 %806 }
  0xcf   : > { %996 = vrot.lane.b32.xlu1 %v3540_v62, %s3287_s28  ;;  %994 = vrot.lane.b32.xlu0 %v3543_v63, %s3287_s28  ;;  %v2873_v62 = vld [vmem:[%s3347_s25 + $0x1b] sm:$0xff]  ;;  %v2872_v63 = vld [vmem:[%s3347_s25 + $0x13] sm:$0xff] }
  0xd1   : > { %v3719_v46 = vpop.permute.xlu1 %812  ;;  %v3721_v47 = vpop.permute.xlu0 %810 }
  0xd3   : > { %1000 = vrot.lane.b32.xlu1 %v3554_v2, %s3287_s28  ;;  %998 = vrot.lane.b32.xlu0 %v3557_v3, %s3287_s28 }
  0xd5   : > { %v3727_v48 = vpop.permute.xlu1 %816  ;;  %v3729_v49 = vpop.permute.xlu0 %814 }
  0xd7   : > { %1004 = vrot.lane.b32.xlu1 %v3568_v6, %s3287_s28  ;;  %1002 = vrot.lane.b32.xlu0 %v3571_v7, %s3287_s28  ;;  %v2875_v6 = vld [vmem:[%s3347_s25 + $0x2b] sm:$0xff]  ;;  %v2874_v7 = vld [vmem:[%s3347_s25 + $0x23] sm:$0xff] }
  0xd9   : > { %v3735_v50 = vpop.permute.xlu1 %820  ;;  %v3737_v51 = vpop.permute.xlu0 %818 }
  0xda   : > { %5177 = vst [vmem:[#allocation26_spill] sm:$0xff] %v3735_v50  ;;  %5178 = vst [vmem:[#allocation27_spill] sm:$0xff] %v3737_v51  ;;  %v3038_v50 = vld [vmem:[%s3347_s25 + $0xd6] sm:$0xff] }
  0xdb   : > { %1008 = vrot.lane.b32.xlu1 %v3582_v10, %s3287_s28  ;;  %1006 = vrot.lane.b32.xlu0 %v3585_v11, %s3287_s28  ;;  %v3022_v51 = vld [vmem:[%s3347_s25 + $0x56] sm:$0xff] }
  0xdd   : > { %v3743_v52 = vpop.permute.xlu1 %824  ;;  %v3745_v53 = vpop.permute.xlu0 %822 }
  0xde   : > { %5179 = vst [vmem:[#allocation28_spill] sm:$0xff] %v3743_v52  ;;  %5180 = vst [vmem:[#allocation29_spill] sm:$0xff] %v3745_v53 }
  0xdf   : > { %1012 = vrot.lane.b32.xlu1 %v3596_v14, %s3287_s28  ;;  %1010 = vrot.lane.b32.xlu0 %v3599_v15, %s3287_s28  ;;  %v2877_v14 = vld [vmem:[%s3347_s25 + $0x3b] sm:$0xff]  ;;  %v2876_v15 = vld [vmem:[%s3347_s25 + $0x33] sm:$0xff] }
  0xe1   : > { %v3751_v54 = vpop.permute.xlu1 %828  ;;  %v3753_v55 = vpop.permute.xlu0 %826 }
  0xe2   : > { %5181 = vst [vmem:[#allocation30_spill] sm:$0xff] %v3751_v54  ;;  %5182 = vst [vmem:[#allocation31_spill] sm:$0xff] %v3753_v55  ;;  %v2999_v55 = vld [vmem:[%s3347_s25 + $0xbd] sm:$0xff] }
  0xe3   : > { %1016 = vrot.lane.b32.xlu1 %v3610_v18, %s3287_s28  ;;  %1014 = vrot.lane.b32.xlu0 %v3613_v19, %s3287_s28 }
  0xe5   : > { %v3761_v58 = vpop.permute.xlu1 %832  ;;  %v3763_v59 = vpop.permute.xlu0 %830 }
  0xe6   : > { %5183 = vst [vmem:[#allocation32_spill] sm:$0xff] %v3761_v58  ;;  %5184 = vst [vmem:[#allocation33_spill] sm:$0xff] %v3763_v59  ;;  %v2898_v58 = vld [vmem:[%s3347_s25 + $0xe3] sm:$0xff] }
  0xe7   : > { %1020 = vrot.lane.b32.xlu1 %v2871_v56, %s3287_s28  ;;  %1018 = vrot.lane.b32.xlu0 %v2870_v57, %s3287_s28  ;;  %v2879_v56 = vld [vmem:[%s3347_s25 + $0x4b] sm:$0xff]  ;;  %v2878_v57 = vld [vmem:[%s3347_s25 + $0x43] sm:$0xff] }
  0xe9   : > { %v3769_v2 = vpop.permute.xlu1 %836  ;;  %v3771_v3 = vpop.permute.xlu0 %834 }
  0xea   : > { %5185 = vst [vmem:[#allocation34_spill] sm:$0xff] %v3769_v2  ;;  %5186 = vst [vmem:[#allocation35_spill] sm:$0xff] %v3771_v3 }
  0xeb   : > { %1096 = vrot.lane.b32.xlu1 %v2873_v62, %s3288_s29  ;;  %1094 = vrot.lane.b32.xlu0 %v2872_v63, %s3288_s29 }
  0xed   : > { %v3777_v10 = vpop.permute.xlu1 %840  ;;  %v3779_v11 = vpop.permute.xlu0 %838 }
  0xee   : > { %5187 = vst [vmem:[#allocation36_spill] sm:$0xff] %v3777_v10  ;;  %5188 = vst [vmem:[#allocation37_spill] sm:$0xff] %v3779_v11  ;;  %v2884_v11 = vld [vmem:[%s3347_s25 + $0x73] sm:$0xff] }
  0xef   : > { %1100 = vrot.lane.b32.xlu1 %v2875_v6, %s3288_s29  ;;  %1098 = vrot.lane.b32.xlu0 %v2874_v7, %s3288_s29  ;;  %v2881_v6 = vld [vmem:[%s3347_s25 + $0x5b] sm:$0xff]  ;;  %v2880_v7 = vld [vmem:[%s3347_s25 + $0x53] sm:$0xff] }
  0xf1   : > { %v3785_v18 = vpop.permute.xlu1 %844  ;;  %v3787_v19 = vpop.permute.xlu0 %842 }
  0xf3   : > { %1104 = vrot.lane.b32.xlu1 %v2877_v14, %s3288_s29  ;;  %1102 = vrot.lane.b32.xlu0 %v2876_v15, %s3288_s29  ;;  %v2883_v15 = vld [vmem:[%s3347_s25 + $0x6b] sm:$0xff] }
  0xf5   : > { %v3793_v62 = vpop.permute.xlu1 %848  ;;  %v3795_v63 = vpop.permute.xlu0 %846 }
  0xf7   : > { %1108 = vrot.lane.b32.xlu1 %v2879_v56, %s3288_s29  ;;  %1106 = vrot.lane.b32.xlu0 %v2878_v57, %s3288_s29  ;;  %v2885_v57 = vld [vmem:[%s3347_s25 + $0x7b] sm:$0xff] }
  0xf9   : > { %v3801_v10 = vpop.permute.xlu1 %852  ;;  %v3803_v14 = vpop.permute.xlu0 %850 }
  0xfb   : > { %1112 = vrot.lane.b32.xlu1 %v2881_v6, %s3288_s29  ;;  %1110 = vrot.lane.b32.xlu0 %v2880_v7, %s3288_s29  ;;  %v2887_v7 = vld [vmem:[%s3347_s25 + $0x8b] sm:$0xff] }
  0xfd   : > { %v3809_v24 = vpop.permute.xlu1 %856  ;;  %v3811_v56 = vpop.permute.xlu0 %854 }
  0xfe   : > { %5189 = vst [vmem:[#allocation38_spill] sm:$0xff] %v3809_v24  ;;  %5190 = vst [vmem:[#allocation39_spill] sm:$0xff] %v3811_v56  ;;  %v3040_v56 = vld [vmem:[%s3347_s25 + $0xe6] sm:$0xff] }
  0xff   : > { %1116 = vrot.lane.b32.xlu1 %v2883_v15, %s3288_s29  ;;  %1114 = vrot.lane.b32.xlu0 %v2882_v42, %s3288_s29  ;;  %v2889_v42 = vld [vmem:[%s3347_s25 + $0x9b] sm:$0xff] }
 0x101   : > { %v3817_v43 = vpop.permute.xlu1 %860  ;;  %v3819_v6 = vpop.permute.xlu0 %858 }
 0x102   : > { %5191 = vst [vmem:[#allocation40_spill] sm:$0xff] %v3817_v43  ;;  %5192 = vst [vmem:[#allocation41_spill] sm:$0xff] %v3819_v6  ;;  %v3036_v6 = vld [vmem:[%s3347_s25 + $0xc6] sm:$0xff] }
 0x103   : > { %1120 = vrot.lane.b32.xlu1 %v2885_v57, %s3288_s29  ;;  %1118 = vrot.lane.b32.xlu0 %v2884_v11, %s3288_s29  ;;  %v2891_v11 = vld [vmem:[%s3347_s25 + $0xab] sm:$0xff] }
 0x105   : > { %v3825_v2 = vpop.permute.xlu1 %864  ;;  %v3827_v15 = vpop.permute.xlu0 %862 }
 0x106   : > { %5193 = vst [vmem:[#allocation42_spill] sm:$0xff] %v3825_v2  ;;  %5194 = vst [vmem:[#allocation43_spill] sm:$0xff] %v3827_v15 }
 0x107   : > { %1124 = vrot.lane.b32.xlu1 %v2887_v7, %s3288_s29  ;;  %1122 = vrot.lane.b32.xlu0 %v2886_v25, %s3288_s29  ;;  %v2893_v25 = vld [vmem:[%s3347_s25 + $0xbb] sm:$0xff] }
 0x109   : > { %v3833_v22 = vpop.permute.xlu1 %868  ;;  %v3835_v57 = vpop.permute.xlu0 %866 }
 0x10a   : > { %5195 = vst [vmem:[#allocation44_spill] sm:$0xff] %v3833_v22  ;;  %5196 = vst [vmem:[#allocation45_spill] sm:$0xff] %v3835_v57 }
 0x10b   : > { %1128 = vrot.lane.b32.xlu1 %v2889_v42, %s3288_s29  ;;  %1126 = vrot.lane.b32.xlu0 %v2888_v40, %s3288_s29  ;;  %v2895_v40 = vld [vmem:[%s3347_s25 + $0xcb] sm:$0xff] }
 0x10d   : > { %v3841_v3 = vpop.permute.xlu1 %872  ;;  %v3843_v7 = vpop.permute.xlu0 %870 }
 0x10e   : > { %5197 = vst [vmem:[#allocation46_spill] sm:$0xff] %v3841_v3  ;;  %5198 = vst [vmem:[#allocation47_spill] sm:$0xff] %v3843_v7  ;;  %v2894_v3 = vld [vmem:[%s3347_s25 + $0xc3] sm:$0xff] }
 0x10f   : > { %1132 = vrot.lane.b32.xlu1 %v2891_v11, %s3288_s29  ;;  %1130 = vrot.lane.b32.xlu0 %v2890_v41, %s3288_s29  ;;  %v2897_v41 = vld [vmem:[%s3347_s25 + $0xdb] sm:$0xff] }
 0x111   : > { %v3849_v22 = vpop.permute.xlu1 %876  ;;  %v3851_v42 = vpop.permute.xlu0 %874 }
 0x112   : > { %5199 = vst [vmem:[#allocation48_spill] sm:$0xff] %v3849_v22  ;;  %5200 = vst [vmem:[#allocation49_spill] sm:$0xff] %v3851_v42  ;;  %v2896_v22 = vld [vmem:[%s3347_s25 + $0xd3] sm:$0xff] }
 0x113   : > { %1136 = vrot.lane.b32.xlu1 %v2893_v25, %s3288_s29  ;;  %1134 = vrot.lane.b32.xlu0 %v2892_v23, %s3288_s29  ;;  %v2899_v23 = vld [vmem:[%s3347_s25 + $0xeb] sm:$0xff] }
 0x115   : > { %v3857_v7 = vpop.permute.xlu1 %952  ;;  %v3859_v11 = vpop.permute.xlu0 %950 }
 0x117   : > { %1140 = vrot.lane.b32.xlu1 %v2895_v40, %s3288_s29  ;;  %1138 = vrot.lane.b32.xlu0 %v2894_v3, %s3288_s29  ;;  %v2901_v3 = vld [vmem:[%s3347_s25 + $0xfb] sm:$0xff] }
 0x119   : > { %v3865_v42 = vpop.permute.xlu1 %956  ;;  %v3867_v25 = vpop.permute.xlu0 %954 }
 0x11b   : > { %1144 = vrot.lane.b32.xlu1 %v2897_v41, %s3288_s29  ;;  %1142 = vrot.lane.b32.xlu0 %v2896_v22, %s3288_s29  ;;  %v2903_v22 = vld [vmem:[%s3347_s25 + $0x10b] sm:$0xff]  ;;  %v2902_v41 = vld [vmem:[%s3347_s25 + $0x103] sm:$0xff] }
 0x11d   : > { %v3873_v38 = vpop.permute.xlu1 %960  ;;  %v3875_v40 = vpop.permute.xlu0 %958 }
 0x11f   : > { %1148 = vrot.lane.b32.xlu1 %v2899_v23, %s3288_s29  ;;  %1146 = vrot.lane.b32.xlu0 %v2898_v58, %s3288_s29  ;;  %v2926_v58 = vld [vmem:[%s3347_s25 + $0xa4] sm:$0xff]  ;;  %v2908_v23 = vld [vmem:[%s3347_s25 + $0x14] sm:$0xff] }
 0x121   : > { %v3881_v57 = vpop.permute.xlu1 %964  ;;  %v3883_v39 = vpop.permute.xlu0 %962 }
 0x122   : > { %5201 = vst [vmem:[#allocation50_spill] sm:$0xff] %v3881_v57  ;;  %5202 = vst [vmem:[#allocation51_spill] sm:$0xff] %v3883_v39  ;;  %v3003_v57 = vld [vmem:[%s3347_s25 + $0xdd] sm:$0xff] }
 0x123   : > { %1152 = vrot.lane.b32.xlu1 %v2901_v3, %s3288_s29  ;;  %1150 = vrot.lane.b32.xlu0 %v2900_v20, %s3288_s29  ;;  %v2082_v20 = vld [vmem:[%s5148_s1 + $0x40] sm:$0xff]  ;;  %v2927_v3 = vld [vmem:[%s3347_s25 + $0xac] sm:$0xff] }
 0x124   : > { %3137 = vmatprep.subr.mxu0 %v2082_v20  ;;  %3209 = vmatprep.subr.mxu1 %v2082_v20 }
 0x125   : > { %v3889_v59 = vpop.permute.xlu1 %968  ;;  %v3891_v21 = vpop.permute.xlu0 %966  ;;  %3138 = vmatpush3.msra.mxu0 %v2082_v20  ;;  %3218 = vmatpush3.msra.mxu1 %v2082_v20 }
 0x126   : > { %5203 = vst [vmem:[#allocation52_spill] sm:$0xff] %v3889_v59  ;;  %5204 = vst [vmem:[#allocation53_spill] sm:$0xff] %v3891_v21  ;;  %v2075_v59 = vld [vmem:[%s5148_s1 + $0x8] sm:$0xff] }
 0x127   : > { %1156 = vrot.lane.b32.xlu1 %v2903_v22, %s3288_s29  ;;  %1154 = vrot.lane.b32.xlu0 %v2902_v41, %s3288_s29  ;;  %v2909_v22 = vld [vmem:[%s3347_s25 + $0x1c] sm:$0xff] }
 0x129   : > { %v3897_v2 = vpop.permute.xlu1 %972  ;;  %v3899_v54 = vpop.permute.xlu0 %970 }
 0x12a   : > { %5205 = vst [vmem:[#allocation54_spill] sm:$0xff] %v3897_v2  ;;  %5206 = vst [vmem:[#allocation55_spill] sm:$0xff] %v3899_v54 }
 0x12b   : > { %1274 = vrot.lane.b32.xlu1 %v2926_v58, %s3289_s30  ;;  %1238 = vrot.lane.b32.xlu0 %v2908_v23, %s3289_s30  ;;  %v2081_v58 = vld [vmem:[%s5148_s1 + $0x38] sm:$0xff]  ;;  %v2080_v23 = vld [vmem:[%s5148_s1 + $0x30] sm:$0xff] }
 0x12c   : > { %3139 = vmatprep.subr.mxu0 %v2081_v58  ;;  %3210 = vmatprep.subr.mxu1 %v2081_v58 }
 0x12d   : > { %v3908_v41 = vpop.permute.xlu1 %976  ;;  %v3910_v2 = vpop.permute.xlu0 %974  ;;  %3140 = vmatpush3.msra.mxu0 %v2081_v58  ;;  %3219 = vmatpush3.msra.mxu1 %v2081_v58 }
 0x12e   : > { %5207 = vst [vmem:[#allocation56_spill] sm:$0xff] %v3908_v41  ;;  %5208 = vst [vmem:[#allocation57_spill] sm:$0xff] %v3910_v2  ;;  %v3924_v41 = vld [vmem:[%s3347_s25 + $0x24] sm:$0xff]  ;;  %3141 = vmatprep.subr.mxu0 %v2080_v23  ;;  %3211 = vmatprep.subr.mxu1 %v2080_v23 }
 0x12f   : > { %1276 = vrot.lane.b32.xlu1 %v2927_v3, %s3289_s30  ;;  %1240 = vrot.lane.b32.xlu0 %v2909_v22, %s3289_s30  ;;  %v2079_v3 = vld [vmem:[%s5148_s1 + $0x28] sm:$0xff]  ;;  %v3938_v22 = vld [vmem:[%s3347_s25 + $0xbc] sm:$0xff] }
 0x130   : > { %3142 = vmatpush3.msra.mxu0 %v2080_v23  ;;  %3220 = vmatpush3.msra.mxu1 %v2080_v23  ;;  %v2077_v23 = vld [vmem:[%s5148_s1 + $0x18] sm:$0xff] }
 0x131   : > { %v3926_v20 = vpop.permute.xlu1 %980  ;;  %v3928_v2 = vpop.permute.xlu0 %978  ;;  %3143 = vmatprep.subr.mxu0 %v2079_v3  ;;  %3212 = vmatprep.subr.mxu1 %v2079_v3 }
 0x132   : > { %5209 = vst [vmem:[#allocation58_spill] sm:$0xff] %v3926_v20  ;;  %5210 = vst [vmem:[#allocation59_spill] sm:$0xff] %v3928_v2  ;;  %v3941_v20 = vld [vmem:[%s3347_s25 + $0x2c] sm:$0xff]  ;;  %3144 = vmatpush3.msra.mxu0 %v2079_v3  ;;  %3221 = vmatpush3.msra.mxu1 %v2079_v3 }
 0x133   : > { %1418 = vrot.lane.b32.xlu1 %v3921_v36, %s3290_s14  ;;  %1382 = vrot.lane.b32.xlu0 %v3924_v41, %s3290_s14  ;;  %v2076_v3 = vld [vmem:[%s5148_s1 + $0x10] sm:$0xff] }
 0x134   : > { %3145 = vmatprep.subr.mxu0 %v2078_v16  ;;  %3213 = vmatprep.subr.mxu1 %v2078_v16 }
 0x135   : > { %v3943_v58 = vpop.permute.xlu1 %984  ;;  %v3945_v2 = vpop.permute.xlu0 %982  ;;  %3146 = vmatpush3.msra.mxu0 %v2078_v16  ;;  %3222 = vmatpush3.msra.mxu1 %v2078_v16 }
 0x136   : > { %5211 = vst [vmem:[#allocation60_spill] sm:$0xff] %v3943_v58  ;;  %5212 = vst [vmem:[#allocation61_spill] sm:$0xff] %v3945_v2  ;;  %v2998_v58 = vld [vmem:[%s3347_s25 + $0xb5] sm:$0xff]  ;;  %v2980_v2 = vld [vmem:[%s3347_s25 + $0x25] sm:$0xff]  ;;  %3147 = vmatprep.subr.mxu0 %v2077_v23  ;;  %3214 = vmatprep.subr.mxu1 %v2077_v23 }
 0x137   : > { %1420 = vrot.lane.b32.xlu1 %v3938_v22, %s3290_s14  ;;  %1384 = vrot.lane.b32.xlu0 %v3941_v20, %s3290_s14 }
 0x138   : > { %3148 = vmatpush3.msra.mxu0 %v2077_v23  ;;  %3223 = vmatpush3.msra.mxu1 %v2077_v23  ;;  %v3016_v23 = vld [vmem:[%s3347_s25 + $0x26] sm:$0xff] }
 0x139   : > { %v3959_v54 = vpop.permute.xlu1 %988  ;;  %v3961_v15 = vpop.permute.xlu0 %986  ;;  %3149 = vmatprep.subr.mxu0 %v2076_v3  ;;  %3215 = vmatprep.subr.mxu1 %v2076_v3 }
 0x13a   : > { %3150 = vmatpush3.msra.mxu0 %v2076_v3  ;;  %3224 = vmatpush3.msra.mxu1 %v2076_v3  ;;  %v3017_v3 = vld [vmem:[%s3347_s25 + $0x2e] sm:$0xff] }
 0x13b   : > { %1562 = vrot.lane.b32.xlu1 %v2998_v58, %s3291_s26  ;;  %1526 = vrot.lane.b32.xlu0 %v2980_v2, %s3291_s26  ;;  %v2074_v2 = vld [vmem:[%s5148_s1] sm:$0xff]  ;;  %v3034_v58 = vld [vmem:[%s3347_s25 + $0xb6] sm:$0xff] }
 0x13c   : > { %3151 = vmatprep.subr.mxu0 %v2075_v59  ;;  %3216 = vmatprep.subr.mxu1 %v2075_v59 }
 0x13d   : > { %v3970_v17 = vpop.permute.xlu1 %992  ;;  %v3972_v16 = vpop.permute.xlu0 %990  ;;  %3152 = vmatpush3.msra.mxu0 %v2075_v59  ;;  %3225 = vmatpush3.msra.mxu1 %v2075_v59  ;;  %v3035_v59 = vld [vmem:[%s3347_s25 + $0xbe] sm:$0xff] }
 0x13e   : > { %3153 = vmatprep.subr.mxu0 %v2074_v2  ;;  %3217 = vmatprep.subr.mxu1 %v2074_v2 }
 0x13f   : > { %1564 = vrot.lane.b32.xlu1 %v2999_v55, %s3291_s26  ;;  %1528 = vrot.lane.b32.xlu0 %v2981_v37, %s3291_s26 }
 0x140   : > { %3154 = vmatpush3.msra.mxu0 %v2074_v2  ;;  %3226 = vmatpush3.msra.mxu1 %v2074_v2 }
 0x141   : > { %v3984_v43 = vpop.permute.xlu1 %996  ;;  %v3986_v52 = vpop.permute.xlu0 %994 }
 0x142   : > { %5213 = vst [vmem:[#allocation62_spill] sm:$0xff] %v3984_v43  ;;  %v4193_v43 = vld [vmem:[%s3347_s25 + $0xf4] sm:$0xff] }
 0x143   : > { %1706 = vrot.lane.b32.xlu1 %v3034_v58, %s3292_s8  ;;  %1670 = vrot.lane.b32.xlu0 %v3016_v23, %s3292_s8 }
 0x145   : > { %v3990_v37 = vpop.permute.xlu1 %1000  ;;  %v3992_v55 = vpop.permute.xlu0 %998 }
 0x146   : > { %5214 = vst [vmem:[#allocation63_spill] sm:$0xff] %v3990_v37  ;;  %5215 = vst [vmem:[#allocation64_spill] sm:$0xff] %v3992_v55  ;;  %v3005_v55 = vld [vmem:[%s3347_s25 + $0xed] sm:$0xff] }
 0x147   : > { %1278 = vrot.lane.b32.xlu1 %v3921_v36, %s3289_s30  ;;  %1242 = vrot.lane.b32.xlu0 %v3924_v41, %s3289_s30  ;;  %v2964_v36 = vld [vmem:[%s3347_s25 + $0xc4] sm:$0xff]  ;;  %v2946_v41 = vld [vmem:[%s3347_s25 + $0x34] sm:$0xff] }
 0x149   : > { %v4000_v58 = vpop.permute.xlu1 %1004  ;;  %v4002_v23 = vpop.permute.xlu0 %1002 }
 0x14a   : > { %5216 = vst [vmem:[#allocation65_spill] sm:$0xff] %v4000_v58  ;;  %5217 = vst [vmem:[#allocation66_spill] sm:$0xff] %v4002_v23  ;;  %v3001_v23 = vld [vmem:[%s3347_s25 + $0xcd] sm:$0xff] }
 0x14b   : > { %1708 = vrot.lane.b32.xlu1 %v3035_v59, %s3292_s8  ;;  %1672 = vrot.lane.b32.xlu0 %v3017_v3, %s3292_s8  ;;  %v2965_v3 = vld [vmem:[%s3347_s25 + $0xcc] sm:$0xff] }
 0x14d   : > { %v4006_v2 = vpop.permute.xlu1 %1008  ;;  %v4008_v34 = vpop.permute.xlu0 %1006 }
 0x14e   : > { %5218 = vst [vmem:[#allocation67_spill] sm:$0xff] %v4006_v2  ;;  %5219 = vst [vmem:[#allocation68_spill] sm:$0xff] %v4008_v34  ;;  %v2947_v2 = vld [vmem:[%s3347_s25 + $0x3c] sm:$0xff] }
 0x14f   : > { %1280 = vrot.lane.b32.xlu1 %v3938_v22, %s3289_s30  ;;  %1244 = vrot.lane.b32.xlu0 %v3941_v20, %s3289_s30  ;;  %v3000_v20 = vld [vmem:[%s3347_s25 + $0xc5] sm:$0xff] }
 0x151   : > { %v4016_v58 = vpop.permute.xlu1 %1012  ;;  %v4018_v59 = vpop.permute.xlu0 %1010 }
 0x152   : > { %5220 = vst [vmem:[#allocation69_spill] sm:$0xff] %v4016_v58  ;;  %5221 = vst [vmem:[#allocation70_spill] sm:$0xff] %v4018_v59  ;;  %v2982_v58 = vld [vmem:[%s3347_s25 + $0x35] sm:$0xff] }
 0x153   : > { %1422 = vrot.lane.b32.xlu1 %v2964_v36, %s3290_s14  ;;  %1386 = vrot.lane.b32.xlu0 %v2946_v41, %s3290_s14 }
 0x155   : > { %v4024_v34 = vpop.permute.xlu1 %1016  ;;  %v4026_v22 = vpop.permute.xlu0 %1014 }
 0x156   : > { %5222 = vst [vmem:[#allocation71_spill] sm:$0xff] %v4024_v34  ;;  %5223 = vst [vmem:[#allocation72_spill] sm:$0xff] %v4026_v22  ;;  %v2983_v34 = vld [vmem:[%s3347_s25 + $0x3d] sm:$0xff] }
 0x157   : > { %1424 = vrot.lane.b32.xlu1 %v2965_v3, %s3290_s14  ;;  %1388 = vrot.lane.b32.xlu0 %v2947_v2, %s3290_s14 }
 0x159   : > { %v4032_v59 = vpop.permute.xlu1 %1020  ;;  %v4034_v12 = vpop.permute.xlu0 %1018 }
 0x15a   : > { %5224 = vst [vmem:[#allocation73_spill] sm:$0xff] %v4032_v59  ;;  %5225 = vst [vmem:[#allocation74_spill] sm:$0xff] %v4034_v12  ;;  %v3018_v59 = vld [vmem:[%s3347_s25 + $0x36] sm:$0xff] }
 0x15b   : > { %1566 = vrot.lane.b32.xlu1 %v3000_v20, %s3291_s26  ;;  %1530 = vrot.lane.b32.xlu0 %v2982_v58, %s3291_s26 }
 0x15d   : > { %v4040_v22 = vpop.permute.xlu1 %1096  ;;  %v4042_v21 = vpop.permute.xlu0 %1094 }
 0x15f   : > { %1568 = vrot.lane.b32.xlu1 %v3001_v23, %s3291_s26  ;;  %1532 = vrot.lane.b32.xlu0 %v2983_v34, %s3291_s26  ;;  %v3037_v34 = vld [vmem:[%s3347_s25 + $0xce] sm:$0xff]  ;;  %v3019_v23 = vld [vmem:[%s3347_s25 + $0x3e] sm:$0xff] }
 0x161   : > { %v4048_v53 = vpop.permute.xlu1 %1100  ;;  %v4050_v12 = vpop.permute.xlu0 %1098 }
 0x163   : > { %1710 = vrot.lane.b32.xlu1 %v3036_v6, %s3292_s8  ;;  %1674 = vrot.lane.b32.xlu0 %v3018_v59, %s3292_s8 }
 0x165   : > { %v4054_v58 = vpop.permute.xlu1 %1104  ;;  %v4056_v20 = vpop.permute.xlu0 %1102 }
 0x166   : > { %5226 = vst [vmem:[#allocation75_spill] sm:$0xff] %v4054_v58 }
 0x167   : > { %1282 = vrot.lane.b32.xlu1 %v2964_v36, %s3289_s30  ;;  %1246 = vrot.lane.b32.xlu0 %v2946_v41, %s3289_s30  ;;  %v2966_v36 = vld [vmem:[%s3347_s25 + $0xd4] sm:$0xff]  ;;  %v2948_v41 = vld [vmem:[%s3347_s25 + $0x44] sm:$0xff] }
 0x169   : > { %v4062_v35 = vpop.permute.xlu1 %1108  ;;  %v4064_v13 = vpop.permute.xlu0 %1106 }
 0x16a   : > { %5227 = vst [vmem:[#allocation76_spill] sm:$0xff] %v4062_v35  ;;  %5228 = vst [vmem:[#allocation77_spill] sm:$0xff] %v4064_v13 }
 0x16b   : > { %1712 = vrot.lane.b32.xlu1 %v3037_v34, %s3292_s8  ;;  %1676 = vrot.lane.b32.xlu0 %v3019_v23, %s3292_s8  ;;  %v2967_v34 = vld [vmem:[%s3347_s25 + $0xdc] sm:$0xff]  ;;  %v2949_v23 = vld [vmem:[%s3347_s25 + $0x4c] sm:$0xff] }
 0x16d   : > { %v4068_v6 = vpop.permute.xlu1 %1112  ;;  %v4070_v59 = vpop.permute.xlu0 %1110 }
 0x16e   : > { %5229 = vst [vmem:[#allocation78_spill] sm:$0xff] %v4068_v6  ;;  %5230 = vst [vmem:[#allocation79_spill] sm:$0xff] %v4070_v59 }
 0x16f   : > { %1284 = vrot.lane.b32.xlu1 %v2965_v3, %s3289_s30  ;;  %1248 = vrot.lane.b32.xlu0 %v2947_v2, %s3289_s30  ;;  %v3002_v2 = vld [vmem:[%s3347_s25 + $0xd5] sm:$0xff] }
 0x171   : > { %v4076_v37 = vpop.permute.xlu1 %1116  ;;  %v4078_v35 = vpop.permute.xlu0 %1114 }
 0x172   : > { %5231 = vst [vmem:[#allocation80_spill] sm:$0xff] %v4076_v37  ;;  %5232 = vst [vmem:[#allocation81_spill] sm:$0xff] %v4078_v35  ;;  %v2984_v37 = vld [vmem:[%s3347_s25 + $0x45] sm:$0xff] }
 0x173   : > { %1426 = vrot.lane.b32.xlu1 %v2966_v36, %s3290_s14  ;;  %1390 = vrot.lane.b32.xlu0 %v2948_v41, %s3290_s14 }
 0x175   : > { %v4084_v6 = vpop.permute.xlu1 %1120  ;;  %v4086_v3 = vpop.permute.xlu0 %1118 }
 0x176   : > { %5233 = vst [vmem:[#allocation82_spill] sm:$0xff] %v4084_v6  ;;  %5234 = vst [vmem:[#allocation83_spill] sm:$0xff] %v4086_v3  ;;  %v2985_v6 = vld [vmem:[%s3347_s25 + $0x4d] sm:$0xff] }
 0x177   : > { %1428 = vrot.lane.b32.xlu1 %v2967_v34, %s3290_s14  ;;  %1392 = vrot.lane.b32.xlu0 %v2949_v23, %s3290_s14 }
 0x179   : > { %v4092_v35 = vpop.permute.xlu1 %1124  ;;  %v4094_v59 = vpop.permute.xlu0 %1122 }
 0x17a   : > { %5235 = vst [vmem:[#allocation84_spill] sm:$0xff] %v4092_v35  ;;  %5236 = vst [vmem:[#allocation85_spill] sm:$0xff] %v4094_v59  ;;  %v3020_v35 = vld [vmem:[%s3347_s25 + $0x46] sm:$0xff] }
 0x17b   : > { %1570 = vrot.lane.b32.xlu1 %v3002_v2, %s3291_s26  ;;  %1534 = vrot.lane.b32.xlu0 %v2984_v37, %s3291_s26 }
 0x17d   : > { %v4100_v3 = vpop.permute.xlu1 %1128  ;;  %v4102_v24 = vpop.permute.xlu0 %1126 }
 0x17e   : > { %5237 = vst [vmem:[#allocation86_spill] sm:$0xff] %v4100_v3  ;;  %5238 = vst [vmem:[#allocation87_spill] sm:$0xff] %v4102_v24 }
 0x17f   : > { %1572 = vrot.lane.b32.xlu1 %v3003_v57, %s3291_s26  ;;  %1536 = vrot.lane.b32.xlu0 %v2985_v6, %s3291_s26  ;;  %v3039_v57 = vld [vmem:[%s3347_s25 + $0xde] sm:$0xff]  ;;  %v3021_v6 = vld [vmem:[%s3347_s25 + $0x4e] sm:$0xff] }
 0x181   : > { %v4108_v32 = vpop.permute.xlu1 %1132  ;;  %v4110_v59 = vpop.permute.xlu0 %1130 }
 0x183   : > { %1714 = vrot.lane.b32.xlu1 %v3038_v50, %s3292_s8  ;;  %1678 = vrot.lane.b32.xlu0 %v3020_v35, %s3292_s8 }
 0x185   : > { %v4114_v37 = vpop.permute.xlu1 %1136  ;;  %v4116_v2 = vpop.permute.xlu0 %1134 }
 0x187   : > { %1286 = vrot.lane.b32.xlu1 %v2966_v36, %s3289_s30  ;;  %1250 = vrot.lane.b32.xlu0 %v2948_v41, %s3289_s30  ;;  %v2968_v36 = vld [vmem:[%s3347_s25 + $0xe4] sm:$0xff]  ;;  %v2950_v41 = vld [vmem:[%s3347_s25 + $0x54] sm:$0xff] }
 0x189   : > { %v4122_v3 = vpop.permute.xlu1 %1140  ;;  %v4124_v24 = vpop.permute.xlu0 %1138 }
 0x18a   : > { %5239 = vst [vmem:[#allocation88_spill] sm:$0xff] %v4122_v3 }
 0x18b   : > { %1716 = vrot.lane.b32.xlu1 %v3039_v57, %s3292_s8  ;;  %1680 = vrot.lane.b32.xlu0 %v3021_v6, %s3292_s8  ;;  %v2969_v57 = vld [vmem:[%s3347_s25 + $0xec] sm:$0xff]  ;;  %v2951_v6 = vld [vmem:[%s3347_s25 + $0x5c] sm:$0xff] }
 0x18d   : > { %v4128_v35 = vpop.permute.xlu1 %1144  ;;  %v4130_v50 = vpop.permute.xlu0 %1142 }
 0x18e   : > { %5240 = vst [vmem:[#allocation89_spill] sm:$0xff] %v4128_v35  ;;  %5241 = vst [vmem:[#allocation90_spill] sm:$0xff] %v4130_v50 }
 0x18f   : > { %1288 = vrot.lane.b32.xlu1 %v2967_v34, %s3289_s30  ;;  %1252 = vrot.lane.b32.xlu0 %v2949_v23, %s3289_s30  ;;  %v3004_v23 = vld [vmem:[%s3347_s25 + $0xe5] sm:$0xff] }
 0x191   : > { %v4136_v8 = vpop.permute.xlu1 %1148  ;;  %v4138_v13 = vpop.permute.xlu0 %1146 }
 0x192   : > { %5242 = vst [vmem:[#allocation91_spill] sm:$0xff] %v4136_v8  ;;  %5243 = vst [vmem:[#allocation92_spill] sm:$0xff] %v4138_v13  ;;  %v2986_v8 = vld [vmem:[%s3347_s25 + $0x55] sm:$0xff] }
 0x193   : > { %1430 = vrot.lane.b32.xlu1 %v2968_v36, %s3290_s14  ;;  %1394 = vrot.lane.b32.xlu0 %v2950_v41, %s3290_s14 }
 0x195   : > { %v4144_v35 = vpop.permute.xlu1 %1152  ;;  %v4146_v34 = vpop.permute.xlu0 %1150 }
 0x196   : > { %5244 = vst [vmem:[#allocation93_spill] sm:$0xff] %v4144_v35  ;;  %5245 = vst [vmem:[#allocation94_spill] sm:$0xff] %v4146_v34  ;;  %v2987_v35 = vld [vmem:[%s3347_s25 + $0x5d] sm:$0xff] }
 0x197   : > { %1432 = vrot.lane.b32.xlu1 %v2969_v57, %s3290_s14  ;;  %1396 = vrot.lane.b32.xlu0 %v2951_v6, %s3290_s14 }
 0x199   : > { %v4152_v13 = vpop.permute.xlu1 %1156  ;;  %v4154_v50 = vpop.permute.xlu0 %1154 }
 0x19a   : > { %5246 = vst [vmem:[#allocation95_spill] sm:$0xff] %v4152_v13  ;;  %5247 = vst [vmem:[#allocation96_spill] sm:$0xff] %v4154_v50 }
 0x19b   : > { %1574 = vrot.lane.b32.xlu1 %v3004_v23, %s3291_s26  ;;  %1538 = vrot.lane.b32.xlu0 %v2986_v8, %s3291_s26 }
 0x19d   : > { %v1275_v34 = vpop.permute.xlu1 %1274  ;;  %v1239_v39 = vpop.permute.xlu0 %1238 }
 0x19f   : > { %1576 = vrot.lane.b32.xlu1 %v3005_v55, %s3291_s26  ;;  %1540 = vrot.lane.b32.xlu0 %v2987_v35, %s3291_s26  ;;  %v3041_v55 = vld [vmem:[%s3347_s25 + $0xee] sm:$0xff]  ;;  %v3023_v35 = vld [vmem:[%s3347_s25 + $0x5e] sm:$0xff] }
 0x1a1   : > { %v4164_v13 = vpop.permute.xlu1 %1276  ;;  %v4166_v50 = vpop.permute.xlu0 %1240 }
 0x1a3   : > { %1718 = vrot.lane.b32.xlu1 %v3040_v56, %s3292_s8  ;;  %1682 = vrot.lane.b32.xlu0 %v3022_v51, %s3292_s8  ;;  %v286_v51 = vld [vmem:[%s3347_s25] sm:$0xff]  ;;  %v304_v56 = vld [vmem:[%s3347_s25 + $0x90] sm:$0xff] }
 0x1a4   : > { %v1797_v58 = vsel %vm1778_vm0, %v304_v56, %v3641_v27 }
 0x1a5   : > { %v1419_v8 = vpop.permute.xlu1 %1418  ;;  %v1383_v23 = vpop.permute.xlu0 %1382 }
 0x1a7   : > { %1290 = vrot.lane.b32.xlu1 %v2968_v36, %s3289_s30  ;;  %1254 = vrot.lane.b32.xlu0 %v2950_v41, %s3289_s30  ;;  %v1779_v41 = vsel %vm1778_vm0, %v286_v51, %v3533_v61  ;;  %v4196_v61 = vld [vmem:[%s3347_s25 + $0x64] sm:$0xff] }
 0x1a8   : > { %v287_v51 = vld [vmem:[%s3347_s25 + $0x8] sm:$0xff] }
 0x1a9   : > { %v4174_v33 = vpop.permute.xlu1 %1420  ;;  %v4176_v9 = vpop.permute.xlu0 %1384 }
 0x1ab   : > { %1720 = vrot.lane.b32.xlu1 %v3041_v55, %s3292_s8  ;;  %1684 = vrot.lane.b32.xlu0 %v3023_v35, %s3292_s8  ;;  %v1816_v55 = vsel %vm1815_vm1, %v1779_v41, %v3713_v45  ;;  %v1834_v35 = vsel %vm1815_vm1, %v1797_v58, %v3787_v19 }
 0x1ac   : > { %v1853_v27 = vsel %vm1852_vm2, %v1816_v55, %v3859_v11  ;;  %v4217_v55 = vld [vmem:[%s3347_s25 + $0xfc] sm:$0xff] }
 0x1ad   : > { %v1563_v3 = vpop.permute.xlu1 %1562  ;;  %v1527_v36 = vpop.permute.xlu0 %1526  ;;  %v1890_v19 = vsel %vm1889_vm3, %v1853_v27, %v4042_v21 }
 0x1ae   : > { %v1927_v11 = vsel %vm1926_vm4, %v1890_v19, %v1239_v39 }
 0x1af   : > { %1292 = vrot.lane.b32.xlu1 %v2969_v57, %s3289_s30  ;;  %1256 = vrot.lane.b32.xlu0 %v2951_v6, %s3289_s30  ;;  %v1871_v57 = vsel %vm1852_vm2, %v1834_v35, %v3961_v15  ;;  %v305_v15 = vld [vmem:[%s3347_s25 + $0x98] sm:$0xff]  ;;  %v1964_v21 = vsel %vm1963_vm5, %v1927_v11, %v1383_v23 }
 0x1b0   : > { %v1908_v58 = vsel %vm1889_vm3, %v1871_v57, %v4110_v59  ;;  %v4220_v59 = vld [vmem:[%s3347_s25 + $0x6c] sm:$0xff]  ;;  %v2001_v39 = vsel %vm2000_vm6, %v1964_v21, %v1527_v36  ;;  %v1798_v23 = vsel %vm1778_vm0, %v305_v15, %v3639_v26 }
 0x1b1   : > { %v1565_v6 = vpop.permute.xlu1 %1564  ;;  %v1529_v45 = vpop.permute.xlu0 %1528  ;;  %v1945_v56 = vsel %vm1926_vm4, %v1908_v58, %v1275_v34  ;;  %v1835_v36 = vsel %vm1815_vm1, %v1798_v23, %v3785_v18  ;;  %v2988_v26 = vld [vmem:[%s3347_s25 + $0x65] sm:$0xff] }
 0x1b2   : > { %v1982_v41 = vsel %vm1963_vm5, %v1945_v56, %v1419_v8  ;;  %v1780_v8 = vsel %vm1778_vm0, %v287_v51, %v3547_v1  ;;  %v3006_v1 = vld [vmem:[%s3347_s25 + $0xf5] sm:$0xff]  ;;  %v1872_v51 = vsel %vm1852_vm2, %v1835_v36, %v3959_v54 }
 0x1b3   : > { %1434 = vrot.lane.b32.xlu1 %v4193_v43, %s3290_s14  ;;  %1398 = vrot.lane.b32.xlu0 %v4196_v61, %s3290_s14  ;;  %v2019_v34 = vsel %vm2000_vm6, %v1982_v41, %v1563_v3  ;;  %v1817_v3 = vsel %vm1815_vm1, %v1780_v8, %v3711_v44  ;;  %v1909_v18 = vsel %vm1889_vm3, %v1872_v51, %v4108_v32  ;;  %v2989_v32 = vld [vmem:[%s3347_s25 + $0x6d] sm:$0xff] }
 0x1b4   : > { %v1854_v58 = vsel %vm1852_vm2, %v1817_v3, %v3857_v7  ;;  %v1946_v15 = vsel %vm1926_vm4, %v1909_v18, %v4164_v13  ;;  %v3025_v8 = vld [vmem:[%s3347_s25 + $0x6e] sm:$0xff]  ;;  %v4301_v18 = vld [vmem:[%s3347_s25 + $0x104] sm:$0xff] }
 0x1b5   : > { %v1707_v35 = vpop.permute.xlu1 %1706  ;;  %v1671_v27 = vpop.permute.xlu0 %1670  ;;  %v1891_v44 = vsel %vm1889_vm3, %v1854_v58, %v4040_v22  ;;  %v1983_v54 = vsel %vm1963_vm5, %v1946_v15, %v4174_v33  ;;  %v3007_v22 = vld [vmem:[%s3347_s25 + $0xfd] sm:$0xff]  ;;  %v3024_v33 = vld [vmem:[%s3347_s25 + $0x66] sm:$0xff]  ;;  %v288_v36 = vld [vmem:[%s3347_s25 + $0x10] sm:$0xff] }
 0x1b6   : > { %v2038_v57 = vsel %vm2037_vm7, %v2001_v39, %v1671_v27  ;;  %v2056_v19 = vsel %vm2037_vm7, %v2019_v34, %v1707_v35  ;;  %v1928_v41 = vsel %vm1926_vm4, %v1891_v44, %v4166_v50  ;;  %v2020_v21 = vsel %vm2000_vm6, %v1983_v54, %v1565_v6 }
 0x1b7   : > { %1436 = vrot.lane.b32.xlu1 %v4217_v55, %s3290_s14  ;;  %1400 = vrot.lane.b32.xlu0 %v4220_v59, %s3290_s14  ;;  %v1965_v7 = vsel %vm1963_vm5, %v1928_v41, %v4176_v9  ;;  %v3042_v9 = vld [vmem:[%s3347_s25 + $0xf6] sm:$0xff] }
 0x1b8   : > { %3155 = vmatprep.mubr.msk.f32.mxu0 %vm2083_vm8, %v2038_v57  ;;  %3182 = vmatprep.mubr.msk.f32.mxu1 %vm2083_vm8, %v2056_v19  ;;  %v2002_v13 = vsel %vm2000_vm6, %v1965_v7, %v1529_v45  ;;  %v3043_v19 = vld [vmem:[%s3347_s25 + $0xfe] sm:$0xff] }
 0x1b9   : > { %v1279_v56 = vpop.permute.xlu1 %1278  ;;  %v1243_v11 = vpop.permute.xlu0 %1242  ;;  %v289_v41 = vld [vmem:[%s3347_s25 + $0x18] sm:$0xff] }
 0x1bb   : > { %1578 = vrot.lane.b32.xlu1 %v3006_v1, %s3291_s26  ;;  %1542 = vrot.lane.b32.xlu0 %v2988_v26, %s3291_s26  ;;  %v306_v1 = vld [vmem:[%s3347_s25 + $0xa0] sm:$0xff] }
 0x1bd   : > { %v1709_v34 = vpop.permute.xlu1 %1708  ;;  %v1673_v50 = vpop.permute.xlu0 %1672 }
 0x1be   : > { %v2057_v39 = vsel %vm2037_vm7, %v2020_v21, %v1709_v34  ;;  %v2039_v35 = vsel %vm2037_vm7, %v2002_v13, %v1673_v50  ;;  %v1782_v50 = vsel %vm1778_vm0, %v289_v41, %v3545_v0  ;;  %v3008_v0 = vld [vmem:[%s3347_s25 + $0x105] sm:$0xff]  ;;  %v308_v41 = vld [vmem:[%s3347_s25 + $0xb0] sm:$0xff] }
 0x1bf   : > { %1580 = vrot.lane.b32.xlu1 %v3007_v22, %s3291_s26  ;;  %1544 = vrot.lane.b32.xlu0 %v2989_v32, %s3291_s26 }
 0x1c0   : > { %3156 = vmatmul.mubr.msk.f32.vlgmr.msra.gmra.mxu0 %vm2083_vm8, %v2039_v35  ;;  %3183 = vmatmul.mubr.msk.f32.vlgmr.msra.gmra.mxu1 %vm2083_vm8, %v2057_v39  ;;  %v1819_v35 = vsel %vm1815_vm1, %v1782_v50, %v3719_v46 }
 0x1c1   : > { %v4272_v6 = vpop.permute.xlu1 %1280  ;;  %v4274_v45 = vpop.permute.xlu0 %1244 }
 0x1c3   : > { %1722 = vrot.lane.b32.xlu1 %v3042_v9, %s3292_s8  ;;  %1686 = vrot.lane.b32.xlu0 %v3024_v33, %s3292_s8  ;;  %v1856_v33 = vsel %vm1852_vm2, %v1819_v35, %v3865_v42 }
 0x1c4   : > { %v1893_v46 = vsel %vm1889_vm3, %v1856_v33, %v4048_v53  ;;  %v3009_v53 = vld [vmem:[%s3347_s25 + $0x10d] sm:$0xff] }
 0x1c5   : > { %v1423_v27 = vpop.permute.xlu1 %1422  ;;  %v1387_v57 = vpop.permute.xlu0 %1386 }
 0x1c7   : > { %1294 = vrot.lane.b32.xlu1 %v4193_v43, %s3289_s30  ;;  %1258 = vrot.lane.b32.xlu0 %v4196_v61, %s3289_s30  ;;  %v1781_v43 = vsel %vm1778_vm0, %v288_v36, %v3531_v60  ;;  %v1799_v61 = vsel %vm1778_vm0, %v306_v1, %v3649_v29  ;;  %v4304_v60 = vld [vmem:[%s3347_s25 + $0x74] sm:$0xff]  ;;  %v1930_v36 = vsel %vm1926_vm4, %v1893_v46, %v4274_v45  ;;  %v2991_v1 = vld [vmem:[%s3347_s25 + $0x7d] sm:$0xff] }
 0x1c8   : > { %v1818_v51 = vsel %vm1815_vm1, %v1781_v43, %v3721_v47  ;;  %v1836_v44 = vsel %vm1815_vm1, %v1799_v61, %v3795_v63  ;;  %v5248_v46 = vld [vmem:[#allocation62_spill] sm:$0xff] }
 0x1c9   : > { %v1425_v23 = vpop.permute.xlu1 %1424  ;;  %v1389_v3 = vpop.permute.xlu0 %1388  ;;  %v1855_v29 = vsel %vm1852_vm2, %v1818_v51, %v3867_v25  ;;  %v307_v25 = vld [vmem:[%s3347_s25 + $0xa8] sm:$0xff] }
 0x1ca   : > { %v1892_v47 = vsel %vm1889_vm3, %v1855_v29, %v4050_v12  ;;  %v4325_v12 = vld [vmem:[%s3347_s25 + $0x10c] sm:$0xff]  ;;  %v1800_v39 = vsel %vm1778_vm0, %v307_v25, %v3647_v28  ;;  %v2990_v28 = vld [vmem:[%s3347_s25 + $0x75] sm:$0xff]  ;;  %v1967_v42 = vsel %vm1963_vm5, %v1930_v36, %v1389_v3 }
 0x1cb   : > { %1724 = vrot.lane.b32.xlu1 %v3043_v19, %s3292_s8  ;;  %1688 = vrot.lane.b32.xlu0 %v3025_v8, %s3292_s8  ;;  %v1929_v7 = vsel %vm1926_vm4, %v1892_v47, %v1243_v11  ;;  %v1837_v9 = vsel %vm1815_vm1, %v1800_v39, %v3793_v62  ;;  %v3026_v3 = vld [vmem:[%s3347_s25 + $0x76] sm:$0xff] }
 0x1cc   : > { %v1966_v22 = vsel %vm1963_vm5, %v1929_v7, %v1387_v57 }
 0x1cd   : > { %v1567_v26 = vpop.permute.xlu1 %1566  ;;  %v1531_v58 = vpop.permute.xlu0 %1530 }
 0x1ce   : > { %v2003_v11 = vsel %vm2000_vm6, %v1966_v22, %v1531_v58  ;;  %v4407_v22 = vld [vmem:[%s3347_s25 + $0x114] sm:$0xff] }
 0x1cf   : > { %1296 = vrot.lane.b32.xlu1 %v4217_v55, %s3289_s30  ;;  %1260 = vrot.lane.b32.xlu0 %v4220_v59, %s3289_s30  ;;  %v1873_v55 = vsel %vm1852_vm2, %v1836_v44, %v3972_v16 }
 0x1d0   : > { %v1910_v63 = vsel %vm1889_vm3, %v1873_v55, %v4116_v2  ;;  %v4328_v2 = vld [vmem:[%s3347_s25 + $0x7c] sm:$0xff]  ;;  %v3045_v55 = vld [vmem:[%s3347_s25 + $0x10e] sm:$0xff] }
 0x1d1   : > { %v1569_v59 = vpop.permute.xlu1 %1568  ;;  %v1533_v15 = vpop.permute.xlu0 %1532  ;;  %v1947_v54 = vsel %vm1926_vm4, %v1910_v63, %v1279_v56  ;;  %v290_v63 = vld [vmem:[%s3347_s25 + $0x20] sm:$0xff] }
 0x1d2   : > { %v1984_v16 = vsel %vm1963_vm5, %v1947_v54, %v1423_v27  ;;  %v1874_v27 = vsel %vm1852_vm2, %v1837_v9, %v3970_v17 }
 0x1d3   : > { %1438 = vrot.lane.b32.xlu1 %v4301_v18, %s3290_s14  ;;  %1402 = vrot.lane.b32.xlu0 %v4304_v60, %s3290_s14  ;;  %v2021_v56 = vsel %vm2000_vm6, %v1984_v16, %v1567_v26  ;;  %v1911_v62 = vsel %vm1889_vm3, %v1874_v27, %v4114_v37  ;;  %v2004_v26 = vsel %vm2000_vm6, %v1967_v42, %v1533_v15 }
 0x1d4   : > { %v1948_v8 = vsel %vm1926_vm4, %v1911_v62, %v4272_v6 }
 0x1d5   : > { %v1711_v32 = vpop.permute.xlu1 %1710  ;;  %v1675_v21 = vpop.permute.xlu0 %1674  ;;  %v1985_v17 = vsel %vm1963_vm5, %v1948_v8, %v1425_v23  ;;  %v3044_v23 = vld [vmem:[%s3347_s25 + $0x106] sm:$0xff] }
 0x1d6   : > { %v2058_v13 = vsel %vm2037_vm7, %v2021_v56, %v1711_v32  ;;  %v2040_v34 = vsel %vm2037_vm7, %v2003_v11, %v1675_v21  ;;  %v2022_v37 = vsel %vm2000_vm6, %v1985_v17, %v1569_v59  ;;  %v3027_v59 = vld [vmem:[%s3347_s25 + $0x7e] sm:$0xff]  ;;  %v291_v11 = vld [vmem:[%s3347_s25 + $0x28] sm:$0xff] }
 0x1d7   : > { %1440 = vrot.lane.b32.xlu1 %v4325_v12, %s3290_s14  ;;  %1404 = vrot.lane.b32.xlu0 %v4328_v2, %s3290_s14 }
 0x1d8   : > { %3158 = vmatprep.mubr.msk.f32.mxu0 %vm2083_vm8, %v2040_v34  ;;  %3185 = vmatprep.mubr.msk.f32.mxu1 %vm2083_vm8, %v2058_v13 }
 0x1d9   : > { %v1283_v57 = vpop.permute.xlu1 %1282  ;;  %v1247_v19 = vpop.permute.xlu0 %1246 }
 0x1db   : > { %1582 = vrot.lane.b32.xlu1 %v3008_v0, %s3291_s26  ;;  %1546 = vrot.lane.b32.xlu0 %v2990_v28, %s3291_s26  ;;  %v1784_v28 = vsel %vm1778_vm0, %v291_v11, %v3559_v4  ;;  %v3010_v4 = vld [vmem:[%s3347_s25 + $0x115] sm:$0xff] }
 0x1dc   : > { %v1821_v27 = vsel %vm1815_vm1, %v1784_v28, %v3727_v48  ;;  %v5249_v48 = vld [vmem:[#allocation75_spill] sm:$0xff] }
 0x1dd   : > { %v1713_v6 = vpop.permute.xlu1 %1712  ;;  %v1677_v58 = vpop.permute.xlu0 %1676 }
 0x1de   : > { %v2059_v45 = vsel %vm2037_vm7, %v2022_v37, %v1713_v6  ;;  %v2041_v43 = vsel %vm2037_vm7, %v2004_v26, %v1677_v58  ;;  %v2993_v26 = vld [vmem:[%s3347_s25 + $0x8d] sm:$0xff] }
 0x1df   : > { %1584 = vrot.lane.b32.xlu1 %v3009_v53, %s3291_s26  ;;  %1548 = vrot.lane.b32.xlu0 %v2991_v1, %s3291_s26  ;;  %v2904_v6 = vld [vmem:[%s3347_s25 + $0x113] sm:$0xff] }
 0x1e0   : > { %3159 = vmatmul.mubr.msk.f32.gmra.mxu0 %vm2083_vm8, %v2041_v43  ;;  %3186 = vmatmul.mubr.msk.f32.gmra.mxu1 %vm2083_vm8, %v2059_v45 }
 0x1e1   : > { %v4378_v61 = vpop.permute.xlu1 %1284  ;;  %v4380_v51 = vpop.permute.xlu0 %1248 }
 0x1e3   : > { %1726 = vrot.lane.b32.xlu1 %v3044_v23, %s3292_s8  ;;  %1690 = vrot.lane.b32.xlu0 %v3026_v3, %s3292_s8 }
 0x1e5   : > { %v1427_v44 = vpop.permute.xlu1 %1426  ;;  %v1391_v29 = vpop.permute.xlu0 %1390 }
 0x1e7   : > { %1298 = vrot.lane.b32.xlu1 %v4301_v18, %s3289_s30  ;;  %1262 = vrot.lane.b32.xlu0 %v4304_v60, %s3289_s30  ;;  %v1783_v18 = vsel %vm1778_vm0, %v290_v63, %v3561_v5  ;;  %v1801_v60 = vsel %vm1778_vm0, %v308_v41, %v3657_v31  ;;  %v4410_v5 = vld [vmem:[%s3347_s25 + $0x84] sm:$0xff] }
 0x1e8   : > { %v1820_v25 = vsel %vm1815_vm1, %v1783_v18, %v3729_v49  ;;  %v1838_v16 = vsel %vm1815_vm1, %v1801_v60, %v3803_v14  ;;  %v310_v18 = vld [vmem:[%s3347_s25 + $0xc0] sm:$0xff] }
 0x1e9   : > { %v1429_v15 = vpop.permute.xlu1 %1428  ;;  %v1393_v47 = vpop.permute.xlu0 %1392  ;;  %v1857_v31 = vsel %vm1852_vm2, %v1820_v25, %v3875_v40  ;;  %v3047_v60 = vld [vmem:[%s3347_s25 + $0x11e] sm:$0xff]  ;;  %v3029_v25 = vld [vmem:[%s3347_s25 + $0x8e] sm:$0xff] }
 0x1ea   : > { %v1894_v49 = vsel %vm1889_vm3, %v1857_v31, %v4056_v20  ;;  %v4431_v20 = vld [vmem:[%s3347_s25 + $0x11c] sm:$0xff] }
 0x1eb   : > { %1728 = vrot.lane.b32.xlu1 %v3045_v55, %s3292_s8  ;;  %1692 = vrot.lane.b32.xlu0 %v3027_v59, %s3292_s8  ;;  %v1931_v21 = vsel %vm1926_vm4, %v1894_v49, %v1247_v19  ;;  %v1858_v19 = vsel %vm1852_vm2, %v1821_v27, %v3873_v38  ;;  %v2905_v59 = vld [vmem:[%s3347_s25 + $0x11b] sm:$0xff]  ;;  %v311_v27 = vld [vmem:[%s3347_s25 + $0xc8] sm:$0xff] }
 0x1ec   : > { %v1968_v13 = vsel %vm1963_vm5, %v1931_v21, %v1391_v29  ;;  %v1895_v17 = vsel %vm1889_vm3, %v1858_v19, %v5249_v48  ;;  %v4534_v19 = vld [vmem:[%s3347_s25 + $0x94] sm:$0xff]  ;;  %v5259_v48 = vld [vmem:[#allocation2_spill] sm:$0xff] }
 0x1ed   : > { %v1571_v54 = vpop.permute.xlu1 %1570  ;;  %v1535_v7 = vpop.permute.xlu0 %1534  ;;  %v1932_v1 = vsel %vm1926_vm4, %v1895_v17, %v4380_v51  ;;  %v3028_v51 = vld [vmem:[%s3347_s25 + $0x86] sm:$0xff] }
 0x1ee   : > { %v2005_v50 = vsel %vm2000_vm6, %v1968_v13, %v1535_v7  ;;  %v1969_v37 = vsel %vm1963_vm5, %v1932_v1, %v1393_v47  ;;  %v292_v7 = vld [vmem:[%s3347_s25 + $0x30] sm:$0xff] }
 0x1ef   : > { %1300 = vrot.lane.b32.xlu1 %v4325_v12, %s3289_s30  ;;  %1264 = vrot.lane.b32.xlu0 %v4328_v2, %s3289_s30  ;;  %v1875_v12 = vsel %vm1852_vm2, %v1838_v16, %v3986_v52  ;;  %v309_v52 = vld [vmem:[%s3347_s25 + $0xb8] sm:$0xff] }
 0x1f0   : > { %v1912_v14 = vsel %vm1889_vm3, %v1875_v12, %v4124_v24  ;;  %v4434_v24 = vld [vmem:[%s3347_s25 + $0x8c] sm:$0xff]  ;;  %v1802_v33 = vsel %vm1778_vm0, %v309_v52, %v3655_v30 }
 0x1f1   : > { %v1573_v2 = vpop.permute.xlu1 %1572  ;;  %v1537_v56 = vpop.permute.xlu0 %1536  ;;  %v1949_v32 = vsel %vm1926_vm4, %v1912_v14, %v1283_v57  ;;  %v1839_v57 = vsel %vm1815_vm1, %v1802_v33, %v3801_v10  ;;  %v2992_v30 = vld [vmem:[%s3347_s25 + $0x85] sm:$0xff]  ;;  %v5250_v10 = vld [vmem:[#allocation88_spill] sm:$0xff] }
 0x1f2   : > { %v1986_v40 = vsel %vm1963_vm5, %v1949_v32, %v1427_v44  ;;  %v1876_v62 = vsel %vm1852_vm2, %v1839_v57, %v5248_v46  ;;  %v2006_v45 = vsel %vm2000_vm6, %v1969_v37, %v1537_v56  ;;  %v3011_v44 = vld [vmem:[%s3347_s25 + $0x11d] sm:$0xff]  ;;  %v5251_v12 = vld [vmem:[#allocation3_spill] sm:$0xff]  ;;  %v5256_v52 = vld [vmem:[#allocation64_spill] sm:$0xff] }
 0x1f3   : > { %1442 = vrot.lane.b32.xlu1 %v4407_v22, %s3290_s14  ;;  %1406 = vrot.lane.b32.xlu0 %v4410_v5, %s3290_s14  ;;  %v2023_v34 = vsel %vm2000_vm6, %v1986_v40, %v1571_v54  ;;  %v1913_v42 = vsel %vm1889_vm3, %v1876_v62, %v5250_v10  ;;  %v5252_v56 = vld [vmem:[#allocation15_spill] sm:$0xff]  ;;  %v5260_v10 = vld [vmem:[#allocation14_spill] sm:$0xff] }
 0x1f4   : > { %v1950_v53 = vsel %vm1926_vm4, %v1913_v42, %v4378_v61  ;;  %v1803_v49 = vsel %vm1778_vm0, %v310_v18, %v5252_v56  ;;  %v5254_v14 = vld [vmem:[#allocation39_spill] sm:$0xff]  ;;  %v1804_v42 = vsel %vm1778_vm0, %v311_v27, %v5260_v10  ;;  %v5274_v10 = vld [vmem:[#allocation92_spill] sm:$0xff] }
 0x1f5   : > { %v1715_v39 = vpop.permute.xlu1 %1714  ;;  %v1679_v35 = vpop.permute.xlu0 %1678  ;;  %v1987_v38 = vsel %vm1963_vm5, %v1950_v53, %v1429_v15  ;;  %v3046_v15 = vld [vmem:[%s3347_s25 + $0x116] sm:$0xff]  ;;  %v1840_v11 = vsel %vm1815_vm1, %v1803_v49, %v5254_v14  ;;  %v5255_v32 = vld [vmem:[#allocation51_spill] sm:$0xff]  ;;  %v5261_v53 = vld [vmem:[#allocation26_spill] sm:$0xff] }
 0x1f6   : > { %v2060_v9 = vsel %vm2037_vm7, %v2023_v34, %v1715_v39  ;;  %v2042_v0 = vsel %vm2037_vm7, %v2005_v50, %v1679_v35  ;;  %v2024_v58 = vsel %vm2000_vm6, %v1987_v38, %v1573_v2  ;;  %v1785_v2 = vsel %vm1778_vm0, %v292_v7, %v5251_v12  ;;  %v5257_v50 = vld [vmem:[#allocation77_spill] sm:$0xff]  ;;  %v5258_v35 = vld [vmem:[#allocation90_spill] sm:$0xff] }
 0x1f7   : > { %1444 = vrot.lane.b32.xlu1 %v4431_v20, %s3290_s14  ;;  %1408 = vrot.lane.b32.xlu0 %v4434_v24, %s3290_s14  ;;  %v1877_v40 = vsel %vm1852_vm2, %v1840_v11, %v5256_v52  ;;  %v5262_v38 = vld [vmem:[#allocation38_spill] sm:$0xff] }
 0x1f8   : > { %3161 = vmatprep.mubr.msk.f32.mxu0 %vm2083_vm8, %v2042_v0  ;;  %3188 = vmatprep.mubr.msk.f32.mxu1 %vm2083_vm8, %v2060_v9  ;;  %v1914_v9 = vsel %vm1889_vm3, %v1877_v40, %v5258_v35  ;;  %v293_v0 = vld [vmem:[%s3347_s25 + $0x38] sm:$0xff]  ;;  %v1841_v37 = vsel %vm1815_vm1, %v1804_v42, %v5262_v38  ;;  %v295_v38 = vld [vmem:[%s3347_s25 + $0x48] sm:$0xff] }
 0x1f9   : > { %v1287_v8 = vpop.permute.xlu1 %1286  ;;  %v1251_v36 = vpop.permute.xlu0 %1250  ;;  %v1786_v17 = vsel %vm1778_vm0, %v293_v0, %v5259_v48  ;;  %v5267_v35 = vld [vmem:[#allocation5_spill] sm:$0xff] }
 0x1fa   : > { %v1951_v28 = vsel %vm1926_vm4, %v1914_v9, %v1287_v8  ;;  %v1823_v1 = vsel %vm1815_vm1, %v1786_v17, %v5261_v53  ;;  %v5268_v0 = vld [vmem:[#allocation17_spill] sm:$0xff]  ;;  %v5273_v17 = vld [vmem:[#allocation79_spill] sm:$0xff] }
 0x1fb   : > { %1586 = vrot.lane.b32.xlu1 %v3010_v4, %s3291_s26  ;;  %1550 = vrot.lane.b32.xlu0 %v2992_v30, %s3291_s26  ;;  %v4531_v30 = vld [vmem:[%s3347_s25 + $0x124] sm:$0xff] }
 0x1fd   : > { %v1717_v43 = vpop.permute.xlu1 %1716  ;;  %v1681_v23 = vpop.permute.xlu0 %1680 }
 0x1fe   : > { %v2061_v3 = vsel %vm2037_vm7, %v2024_v58, %v1717_v43  ;;  %v2043_v61 = vsel %vm2037_vm7, %v2006_v45, %v1681_v23  ;;  %v5263_v58 = vld [vmem:[#allocation50_spill] sm:$0xff]  ;;  %v5264_v43 = vld [vmem:[#allocation63_spill] sm:$0xff] }
 0x1ff   : > { %1552 = vrot.lane.b32.xlu1 %v2993_v26, %s3291_s26  ;;  %1158 = vrot.lane.b32.xlu0 %v2904_v6, %s3288_s29  ;;  %v4555_v26 = vld [vmem:[%s3347_s25 + $0x12c] sm:$0xff]  ;;  %v4558_v6 = vld [vmem:[%s3347_s25 + $0x9c] sm:$0xff]  ;;  %v1860_v45 = vsel %vm1852_vm2, %v1823_v1, %v5263_v58  ;;  %v1878_v23 = vsel %vm1852_vm2, %v1841_v37, %v5264_v43 }
 0x200   : > { %3162 = vmatmul.mubr.msk.f32.gmra.mxu0 %vm2083_vm8, %v2043_v61  ;;  %3189 = vmatmul.mubr.msk.f32.gmra.mxu1 %vm2083_vm8, %v2061_v3  ;;  %v313_v37 = vld [vmem:[%s3347_s25 + $0xd8] sm:$0xff] }
 0x201   : > { %v4484_v29 = vpop.permute.xlu1 %1288  ;;  %v4486_v55 = vpop.permute.xlu0 %1252 }
 0x203   : > { %1694 = vrot.lane.b32.xlu1 %v3028_v51, %s3292_s8  ;;  %1588 = vrot.lane.b32.xlu0 %v3011_v44, %s3291_s26  ;;  %v5265_v51 = vld [vmem:[#allocation76_spill] sm:$0xff] }
 0x204   : > { %v1897_v44 = vsel %vm1889_vm3, %v1860_v45, %v5265_v51 }
 0x205   : > { %v1431_v47 = vpop.permute.xlu1 %1430  ;;  %v1395_v63 = vpop.permute.xlu0 %1394 }
 0x206   : > { %v1988_v57 = vsel %vm1963_vm5, %v1951_v28, %v1431_v47 }
 0x207   : > { %1160 = vrot.lane.b32.xlu1 %v2905_v59, %s3288_s29  ;;  %1730 = vrot.lane.b32.xlu0 %v3046_v15, %s3292_s8  ;;  %v5266_v59 = vld [vmem:[#allocation89_spill] sm:$0xff] }
 0x208   : > { %v1915_v15 = vsel %vm1889_vm3, %v1878_v23, %v5266_v59  ;;  %v5275_v59 = vld [vmem:[#allocation4_spill] sm:$0xff] }
 0x209   : > { %v1433_v41 = vpop.permute.xlu1 %1432  ;;  %v1397_v54 = vpop.permute.xlu0 %1396  ;;  %v1952_v47 = vsel %vm1926_vm4, %v1915_v15, %v4484_v29  ;;  %v1788_v15 = vsel %vm1778_vm0, %v295_v38, %v5275_v59  ;;  %v5285_v38 = vld [vmem:[#allocation31_spill] sm:$0xff]  ;;  %v5289_v59 = vld [vmem:[#allocation81_spill] sm:$0xff] }
 0x20a   : > { %v1989_v7 = vsel %vm1963_vm5, %v1952_v47, %v1433_v41  ;;  %v2995_v41 = vld [vmem:[%s3347_s25 + $0x9d] sm:$0xff]  ;;  %v5276_v47 = vld [vmem:[#allocation16_spill] sm:$0xff] }
 0x20b   : > { %1302 = vrot.lane.b32.xlu1 %v4407_v22, %s3289_s30  ;;  %1266 = vrot.lane.b32.xlu0 %v4410_v5, %s3289_s30  ;;  %v5253_v22 = vld [vmem:[#allocation27_spill] sm:$0xff] }
 0x20c   : > { %v1822_v5 = vsel %vm1815_vm1, %v1785_v2, %v5253_v22  ;;  %v3030_v22 = vld [vmem:[%s3347_s25 + $0x96] sm:$0xff] }
 0x20d   : > { %v1575_v16 = vpop.permute.xlu1 %1574  ;;  %v1539_v31 = vpop.permute.xlu0 %1538  ;;  %v1859_v21 = vsel %vm1852_vm2, %v1822_v5, %v5255_v32  ;;  %v3013_v5 = vld [vmem:[%s3347_s25 + $0x12d] sm:$0xff] }
 0x20e   : > { %v1896_v39 = vsel %vm1889_vm3, %v1859_v21, %v5257_v50  ;;  %v2025_v46 = vsel %vm2000_vm6, %v1988_v57, %v1575_v16  ;;  %v2907_v32 = vld [vmem:[%s3347_s25 + $0x12b] sm:$0xff]  ;;  %v5270_v57 = vld [vmem:[#allocation41_spill] sm:$0xff] }
 0x20f   : > { %1732 = vrot.lane.b32.xlu1 %v3047_v60, %s3292_s8  ;;  %1696 = vrot.lane.b32.xlu0 %v3029_v25, %s3292_s8  ;;  %v1933_v33 = vsel %vm1926_vm4, %v1896_v39, %v1251_v36  ;;  %v3012_v60 = vld [vmem:[%s3347_s25 + $0x125] sm:$0xff]  ;;  %v2994_v25 = vld [vmem:[%s3347_s25 + $0x95] sm:$0xff] }
 0x210   : > { %v1970_v4 = vsel %vm1963_vm5, %v1933_v33, %v1395_v63  ;;  %v1934_v63 = vsel %vm1926_vm4, %v1897_v44, %v4486_v55  ;;  %v3048_v21 = vld [vmem:[%s3347_s25 + $0x126] sm:$0xff]  ;;  %v5269_v33 = vld [vmem:[#allocation29_spill] sm:$0xff] }
 0x211   : > { %v1577_v13 = vpop.permute.xlu1 %1576  ;;  %v1541_v34 = vpop.permute.xlu0 %1540  ;;  %v2007_v62 = vsel %vm2000_vm6, %v1970_v4, %v1539_v31  ;;  %v1971_v18 = vsel %vm1963_vm5, %v1934_v63, %v1397_v54  ;;  %v2906_v54 = vld [vmem:[%s3347_s25 + $0x123] sm:$0xff]  ;;  %v1806_v63 = vsel %vm1778_vm0, %v313_v37, %v5276_v47 }
 0x212   : > { %v2026_v16 = vsel %vm2000_vm6, %v1989_v7, %v1577_v13  ;;  %v2008_v29 = vsel %vm2000_vm6, %v1971_v18, %v1541_v34  ;;  %v294_v13 = vld [vmem:[%s3347_s25 + $0x40] sm:$0xff]  ;;  %v312_v34 = vld [vmem:[%s3347_s25 + $0xd0] sm:$0xff] }
 0x213   : > { %1304 = vrot.lane.b32.xlu1 %v4431_v20, %s3289_s30  ;;  %1268 = vrot.lane.b32.xlu0 %v4434_v24, %s3289_s30  ;;  %v1787_v9 = vsel %vm1778_vm0, %v294_v13, %v5267_v35  ;;  %v1805_v28 = vsel %vm1778_vm0, %v312_v34, %v5268_v0  ;;  %v5277_v7 = vld [vmem:[#allocation28_spill] sm:$0xff]  ;;  %v2979_v13 = vld [vmem:[%s3347_s25 + $0x13c] sm:$0xff] }
 0x214   : > { %v1824_v27 = vsel %vm1815_vm1, %v1787_v9, %v5269_v33  ;;  %v1842_v4 = vsel %vm1815_vm1, %v1805_v28, %v5270_v57  ;;  %v1825_v18 = vsel %vm1815_vm1, %v1788_v15, %v5277_v7  ;;  %v2961_v34 = vld [vmem:[%s3347_s25 + $0xac] sm:$0xff]  ;;  %v3015_v33 = vld [vmem:[%s3347_s25 + $0x13d] sm:$0xff] }
 0x215   : > { %v1719_v8 = vpop.permute.xlu1 %1718  ;;  %v1683_v20 = vpop.permute.xlu0 %1682  ;;  %v5290_v47 = vld [vmem:[#allocation94_spill] sm:$0xff] }
 0x216   : > { %v2062_v36 = vsel %vm2037_vm7, %v2025_v46, %v1719_v8  ;;  %v2044_v24 = vsel %vm2037_vm7, %v2007_v62, %v1683_v20  ;;  %v3049_v46 = vld [vmem:[%s3347_s25 + $0x12e] sm:$0xff]  ;;  %v3031_v62 = vld [vmem:[%s3347_s25 + $0x9e] sm:$0xff] }
 0x217   : > { %1446 = vrot.lane.b32.xlu1 %v4531_v30, %s3290_s14  ;;  %1410 = vrot.lane.b32.xlu0 %v4534_v19, %s3290_s14  ;;  %v5271_v8 = vld [vmem:[#allocation53_spill] sm:$0xff] }
 0x218   : > { %3164 = vmatprep.mubr.msk.f32.mxu0 %vm2083_vm8, %v2044_v24  ;;  %3191 = vmatprep.mubr.msk.f32.mxu1 %vm2083_vm8, %v2062_v36  ;;  %v1861_v20 = vsel %vm1852_vm2, %v1824_v27, %v5271_v8  ;;  %v5272_v36 = vld [vmem:[#allocation66_spill] sm:$0xff]  ;;  %v2997_v27 = vld [vmem:[%s3347_s25 + $0xad] sm:$0xff] }
 0x219   : > { %v1291_v3 = vpop.permute.xlu1 %1290  ;;  %v1255_v61 = vpop.permute.xlu0 %1254  ;;  %v1879_v24 = vsel %vm1852_vm2, %v1842_v4, %v5272_v36  ;;  %v296_v36 = vld [vmem:[%s3347_s25 + $0x50] sm:$0xff] }
 0x21a   : > { %v1916_v42 = vsel %vm1889_vm3, %v1879_v24, %v5274_v10  ;;  %v314_v24 = vld [vmem:[%s3347_s25 + $0xe0] sm:$0xff]  ;;  %v5283_v10 = vld [vmem:[#allocation7_spill] sm:$0xff] }
 0x21b   : > { %1448 = vrot.lane.b32.xlu1 %v4555_v26, %s3290_s14  ;;  %1412 = vrot.lane.b32.xlu0 %v4558_v6, %s3290_s14  ;;  %v1953_v53 = vsel %vm1926_vm4, %v1916_v42, %v1291_v3  ;;  %v1789_v42 = vsel %vm1778_vm0, %v296_v36, %v5283_v10  ;;  %v298_v10 = vld [vmem:[%s3347_s25 + $0x60] sm:$0xff] }
 0x21c   : > { %v1826_v37 = vsel %vm1815_vm1, %v1789_v42, %v5285_v38 }
 0x21d   : > { %v1721_v55 = vpop.permute.xlu1 %1720  ;;  %v1685_v31 = vpop.permute.xlu0 %1684 }
 0x21e   : > { %v2063_v12 = vsel %vm2037_vm7, %v2026_v16, %v1721_v55  ;;  %v2045_v2 = vsel %vm2037_vm7, %v2008_v29, %v1685_v31  ;;  %v2978_v16 = vld [vmem:[%s3347_s25 + $0x134] sm:$0xff]  ;;  %v2960_v29 = vld [vmem:[%s3347_s25 + $0xa4] sm:$0xff] }
 0x21f   : > { %1590 = vrot.lane.b32.xlu1 %v3012_v60, %s3291_s26  ;;  %1554 = vrot.lane.b32.xlu0 %v2994_v25, %s3291_s26  ;;  %v5278_v60 = vld [vmem:[#allocation40_spill] sm:$0xff]  ;;  %v5280_v31 = vld [vmem:[#allocation65_spill] sm:$0xff] }
 0x220   : > { %3165 = vmatmul.mubr.msk.f32.gmra.mxu0 %vm2083_vm8, %v2045_v2  ;;  %3192 = vmatmul.mubr.msk.f32.gmra.mxu1 %vm2083_vm8, %v2063_v12  ;;  %v1843_v25 = vsel %vm1815_vm1, %v1806_v63, %v5278_v60  ;;  %v5279_v55 = vld [vmem:[#allocation52_spill] sm:$0xff]  ;;  %v297_v60 = vld [vmem:[%s3347_s25 + $0x58] sm:$0xff] }
 0x221   : > { %v4590_v56 = vpop.permute.xlu1 %1292  ;;  %v4592_v49 = vpop.permute.xlu0 %1256 }
 0x223   : > { %1556 = vrot.lane.b32.xlu1 %v2995_v41, %s3291_s26  ;;  %1162 = vrot.lane.b32.xlu0 %v2906_v54, %s3288_s29  ;;  %v5281_v41 = vld [vmem:[#allocation78_spill] sm:$0xff] }
 0x225   : > { %v1435_v14 = vpop.permute.xlu1 %1434  ;;  %v1399_v11 = vpop.permute.xlu0 %1398 }
 0x226   : > { %v1990_v58 = vsel %vm1963_vm5, %v1953_v53, %v1435_v14  ;;  %v5284_v53 = vld [vmem:[#allocation19_spill] sm:$0xff] }
 0x227   : > { %1698 = vrot.lane.b32.xlu1 %v3030_v22, %s3292_s8  ;;  %1592 = vrot.lane.b32.xlu0 %v3013_v5, %s3291_s26  ;;  %v5282_v22 = vld [vmem:[#allocation91_spill] sm:$0xff] }
 0x229   : > { %v1437_v52 = vpop.permute.xlu1 %1436  ;;  %v1401_v40 = vpop.permute.xlu0 %1400 }
 0x22b   : > { %1164 = vrot.lane.b32.xlu1 %v2907_v32, %s3288_s29  ;;  %1734 = vrot.lane.b32.xlu0 %v3048_v21, %s3292_s8  ;;  %s3228_s29 = smul.u32 288, %s5348_s18 }
 0x22d   : > { %v1579_v50 = vpop.permute.xlu1 %1578  ;;  %v1543_v39 = vpop.permute.xlu0 %1542  ;;  %s4819_s12 = scalar_lea.vmem %s5151_s4, %s3228_s29  ;;  %s4846_s17 = scalar_lea.vmem %s5152_s5, %s3228_s29 }
 0x22e   : > { %v2027_v43 = vsel %vm2000_vm6, %v1990_v58, %v1579_v50  ;;  %v5286_v58 = vld [vmem:[#allocation43_spill] sm:$0xff] }
 0x22f   : > { %1306 = vrot.lane.b32.xlu1 %v4531_v30, %s3289_s30  ;;  %1270 = vrot.lane.b32.xlu0 %v4534_v19, %s3289_s30  ;;  %v1898_v19 = vsel %vm1889_vm3, %v1861_v20, %v5273_v17 }
 0x230   : > { %v1935_v1 = vsel %vm1926_vm4, %v1898_v19, %v1255_v61 }
 0x231   : > { %v1581_v30 = vpop.permute.xlu1 %1580  ;;  %v1545_v48 = vpop.permute.xlu0 %1544  ;;  %v1972_v45 = vsel %vm1963_vm5, %v1935_v1, %v1399_v11  ;;  %v1807_v1 = vsel %vm1778_vm0, %v314_v24, %v5284_v53 }
 0x232   : > { %v2009_v23 = vsel %vm2000_vm6, %v1972_v45, %v1543_v39  ;;  %v1844_v45 = vsel %vm1815_vm1, %v1807_v1, %v5286_v58  ;;  %v5299_v1 = vld [vmem:[#allocation9_spill] sm:$0xff] }
 0x233   : > { %1736 = vrot.lane.b32.xlu1 %v3049_v46, %s3292_s8  ;;  %1700 = vrot.lane.b32.xlu0 %v3031_v62, %s3292_s8  ;;  %v3050_v46 = vld [vmem:[%s3347_s25 + $0x136] sm:$0xff]  ;;  %v3032_v62 = vld [vmem:[%s3347_s25 + $0xa6] sm:$0xff]  ;;  %v1791_v38 = vsel %vm1778_vm0, %v298_v10, %v5299_v1 }
 0x234   : > { %v5300_v58 = vld [vmem:[#allocation33_spill] sm:$0xff]  ;;  %v4826_v10 = vld [vmem:[%s5150_s3] ss:$0 sm:$0xff] }
 0x235   : > { %v1723_v51 = vpop.permute.xlu1 %1722  ;;  %v1687_v3 = vpop.permute.xlu0 %1686 }
 0x236   : > { %v2064_v61 = vsel %vm2037_vm7, %v2027_v43, %v1723_v51  ;;  %v2046_v44 = vsel %vm2037_vm7, %v2009_v23, %v1687_v3  ;;  %v5287_v43 = vld [vmem:[#allocation55_spill] sm:$0xff]  ;;  %v5288_v51 = vld [vmem:[#allocation68_spill] sm:$0xff] }
 0x237   : > { %1308 = vrot.lane.b32.xlu1 %v4555_v26, %s3289_s30  ;;  %1272 = vrot.lane.b32.xlu0 %v4558_v6, %s3289_s30  ;;  %v1862_v26 = vsel %vm1852_vm2, %v1825_v18, %v5279_v55  ;;  %v1880_v6 = vsel %vm1852_vm2, %v1843_v25, %v5280_v31  ;;  %v1863_v23 = vsel %vm1852_vm2, %v1826_v37, %v5287_v43  ;;  %v315_v25 = vld [vmem:[%s3347_s25 + $0xe8] sm:$0xff]  ;;  %v316_v37 = vld [vmem:[%s3347_s25 + $0xf0] sm:$0xff]  ;;  %v5301_v43 = vld [vmem:[#allocation57_spill] sm:$0xff] }
 0x238   : > { %3167 = vmatprep.mubr.msk.f32.mxu0 %vm2083_vm8, %v2046_v44  ;;  %3194 = vmatprep.mubr.msk.f32.mxu1 %vm2083_vm8, %v2064_v61  ;;  %v1899_v54 = vsel %vm1889_vm3, %v1862_v26, %v5281_v41  ;;  %v1917_v5 = vsel %vm1889_vm3, %v1880_v6, %v5282_v22  ;;  %v1881_v3 = vsel %vm1852_vm2, %v1844_v45, %v5288_v51  ;;  %v5291_v22 = vld [vmem:[#allocation6_spill] sm:$0xff] }
 0x239   : > { %v1295_v12 = vpop.permute.xlu1 %1294  ;;  %v1259_v2 = vpop.permute.xlu0 %1258  ;;  %v1954_v14 = vsel %vm1926_vm4, %v1917_v5, %v4590_v56  ;;  %v1936_v11 = vsel %vm1926_vm4, %v1899_v54, %v4592_v49  ;;  %v1900_v15 = vsel %vm1889_vm3, %v1863_v23, %v5289_v59  ;;  %v1918_v63 = vsel %vm1889_vm3, %v1881_v3, %v5290_v47  ;;  %v5303_v59 = vld [vmem:[#allocation21_spill] sm:$0xff] }
 0x23a   : > { %v1991_v32 = vsel %vm1963_vm5, %v1954_v14, %v1437_v52  ;;  %v1973_v21 = vsel %vm1963_vm5, %v1936_v11, %v1401_v40  ;;  %v3014_v52 = vld [vmem:[%s3347_s25 + $0x135] sm:$0xff]  ;;  %v2996_v40 = vld [vmem:[%s3347_s25 + $0xa5] sm:$0xff]  ;;  %v1955_v7 = vsel %vm1926_vm4, %v1918_v63, %v1295_v12  ;;  %v1937_v18 = vsel %vm1926_vm4, %v1900_v15, %v1259_v2 }
 0x23b   : > { %1450 = vrot.lane.b32.xlu1 %v2978_v16, %s3290_s14  ;;  %1414 = vrot.lane.b32.xlu0 %v2960_v29, %s3290_s14  ;;  %v2028_v50 = vsel %vm2000_vm6, %v1991_v32, %v1581_v30  ;;  %v2010_v56 = vsel %vm2000_vm6, %v1973_v21, %v1545_v48  ;;  %v3051_v30 = vld [vmem:[%s3347_s25 + $0x13e] sm:$0xff]  ;;  %v3033_v48 = vld [vmem:[%s3347_s25 + $0xae] sm:$0xff]  ;;  %v1790_v12 = vsel %vm1778_vm0, %v297_v60, %v5291_v22 }
 0x23c   : > { %v5292_v2 = vld [vmem:[#allocation18_spill] sm:$0xff]  ;;  %v1828_v45 = vsel %vm1815_vm1, %v1791_v38, %v5300_v58  ;;  %v1809_v15 = vsel %vm1778_vm0, %v316_v37, %v5303_v59  ;;  %v5304_v63 = vld [vmem:[#allocation45_spill] sm:$0xff]  ;;  %v2524_v38 = vld [vmem:[%s4819_s12 + $0x8] sm:$0xff] }
 0x23d   : > { %v1725_v39 = vpop.permute.xlu1 %1724  ;;  %v1689_v49 = vpop.permute.xlu0 %1688  ;;  %v1808_v5 = vsel %vm1778_vm0, %v315_v25, %v5292_v2  ;;  %v5293_v14 = vld [vmem:[#allocation30_spill] sm:$0xff]  ;;  %v1865_v23 = vsel %vm1852_vm2, %v1828_v45, %v5301_v43  ;;  %v317_v22 = vld [vmem:[%s3347_s25 + $0xf8] sm:$0xff] }
 0x23e   : > { %v2065_v35 = vsel %vm2037_vm7, %v2028_v50, %v1725_v39  ;;  %v2047_v9 = vsel %vm2037_vm7, %v2010_v56, %v1689_v49  ;;  %v1827_v11 = vsel %vm1815_vm1, %v1790_v12, %v5293_v14  ;;  %v5294_v32 = vld [vmem:[#allocation42_spill] sm:$0xff]  ;;  %v5296_v50 = vld [vmem:[#allocation67_spill] sm:$0xff]  ;;  %v2542_v37 = vld [vmem:[%s4819_s12 + $0x98] sm:$0xff] }
 0x23f   : > { %1452 = vrot.lane.b32.xlu1 %v2979_v13, %s3290_s14  ;;  %1416 = vrot.lane.b32.xlu0 %v2961_v34, %s3290_s14  ;;  %v1845_v21 = vsel %vm1815_vm1, %v1808_v5, %v5294_v32  ;;  %v5295_v13 = vld [vmem:[#allocation54_spill] sm:$0xff]  ;;  %v5307_v32 = vld [vmem:[#allocation8_spill] sm:$0xff] }
 0x240   : > { %3168 = vmatmul.mubr.msk.f32.gmra.mxu0 %vm2083_vm8, %v2047_v9  ;;  %3195 = vmatmul.mubr.msk.f32.gmra.mxu1 %vm2083_vm8, %v2065_v35  ;;  %v1864_v34 = vsel %vm1852_vm2, %v1827_v11, %v5295_v13  ;;  %v1882_v56 = vsel %vm1852_vm2, %v1845_v21, %v5296_v50  ;;  %v5297_v35 = vld [vmem:[#allocation80_spill] sm:$0xff]  ;;  %v5305_v60 = vld [vmem:[#allocation70_spill] sm:$0xff] }
 0x241   : > { %v1297_v0 = vpop.permute.xlu1 %1296  ;;  %v1261_v28 = vpop.permute.xlu0 %1260  ;;  %v1901_v9 = vsel %vm1889_vm3, %v1864_v34, %v5297_v35  ;;  %v5308_v13 = vld [vmem:[#allocation20_spill] sm:$0xff] }
 0x242   : > { %v1810_v34 = vsel %vm1778_vm0, %v317_v22, %v5308_v13  ;;  %v5309_v50 = vld [vmem:[#allocation32_spill] sm:$0xff]  ;;  %v5317_v13 = vld [vmem:[#allocation59_spill] sm:$0xff] }
 0x243   : > { %1594 = vrot.lane.b32.xlu1 %v3014_v52, %s3291_s26  ;;  %1558 = vrot.lane.b32.xlu0 %v2996_v40, %s3291_s26  ;;  %v5298_v52 = vld [vmem:[#allocation93_spill] sm:$0xff]  ;;  %v5311_v35 = vld [vmem:[#allocation56_spill] sm:$0xff] }
 0x244   : > { %v1919_v40 = vsel %vm1889_vm3, %v1882_v56, %v5298_v52  ;;  %v5312_v52 = vld [vmem:[#allocation69_spill] sm:$0xff] }
 0x245   : > { %v1439_v57 = vpop.permute.xlu1 %1438  ;;  %v1403_v4 = vpop.permute.xlu0 %1402 }
 0x246   : > { %v1992_v16 = vsel %vm1963_vm5, %v1955_v7, %v1439_v57  ;;  %v1974_v29 = vsel %vm1963_vm5, %v1937_v18, %v1403_v4  ;;  %v1846_v7 = vsel %vm1815_vm1, %v1809_v15, %v5304_v63  ;;  %v2523_v15 = vld [vmem:[%s4819_s12] sm:$0xff] }
 0x247   : > { %1596 = vrot.lane.b32.xlu1 %v3015_v33, %s3291_s26  ;;  %1560 = vrot.lane.b32.xlu0 %v2997_v27, %s3291_s26  ;;  %v1956_v33 = vsel %vm1926_vm4, %v1919_v40, %v1297_v0  ;;  %v1938_v27 = vsel %vm1926_vm4, %v1901_v9, %v1261_v28  ;;  %v1883_v25 = vsel %vm1852_vm2, %v1846_v7, %v5305_v60 }
 0x249   : > { %v1441_v8 = vpop.permute.xlu1 %1440  ;;  %v1405_v20 = vpop.permute.xlu0 %1404 }
 0x24a   : > { %v1993_v57 = vsel %vm1963_vm5, %v1956_v33, %v1441_v8  ;;  %v1975_v4 = vsel %vm1963_vm5, %v1938_v27, %v1405_v20 }
 0x24b   : > { %1738 = vrot.lane.b32.xlu1 %v3050_v46, %s3292_s8  ;;  %1702 = vrot.lane.b32.xlu0 %v3032_v62, %s3292_s8 }
 0x24d   : > { %v1583_v17 = vpop.permute.xlu1 %1582  ;;  %v1547_v19 = vpop.permute.xlu0 %1546 }
 0x24e   : > { %v2029_v55 = vsel %vm2000_vm6, %v1992_v16, %v1583_v17  ;;  %v2011_v26 = vsel %vm2000_vm6, %v1974_v29, %v1547_v19 }
 0x24f   : > { %1740 = vrot.lane.b32.xlu1 %v3051_v30, %s3292_s8  ;;  %1704 = vrot.lane.b32.xlu0 %v3033_v48, %s3292_s8 }
 0x251   : > { %v1585_v61 = vpop.permute.xlu1 %1584  ;;  %v1549_v44 = vpop.permute.xlu0 %1548 }
 0x252   : > { %v2030_v46 = vsel %vm2000_vm6, %v1993_v57, %v1585_v61  ;;  %v2012_v62 = vsel %vm2000_vm6, %v1975_v4, %v1549_v44  ;;  %v5302_v61 = vld [vmem:[#allocation83_spill] sm:$0xff]  ;;  %v5313_v57 = vld [vmem:[#allocation82_spill] sm:$0xff] }
 0x253   : > { %v1902_v44 = vsel %vm1889_vm3, %v1865_v23, %v5302_v61 }
 0x255   : > { %v1727_v31 = vpop.permute.xlu1 %1726  ;;  %v1691_v6 = vpop.permute.xlu0 %1690 }
 0x256   : > { %v2066_v41 = vsel %vm2037_vm7, %v2029_v55, %v1727_v31  ;;  %v2048_v54 = vsel %vm2037_vm7, %v2011_v26, %v1691_v6  ;;  %v5306_v26 = vld [vmem:[#allocation96_spill] sm:$0xff] }
 0x257   : > { %3170 = vmatprep.mubr.msk.f32.mxu0 %vm2083_vm8, %v2048_v54  ;;  %3197 = vmatprep.mubr.msk.f32.mxu1 %vm2083_vm8, %v2066_v41  ;;  %v1920_v31 = vsel %vm1889_vm3, %v1883_v25, %v5306_v26  ;;  %v299_v54 = vld [vmem:[%s3347_s25 + $0x68] sm:$0xff] }
 0x258   : > { %v1792_v21 = vsel %vm1778_vm0, %v299_v54, %v5307_v32  ;;  %v300_v54 = vld [vmem:[%s3347_s25 + $0x70] sm:$0xff]  ;;  %v5316_v32 = vld [vmem:[#allocation35_spill] sm:$0xff] }
 0x259   : > { %v1299_v39 = vpop.permute.xlu1 %1298  ;;  %v1263_v49 = vpop.permute.xlu0 %1262  ;;  %v1829_v56 = vsel %vm1815_vm1, %v1792_v21, %v5309_v50 }
 0x25a   : > { %v1939_v47 = vsel %vm1926_vm4, %v1902_v44, %v1263_v49  ;;  %v1957_v41 = vsel %vm1926_vm4, %v1920_v31, %v1299_v39  ;;  %v5310_v39 = vld [vmem:[#allocation44_spill] sm:$0xff]  ;;  %v1866_v9 = vsel %vm1852_vm2, %v1829_v56, %v5311_v35  ;;  %v5319_v35 = vld [vmem:[#allocation23_spill] sm:$0xff] }
 0x25b   : > { %v1847_v49 = vsel %vm1815_vm1, %v1810_v34, %v5310_v39  ;;  %v1903_v4 = vsel %vm1889_vm3, %v1866_v9, %v5313_v57  ;;  %v5318_v39 = vld [vmem:[#allocation85_spill] sm:$0xff] }
 0x25c   : > { %v1884_v40 = vsel %vm1852_vm2, %v1847_v49, %v5312_v52 }
 0x25d   : > { %v1729_v36 = vpop.permute.xlu1 %1728  ;;  %v1693_v24 = vpop.permute.xlu0 %1692 }
 0x25e   : > { %v2067_v30 = vsel %vm2037_vm7, %v2030_v46, %v1729_v36  ;;  %v2049_v48 = vsel %vm2037_vm7, %v2012_v62, %v1693_v24  ;;  %v5314_v46 = vld [vmem:[#allocation95_spill] sm:$0xff]  ;;  %v4810_v36 = vld [vmem:[%s5149_s2] ss:$0 sm:$0xff] }
 0x25f   : > { %3171 = vmatmul.mubr.msk.f32.gmra.mxu0 %vm2083_vm8, %v2049_v48  ;;  %3198 = vmatmul.mubr.msk.f32.gmra.mxu1 %vm2083_vm8, %v2067_v30  ;;  %v1921_v62 = vsel %vm1889_vm3, %v1884_v40, %v5314_v46  ;;  %v5320_v40 = vld [vmem:[#allocation47_spill] sm:$0xff]  ;;  %v5321_v46 = vld [vmem:[#allocation72_spill] sm:$0xff] }
 0x261   : > { %v1301_v0 = vpop.permute.xlu1 %1300  ;;  %v1265_v28 = vpop.permute.xlu0 %1264 }
 0x262   : > { %v1958_v24 = vsel %vm1926_vm4, %v1921_v62, %v1301_v0  ;;  %v1940_v30 = vsel %vm1926_vm4, %v1903_v4, %v1265_v28 }
 0x265   : > { %v1443_v8 = vpop.permute.xlu1 %1442  ;;  %v1407_v17 = vpop.permute.xlu0 %1406 }
 0x266   : > { %v1976_v18 = vsel %vm1963_vm5, %v1939_v47, %v1407_v17  ;;  %v1994_v12 = vsel %vm1963_vm5, %v1957_v41, %v1443_v8  ;;  %v2541_v47 = vld [vmem:[%s4819_s12 + $0x90] sm:$0xff] }
 0x269   : > { %v1445_v20 = vpop.permute.xlu1 %1444  ;;  %v1409_v19 = vpop.permute.xlu0 %1408 }
 0x26a   : > { %v1995_v48 = vsel %vm1963_vm5, %v1958_v24, %v1445_v20  ;;  %v1977_v8 = vsel %vm1963_vm5, %v1940_v30, %v1409_v19 }
 0x26d   : > { %v1587_v42 = vpop.permute.xlu1 %1586  ;;  %v1551_v53 = vpop.permute.xlu0 %1550 }
 0x26e   : > { %v2013_v16 = vsel %vm2000_vm6, %v1976_v18, %v1551_v53  ;;  %v2031_v2 = vsel %vm2000_vm6, %v1994_v12, %v1587_v42 }
 0x271   : > { %v1553_v51 = vpop.permute.xlu1 %1552  ;;  %v4762_v3 = vpop.permute.xlu0 %1158 }
 0x272   : > { %v2014_v28 = vsel %vm2000_vm6, %v1977_v8, %v1553_v51  ;;  %v301_v8 = vld [vmem:[%s3347_s25 + $0x78] sm:$0xff] }
 0x275   : > { %v1695_v29 = vpop.permute.xlu1 %1694  ;;  %v1589_v55 = vpop.permute.xlu0 %1588 }
 0x276   : > { %v2050_v6 = vsel %vm2037_vm7, %v2013_v16, %v1695_v29  ;;  %v2032_v42 = vsel %vm2000_vm6, %v1995_v48, %v1589_v55 }
 0x277   : > { %3173 = vmatprep.mubr.msk.f32.mxu0 %vm2083_vm8, %v2050_v6 }
 0x279   : > { %v4784_v5 = vpop.permute.xlu1 %1160  ;;  %v1731_v14 = vpop.permute.xlu0 %1730 }
 0x27a   : > { %v2068_v11 = vsel %vm2037_vm7, %v2031_v2, %v1731_v14  ;;  %v5315_v2 = vld [vmem:[#allocation11_spill] sm:$0xff] }
 0x27b   : > { %3200 = vmatprep.mubr.msk.f32.mxu1 %vm2083_vm8, %v2068_v11  ;;  %v1793_v14 = vsel %vm1778_vm0, %v300_v54, %v5315_v2  ;;  %v318_v11 = vld [vmem:[%s3347_s25 + $0x100] sm:$0xff]  ;;  %v2526_v2 = vld [vmem:[%s4819_s12 + $0x18] sm:$0xff] }
 0x27c   : > { %v1830_v21 = vsel %vm1815_vm1, %v1793_v14, %v5316_v32  ;;  %v1811_v9 = vsel %vm1778_vm0, %v318_v11, %v5319_v35 }
 0x27d   : > { %v4801_v33 = vpop.permute.xlu1 %1302  ;;  %v1267_v27 = vpop.permute.xlu0 %1266  ;;  %v1867_v34 = vsel %vm1852_vm2, %v1830_v21, %v5317_v13  ;;  %v1848_v57 = vsel %vm1815_vm1, %v1811_v9, %v5320_v40 }
 0x27e   : > { %v1904_v49 = vsel %vm1889_vm3, %v1867_v34, %v5318_v39  ;;  %v1885_v62 = vsel %vm1852_vm2, %v1848_v57, %v5321_v46  ;;  %v2525_v34 = vld [vmem:[%s4819_s12 + $0x10] sm:$0xff] }
 0x27f   : > { %v1941_v52 = vsel %vm1926_vm4, %v1904_v49, %v1267_v27 }
 0x280   : > { %v3157_v17 = vpop.f32.mrf.mxu0  ;;  %v3184_v0 = vpop.f32.mrf.mxu1 }
 0x281   : > { %v2445_v53 = vmul.f32 %v3157_v17, %v4810_v36  ;;  %v2463_v1 = vmul.f32 %v3184_v0, %v4810_v36  ;;  %v1733_v20 = vpop.permute.xlu1 %1732  ;;  %v1697_v19 = vpop.permute.xlu0 %1696  ;;  %v319_v17 = vld [vmem:[%s3347_s25 + $0x108] sm:$0xff]  ;;  %v1922_v0 = vsel %vm1889_vm3, %v1885_v62, %v4762_v3 }
 0x282   : > { %v2069_v58 = vsel %vm2037_vm7, %v2032_v42, %v1733_v20  ;;  %v2051_v45 = vsel %vm2037_vm7, %v2014_v28, %v1697_v19  ;;  %v2258_v43 = vpop.f32.mrf.mxu0  ;;  %v2348_v23 = vpop.f32.mrf.mxu1  ;;  %v1959_v27 = vsel %vm1926_vm4, %v1922_v0, %v4801_v33  ;;  %v5323_v20 = vld [vmem:[#allocation22_spill] sm:$0xff] }
 0x283   : > { %v2488_v51 = vadd.f32 %v4826_v10, %v2445_v53  ;;  %v2506_v61 = vadd.f32 %v4826_v10, %v2463_v1  ;;  %v2444_v44 = vmul.f32 %v4810_v36, %v2258_v43  ;;  %v2462_v59 = vmul.f32 %v4810_v36, %v2348_v23  ;;  %3174 = vmatmul.mubr.msk.f32.gmra.mxu0 %vm2083_vm8, %v2051_v45  ;;  %v5322_v53 = vld [vmem:[#allocation10_spill] sm:$0xff] }
 0x284   : > { %3201 = vmatmul.mubr.msk.f32.gmra.mxu1 %vm2083_vm8, %v2069_v58  ;;  %v1794_v1 = vsel %vm1778_vm0, %v301_v8, %v5322_v53  ;;  %v1812_v19 = vsel %vm1778_vm0, %v319_v17, %v5323_v20  ;;  %v5324_v58 = vld [vmem:[#allocation34_spill] sm:$0xff]  ;;  %v5329_v53 = vld [vmem:[#allocation13_spill] sm:$0xff] }
 0x285   : > { %v2560_v63 = vadd.f32 %v2524_v38, %v2488_v51  ;;  %v2578_v7 = vadd.f32 %v2542_v37, %v2506_v61  ;;  %v2487_v18 = vadd.f32 %v4826_v10, %v2444_v44  ;;  %v2505_v60 = vadd.f32 %v4826_v10, %v2462_v59  ;;  %v1305_v25 = vpop.permute.xlu1 %1304  ;;  %v1269_v16 = vpop.permute.xlu0 %1268  ;;  %v5325_v43 = vld [vmem:[#allocation46_spill] sm:$0xff]  ;;  %v5327_v44 = vld [vmem:[#allocation71_spill] sm:$0xff]  ;;  %v5330_v20 = vld [vmem:[#allocation25_spill] sm:$0xff] }
 0x286   : > { %v1831_v45 = vsel %vm1815_vm1, %v1794_v1, %v5324_v58  ;;  %v1849_v33 = vsel %vm1815_vm1, %v1812_v19, %v5325_v43  ;;  %v5326_v51 = vld [vmem:[#allocation58_spill] sm:$0xff]  ;;  %v5331_v58 = vld [vmem:[#allocation37_spill] sm:$0xff] }
 0x287   : > { %2596 = vst.msk [vmem:[%s4846_s17 + $0x8] sm:$0xff] %vm1778_vm0, %v2560_v63  ;;  %2614 = vst.msk [vmem:[%s4846_s17 + $0x98] sm:$0xff] %vm1778_vm0, %v2578_v7  ;;  %v2559_v29 = vadd.f32 %v2523_v15, %v2487_v18  ;;  %v2577_v55 = vadd.f32 %v2541_v47, %v2505_v60  ;;  %v1868_v61 = vsel %vm1852_vm2, %v1831_v45, %v5326_v51  ;;  %v5328_v15 = vld [vmem:[#allocation84_spill] sm:$0xff]  ;;  %v302_v0 = vld [vmem:[%s3347_s25 + $0x80] sm:$0xff] }
 0x288   : > { %v1886_v59 = vsel %vm1852_vm2, %v1849_v33, %v5327_v44  ;;  %v1905_v47 = vsel %vm1889_vm3, %v1868_v61, %v5328_v15  ;;  %v1795_v1 = vsel %vm1778_vm0, %v302_v0, %v5329_v53  ;;  %v5332_v43 = vld [vmem:[#allocation49_spill] sm:$0xff]  ;;  %v5334_v61 = vld [vmem:[#allocation74_spill] sm:$0xff]  ;;  %v2528_v0 = vld [vmem:[%s4819_s12 + $0x28] sm:$0xff] }
 0x289   : > { %2595 = vst.msk [vmem:[%s4846_s17] sm:$0xff] %vm1778_vm0, %v2559_v29  ;;  %2613 = vst.msk [vmem:[%s4846_s17 + $0x90] sm:$0xff] %vm1778_vm0, %v2577_v55  ;;  %v1447_v26 = vpop.permute.xlu1 %1446  ;;  %v1411_v31 = vpop.permute.xlu0 %1410  ;;  %v1923_v63 = vsel %vm1889_vm3, %v1886_v59, %v4784_v5  ;;  %v1942_v29 = vsel %vm1926_vm4, %v1905_v47, %v1269_v16  ;;  %v2544_v5 = vld [vmem:[%s4819_s12 + $0xa8] sm:$0xff]  ;;  %v1832_v45 = vsel %vm1815_vm1, %v1795_v1, %v5331_v58 }
 0x28a   : > { %v1978_v4 = vsel %vm1963_vm5, %v1941_v52, %v1411_v31  ;;  %v1996_v42 = vsel %vm1963_vm5, %v1959_v27, %v1447_v26  ;;  %v1960_v60 = vsel %vm1926_vm4, %v1923_v63, %v1305_v25  ;;  %v5335_v47 = vld [vmem:[#allocation87_spill] sm:$0xff] }
 0x28d   : > { %v1449_v6 = vpop.permute.xlu1 %1448  ;;  %v1413_v41 = vpop.permute.xlu0 %1412 }
 0x291   : > { %v1591_v22 = vpop.permute.xlu1 %1590  ;;  %v1555_v12 = vpop.permute.xlu0 %1554 }
 0x292   : > { %v2015_v24 = vsel %vm2000_vm6, %v1978_v4, %v1555_v12  ;;  %v2033_v38 = vsel %vm2000_vm6, %v1996_v42, %v1591_v22  ;;  %v1997_v22 = vsel %vm1963_vm5, %v1960_v60, %v1449_v6  ;;  %v1979_v12 = vsel %vm1963_vm5, %v1942_v29, %v1413_v41  ;;  %v2543_v41 = vld [vmem:[%s4819_s12 + $0xa0] sm:$0xff]  ;;  %v5337_v29 = vld [vmem:[#allocation24_spill] sm:$0xff] }
 0x295   : > { %v1557_v50 = vpop.permute.xlu1 %1556  ;;  %v4869_v56 = vpop.permute.xlu0 %1162 }
 0x296   : > { %v2016_v13 = vsel %vm2000_vm6, %v1979_v12, %v1557_v50  ;;  %v5338_v12 = vld [vmem:[#allocation36_spill] sm:$0xff] }
 0x299   : > { %v1699_v30 = vpop.permute.xlu1 %1698  ;;  %v1593_v48 = vpop.permute.xlu0 %1592 }
 0x29a   : > { %v2052_v28 = vsel %vm2037_vm7, %v2015_v24, %v1699_v30  ;;  %v2034_v6 = vsel %vm2000_vm6, %v1997_v22, %v1593_v48 }
 0x29b   : > { %3176 = vmatprep.mubr.msk.f32.mxu0 %vm2083_vm8, %v2052_v28  ;;  %v320_v28 = vld [vmem:[%s3347_s25 + $0x110] sm:$0xff] }
 0x29c   : > { %v1813_v19 = vsel %vm1778_vm0, %v320_v28, %v5330_v20  ;;  %v2546_v28 = vld [vmem:[%s4819_s12 + $0xb8] sm:$0xff] }
 0x29d   : > { %v4896_v37 = vpop.permute.xlu1 %1164  ;;  %v1735_v3 = vpop.permute.xlu0 %1734  ;;  %v1850_v33 = vsel %vm1815_vm1, %v1813_v19, %v5332_v43 }
 0x29e   : > { %v2070_v23 = vsel %vm2037_vm7, %v2033_v38, %v1735_v3  ;;  %v303_v38 = vld [vmem:[%s3347_s25 + $0x88] sm:$0xff]  ;;  %v321_v3 = vld [vmem:[%s3347_s25 + $0x118] sm:$0xff]  ;;  %v1887_v44 = vsel %vm1852_vm2, %v1850_v33, %v5334_v61 }
 0x29f   : > { %3203 = vmatprep.mubr.msk.f32.mxu1 %vm2083_vm8, %v2070_v23  ;;  %v5333_v23 = vld [vmem:[#allocation61_spill] sm:$0xff] }
 0x2a0   : > { %v3160_v7 = vpop.f32.mrf.mxu0  ;;  %v3187_v18 = vpop.f32.mrf.mxu1  ;;  %v1869_v51 = vsel %vm1852_vm2, %v1832_v45, %v5333_v23 }
 0x2a1   : > { %v2447_v55 = vmul.f32 %v3160_v7, %v4810_v36  ;;  %v2465_v26 = vmul.f32 %v3187_v18, %v4810_v36  ;;  %v1307_v31 = vpop.permute.xlu1 %1306  ;;  %v1271_v54 = vpop.permute.xlu0 %1270  ;;  %v1906_v63 = vsel %vm1889_vm3, %v1869_v51, %v5335_v47  ;;  %v1924_v7 = vsel %vm1889_vm3, %v1887_v44, %v4869_v56  ;;  %v5336_v18 = vld [vmem:[#allocation12_spill] sm:$0xff]  ;;  %v2530_v47 = vld [vmem:[%s4819_s12 + $0x38] sm:$0xff] }
 0x2a2   : > { %v2268_v14 = vpop.f32.mrf.mxu0  ;;  %v2358_v11 = vpop.f32.mrf.mxu1  ;;  %v1796_v60 = vsel %vm1778_vm0, %v303_v38, %v5336_v18  ;;  %v1943_v22 = vsel %vm1926_vm4, %v1906_v63, %v1271_v54  ;;  %v2527_v38 = vld [vmem:[%s4819_s12 + $0x20] sm:$0xff]  ;;  %v2548_v63 = vld [vmem:[%s4819_s12 + $0xc8] sm:$0xff] }
 0x2a3   : > { %v2490_v25 = vadd.f32 %v4826_v10, %v2447_v55  ;;  %v2508_v16 = vadd.f32 %v4826_v10, %v2465_v26  ;;  %v2446_v32 = vmul.f32 %v4810_v36, %v2268_v14  ;;  %v2464_v21 = vmul.f32 %v4810_v36, %v2358_v11 }
 0x2a4   : > { %v1814_v55 = vsel %vm1778_vm0, %v321_v3, %v5337_v29  ;;  %v1961_v26 = vsel %vm1926_vm4, %v1924_v7, %v1307_v31  ;;  %v2545_v3 = vld [vmem:[%s4819_s12 + $0xb0] sm:$0xff] }
 0x2a5   : > { %v2562_v39 = vadd.f32 %v2526_v2, %v2490_v25  ;;  %v2580_v49 = vadd.f32 %v2544_v5, %v2508_v16  ;;  %v2489_v35 = vadd.f32 %v4826_v10, %v2446_v32  ;;  %v2507_v9 = vadd.f32 %v4826_v10, %v2464_v21  ;;  %v1737_v52 = vpop.permute.xlu1 %1736  ;;  %v1701_v40 = vpop.permute.xlu0 %1700  ;;  %v5339_v5 = vld [vmem:[#allocation48_spill] sm:$0xff]  ;;  %v5341_v32 = vld [vmem:[#allocation73_spill] sm:$0xff] }
 0x2a6   : > { %v2071_v57 = vsel %vm2037_vm7, %v2034_v6, %v1737_v52  ;;  %v2053_v4 = vsel %vm2037_vm7, %v2016_v13, %v1701_v40  ;;  %v1833_v2 = vsel %vm1815_vm1, %v1796_v60, %v5338_v12  ;;  %v1851_v14 = vsel %vm1815_vm1, %v1814_v55, %v5339_v5  ;;  %v5340_v25 = vld [vmem:[#allocation60_spill] sm:$0xff]  ;;  %v2547_v12 = vld [vmem:[%s4819_s12 + $0xc0] sm:$0xff] }
 0x2a7   : > { %2598 = vst.msk [vmem:[%s4846_s17 + $0x18] sm:$0xff] %vm1778_vm0, %v2562_v39  ;;  %2616 = vst.msk [vmem:[%s4846_s17 + $0xa8] sm:$0xff] %vm1778_vm0, %v2580_v49  ;;  %v2561_v50 = vadd.f32 %v2525_v34, %v2489_v35  ;;  %v2579_v46 = vadd.f32 %v2543_v41, %v2507_v9  ;;  %3177 = vmatmul.mubr.msk.f32.gmra.mxu0 %vm2083_vm8, %v2053_v4  ;;  %3204 = vmatmul.mubr.msk.f32.gmra.mxu1 %vm2083_vm8, %v2071_v57  ;;  %v5342_v34 = vld [vmem:[#allocation86_spill] sm:$0xff] }
 0x2a8   : > { %v1870_v16 = vsel %vm1852_vm2, %v1833_v2, %v5340_v25  ;;  %v1888_v21 = vsel %vm1852_vm2, %v1851_v14, %v5341_v32 }
 0x2a9   : > { %2597 = vst.msk [vmem:[%s4846_s17 + $0x10] sm:$0xff] %vm1778_vm0, %v2561_v50  ;;  %2615 = vst.msk [vmem:[%s4846_s17 + $0xa0] sm:$0xff] %vm1778_vm0, %v2579_v46  ;;  %v1309_v62 = vpop.permute.xlu1 %1308  ;;  %v1273_v24 = vpop.permute.xlu0 %1272  ;;  %v1907_v41 = vsel %vm1889_vm3, %v1870_v16, %v5342_v34  ;;  %v1925_v39 = vsel %vm1889_vm3, %v1888_v21, %v4896_v37 }
 0x2aa   : > { %v1962_v9 = vsel %vm1926_vm4, %v1925_v39, %v1309_v62  ;;  %v1944_v52 = vsel %vm1926_vm4, %v1907_v41, %v1273_v24 }
 0x2ad   : > { %v1451_v30 = vpop.permute.xlu1 %1450  ;;  %v1415_v48 = vpop.permute.xlu0 %1414 }
 0x2ae   : > { %v1998_v11 = vsel %vm1963_vm5, %v1961_v26, %v1451_v30  ;;  %v1980_v56 = vsel %vm1963_vm5, %v1943_v22, %v1415_v48  ;;  %v2529_v22 = vld [vmem:[%s4819_s12 + $0x30] sm:$0xff] }
 0x2b1   : > { %v1453_v8 = vpop.permute.xlu1 %1452  ;;  %v1417_v17 = vpop.permute.xlu0 %1416 }
 0x2b2   : > { %v1999_v40 = vsel %vm1963_vm5, %v1962_v9, %v1453_v8  ;;  %v1981_v57 = vsel %vm1963_vm5, %v1944_v52, %v1417_v17  ;;  %v2531_v9 = vld [vmem:[%s4819_s12 + $0x40] sm:$0xff]  ;;  %v2549_v52 = vld [vmem:[%s4819_s12 + $0xd0] sm:$0xff] }
 0x2b5   : > { %v1595_v27 = vpop.permute.xlu1 %1594  ;;  %v1559_v42 = vpop.permute.xlu0 %1558 }
 0x2b6   : > { %v2035_v31 = vsel %vm2000_vm6, %v1998_v11, %v1595_v27  ;;  %v2017_v54 = vsel %vm2000_vm6, %v1980_v56, %v1559_v42 }
 0x2b9   : > { %v1597_v59 = vpop.permute.xlu1 %1596  ;;  %v1561_v15 = vpop.permute.xlu0 %1560 }
 0x2ba   : > { %v2036_v50 = vsel %vm2000_vm6, %v1999_v40, %v1597_v59  ;;  %v2018_v46 = vsel %vm2000_vm6, %v1981_v57, %v1561_v15 }
 0x2bd   : > { %v1739_v13 = vpop.permute.xlu1 %1738  ;;  %v1703_v6 = vpop.permute.xlu0 %1702 }
 0x2be   : > { %v2072_v49 = vsel %vm2037_vm7, %v2035_v31, %v1739_v13  ;;  %v2054_v35 = vsel %vm2037_vm7, %v2017_v54, %v1703_v6  ;;  %v2532_v54 = vld [vmem:[%s4819_s12 + $0x48] sm:$0xff]  ;;  %v2550_v13 = vld [vmem:[%s4819_s12 + $0xd8] sm:$0xff] }
 0x2bf   : > { %3179 = vmatprep.mubr.msk.f32.mxu0 %vm2083_vm8, %v2054_v35  ;;  %3206 = vmatprep.mubr.msk.f32.mxu1 %vm2083_vm8, %v2072_v49 }
 0x2c0   : > { %v3163_v4 = vpop.f32.mrf.mxu0  ;;  %v3190_v37 = vpop.f32.mrf.mxu1 }
 0x2c1   : > { %v2449_v30 = vmul.f32 %v3163_v4, %v4810_v36  ;;  %v2467_v62 = vmul.f32 %v3190_v37, %v4810_v36  ;;  %v1741_v24 = vpop.permute.xlu1 %1740  ;;  %v1705_v48 = vpop.permute.xlu0 %1704 }
 0x2c2   : > { %v2073_v8 = vsel %vm2037_vm7, %v2036_v50, %v1741_v24  ;;  %v2055_v17 = vsel %vm2037_vm7, %v2018_v46, %v1705_v48  ;;  %v2278_v27 = vpop.f32.mrf.mxu0  ;;  %v2368_v42 = vpop.f32.mrf.mxu1 }
 0x2c3   : > { %v2492_v53 = vadd.f32 %v4826_v10, %v2449_v30  ;;  %v2510_v1 = vadd.f32 %v4826_v10, %v2467_v62  ;;  %v2448_v20 = vmul.f32 %v4810_v36, %v2278_v27  ;;  %v2466_v19 = vmul.f32 %v4810_v36, %v2368_v42  ;;  %3180 = vmatmul.mubr.msk.f32.gmra.mxu0 %vm2083_vm8, %v2055_v17 }
 0x2c4   : > { %3207 = vmatmul.mubr.msk.f32.gmra.mxu1 %vm2083_vm8, %v2073_v8 }
 0x2c5   : > { %v2564_v58 = vadd.f32 %v2528_v0, %v2492_v53  ;;  %v2582_v45 = vadd.f32 %v2546_v28, %v2510_v1  ;;  %v2491_v43 = vadd.f32 %v4826_v10, %v2448_v20  ;;  %v2509_v33 = vadd.f32 %v4826_v10, %v2466_v19  ;;  %v2534_v0 = vld [vmem:[%s4819_s12 + $0x58] sm:$0xff]  ;;  %v2552_v28 = vld [vmem:[%s4819_s12 + $0xe8] sm:$0xff]  ;;  %v2533_v20 = vld [vmem:[%s4819_s12 + $0x50] sm:$0xff] }
 0x2c6   : > { %v2551_v19 = vld [vmem:[%s4819_s12 + $0xe0] sm:$0xff] }
 0x2c7   : > { %2600 = vst.msk [vmem:[%s4846_s17 + $0x28] sm:$0xff] %vm1778_vm0, %v2564_v58  ;;  %2618 = vst.msk [vmem:[%s4846_s17 + $0xb8] sm:$0xff] %vm1778_vm0, %v2582_v45  ;;  %v2563_v23 = vadd.f32 %v2527_v38, %v2491_v43  ;;  %v2581_v51 = vadd.f32 %v2545_v3, %v2509_v33 }
 0x2c9   : > { %2599 = vst.msk [vmem:[%s4846_s17 + $0x20] sm:$0xff] %vm1778_vm0, %v2563_v23  ;;  %2617 = vst.msk [vmem:[%s4846_s17 + $0xb0] sm:$0xff] %vm1778_vm0, %v2581_v51 }
 0x2e0   : > { %v3166_v61 = vpop.f32.mrf.mxu0  ;;  %v3193_v44 = vpop.f32.mrf.mxu1 }
 0x2e1   : > { %v2451_v59 = vmul.f32 %v3166_v61, %v4810_v36  ;;  %v2469_v15 = vmul.f32 %v3193_v44, %v4810_v36  ;;  %v2536_v44 = vld [vmem:[%s4819_s12 + $0x68] sm:$0xff] }
 0x2e2   : > { %v2288_v7 = vpop.f32.mrf.mxu0  ;;  %v2378_v18 = vpop.f32.mrf.mxu1 }
 0x2e3   : > { %v2494_v60 = vadd.f32 %v4826_v10, %v2451_v59  ;;  %v2512_v29 = vadd.f32 %v4826_v10, %v2469_v15  ;;  %v2450_v55 = vmul.f32 %v4810_v36, %v2288_v7  ;;  %v2468_v26 = vmul.f32 %v4810_v36, %v2378_v18 }
 0x2e5   : > { %v2566_v2 = vadd.f32 %v2530_v47, %v2494_v60  ;;  %v2584_v5 = vadd.f32 %v2548_v63, %v2512_v29  ;;  %v2493_v14 = vadd.f32 %v4826_v10, %v2450_v55  ;;  %v2511_v11 = vadd.f32 %v4826_v10, %v2468_v26  ;;  %v2554_v63 = vld [vmem:[%s4819_s12 + $0xf8] sm:$0xff]  ;;  %v2535_v29 = vld [vmem:[%s4819_s12 + $0x60] sm:$0xff] }
 0x2e7   : > { %2602 = vst.msk [vmem:[%s4846_s17 + $0x38] sm:$0xff] %vm1778_vm0, %v2566_v2  ;;  %2620 = vst.msk [vmem:[%s4846_s17 + $0xc8] sm:$0xff] %vm1778_vm0, %v2584_v5  ;;  %v2565_v56 = vadd.f32 %v2529_v22, %v2493_v14  ;;  %v2583_v25 = vadd.f32 %v2547_v12, %v2511_v11  ;;  %v2553_v12 = vld [vmem:[%s4819_s12 + $0xf0] sm:$0xff] }
 0x2e9   : > { %2601 = vst.msk [vmem:[%s4846_s17 + $0x30] sm:$0xff] %vm1778_vm0, %v2565_v56  ;;  %2619 = vst.msk [vmem:[%s4846_s17 + $0xc0] sm:$0xff] %vm1778_vm0, %v2583_v25 }
 0x300   : > { %v3169_v16 = vpop.f32.mrf.mxu0  ;;  %v3196_v32 = vpop.f32.mrf.mxu1 }
 0x301   : > { %v2453_v21 = vmul.f32 %v3169_v16, %v4810_v36  ;;  %v2471_v31 = vmul.f32 %v3196_v32, %v4810_v36 }
 0x302   : > { %v2298_v6 = vpop.f32.mrf.mxu0  ;;  %v2388_v34 = vpop.f32.mrf.mxu1 }
 0x303   : > { %v2496_v41 = vadd.f32 %v4826_v10, %v2453_v21  ;;  %v2514_v39 = vadd.f32 %v4826_v10, %v2471_v31  ;;  %v2452_v49 = vmul.f32 %v4810_v36, %v2298_v6  ;;  %v2470_v35 = vmul.f32 %v4810_v36, %v2388_v34  ;;  %v2538_v21 = vld [vmem:[%s4819_s12 + $0x78] sm:$0xff]  ;;  %v2556_v31 = vld [vmem:[%s4819_s12 + $0x108] sm:$0xff] }
 0x305   : > { %v2568_v40 = vadd.f32 %v2532_v54, %v2496_v41  ;;  %v2586_v57 = vadd.f32 %v2550_v13, %v2514_v39  ;;  %v2495_v4 = vadd.f32 %v4826_v10, %v2452_v49  ;;  %v2513_v37 = vadd.f32 %v4826_v10, %v2470_v35  ;;  %v2537_v49 = vld [vmem:[%s4819_s12 + $0x70] sm:$0xff]  ;;  %v2555_v35 = vld [vmem:[%s4819_s12 + $0x100] sm:$0xff] }
 0x307   : > { %2604 = vst.msk [vmem:[%s4846_s17 + $0x48] sm:$0xff] %vm1778_vm0, %v2568_v40  ;;  %2622 = vst.msk [vmem:[%s4846_s17 + $0xd8] sm:$0xff] %vm1778_vm0, %v2586_v57  ;;  %v2567_v50 = vadd.f32 %v2531_v9, %v2495_v4  ;;  %v2585_v46 = vadd.f32 %v2549_v52, %v2513_v37 }
 0x309   : > { %2603 = vst.msk [vmem:[%s4846_s17 + $0x40] sm:$0xff] %vm1778_vm0, %v2567_v50  ;;  %2621 = vst.msk [vmem:[%s4846_s17 + $0xd0] sm:$0xff] %vm1778_vm0, %v2585_v46 }
 0x31f   : > { %v3172_v30 = vpop.f32.mrf.mxu0  ;;  %v3199_v62 = vpop.f32.mrf.mxu1 }
 0x320   : > { %v2455_v24 = vmul.f32 %v3172_v30, %v4810_v36  ;;  %v2473_v48 = vmul.f32 %v3199_v62, %v4810_v36  ;;  %v2540_v62 = vld [vmem:[%s4819_s12 + $0x88] sm:$0xff] }
 0x321   : > { %v2308_v8 = vpop.f32.mrf.mxu0  ;;  %v2398_v17 = vpop.f32.mrf.mxu1 }
 0x322   : > { %v2498_v27 = vadd.f32 %v4826_v10, %v2455_v24  ;;  %v2516_v42 = vadd.f32 %v4826_v10, %v2473_v48  ;;  %v2454_v53 = vmul.f32 %v4810_v36, %v2308_v8  ;;  %v2472_v1 = vmul.f32 %v4810_v36, %v2398_v17 }
 0x324   : > { %v2570_v38 = vadd.f32 %v2534_v0, %v2498_v27  ;;  %v2588_v3 = vadd.f32 %v2552_v28, %v2516_v42  ;;  %v2497_v58 = vadd.f32 %v4826_v10, %v2454_v53  ;;  %v2515_v45 = vadd.f32 %v4826_v10, %v2472_v1  ;;  %v2558_v28 = vld [vmem:[%s4819_s12 + $0x118] sm:$0xff]  ;;  %v2539_v42 = vld [vmem:[%s4819_s12 + $0x80] sm:$0xff] }
 0x326   : > { %2606 = vst.msk [vmem:[%s4846_s17 + $0x58] sm:$0xff] %vm1778_vm0, %v2570_v38  ;;  %2624 = vst.msk [vmem:[%s4846_s17 + $0xe8] sm:$0xff] %vm1778_vm0, %v2588_v3  ;;  %v2569_v43 = vadd.f32 %v2533_v20, %v2497_v58  ;;  %v2587_v33 = vadd.f32 %v2551_v19, %v2515_v45  ;;  %v2557_v19 = vld [vmem:[%s4819_s12 + $0x110] sm:$0xff] }
 0x328   : > { %2605 = vst.msk [vmem:[%s4846_s17 + $0x50] sm:$0xff] %vm1778_vm0, %v2569_v43  ;;  %2623 = vst.msk [vmem:[%s4846_s17 + $0xe0] sm:$0xff] %vm1778_vm0, %v2587_v33 }
 0x343   : > { %v3175_v23 = vpop.f32.mrf.mxu0 }
 0x344   : > { %v2457_v51 = vmul.f32 %v3175_v23, %v4810_v36  ;;  %v3202_v61 = vpop.f32.mrf.mxu1 }
 0x345   : > { %v2475_v59 = vmul.f32 %v3202_v61, %v4810_v36  ;;  %v2318_v15 = vpop.f32.mrf.mxu0 }
 0x346   : > { %v2500_v47 = vadd.f32 %v4826_v10, %v2457_v51  ;;  %v2456_v7 = vmul.f32 %v4810_v36, %v2318_v15  ;;  %v2408_v18 = vpop.f32.mrf.mxu1 }
 0x347   : > { %v2518_v60 = vadd.f32 %v4826_v10, %v2475_v59  ;;  %v2474_v55 = vmul.f32 %v4810_v36, %v2408_v18 }
 0x348   : > { %v2572_v26 = vadd.f32 %v2536_v44, %v2500_v47  ;;  %v2499_v22 = vadd.f32 %v4826_v10, %v2456_v7 }
 0x349   : > { %v2590_v2 = vadd.f32 %v2554_v63, %v2518_v60  ;;  %v2517_v5 = vadd.f32 %v4826_v10, %v2474_v55 }
 0x34a   : > { %2608 = vst.msk [vmem:[%s4846_s17 + $0x68] sm:$0xff] %vm1778_vm0, %v2572_v26  ;;  %v2571_v14 = vadd.f32 %v2535_v29, %v2499_v22 }
 0x34b   : > { %2626 = vst.msk [vmem:[%s4846_s17 + $0xf8] sm:$0xff] %vm1778_vm0, %v2590_v2  ;;  %v2589_v11 = vadd.f32 %v2553_v12, %v2517_v5 }
 0x34c   : > { %2607 = vst.msk [vmem:[%s4846_s17 + $0x60] sm:$0xff] %vm1778_vm0, %v2571_v14 }
 0x34d   : > { %2625 = vst.msk [vmem:[%s4846_s17 + $0xf0] sm:$0xff] %vm1778_vm0, %v2589_v11 }
 0x367   : > { %v3178_v56 = vpop.f32.mrf.mxu0  ;;  %v3205_v25 = vpop.f32.mrf.mxu1 }
 0x368   : > { %v2459_v16 = vmul.f32 %v3178_v56, %v4810_v36  ;;  %v2477_v32 = vmul.f32 %v3205_v25, %v4810_v36 }
 0x369   : > { %v2328_v54 = vpop.f32.mrf.mxu0  ;;  %v2418_v13 = vpop.f32.mrf.mxu1 }
 0x36a   : > { %v2502_v6 = vadd.f32 %v4826_v10, %v2459_v16  ;;  %v2520_v34 = vadd.f32 %v4826_v10, %v2477_v32  ;;  %v2458_v41 = vmul.f32 %v4810_v36, %v2328_v54  ;;  %v2476_v39 = vmul.f32 %v4810_v36, %v2418_v13 }
 0x36c   : > { %v2574_v9 = vadd.f32 %v2538_v21, %v2502_v6  ;;  %v2592_v52 = vadd.f32 %v2556_v31, %v2520_v34  ;;  %v2501_v40 = vadd.f32 %v4826_v10, %v2458_v41  ;;  %v2519_v57 = vadd.f32 %v4826_v10, %v2476_v39 }
 0x36e   : > { %2610 = vst.msk [vmem:[%s4846_s17 + $0x78] sm:$0xff] %vm1778_vm0, %v2574_v9  ;;  %2628 = vst.msk [vmem:[%s4846_s17 + $0x108] sm:$0xff] %vm1778_vm0, %v2592_v52  ;;  %v2573_v4 = vadd.f32 %v2537_v49, %v2501_v40  ;;  %v2591_v37 = vadd.f32 %v2555_v35, %v2519_v57 }
 0x370   : > { %2609 = vst.msk [vmem:[%s4846_s17 + $0x70] sm:$0xff] %vm1778_vm0, %v2573_v4  ;;  %2627 = vst.msk [vmem:[%s4846_s17 + $0x100] sm:$0xff] %vm1778_vm0, %v2591_v37 }
 0x383   : > { %v3181_v50 = vpop.f32.mrf.mxu0 }
 0x384   : > { %v2461_v46 = vmul.f32 %v3181_v50, %v4810_v36  ;;  %v3208_v30 = vpop.f32.mrf.mxu1 }
 0x385   : > { %v2479_v24 = vmul.f32 %v3208_v30, %v4810_v36  ;;  %v2338_v48 = vpop.f32.mrf.mxu0 }
 0x386   : > { %v2504_v0 = vadd.f32 %v4826_v10, %v2461_v46  ;;  %v2460_v8 = vmul.f32 %v4810_v36, %v2338_v48  ;;  %v2428_v17 = vpop.f32.mrf.mxu1 }
 0x387   : > { %v2522_v27 = vadd.f32 %v4826_v10, %v2479_v24  ;;  %v2478_v53 = vmul.f32 %v4810_v36, %v2428_v17 }
 0x388   : > { %v2576_v1 = vadd.f32 %v2540_v62, %v2504_v0  ;;  %v2503_v20 = vadd.f32 %v4826_v10, %v2460_v8 }
 0x389   : > { %v2594_v38 = vadd.f32 %v2558_v28, %v2522_v27  ;;  %v2521_v3 = vadd.f32 %v4826_v10, %v2478_v53 }
 0x38a   : > { %2612 = vst.msk [vmem:[%s4846_s17 + $0x88] sm:$0xff] %vm1778_vm0, %v2576_v1  ;;  %v2575_v58 = vadd.f32 %v2539_v42, %v2503_v20 }
 0x38b   : > { %2630 = vst.msk [vmem:[%s4846_s17 + $0x118] sm:$0xff] %vm1778_vm0, %v2594_v38  ;;  %v2593_v45 = vadd.f32 %v2557_v19, %v2521_v3 }
 0x38c   : > { %2611 = vst.msk [vmem:[%s4846_s17 + $0x80] sm:$0xff] %vm1778_vm0, %v2575_v58 }
 0x38d   : > { %2629 = vst.msk [vmem:[%s4846_s17 + $0x110] sm:$0xff] %vm1778_vm0, %v2593_v45 }
 0x38e PF: > { %s15_s20 = sadd.s32 1, %s3283_s20   ;;  %s5343_s18 = smov %s3279_s19 }
 0x38f   : > { %p12_p5 = scmp.ge.s32.totalorder %s15_s20, 4   ;;  %s5344_s19 = smov %s5346_s21 }
 0x391   :  { %14 = sbr.rel (!%p12_p5) target bundleno = 2 (0x2), region = 82 }

// kernel: resunet_encoder.14
= control target key start
LH: loop header
LB: loop body
LE: loop exit
PB: predicated region body
PF: predicated region fallthrough
CT: control target
= control target key end

     0   :  { %s971_s15 = smov 0   ;;  %s973_s16 = smov 0   ;;  %s1208_s0 = inlined_call_operand.vmem [shape: f32[2,88,32], index: 0, kind: input, shape index: {}]   ;;  %s1209_s1 = inlined_call_operand.vmem [shape: f32[128,16], index: 1, kind: input, shape index: {}]   ;;  %s1210_s2 = inlined_call_operand.vmem [shape: f32[1,16], index: 2, kind: input, shape index: {}]   ;;  %s1211_s3 = inlined_call_operand.vmem [shape: f32[1,16], index: 3, kind: input, shape index: {}]   ;;  %s1212_s4 = inlined_call_operand.vmem [shape: f32[2,72,16], index: 4, kind: output, shape index: {}]  }
   0x1   :  { %s975_s17 = smov 0  }
   0x2 LB: > { %s26_s18 = sadd.s32 1, %s935_s16  ;;  %p676_p0 = scmp.ge.s32.totalorder %s939_s17, 1  ;;  %s939_s17 = sphi %s975_s17, %s14_s17   ;;  %s935_s16 = sphi %s973_s16, %s1214_s16   ;;  %s931_s15 = sphi %s971_s15, %s1213_s15  }
   0x3   : > { %p28_p1 = scmp.ge.s32.totalorder %s26_s18, 2  ;;  %p176_p2 = scmp.lt.s32.totalorder %s939_s17, 3 }
   0x5   : > { %s1216_s18 = smov (%p28_p1, %s26_s18), 0  ;;  %p177_p3 = pnand %p676_p0, %p176_p2 }
   0x6   : > { %p206_p4 = scmp.lt.s32.totalorder (!%p177_p3), %s931_s15, 1  ;;  %s942_s9 = smov (!%p177_p3), 32  }
   0x7   : > { %180 = sbr.rel (%p177_p3) target bundleno = 368 (0x170), region = 36  ;;  %s943_s10 = smov (!%p177_p3), 96  }
   0x8   : > { %s944_s19 = smov (!%p177_p3), 64  }
   0xc   : > { %v418_v0 = vld [vmem:[%s1209_s1 + $0x78] sm:$0xff]  ;;  %v941_v1 = vmov 0.0   ;;  %v417_v2 = vld [vmem:[%s1209_s1 + $0x70] sm:$0xff]  ;;  %s1218_s15 = smov (!%p206_p4, %s931_s15), 1  ;;  %v416_v3 = vld [vmem:[%s1209_s1 + $0x68] sm:$0xff]  ;;  %vm945_vm0 = vmmov 0  }
   0xd   : > { %735 = vmatprep.subr.mxu0 %v941_v1  ;;  %794 = vmatprep.subr.mxu1 %v941_v1  ;;  %s826_s25 = smul.u32 88, %s1218_s15  ;;  %v415_v4 = vld [vmem:[%s1209_s1 + $0x60] sm:$0xff]  ;;  %v414_v5 = vld [vmem:[%s1209_s1 + $0x58] sm:$0xff]  ;;  %v413_v14 = vld [vmem:[%s1209_s1 + $0x50] sm:$0xff]  ;;  %vm373_vm1 = vcmask 261120   ;;  %vm383_vm2 = vcmask 523264  }
   0xe   : > { %736 = vmatpush3.msra.mxu0 %v418_v0  ;;  %810 = vmatpush3.msra.mxu1 %v418_v0  ;;  %v412_v19 = vld [vmem:[%s1209_s1 + $0x48] sm:$0xff]  ;;  %v411_v22 = vld [vmem:[%s1209_s1 + $0x40] sm:$0xff]  ;;  %v410_v27 = vld [vmem:[%s1209_s1 + $0x38] sm:$0xff]  ;;  %vm393_vm3 = vcmask 785408   ;;  %vm570_vm4 = vcmask 130048  }
   0xf   : > { %737 = vmatprep.subr.mxu0 %v941_v1  ;;  %795 = vmatprep.subr.mxu1 %v941_v1  ;;  %s1013_s30 = scalar_lea.vmem %s1208_s0, %s826_s25  ;;  %v409_v28 = vld [vmem:[%s1209_s1 + $0x30] sm:$0xff]  ;;  %v408_v32 = vld [vmem:[%s1209_s1 + $0x28] sm:$0xff]  ;;  %v407_v35 = vld [vmem:[%s1209_s1 + $0x20] sm:$0xff] }
  0x10   : > { %738 = vmatpush3.msra.mxu0 %v417_v2  ;;  %811 = vmatpush3.msra.mxu1 %v417_v2  ;;  %v679_v6 = vld [vmem:[%s1013_s30 + $0x1] sm:$0xff]  ;;  %v680_v7 = vld [vmem:[%s1013_s30 + $0x9] sm:$0xff]  ;;  %v698_v10 = vld [vmem:[%s1013_s30 + $0x12] sm:$0xff] }
  0x11   : > { %739 = vmatprep.subr.mxu0 %v941_v1  ;;  %796 = vmatprep.subr.mxu1 %v941_v1  ;;  %v697_v8 = vld [vmem:[%s1013_s30 + $0xa] sm:$0xff]  ;;  %v857_v9 = vpack.i.bf16 %v680_v7, %v679_v6  ;;  %v690_v17 = vld [vmem:[%s1013_s30 + $0x19] sm:$0xff]  ;;  %v691_v25 = vld [vmem:[%s1013_s30 + $0x21] sm:$0xff] }
  0x12   : > { %740 = vmatpush3.msra.mxu0 %v416_v3  ;;  %812 = vmatpush3.msra.mxu1 %v416_v3  ;;  %v689_v11 = vld [vmem:[%s1013_s30 + $0x11] sm:$0xff]  ;;  %v1026_v12 = vld [vmem:[%s1013_s30 + $0x29] sm:$0xff]  ;;  %v867_v13 = vpack.i.bf16 %v698_v10, %v697_v8  ;;  %v699_v20 = vld [vmem:[%s1013_s30 + $0x1a] sm:$0xff] }
  0x13   : > { %741 = vmatprep.subr.mxu0 %v941_v1  ;;  %797 = vmatprep.subr.mxu1 %v941_v1  ;;  %v862_v15 = vpack.i.bf16 %v689_v11, %v680_v7  ;;  %v872_v16 = vpack.i.bf16 %v689_v11, %v1026_v12  ;;  %v693_v18 = vld [vmem:[%s1013_s30 + $0x31] sm:$0xff]  ;;  %v694_v26 = vld [vmem:[%s1013_s30 + $0x39] sm:$0xff]  ;;  %v700_v30 = vld [vmem:[%s1013_s30 + $0x22] sm:$0xff] }
  0x14   : > { %742 = vmatpush3.msra.mxu0 %v415_v4  ;;  %813 = vmatpush3.msra.mxu1 %v415_v4  ;;  %v702_v21 = vld [vmem:[%s1013_s30 + $0x32] sm:$0xff]  ;;  %v877_v23 = vpack.i.bf16 %v690_v17, %v693_v18  ;;  %v892_v29 = vpack.i.bf16 %v691_v25, %v694_v26  ;;  %v703_v31 = vld [vmem:[%s1013_s30 + $0x3a] sm:$0xff]  ;;  %v704_v38 = vld [vmem:[%s1013_s30 + $0x42] sm:$0xff] }
  0x15   : > { %743 = vmatprep.subr.mxu0 %v941_v1  ;;  %798 = vmatprep.subr.mxu1 %v941_v1  ;;  %v882_v24 = vpack.i.bf16 %v699_v20, %v702_v21  ;;  %v897_v33 = vpack.i.bf16 %v700_v30, %v703_v31  ;;  %v695_v34 = vld [vmem:[%s1013_s30 + $0x41] sm:$0xff]  ;;  %v406_v37 = vld [vmem:[%s1209_s1 + $0x18] sm:$0xff]  ;;  %v405_v39 = vld [vmem:[%s1209_s1 + $0x10] sm:$0xff] }
  0x16   : > { %858 = vrot.lane.b32.xlu0 %v857_v9, %s942_s9  ;;  %744 = vmatpush3.msra.mxu0 %v414_v5  ;;  %v907_v36 = vpack.i.bf16 %v1026_v12, %v695_v34  ;;  %v701_v40 = vld [vmem:[%s1013_s30 + $0x2a] sm:$0xff]  ;;  %v403_v45 = vld [vmem:[%s1209_s1] sm:$0xff]  ;;  %v226_v17 = vld [vmem:[%s1013_s30 + $0x18] sm:$0xff] }
  0x17   : > { %868 = vrot.lane.b32.xlu1 %v867_v13, %s943_s10  ;;  %745 = vmatprep.subr.mxu0 %v941_v1  ;;  %v705_v41 = vld [vmem:[%s1013_s30 + $0x4a] sm:$0xff]  ;;  %v223_v49 = vld [vmem:[%s1013_s30] sm:$0xff]  ;;  %v230_v31 = vld [vmem:[%s1013_s30 + $0x38] sm:$0xff] }
  0x18   : > { %746 = vmatpush3.msra.mxu0 %v413_v14  ;;  %814 = vmatpush3.msra.mxu1 %v414_v5  ;;  %v696_v42 = vld [vmem:[%s1013_s30 + $0x49] sm:$0xff]  ;;  %v912_v44 = vpack.i.bf16 %v705_v41, %v701_v40 }
  0x19   : > { %747 = vmatprep.subr.mxu0 %v941_v1  ;;  %799 = vmatprep.subr.mxu1 %v941_v1  ;;  %v404_v43 = vld [vmem:[%s1209_s1 + $0x8] sm:$0xff]  ;;  %v225_v62 = vld [vmem:[%s1013_s30 + $0x10] sm:$0xff] }
  0x1a   : > { %863 = vrot.lane.b32.xlu0 %v862_v15, %s944_s19  ;;  %748 = vmatpush3.msra.mxu0 %v412_v19  ;;  %v224_v56 = vld [vmem:[%s1013_s30 + $0x8] sm:$0xff] }
  0x1b   : > { %873 = vrot.lane.b32.xlu1 %v872_v16, %s942_s9  ;;  %749 = vmatprep.subr.mxu0 %v941_v1  ;;  %v228_v57 = vld [vmem:[%s1013_s30 + $0x28] sm:$0xff]  ;;  %v229_v16 = vld [vmem:[%s1013_s30 + $0x30] sm:$0xff] }
  0x1c   : > { %815 = vmatpush3.msra.mxu1 %v413_v14  ;;  %750 = vmatpush3.msra.mxu0 %v411_v22 }
  0x1d   : > { %800 = vmatprep.subr.mxu1 %v941_v1  ;;  %751 = vmatprep.subr.mxu0 %v941_v1 }
  0x1e   : > { %878 = vrot.lane.b32.xlu0 %v877_v23, %s944_s19  ;;  %816 = vmatpush3.msra.mxu1 %v412_v19 }
  0x1f   : > { %883 = vrot.lane.b32.xlu1 %v882_v24, %s943_s10  ;;  %752 = vmatpush3.msra.mxu0 %v410_v27 }
  0x20   : > { %801 = vmatprep.subr.mxu1 %v941_v1  ;;  %753 = vmatprep.subr.mxu0 %v941_v1 }
  0x21   : > { %817 = vmatpush3.msra.mxu1 %v411_v22  ;;  %754 = vmatpush3.msra.mxu0 %v409_v28 }
  0x22   : > { %888 = vrot.lane.b32.xlu0 %v877_v23, %s942_s9  ;;  %802 = vmatprep.subr.mxu1 %v941_v1 }
  0x23   : > { %893 = vrot.lane.b32.xlu1 %v892_v29, %s944_s19  ;;  %755 = vmatprep.subr.mxu0 %v941_v1 }
  0x24   : > { %818 = vmatpush3.msra.mxu1 %v410_v27  ;;  %756 = vmatpush3.msra.mxu0 %v408_v32 }
  0x25   : > { %803 = vmatprep.subr.mxu1 %v941_v1  ;;  %757 = vmatprep.subr.mxu0 %v941_v1 }
  0x26   : > { %898 = vrot.lane.b32.xlu0 %v897_v33, %s943_s10  ;;  %819 = vmatpush3.msra.mxu1 %v409_v28 }
  0x27   : > { %903 = vrot.lane.b32.xlu1 %v892_v29, %s942_s9  ;;  %758 = vmatpush3.msra.mxu0 %v407_v35 }
  0x28   : > { %804 = vmatprep.subr.mxu1 %v941_v1  ;;  %759 = vmatprep.subr.mxu0 %v941_v1 }
  0x29   : > { %820 = vmatpush3.msra.mxu1 %v408_v32  ;;  %760 = vmatpush3.msra.mxu0 %v406_v37 }
  0x2a   : > { %908 = vrot.lane.b32.xlu0 %v907_v36, %s944_s19  ;;  %805 = vmatprep.subr.mxu1 %v941_v1 }
  0x2b   : > { %360 = vrot.lane.b32.xlu1 %v704_v38, %s943_s10  ;;  %761 = vmatprep.subr.mxu0 %v941_v1 }
  0x2c   : > { %821 = vmatpush3.msra.mxu1 %v407_v35  ;;  %762 = vmatpush3.msra.mxu0 %v405_v39 }
  0x2d   : > { %806 = vmatprep.subr.mxu1 %v941_v1  ;;  %763 = vmatprep.subr.mxu0 %v941_v1 }
  0x2e   : > { %290 = vrot.lane.b32.xlu0 %v695_v34, %s942_s9  ;;  %822 = vmatpush3.msra.mxu1 %v406_v37 }
  0x2f   : > { %326 = vrot.lane.b32.xlu1 %v696_v42, %s944_s19  ;;  %764 = vmatpush3.msra.mxu0 %v404_v43 }
  0x30   : > { %807 = vmatprep.subr.mxu1 %v941_v1  ;;  %765 = vmatprep.subr.mxu0 %v941_v1 }
  0x31   : > { %823 = vmatpush3.msra.mxu1 %v405_v39  ;;  %766 = vmatpush3.msra.mxu0 %v403_v45 }
  0x32   : > { %913 = vrot.lane.b32.xlu0 %v912_v44, %s943_s10  ;;  %767 = vmatprep.mubr.msk.f32.mxu0 %vm945_vm0, %v941_v1  ;;  %v231_v44 = vld [vmem:[%s1013_s30 + $0x40] sm:$0xff]  ;;  %s827_s10 = smul.u32 72, %s1218_s15 }
  0x33   : > { %808 = vmatprep.subr.mxu1 %v941_v1  ;;  %782 = vmatprep.mubr.msk.f32.mxu1 %vm945_vm0, %v941_v1 }
  0x34   : > { %824 = vmatpush3.msra.mxu1 %v404_v43  ;;  %s1179_s21 = scalar_lea.vmem %s1212_s4, %s827_s10 }
  0x35   : > { %809 = vmatprep.subr.mxu1 %v941_v1 }
  0x36   : > { %825 = vmatpush3.msra.mxu1 %v403_v45 }
  0x88   : > { %v859_v46 = vpop.permute.xlu0 %858 }
  0x89   : > { %v869_v47 = vpop.permute.xlu1 %868  ;;  %v860_v48 = vunpack.i.l.bf16 %v859_v46  ;;  %v861_v50 = vunpack.i.h.bf16 %v859_v46  ;;  %v227_v46 = vld [vmem:[%s1013_s30 + $0x20] sm:$0xff] }
  0x8a   : > { %v870_v51 = vunpack.i.l.bf16 %v869_v47  ;;  %v871_v63 = vunpack.i.h.bf16 %v869_v47 }
  0x8b   : > { %v374_v60 = vsel %vm373_vm1, %v223_v49, %v860_v48  ;;  %v375_v3 = vsel %vm373_vm1, %v224_v56, %v861_v50 }
  0x8c   : > { %v864_v52 = vpop.permute.xlu0 %863 }
  0x8d   : > { %v866_v53 = vunpack.i.h.bf16 %v864_v52  ;;  %v865_v54 = vunpack.i.l.bf16 %v864_v52  ;;  %v874_v55 = vpop.permute.xlu1 %873 }
  0x8e   : > { %v876_v58 = vunpack.i.h.bf16 %v874_v55  ;;  %v875_v59 = vunpack.i.l.bf16 %v874_v55 }
  0x8f   : > { %v384_v61 = vsel %vm383_vm2, %v374_v60, %v865_v54  ;;  %v385_v8 = vsel %vm383_vm2, %v375_v3, %v866_v53 }
  0x90   : > { %v879_v0 = vpop.permute.xlu0 %878  ;;  %v394_v2 = vsel %vm393_vm3, %v384_v61, %v870_v51  ;;  %v379_v4 = vsel %vm373_vm1, %v228_v57, %v875_v59  ;;  %v376_v10 = vsel %vm373_vm1, %v225_v62, %v876_v58  ;;  %v395_v14 = vsel %vm393_vm3, %v385_v8, %v871_v63  ;;  %v707_v59 = vld [vmem:[%s1211_s3] ss:$0 sm:$0xff] }
  0x91   : > { %v881_v5 = vunpack.i.h.bf16 %v879_v0  ;;  %v880_v6 = vunpack.i.l.bf16 %v879_v0  ;;  %v884_v7 = vpop.permute.xlu1 %883  ;;  %768 = vmatmul.mubr.f32.vlgmr.msra.gmra.mxu0 %v394_v2 }
  0x92   : > { %v885_v9 = vunpack.i.l.bf16 %v884_v7  ;;  %770 = vmatprep.mubr.msk.f32.mxu0 %vm945_vm0, %v941_v1  ;;  %v886_v12 = vunpack.i.h.bf16 %v884_v7 }
  0x93   : > { %v389_v11 = vsel %vm383_vm2, %v379_v4, %v880_v6  ;;  %v386_v21 = vsel %vm383_vm2, %v376_v10, %v881_v5 }
  0x94   : > { %v889_v13 = vpop.permute.xlu0 %888  ;;  %v399_v15 = vsel %vm393_vm3, %v389_v11, %v885_v9  ;;  %v396_v27 = vsel %vm393_vm3, %v386_v21, %v886_v12 }
  0x95   : > { %v891_v18 = vunpack.i.h.bf16 %v889_v13  ;;  %v890_v19 = vunpack.i.l.bf16 %v889_v13  ;;  %v894_v20 = vpop.permute.xlu1 %893  ;;  %771 = vmatmul.mubr.f32.gmra.mxu0 %v395_v14  ;;  %783 = vmatmul.mubr.f32.vlgmr.msra.gmra.mxu1 %v399_v15 }
  0x96   : > { %v896_v22 = vunpack.i.h.bf16 %v894_v20  ;;  %v895_v23 = vunpack.i.l.bf16 %v894_v20  ;;  %773 = vmatprep.mubr.msk.f32.mxu0 %vm945_vm0, %v941_v1  ;;  %785 = vmatprep.mubr.msk.f32.mxu1 %vm945_vm0, %v941_v1 }
  0x97   : > { %v380_v24 = vsel %vm373_vm1, %v229_v16, %v890_v19  ;;  %v377_v25 = vsel %vm373_vm1, %v226_v17, %v891_v18 }
  0x98   : > { %v899_v26 = vpop.permute.xlu0 %898  ;;  %v390_v33 = vsel %vm383_vm2, %v380_v24, %v895_v23  ;;  %v387_v34 = vsel %vm383_vm2, %v377_v25, %v896_v22 }
  0x99   : > { %v901_v28 = vunpack.i.h.bf16 %v899_v26  ;;  %v900_v29 = vunpack.i.l.bf16 %v899_v26  ;;  %v904_v30 = vpop.permute.xlu1 %903  ;;  %774 = vmatmul.mubr.f32.gmra.mxu0 %v396_v27 }
  0x9a   : > { %v905_v32 = vunpack.i.l.bf16 %v904_v30  ;;  %776 = vmatprep.mubr.msk.f32.mxu0 %vm945_vm0, %v941_v1  ;;  %v906_v41 = vunpack.i.h.bf16 %v904_v30 }
  0x9b   : > { %v400_v35 = vsel %vm393_vm3, %v390_v33, %v900_v29  ;;  %v397_v36 = vsel %vm393_vm3, %v387_v34, %v901_v28 }
  0x9c   : > { %v909_v37 = vpop.permute.xlu0 %908  ;;  %786 = vmatmul.mubr.f32.gmra.mxu1 %v400_v35  ;;  %v381_v38 = vsel %vm373_vm1, %v230_v31, %v905_v32  ;;  %v378_v50 = vsel %vm373_vm1, %v227_v46, %v906_v41 }
  0x9d   : > { %v910_v39 = vunpack.i.l.bf16 %v909_v37  ;;  %v361_v40 = vpop.permute.xlu1 %360  ;;  %777 = vmatmul.mubr.f32.gmra.mxu0 %v397_v36  ;;  %788 = vmatprep.mubr.msk.f32.mxu1 %vm945_vm0, %v941_v1  ;;  %v911_v47 = vunpack.i.h.bf16 %v909_v37 }
  0x9e   : > { %779 = vmatprep.mubr.msk.f32.mxu0 %vm945_vm0, %v941_v1 }
  0x9f   : > { %v391_v42 = vsel %vm383_vm2, %v381_v38, %v910_v39  ;;  %v388_v55 = vsel %vm383_vm2, %v378_v50, %v911_v47 }
  0xa0   : > { %v291_v43 = vpop.permute.xlu0 %290  ;;  %v401_v45 = vsel %vm393_vm3, %v391_v42, %v361_v40 }
  0xa1   : > { %789 = vmatmul.mubr.f32.gmra.mxu1 %v401_v45  ;;  %v382_v48 = vsel %vm373_vm1, %v231_v44, %v291_v43  ;;  %v327_v49 = vpop.permute.xlu1 %326 }
  0xa2   : > { %791 = vmatprep.mubr.msk.f32.mxu1 %vm945_vm0, %v941_v1  ;;  %v392_v54 = vsel %vm383_vm2, %v382_v48, %v327_v49  ;;  %v706_v1 = vld [vmem:[%s1210_s2] ss:$0 sm:$0xff] }
  0xa4   : > { %v914_v51 = vpop.permute.xlu0 %913 }
  0xa5   : > { %v916_v52 = vunpack.i.h.bf16 %v914_v51  ;;  %v915_v53 = vunpack.i.l.bf16 %v914_v51 }
  0xa7   : > { %v398_v56 = vsel %vm393_vm3, %v388_v55, %v915_v53  ;;  %v402_v57 = vsel %vm393_vm3, %v392_v54, %v916_v52 }
  0xa8   : > { %780 = vmatmul.mubr.f32.gmra.mxu0 %v398_v56  ;;  %792 = vmatmul.mubr.f32.gmra.mxu1 %v402_v57 }
 0x151   : > { %v485_v58 = vpop.f32.mrf.mxu0 }
 0x152   : > { %v536_v60 = vmul.f32 %v706_v1, %v485_v58 }
 0x153   : > { %v769_v61 = vpop.f32.mrf.mxu0 }
 0x154   : > { %v552_v62 = vadd.f32 %v707_v59, %v536_v60 }
 0x155   : > { %v490_v63 = vpop.f32.mrf.mxu0  ;;  %v510_v0 = vpop.f32.mrf.mxu1 }
 0x156   : > { %v561_v2 = vmax.f32 %v552_v62, 0.0  ;;  %v537_v3 = vmul.f32 %v706_v1, %v490_v63  ;;  %v541_v4 = vmul.f32 %v706_v1, %v510_v0 }
 0x157   : > { %v772_v5 = vpop.f32.mrf.mxu0  ;;  %v784_v6 = vpop.f32.mrf.mxu1 }
 0x158   : > { %571 = vst.msk [vmem:[%s1179_s21] sm:$0xff] %vm570_vm4, %v561_v2  ;;  %v553_v7 = vadd.f32 %v707_v59, %v537_v3  ;;  %v557_v8 = vadd.f32 %v707_v59, %v541_v4 }
 0x159   : > { %v495_v9 = vpop.f32.mrf.mxu0 }
 0x15a   : > { %v562_v10 = vmax.f32 %v553_v7, 0.0  ;;  %v566_v11 = vmax.f32 %v557_v8, 0.0  ;;  %v538_v12 = vmul.f32 %v706_v1, %v495_v9 }
 0x15b   : > { %v775_v13 = vpop.f32.mrf.mxu0 }
 0x15c   : > { %572 = vst.msk [vmem:[%s1179_s21 + $0x8] sm:$0xff] %vm570_vm4, %v562_v10  ;;  %576 = vst.msk [vmem:[%s1179_s21 + $0x28] sm:$0xff] %vm570_vm4, %v566_v11  ;;  %v554_v14 = vadd.f32 %v707_v59, %v538_v12  ;;  %v515_v15 = vpop.f32.mrf.mxu1 }
 0x15d   : > { %v542_v16 = vmul.f32 %v706_v1, %v515_v15  ;;  %v500_v17 = vpop.f32.mrf.mxu0 }
 0x15e   : > { %v563_v18 = vmax.f32 %v554_v14, 0.0  ;;  %v539_v19 = vmul.f32 %v706_v1, %v500_v17  ;;  %v787_v20 = vpop.f32.mrf.mxu1 }
 0x15f   : > { %v558_v21 = vadd.f32 %v707_v59, %v542_v16  ;;  %v778_v22 = vpop.f32.mrf.mxu0 }
 0x160   : > { %573 = vst.msk [vmem:[%s1179_s21 + $0x10] sm:$0xff] %vm570_vm4, %v563_v18  ;;  %v555_v23 = vadd.f32 %v707_v59, %v539_v19 }
 0x161   : > { %v567_v24 = vmax.f32 %v558_v21, 0.0  ;;  %v520_v25 = vpop.f32.mrf.mxu1 }
 0x162   : > { %v564_v26 = vmax.f32 %v555_v23, 0.0  ;;  %v543_v27 = vmul.f32 %v706_v1, %v520_v25 }
 0x163   : > { %577 = vst.msk [vmem:[%s1179_s21 + $0x30] sm:$0xff] %vm570_vm4, %v567_v24  ;;  %v790_v28 = vpop.f32.mrf.mxu1 }
 0x164   : > { %574 = vst.msk [vmem:[%s1179_s21 + $0x18] sm:$0xff] %vm570_vm4, %v564_v26  ;;  %v559_v29 = vadd.f32 %v707_v59, %v543_v27 }
 0x166   : > { %v568_v30 = vmax.f32 %v559_v29, 0.0 }
 0x168   : > { %578 = vst.msk [vmem:[%s1179_s21 + $0x38] sm:$0xff] %vm570_vm4, %v568_v30  ;;  %v505_v31 = vpop.f32.mrf.mxu0  ;;  %v525_v32 = vpop.f32.mrf.mxu1 }
 0x169   : > { %v540_v33 = vmul.f32 %v706_v1, %v505_v31  ;;  %v544_v34 = vmul.f32 %v706_v1, %v525_v32 }
 0x16a   : > { %v781_v35 = vpop.f32.mrf.mxu0  ;;  %v793_v36 = vpop.f32.mrf.mxu1 }
 0x16b   : > { %v556_v37 = vadd.f32 %v707_v59, %v540_v33  ;;  %v560_v38 = vadd.f32 %v707_v59, %v544_v34 }
 0x16d   : > { %v565_v39 = vmax.f32 %v556_v37, 0.0  ;;  %v569_v40 = vmax.f32 %v560_v38, 0.0 }
 0x16f   : > { %575 = vst.msk [vmem:[%s1179_s21 + $0x20] sm:$0xff] %vm570_vm4, %v565_v39  ;;  %579 = vst.msk [vmem:[%s1179_s21 + $0x40] sm:$0xff] %vm570_vm4, %v569_v40 }
 0x170 PF: > { %s14_s17 = sadd.s32 1, %s939_s17   ;;  %s1213_s15 = smov %s935_s16 }
 0x171   : > { %p11_p5 = scmp.ge.s32.totalorder %s14_s17, 4   ;;  %s1214_s16 = smov %s1216_s18 }
 0x173   :  { %13 = sbr.rel (!%p11_p5) target bundleno = 2 (0x2), region = 70 }

// kernel: tile.33
= control target key start
LH: loop header
LB: loop body
LE: loop exit
PB: predicated region body
PF: predicated region fallthrough
CT: control target
= control target key end

     0   :  { %s22_s0 = inlined_call_operand.vmem [shape: f32[16], index: 0, kind: input, shape index: {}]   ;;  %s23_s1 = inlined_call_operand.vmem [shape: f32[8,16], index: 1, kind: output, shape index: {}]  }
   0x1   :  { %v4_v0 = vld [vmem:[%s22_s0] ss:$0 sm:$0xff] }
   0x2   :  { %5 = vst [vmem:[%s23_s1] sm:$0xff] %v4_v0 }

// kernel: tile.34
= control target key start
LH: loop header
LB: loop body
LE: loop exit
PB: predicated region body
PF: predicated region fallthrough
CT: control target
= control target key end

     0   :  { %s69_s10 = smov 112   ;;  %s70_s11 = smov 80   ;;  %vm3_vm0 = vcmask 130048   ;;  %vm9_vm1 = vcmask 1048448   ;;  %vm15_vm2 = vcmask 917248   ;;  %vm21_vm3 = vcmask 786048   ;;  %s113_s0 = inlined_call_operand.vmem [shape: f32[8,16], index: 0, kind: input, shape index: {}]   ;;  %s114_s1 = inlined_call_operand.vmem [shape: f32[1,128], index: 1, kind: output, shape index: {}]  }
   0x1   :  { %v55_v0 = vld [vmem:[%s113_s0 + $0x7] sm:$0x1]   ;;  %v57_v1 = vld [vmem:[%s113_s0 + $0x5] sm:$0x1]   ;;  %v56_v2 = vld [vmem:[%s113_s0 + $0x6] sm:$0x1]  }
   0x2   :  { %7 = vrot.lane.b32.xlu0 %v55_v0, %s69_s10  ;;  %19 = vrot.lane.b32.xlu1 %v57_v1, %s70_s11  ;;  %v58_v3 = vld [vmem:[%s113_s0 + $0x4] sm:$0x1]   ;;  %v2_v4 = vld [vmem:[%s113_s0] sm:$0x1]   ;;  %s71_s18 = smov 96   ;;  %s72_s19 = smov 64  }
   0x3   :  { %4 = vst.msk [vmem:[#allocation0] sm:$0x1] %vm3_vm0, %v2_v4   ;;  %v59_v5 = vld [vmem:[%s113_s0 + $0x3] sm:$0x1]   ;;  %v60_v6 = vld [vmem:[%s113_s0 + $0x2] sm:$0x1]  }
   0x4   :  { %s73_s24 = smov 48   ;;  %s74_s25 = smov 32   ;;  %v61_v7 = vld [vmem:[%s113_s0 + $0x1] sm:$0x1]   ;;  %vm27_vm4 = vcmask 654848   ;;  %vm33_vm5 = vcmask 523648  }
   0x5   :  { %s75_s0 = smov 16   ;;  %vm39_vm6 = vcmask 392448   ;;  %vm45_vm7 = vcmask 261248  }
   0x6   :  { %13 = vrot.lane.b32.xlu0 %v56_v2, %s71_s18  ;;  %25 = vrot.lane.b32.xlu1 %v58_v3, %s72_s19 }
   0xa   :  { %31 = vrot.lane.b32.xlu0 %v59_v5, %s73_s24  ;;  %37 = vrot.lane.b32.xlu1 %v60_v6, %s74_s25 }
   0xe   :  { %43 = vrot.lane.b32.xlu0 %v61_v7, %s75_s0 }
  0x74   :  { %v8_v8 = vpop.permute.xlu0 %7   ;;  %v20_v9 = vpop.permute.xlu1 %19  }
  0x75   :  { %10 = vst.msk [vmem:[#allocation0] sm:$0x1] %vm9_vm1, %v8_v8  }
  0x78   :  { %v14_v10 = vpop.permute.xlu0 %13   ;;  %v26_v11 = vpop.permute.xlu1 %25  }
  0x79   :  { %16 = vst.msk [vmem:[#allocation0] sm:$0x1] %vm15_vm2, %v14_v10  }
  0x7a   :  { %22 = vst.msk [vmem:[#allocation0] sm:$0x1] %vm21_vm3, %v20_v9  }
  0x7b   :  { %28 = vst.msk [vmem:[#allocation0] sm:$0x1] %vm27_vm4, %v26_v11  }
  0x7c   :  { %v32_v12 = vpop.permute.xlu0 %31   ;;  %v38_v13 = vpop.permute.xlu1 %37  }
  0x7d   :  { %34 = vst.msk [vmem:[#allocation0] sm:$0x1] %vm33_vm5, %v32_v12  }
  0x7e   :  { %40 = vst.msk [vmem:[#allocation0] sm:$0x1] %vm39_vm6, %v38_v13  }
  0x80   :  { %v44_v14 = vpop.permute.xlu0 %43  }
  0x81   :  { %46 = vst.msk [vmem:[#allocation0] sm:$0x1] %vm45_vm7, %v44_v14  }
  0x88   :  { %v51_v15 = vld [vmem:[#allocation0] sm:$0x1] }
  0x89   :  { %54 = vst [vmem:[%s114_s1] sm:$0x1] %v51_v15 }

// kernel: resunet_encoder.17
= control target key start
LH: loop header
LB: loop body
LE: loop exit
PB: predicated region body
PF: predicated region fallthrough
CT: control target
= control target key end

     0   :  { %s369_s12 = smov 0   ;;  %s371_s13 = smov 0   ;;  %s396_s0 = inlined_call_operand.vmem [shape: f32[2,8,128], index: 0, kind: input, shape index: {}]   ;;  %s397_s1 = inlined_call_operand.vmem [shape: f32[1,128], index: 1, kind: input, shape index: {}]   ;;  %s398_s2 = inlined_call_operand.vmem [shape: f32[1,128], index: 2, kind: input, shape index: {}]   ;;  %s399_s3 = inlined_call_operand.vmem [shape: f32[2,8,128], index: 3, kind: output, shape index: {}]  }
   0x1   :  { %s373_s14 = smov 0  }
   0x2 LB: > { %s25_s15 = sadd.s32 1, %s343_s13  ;;  %p294_p0 = scmp.ge.s32.totalorder %s347_s14, 1  ;;  %s347_s14 = sphi %s373_s14, %s13_s14   ;;  %s343_s13 = sphi %s371_s13, %s401_s13   ;;  %s339_s12 = sphi %s369_s12, %s400_s12  }
   0x3   : > { %p27_p1 = scmp.ge.s32.totalorder %s25_s15, 2  ;;  %p155_p2 = scmp.lt.s32.totalorder %s347_s14, 3 }
   0x5   : > { %s403_s15 = smov (%p27_p1, %s25_s15), 0  ;;  %p156_p3 = pnand %p294_p0, %p155_p2 }
   0x6   : > { %p183_p4 = scmp.lt.s32.totalorder (!%p156_p3), %s339_s12, 1 }
   0x7   : > { %159 = sbr.rel (%p156_p3) target bundleno = 23 (0x17), region = 32 }
   0xc   : > { %s405_s12 = smov (!%p183_p4, %s339_s12), 1  ;;  %v297_v0 = vld [vmem:[%s397_s1] ss:$0 sm:$0xff] }
   0xd   : > { %s295_s16 = sshll.u32 %s405_s12, 3  ;;  %v298_v2 = vld [vmem:[%s398_s2] ss:$0 sm:$0xff] }
   0xe   : > { %s189_s21 = scalar_lea.vmem %s396_s0, %s295_s16  ;;  %s196_s26 = scalar_lea.vmem %s399_s3, %s295_s16 }
   0xf   : > { %v197_v1 = vld [vmem:[%s189_s21] sm:$0xff] }
  0x10   : > { %v205_v3 = vmul.f32 %v297_v0, %v197_v1 }
  0x12   : > { %v213_v4 = vadd.f32 %v298_v2, %v205_v3 }
  0x14   : > { %v214_v5 = vmax.f32 %v213_v4, 0.0 }
  0x16   : > { %215 = vst [vmem:[%s196_s26] sm:$0xff] %v214_v5 }
  0x17 PF: > { %s13_s14 = sadd.s32 1, %s347_s14   ;;  %s400_s12 = smov %s343_s13 }
  0x18   : > { %p10_p5 = scmp.ge.s32.totalorder %s13_s14, 4   ;;  %s401_s13 = smov %s403_s15 }
  0x1a   :  { %12 = sbr.rel (!%p10_p5) target bundleno = 2 (0x2), region = 62 }

// kernel: resunet_encoder.15
= control target key start
LH: loop header
LB: loop body
LE: loop exit
PB: predicated region body
PF: predicated region fallthrough
CT: control target
= control target key end

     0   :  { %s1510_s18 = smov 0   ;;  %s1512_s19 = smov 0   ;;  %s1909_s0 = inlined_call_operand.vmem [shape: f32[2,104,16], index: 0, kind: input, shape index: {}]   ;;  %s1910_s1 = inlined_call_operand.vmem [shape: f32[144,16], index: 1, kind: input, shape index: {}]   ;;  %s1911_s2 = inlined_call_operand.vmem [shape: f32[1,16], index: 2, kind: input, shape index: {}]   ;;  %s1912_s3 = inlined_call_operand.vmem [shape: f32[1,16], index: 3, kind: input, shape index: {}]   ;;  %s1913_s4 = inlined_call_operand.vmem [shape: f32[2,80,16], index: 4, kind: input, shape index: {}]   ;;  %s1914_s5 = inlined_call_operand.vmem [shape: f32[2,80,16], index: 5, kind: output, shape index: {}]  }
   0x1   :  { %s1514_s20 = smov 0  }
   0x2 LB: > { %s27_s21 = sadd.s32 1, %s1466_s19  ;;  %p1105_p0 = scmp.ge.s32.totalorder %s1470_s20, 1  ;;  %s1470_s20 = sphi %s1514_s20, %s15_s20   ;;  %s1466_s19 = sphi %s1512_s19, %s1916_s19   ;;  %s1462_s18 = sphi %s1510_s18, %s1915_s18  }
   0x3   : > { %p29_p1 = scmp.ge.s32.totalorder %s27_s21, 2  ;;  %p218_p2 = scmp.lt.s32.totalorder %s1470_s20, 3 }
   0x5   : > { %s1918_s21 = smov (%p29_p1, %s27_s21), 0  ;;  %p219_p3 = pnand %p1105_p0, %p218_p2 }
   0x6   : > { %p259_p4 = scmp.lt.s32.totalorder (!%p219_p3), %s1462_s18, 1  ;;  %s1473_s11 = smov (!%p219_p3), 48  }
   0x7   : > { %222 = sbr.rel (%p219_p3) target bundleno = 409 (0x199), region = 40  ;;  %s1474_s14 = smov (!%p219_p3), 16  }
   0x8   : > { %s1475_s17 = smov (!%p219_p3), 64   ;;  %s1476_s22 = smov (!%p219_p3), 32  }
   0x9   : > { %s1477_s25 = smov (!%p219_p3), 80   ;;  %s1478_s30 = smov (!%p219_p3), 96  }
   0xa   : > { %s1479_s9 = smov (!%p219_p3), 112  }
   0xc   : > { %v764_v0 = vld [vmem:[%s1910_s1 + $0x78] sm:$0xff]  ;;  %v1472_v1 = vmov 0.0   ;;  %v763_v2 = vld [vmem:[%s1910_s1 + $0x70] sm:$0xff]  ;;  %s1920_s18 = smov (!%p259_p4, %s1462_s18), 1  ;;  %v762_v3 = vld [vmem:[%s1910_s1 + $0x68] sm:$0xff]  ;;  %vm672_vm0 = vcmask 130048  }
   0xd   : > { %797 = vmatprep.subr.mxu0 %v1472_v1  ;;  %1203 = vmatprep.subr.mxu1 %v1472_v1  ;;  %s1239_s28 = smul.u32 104, %s1920_s18  ;;  %v761_v4 = vld [vmem:[%s1910_s1 + $0x60] sm:$0xff]  ;;  %v760_v5 = vld [vmem:[%s1910_s1 + $0x58] sm:$0xff]  ;;  %v759_v17 = vld [vmem:[%s1910_s1 + $0x50] sm:$0xff]  ;;  %vm683_vm1 = vcmask 261120   ;;  %vm694_vm2 = vcmask 392192  }
   0xe   : > { %798 = vmatpush1.msra.mxu0 %v764_v0  ;;  %1221 = vmatpush1.msra.mxu1 %v764_v0  ;;  %v758_v23 = vld [vmem:[%s1910_s1 + $0x48] sm:$0xff]  ;;  %v757_v28 = vld [vmem:[%s1910_s1 + $0x40] sm:$0xff]  ;;  %v756_v30 = vld [vmem:[%s1910_s1 + $0x38] sm:$0xff]  ;;  %vm705_vm3 = vcmask 523264   ;;  %vm716_vm4 = vcmask 654336   ;;  %vm727_vm5 = vcmask 785408  }
   0xf   : > { %799 = vmatprep.subr.mxu0 %v1472_v1  ;;  %1204 = vmatprep.subr.mxu1 %v1472_v1  ;;  %s1552_s8 = scalar_lea.vmem %s1909_s0, %s1239_s28  ;;  %v755_v35 = vld [vmem:[%s1910_s1 + $0x30] sm:$0xff]  ;;  %v754_v40 = vld [vmem:[%s1910_s1 + $0x28] sm:$0xff]  ;;  %v753_v44 = vld [vmem:[%s1910_s1 + $0x20] sm:$0xff]  ;;  %vm738_vm6 = vcmask 916480  }
  0x10   : > { %800 = vmatpush1.msra.mxu0 %v763_v2  ;;  %1222 = vmatpush1.msra.mxu1 %v763_v2  ;;  %v1129_v6 = vld [vmem:[%s1552_s8 + $0xa] sm:$0xff]  ;;  %v1134_v7 = vld [vmem:[%s1552_s8 + $0x32] sm:$0xff]  ;;  %v1109_v8 = vld [vmem:[%s1552_s8 + $0x1] sm:$0xff] }
  0x11   : > { %801 = vmatprep.subr.mxu0 %v1472_v1  ;;  %1205 = vmatprep.subr.mxu1 %v1472_v1  ;;  %v1562_v9 = vpack.i.bf16 %v1134_v7, %v1129_v6  ;;  %v1114_v10 = vld [vmem:[%s1552_s8 + $0x29] sm:$0xff]  ;;  %v1144_v12 = vld [vmem:[%s1552_s8 + $0x33] sm:$0xff]  ;;  %v1164_v27 = vld [vmem:[%s1552_s8 + $0x3c] sm:$0xff] }
  0x12   : > { %802 = vmatpush1.msra.mxu0 %v762_v3  ;;  %1223 = vmatpush1.msra.mxu1 %v762_v3  ;;  %v1139_v11 = vld [vmem:[%s1552_s8 + $0xb] sm:$0xff]  ;;  %v1273_v13 = vpack.i.bf16 %v1114_v10, %v1109_v8  ;;  %v1119_v14 = vld [vmem:[%s1552_s8 + $0x2] sm:$0xff]  ;;  %v1582_v20 = vld [vmem:[%s1552_s8 + $0x34] sm:$0xff] }
  0x13   : > { %803 = vmatprep.subr.mxu0 %v1472_v1  ;;  %1206 = vmatprep.subr.mxu1 %v1472_v1  ;;  %v1569_v15 = vld [vmem:[%s1552_s8 + $0x2a] sm:$0xff]  ;;  %v1288_v16 = vpack.i.bf16 %v1144_v12, %v1139_v11  ;;  %v1159_v26 = vld [vmem:[%s1552_s8 + $0x14] sm:$0xff]  ;;  %v1174_v32 = vld [vmem:[%s1552_s8 + $0x3d] sm:$0xff] }
  0x14   : > { %804 = vmatpush1.msra.mxu0 %v761_v4  ;;  %1224 = vmatpush1.msra.mxu1 %v761_v4  ;;  %v1278_v18 = vpack.i.bf16 %v1569_v15, %v1119_v14  ;;  %v1149_v19 = vld [vmem:[%s1552_s8 + $0xc] sm:$0xff]  ;;  %v1308_v29 = vpack.i.bf16 %v1164_v27, %v1159_v26  ;;  %v1169_v31 = vld [vmem:[%s1552_s8 + $0x15] sm:$0xff]  ;;  %v1136_v48 = vld [vmem:[%s1552_s8 + $0x42] sm:$0xff] }
  0x15   : > { %805 = vmatprep.subr.mxu0 %v1472_v1  ;;  %1207 = vmatprep.subr.mxu1 %v1472_v1  ;;  %v1110_v21 = vld [vmem:[%s1552_s8 + $0x9] sm:$0xff]  ;;  %v1115_v22 = vld [vmem:[%s1552_s8 + $0x31] sm:$0xff]  ;;  %v1298_v24 = vpack.i.bf16 %v1582_v20, %v1149_v19  ;;  %v1135_v34 = vld [vmem:[%s1552_s8 + $0x3a] sm:$0xff]  ;;  %v1318_v36 = vpack.i.bf16 %v1174_v32, %v1169_v31 }
  0x16   : > { %1284 = vrot.lane.b32.xlu1 %v1562_v9, %s1473_s11  ;;  %806 = vmatpush1.msra.mxu0 %v760_v5  ;;  %v1293_v25 = vpack.i.bf16 %v1115_v22, %v1110_v21  ;;  %v1130_v33 = vld [vmem:[%s1552_s8 + $0x12] sm:$0xff]  ;;  %v1145_v42 = vld [vmem:[%s1552_s8 + $0x3b] sm:$0xff]  ;;  %v1165_v51 = vld [vmem:[%s1552_s8 + $0x44] sm:$0xff] }
  0x17   : > { %1274 = vrot.lane.b32.xlu0 %v1273_v13, %s1474_s14  ;;  %1225 = vmatpush1.msra.mxu1 %v760_v5  ;;  %v1313_v37 = vpack.i.bf16 %v1135_v34, %v1130_v33  ;;  %v1111_v38 = vld [vmem:[%s1552_s8 + $0x11] sm:$0xff]  ;;  %v1116_v39 = vld [vmem:[%s1552_s8 + $0x39] sm:$0xff]  ;;  %v750_v53 = vld [vmem:[%s1910_s1 + $0x8] sm:$0xff] }
  0x18   : > { %807 = vmatprep.subr.mxu0 %v1472_v1  ;;  %1208 = vmatprep.subr.mxu1 %v1472_v1  ;;  %v1140_v41 = vld [vmem:[%s1552_s8 + $0x13] sm:$0xff]  ;;  %v1328_v43 = vpack.i.bf16 %v1116_v39, %v1111_v38  ;;  %v1160_v50 = vld [vmem:[%s1552_s8 + $0x1c] sm:$0xff]  ;;  %v1175_v58 = vld [vmem:[%s1552_s8 + $0x45] sm:$0xff] }
  0x19   : > { %808 = vmatpush1.msra.mxu0 %v759_v17  ;;  %1226 = vmatpush1.msra.mxu1 %v759_v17  ;;  %v1323_v45 = vpack.i.bf16 %v1145_v42, %v1140_v41  ;;  %v752_v46 = vld [vmem:[%s1910_s1 + $0x18] sm:$0xff]  ;;  %v751_v49 = vld [vmem:[%s1910_s1 + $0x10] sm:$0xff]  ;;  %v1343_v54 = vpack.i.bf16 %v1165_v51, %v1160_v50  ;;  %v1146_v56 = vld [vmem:[%s1552_s8 + $0x43] sm:$0xff] }
  0x1a   : > { %1289 = vrot.lane.b32.xlu1 %v1288_v16, %s1475_s17  ;;  %809 = vmatprep.subr.mxu0 %v1472_v1  ;;  %v1131_v47 = vld [vmem:[%s1552_s8 + $0x1a] sm:$0xff]  ;;  %v766_v62 = vld [vmem:[%s1910_s1 + $0x88] sm:$0xff]  ;;  %v1138_v22 = vld [vmem:[%s1552_s8 + $0x52] sm:$0xff] }
  0x1b   : > { %1279 = vrot.lane.b32.xlu0 %v1278_v18, %s1476_s22  ;;  %1209 = vmatprep.subr.mxu1 %v1472_v1  ;;  %v1348_v52 = vpack.i.bf16 %v1136_v48, %v1131_v47  ;;  %v1141_v55 = vld [vmem:[%s1552_s8 + $0x1b] sm:$0xff]  ;;  %v1161_v4 = vld [vmem:[%s1552_s8 + $0x24] sm:$0xff]  ;;  %v1166_v5 = vld [vmem:[%s1552_s8 + $0x4c] sm:$0xff] }
  0x1c   : > { %810 = vmatpush1.msra.mxu0 %v758_v23  ;;  %1227 = vmatpush1.msra.mxu1 %v758_v23  ;;  %v1170_v57 = vld [vmem:[%s1552_s8 + $0x1d] sm:$0xff]  ;;  %v1358_v60 = vpack.i.bf16 %v1146_v56, %v1141_v55  ;;  %v1378_v8 = vpack.i.bf16 %v1166_v5, %v1161_v4  ;;  %v1176_v10 = vld [vmem:[%s1552_s8 + $0x4d] sm:$0xff]  ;;  %v1173_v34 = vld [vmem:[%s1552_s8 + $0x35] sm:$0xff] }
  0x1d   : > { %811 = vmatprep.subr.mxu0 %v1472_v1  ;;  %1210 = vmatprep.subr.mxu1 %v1472_v1  ;;  %v749_v59 = vld [vmem:[%s1910_s1] sm:$0xff]  ;;  %v1353_v61 = vpack.i.bf16 %v1175_v58, %v1170_v57  ;;  %v1179_v6 = vld [vmem:[%s1552_s8 + $0x16] sm:$0xff]  ;;  %v1137_v11 = vld [vmem:[%s1552_s8 + $0x4a] sm:$0xff] }
  0x1e   : > { %1299 = vrot.lane.b32.xlu1 %v1298_v24, %s1477_s25  ;;  %812 = vmatpush1.msra.mxu0 %v757_v28  ;;  %v1112_v63 = vld [vmem:[%s1552_s8 + $0x19] sm:$0xff]  ;;  %v1117_v0 = vld [vmem:[%s1552_s8 + $0x41] sm:$0xff]  ;;  %v1118_v16 = vld [vmem:[%s1552_s8 + $0x49] sm:$0xff] }
  0x1f   : > { %1294 = vrot.lane.b32.xlu0 %v1293_v25, %s1474_s14  ;;  %1228 = vmatpush1.msra.mxu1 %v757_v28  ;;  %v765_v2 = vld [vmem:[%s1910_s1 + $0x80] sm:$0xff]  ;;  %v1363_v3 = vpack.i.bf16 %v1117_v0, %v1112_v63  ;;  %v1147_v18 = vld [vmem:[%s1552_s8 + $0x4b] sm:$0xff]  ;;  %v1167_v24 = vld [vmem:[%s1552_s8 + $0x54] sm:$0xff]  ;;  %v1418_v25 = vpack.i.bf16 %v1138_v22, %v1569_v15 }
  0x20   : > { %813 = vmatprep.subr.mxu0 %v1472_v1  ;;  %1211 = vmatprep.subr.mxu1 %v1472_v1  ;;  %v1184_v7 = vld [vmem:[%s1552_s8 + $0x3e] sm:$0xff]  ;;  %v1162_v23 = vld [vmem:[%s1552_s8 + $0x2c] sm:$0xff] }
  0x21   : > { %814 = vmatpush1.msra.mxu0 %v756_v30  ;;  %1229 = vmatpush1.msra.mxu1 %v756_v30  ;;  %v1113_v14 = vld [vmem:[%s1552_s8 + $0x21] sm:$0xff]  ;;  %v1413_v26 = vpack.i.bf16 %v1167_v24, %v1162_v23  ;;  %v1143_v27 = vld [vmem:[%s1552_s8 + $0x2b] sm:$0xff]  ;;  %v1148_v28 = vld [vmem:[%s1552_s8 + $0x53] sm:$0xff] }
  0x22   : > { %1309 = vrot.lane.b32.xlu1 %v1308_v29, %s1478_s30  ;;  %815 = vmatprep.subr.mxu0 %v1472_v1  ;;  %v1142_v17 = vld [vmem:[%s1552_s8 + $0x23] sm:$0xff]  ;;  %v1398_v19 = vpack.i.bf16 %v1118_v16, %v1113_v14  ;;  %v1177_v30 = vld [vmem:[%s1552_s8 + $0x55] sm:$0xff]  ;;  %v1428_v31 = vpack.i.bf16 %v1148_v28, %v1143_v27 }
  0x23   : > { %1304 = vrot.lane.b32.xlu0 %v1562_v9, %s1476_s22  ;;  %1212 = vmatprep.subr.mxu1 %v1472_v1  ;;  %v1171_v9 = vld [vmem:[%s1552_s8 + $0x25] sm:$0xff]  ;;  %v1393_v21 = vpack.i.bf16 %v1147_v18, %v1142_v17  ;;  %v1168_v33 = vld [vmem:[%s1552_s8 + $0x5c] sm:$0xff]  ;;  %v292_v23 = vld [vmem:[%s1552_s8 + $0x30] sm:$0xff] }
  0x24   : > { %816 = vmatpush1.msra.mxu0 %v755_v35  ;;  %1230 = vmatpush1.msra.mxu1 %v755_v35  ;;  %v1388_v12 = vpack.i.bf16 %v1176_v10, %v1171_v9  ;;  %v1438_v15 = vpack.i.bf16 %v1168_v33, %v1582_v20  ;;  %v1178_v35 = vld [vmem:[%s1552_s8 + $0x5d] sm:$0xff]  ;;  %v291_v42 = vld [vmem:[%s1552_s8 + $0x28] sm:$0xff] }
  0x25   : > { %817 = vmatprep.subr.mxu0 %v1472_v1  ;;  %1213 = vmatprep.subr.mxu1 %v1472_v1  ;;  %v286_v41 = vld [vmem:[%s1552_s8] sm:$0xff]  ;;  %v287_v22 = vld [vmem:[%s1552_s8 + $0x8] sm:$0xff] }
  0x26   : > { %1319 = vrot.lane.b32.xlu1 %v1318_v36, %s1479_s9  ;;  %818 = vmatpush1.msra.mxu0 %v754_v40  ;;  %v1443_v36 = vpack.i.bf16 %v1178_v35, %v1173_v34 }
  0x27   : > { %1314 = vrot.lane.b32.xlu0 %v1313_v37, %s1473_s11  ;;  %1231 = vmatpush1.msra.mxu1 %v754_v40 }
  0x28   : > { %819 = vmatprep.subr.mxu0 %v1472_v1  ;;  %1214 = vmatprep.subr.mxu1 %v1472_v1 }
  0x29   : > { %820 = vmatpush1.msra.mxu0 %v753_v44  ;;  %1232 = vmatpush1.msra.mxu1 %v753_v44 }
  0x2a   : > { %1329 = vrot.lane.b32.xlu1 %v1328_v43, %s1474_s14  ;;  %821 = vmatprep.subr.mxu0 %v1472_v1 }
  0x2b   : > { %1324 = vrot.lane.b32.xlu0 %v1323_v45, %s1475_s17  ;;  %1215 = vmatprep.subr.mxu1 %v1472_v1 }
  0x2c   : > { %822 = vmatpush1.msra.mxu0 %v752_v46  ;;  %1233 = vmatpush1.msra.mxu1 %v752_v46 }
  0x2d   : > { %823 = vmatprep.subr.mxu0 %v1472_v1  ;;  %1216 = vmatprep.subr.mxu1 %v1472_v1 }
  0x2e   : > { %1339 = vrot.lane.b32.xlu1 %v1313_v37, %s1476_s22  ;;  %824 = vmatpush1.msra.mxu0 %v751_v49 }
  0x2f   : > { %1334 = vrot.lane.b32.xlu0 %v1308_v29, %s1477_s25  ;;  %1234 = vmatpush1.msra.mxu1 %v751_v49  ;;  %v1172_v29 = vld [vmem:[%s1552_s8 + $0x2d] sm:$0xff] }
  0x30   : > { %825 = vmatprep.subr.mxu0 %v1472_v1  ;;  %1217 = vmatprep.subr.mxu1 %v1472_v1  ;;  %v1423_v32 = vpack.i.bf16 %v1177_v30, %v1172_v29 }
  0x31   : > { %826 = vmatpush1.msra.mxu0 %v750_v53  ;;  %1235 = vmatpush1.msra.mxu1 %v750_v53 }
  0x32   : > { %1349 = vrot.lane.b32.xlu1 %v1348_v52, %s1473_s11  ;;  %827 = vmatprep.subr.mxu0 %v1472_v1 }
  0x33   : > { %1344 = vrot.lane.b32.xlu0 %v1343_v54, %s1478_s30  ;;  %1218 = vmatprep.subr.mxu1 %v1472_v1 }
  0x34   : > { %828 = vmatpush1.msra.mxu0 %v749_v59  ;;  %1236 = vmatpush1.msra.mxu1 %v749_v59 }
  0x35   : > { %857 = vmatprep.subr.mxu0 %v1472_v1  ;;  %1219 = vmatprep.subr.mxu1 %v1472_v1 }
  0x36   : > { %1359 = vrot.lane.b32.xlu1 %v1358_v60, %s1475_s17  ;;  %858 = vmatpush2.msra.mxu0 %v766_v62 }
  0x37   : > { %1354 = vrot.lane.b32.xlu0 %v1353_v61, %s1479_s9  ;;  %1237 = vmatpush2.msra.mxu1 %v766_v62 }
  0x38   : > { %859 = vmatprep.subr.mxu0 %v1472_v1  ;;  %1220 = vmatprep.subr.mxu1 %v1472_v1  ;;  %v1132_v1 = vld [vmem:[%s1552_s8 + $0x22] sm:$0xff] }
  0x39   : > { %860 = vmatpush2.msra.mxu0 %v765_v2  ;;  %1238 = vmatpush2.msra.mxu1 %v765_v2  ;;  %v1383_v13 = vpack.i.bf16 %v1137_v11, %v1132_v1  ;;  %v1180_v1 = vld [vmem:[%s1552_s8 + $0x1e] sm:$0xff]  ;;  %v1185_v11 = vld [vmem:[%s1552_s8 + $0x46] sm:$0xff] }
  0x3a   : > { %1369 = vrot.lane.b32.xlu1 %v1343_v54, %s1477_s25  ;;  %1189 = vmatprep.mubr.msk.f32.mxu0 %vm672_vm0, %v1179_v6 }
  0x3b   : > { %1364 = vrot.lane.b32.xlu0 %v1363_v3, %s1474_s14  ;;  %1194 = vmatprep.mubr.msk.f32.mxu1 %vm672_vm0, %v1184_v7 }
  0x3e   : > { %1379 = vrot.lane.b32.xlu1 %v1378_v8, %s1478_s30 }
  0x3f   : > { %1374 = vrot.lane.b32.xlu0 %v1348_v52, %s1476_s22 }
  0x42   : > { %1389 = vrot.lane.b32.xlu1 %v1388_v12, %s1479_s9 }
  0x43   : > { %1384 = vrot.lane.b32.xlu0 %v1383_v13, %s1473_s11 }
  0x46   : > { %1399 = vrot.lane.b32.xlu1 %v1398_v19, %s1474_s14 }
  0x47   : > { %1394 = vrot.lane.b32.xlu0 %v1393_v21, %s1475_s17 }
  0x4a   : > { %1409 = vrot.lane.b32.xlu1 %v1383_v13, %s1476_s22 }
  0x4b   : > { %1404 = vrot.lane.b32.xlu0 %v1378_v8, %s1477_s25 }
  0x4e   : > { %1419 = vrot.lane.b32.xlu1 %v1418_v25, %s1473_s11 }
  0x4f   : > { %1414 = vrot.lane.b32.xlu0 %v1413_v26, %s1478_s30 }
  0x52   : > { %1429 = vrot.lane.b32.xlu1 %v1428_v31, %s1475_s17 }
  0x53   : > { %1424 = vrot.lane.b32.xlu0 %v1423_v32, %s1479_s9 }
  0x56   : > { %1439 = vrot.lane.b32.xlu1 %v1438_v15, %s1478_s30 }
  0x57   : > { %1434 = vrot.lane.b32.xlu0 %v1413_v26, %s1477_s25 }
  0x5b   : > { %1444 = vrot.lane.b32.xlu0 %v1443_v36, %s1479_s9 }
  0x88   : > { %v1285_v37 = vpop.permute.xlu1 %1284 }
  0x89   : > { %v1275_v38 = vpop.permute.xlu0 %1274  ;;  %v1287_v51 = vunpack.i.h.bf16 %v1285_v37  ;;  %v1286_v52 = vunpack.i.l.bf16 %v1285_v37 }
  0x8a   : > { %v1277_v39 = vunpack.i.h.bf16 %v1275_v38  ;;  %v1276_v40 = vunpack.i.l.bf16 %v1275_v38 }
  0x8c   : > { %v1290_v43 = vpop.permute.xlu1 %1289  ;;  %v673_v46 = vsel %vm672_vm0, %v286_v41, %v1276_v40  ;;  %v678_v47 = vsel %vm672_vm0, %v291_v42, %v1277_v39 }
  0x8d   : > { %v1280_v20 = vpop.permute.xlu0 %1279  ;;  %v1292_v54 = vunpack.i.h.bf16 %v1290_v43  ;;  %v1291_v55 = vunpack.i.l.bf16 %v1290_v43 }
  0x8e   : > { %v1282_v44 = vunpack.i.h.bf16 %v1280_v20  ;;  %v1281_v45 = vunpack.i.l.bf16 %v1280_v20 }
  0x90   : > { %v684_v48 = vsel %vm683_vm1, %v673_v46, %v1281_v45  ;;  %v689_v49 = vsel %vm683_vm1, %v678_v47, %v1282_v44  ;;  %v1300_v50 = vpop.permute.xlu1 %1299 }
  0x91   : > { %v1295_v53 = vpop.permute.xlu0 %1294  ;;  %v695_v56 = vsel %vm694_vm2, %v684_v48, %v1286_v52  ;;  %v700_v57 = vsel %vm694_vm2, %v689_v49, %v1287_v51  ;;  %v1302_v59 = vunpack.i.h.bf16 %v1300_v50  ;;  %v1301_v60 = vunpack.i.l.bf16 %v1300_v50  ;;  %v1181_v52 = vld [vmem:[%s1552_s8 + $0x26] sm:$0xff] }
  0x92   : > { %v706_v0 = vsel %vm705_vm3, %v695_v56, %v1291_v55  ;;  %v711_v2 = vsel %vm705_vm3, %v700_v57, %v1292_v54  ;;  %v1297_v19 = vunpack.i.h.bf16 %v1295_v53  ;;  %v1296_v21 = vunpack.i.l.bf16 %v1295_v53  ;;  %v1186_v53 = vld [vmem:[%s1552_s8 + $0x4e] sm:$0xff]  ;;  %v293_v55 = vld [vmem:[%s1552_s8 + $0x38] sm:$0xff] }
  0x93   : > { %v717_v7 = vsel %vm716_vm4, %v706_v0, %v1301_v60  ;;  %v722_v8 = vsel %vm716_vm4, %v711_v2, %v1302_v59  ;;  %v288_v54 = vld [vmem:[%s1552_s8 + $0x10] sm:$0xff] }
  0x94   : > { %v1310_v58 = vpop.permute.xlu1 %1309  ;;  %v674_v32 = vsel %vm672_vm0, %v287_v22, %v1296_v21  ;;  %v679_v33 = vsel %vm672_vm0, %v292_v23, %v1297_v19 }
  0x95   : > { %v1305_v61 = vpop.permute.xlu0 %1304  ;;  %v1312_v62 = vunpack.i.h.bf16 %v1310_v58  ;;  %v1311_v63 = vunpack.i.l.bf16 %v1310_v58 }
  0x96   : > { %v1307_v24 = vunpack.i.h.bf16 %v1305_v61  ;;  %v1306_v25 = vunpack.i.l.bf16 %v1305_v61 }
  0x97   : > { %v728_v9 = vsel %vm727_vm5, %v717_v7, %v1311_v63  ;;  %v733_v10 = vsel %vm727_vm5, %v722_v8, %v1312_v62 }
  0x98   : > { %v1320_v3 = vpop.permute.xlu1 %1319  ;;  %v685_v35 = vsel %vm683_vm1, %v674_v32, %v1306_v25  ;;  %v690_v36 = vsel %vm683_vm1, %v679_v33, %v1307_v24 }
  0x99   : > { %v1322_v4 = vunpack.i.h.bf16 %v1320_v3  ;;  %v1321_v5 = vunpack.i.l.bf16 %v1320_v3  ;;  %v1315_v6 = vpop.permute.xlu0 %1314 }
  0x9a   : > { %v1317_v26 = vunpack.i.h.bf16 %v1315_v6  ;;  %v1316_v27 = vunpack.i.l.bf16 %v1315_v6 }
  0x9b   : > { %v739_v12 = vsel %vm738_vm6, %v728_v9, %v1321_v5  ;;  %v744_v13 = vsel %vm738_vm6, %v733_v10, %v1322_v4 }
  0x9c   : > { %v1330_v14 = vpop.permute.xlu1 %1329  ;;  %862 = vmatmul.mubr.f32.vlgmr.msra.gmra.mxu0 %v739_v12  ;;  %887 = vmatmul.mubr.f32.vlgmr.msra.gmra.mxu1 %v744_v13  ;;  %v696_v39 = vsel %vm694_vm2, %v685_v35, %v1316_v27  ;;  %v701_v40 = vsel %vm694_vm2, %v690_v36, %v1317_v26  ;;  %v1182_v26 = vld [vmem:[%s1552_s8 + $0x2e] sm:$0xff]  ;;  %v1187_v27 = vld [vmem:[%s1552_s8 + $0x56] sm:$0xff]  ;;  %v294_v36 = vld [vmem:[%s1552_s8 + $0x40] sm:$0xff] }
  0x9d   : > { %v1325_v16 = vpop.permute.xlu0 %1324  ;;  %1190 = vmatprep.mubr.msk.f32.mxu0 %vm672_vm0, %v1180_v1  ;;  %1195 = vmatprep.mubr.msk.f32.mxu1 %vm672_vm0, %v1185_v11  ;;  %v1332_v48 = vunpack.i.h.bf16 %v1330_v14  ;;  %v1331_v49 = vunpack.i.l.bf16 %v1330_v14  ;;  %v289_v35 = vld [vmem:[%s1552_s8 + $0x18] sm:$0xff] }
  0x9e   : > { %v1327_v29 = vunpack.i.h.bf16 %v1325_v16  ;;  %v1326_v30 = vunpack.i.l.bf16 %v1325_v16 }
  0x9f   : > { %v675_v62 = vsel %vm672_vm0, %v288_v54, %v1331_v49  ;;  %v680_v63 = vsel %vm672_vm0, %v293_v55, %v1332_v48  ;;  %v295_v48 = vld [vmem:[%s1552_s8 + $0x48] sm:$0xff] }
  0xa0   : > { %v1749_v17 = vpop.permute.xlu1 %1339  ;;  %v707_v42 = vsel %vm705_vm3, %v696_v39, %v1326_v30  ;;  %v712_v43 = vsel %vm705_vm3, %v701_v40, %v1327_v29 }
  0xa1   : > { %v1335_v18 = vpop.permute.xlu0 %1334  ;;  %v1342_v60 = vunpack.i.h.bf16 %v1749_v17  ;;  %v1341_v61 = vunpack.i.l.bf16 %v1749_v17 }
  0xa2   : > { %v1337_v15 = vunpack.i.h.bf16 %v1335_v18  ;;  %v1336_v34 = vunpack.i.l.bf16 %v1335_v18 }
  0xa3   : > { %v686_v9 = vsel %vm683_vm1, %v675_v62, %v1341_v61  ;;  %v691_v10 = vsel %vm683_vm1, %v680_v63, %v1342_v60 }
  0xa4   : > { %v1350_v28 = vpop.permute.xlu1 %1349  ;;  %v718_v46 = vsel %vm716_vm4, %v707_v42, %v1336_v34  ;;  %v723_v47 = vsel %vm716_vm4, %v712_v43, %v1337_v15 }
  0xa5   : > { %v1345_v31 = vpop.permute.xlu0 %1344  ;;  %v1352_v0 = vunpack.i.h.bf16 %v1350_v28  ;;  %v1351_v2 = vunpack.i.l.bf16 %v1350_v28 }
  0xa6   : > { %v1347_v37 = vunpack.i.h.bf16 %v1345_v31  ;;  %v1346_v38 = vunpack.i.l.bf16 %v1345_v31 }
  0xa7   : > { %v697_v12 = vsel %vm694_vm2, %v686_v9, %v1351_v2  ;;  %v702_v13 = vsel %vm694_vm2, %v691_v10, %v1352_v0 }
  0xa8   : > { %v1360_v41 = vpop.permute.xlu1 %1359  ;;  %v729_v50 = vsel %vm727_vm5, %v718_v46, %v1346_v38  ;;  %v734_v51 = vsel %vm727_vm5, %v723_v47, %v1347_v37  ;;  %v290_v47 = vld [vmem:[%s1552_s8 + $0x20] sm:$0xff] }
  0xa9   : > { %v1355_v20 = vpop.permute.xlu0 %1354  ;;  %v1362_v3 = vunpack.i.h.bf16 %v1360_v41  ;;  %v1361_v4 = vunpack.i.l.bf16 %v1360_v41 }
  0xaa   : > { %v1357_v44 = vunpack.i.h.bf16 %v1355_v20  ;;  %v1356_v45 = vunpack.i.l.bf16 %v1355_v20 }
  0xab   : > { %v708_v14 = vsel %vm705_vm3, %v697_v12, %v1361_v4  ;;  %v713_v16 = vsel %vm705_vm3, %v702_v13, %v1362_v3  ;;  %v1183_v12 = vld [vmem:[%s1552_s8 + $0x36] sm:$0xff]  ;;  %v1188_v13 = vld [vmem:[%s1552_s8 + $0x5e] sm:$0xff]  ;;  %s1240_s8 = smul.u32 80, %s1920_s18 }
  0xac   : > { %v1370_v56 = vpop.permute.xlu1 %1369  ;;  %v740_v57 = vsel %vm738_vm6, %v729_v50, %v1356_v45  ;;  %v745_v58 = vsel %vm738_vm6, %v734_v51, %v1357_v44 }
  0xad   : > { %v1365_v59 = vpop.permute.xlu0 %1364  ;;  %867 = vmatmul.mubr.f32.gmra.mxu0 %v740_v57  ;;  %892 = vmatmul.mubr.f32.gmra.mxu1 %v745_v58  ;;  %v1372_v6 = vunpack.i.h.bf16 %v1370_v56  ;;  %v1371_v7 = vunpack.i.l.bf16 %v1370_v56  ;;  %s1838_s25 = scalar_lea.vmem %s1913_s4, %s1240_s8  ;;  %s1854_s13 = scalar_lea.vmem %s1914_s5, %s1240_s8 }
  0xae   : > { %1191 = vmatprep.mubr.msk.f32.mxu0 %vm672_vm0, %v1181_v52  ;;  %1196 = vmatprep.mubr.msk.f32.mxu1 %vm672_vm0, %v1186_v53  ;;  %v1367_v33 = vunpack.i.h.bf16 %v1365_v59  ;;  %v1366_v15 = vunpack.i.l.bf16 %v1365_v59 }
  0xaf   : > { %v719_v22 = vsel %vm716_vm4, %v708_v14, %v1371_v7  ;;  %v724_v23 = vsel %vm716_vm4, %v713_v16, %v1372_v6 }
  0xb0   : > { %v1380_v5 = vpop.permute.xlu1 %1379  ;;  %v676_v45 = vsel %vm672_vm0, %v289_v35, %v1366_v15  ;;  %v681_v46 = vsel %vm672_vm0, %v294_v36, %v1367_v33 }
  0xb1   : > { %v1375_v8 = vpop.permute.xlu0 %1374  ;;  %v1382_v1 = vunpack.i.h.bf16 %v1380_v5  ;;  %v1381_v11 = vunpack.i.l.bf16 %v1380_v5 }
  0xb2   : > { %v1377_v37 = vunpack.i.h.bf16 %v1375_v8  ;;  %v1376_v38 = vunpack.i.l.bf16 %v1375_v8 }
  0xb3   : > { %v730_v24 = vsel %vm727_vm5, %v719_v22, %v1381_v11  ;;  %v735_v25 = vsel %vm727_vm5, %v724_v23, %v1382_v1 }
  0xb4   : > { %v1390_v17 = vpop.permute.xlu1 %1389  ;;  %v687_v52 = vsel %vm683_vm1, %v676_v45, %v1376_v38  ;;  %v692_v53 = vsel %vm683_vm1, %v681_v46, %v1377_v37  ;;  %v1833_v38 = vld [vmem:[%s1911_s2] ss:$0 sm:$0xff] }
  0xb5   : > { %v1392_v18 = vunpack.i.h.bf16 %v1390_v17  ;;  %v1391_v19 = vunpack.i.l.bf16 %v1390_v17  ;;  %v1385_v21 = vpop.permute.xlu0 %1384 }
  0xb6   : > { %v1387_v39 = vunpack.i.h.bf16 %v1385_v21  ;;  %v1386_v40 = vunpack.i.l.bf16 %v1385_v21 }
  0xb7   : > { %v741_v28 = vsel %vm738_vm6, %v730_v24, %v1391_v19  ;;  %v746_v29 = vsel %vm738_vm6, %v735_v25, %v1392_v18 }
  0xb8   : > { %v1400_v30 = vpop.permute.xlu1 %1399  ;;  %872 = vmatmul.mubr.f32.gmra.mxu0 %v741_v28  ;;  %897 = vmatmul.mubr.f32.gmra.mxu1 %v746_v29  ;;  %v698_v54 = vsel %vm694_vm2, %v687_v52, %v1386_v40  ;;  %v703_v55 = vsel %vm694_vm2, %v692_v53, %v1387_v39  ;;  %v1843_v40 = vld [vmem:[%s1912_s3] ss:$0 sm:$0xff] }
  0xb9   : > { %v1395_v31 = vpop.permute.xlu0 %1394  ;;  %1192 = vmatprep.mubr.msk.f32.mxu0 %vm672_vm0, %v1182_v26  ;;  %1197 = vmatprep.mubr.msk.f32.mxu1 %vm672_vm0, %v1187_v27  ;;  %v1402_v41 = vunpack.i.h.bf16 %v1400_v30  ;;  %v1401_v42 = vunpack.i.l.bf16 %v1400_v30 }
  0xba   : > { %v1397_v43 = vunpack.i.h.bf16 %v1395_v31  ;;  %v1396_v20 = vunpack.i.l.bf16 %v1395_v31 }
  0xbb   : > { %v677_v58 = vsel %vm672_vm0, %v290_v47, %v1401_v42  ;;  %v682_v59 = vsel %vm672_vm0, %v295_v48, %v1402_v41 }
  0xbc   : > { %v1410_v32 = vpop.permute.xlu1 %1409  ;;  %v709_v60 = vsel %vm705_vm3, %v698_v54, %v1396_v20  ;;  %v714_v61 = vsel %vm705_vm3, %v703_v55, %v1397_v43  ;;  %v946_v20 = vld [vmem:[%s1838_s25] sm:$0xff]  ;;  %v947_v55 = vld [vmem:[%s1838_s25 + $0x8] sm:$0xff] }
  0xbd   : > { %v1405_v34 = vpop.permute.xlu0 %1404  ;;  %v1412_v63 = vunpack.i.h.bf16 %v1410_v32  ;;  %v1411_v0 = vunpack.i.l.bf16 %v1410_v32 }
  0xbe   : > { %v1407_v49 = vunpack.i.h.bf16 %v1405_v34  ;;  %v1406_v50 = vunpack.i.l.bf16 %v1405_v34 }
  0xbf   : > { %v688_v18 = vsel %vm683_vm1, %v677_v58, %v1411_v0  ;;  %v693_v19 = vsel %vm683_vm1, %v682_v59, %v1412_v63 }
  0xc0   : > { %v1420_v44 = vpop.permute.xlu1 %1419  ;;  %v720_v3 = vsel %vm716_vm4, %v709_v60, %v1406_v50  ;;  %v725_v4 = vsel %vm716_vm4, %v714_v61, %v1407_v49 }
  0xc1   : > { %v1415_v51 = vpop.permute.xlu0 %1414  ;;  %v1422_v5 = vunpack.i.h.bf16 %v1420_v44  ;;  %v1421_v6 = vunpack.i.l.bf16 %v1420_v44  ;;  %v951_v44 = vld [vmem:[%s1838_s25 + $0x28] sm:$0xff] }
  0xc2   : > { %v1417_v56 = vunpack.i.h.bf16 %v1415_v51  ;;  %v1416_v57 = vunpack.i.l.bf16 %v1415_v51 }
  0xc3   : > { %v699_v22 = vsel %vm694_vm2, %v688_v18, %v1421_v6  ;;  %v704_v23 = vsel %vm694_vm2, %v693_v19, %v1422_v5  ;;  %v953_v5 = vld [vmem:[%s1838_s25 + $0x38] sm:$0xff] }
  0xc4   : > { %v1430_v62 = vpop.permute.xlu1 %1429  ;;  %v731_v1 = vsel %vm727_vm5, %v720_v3, %v1416_v57  ;;  %v736_v11 = vsel %vm727_vm5, %v725_v4, %v1417_v56  ;;  %v952_v56 = vld [vmem:[%s1838_s25 + $0x30] sm:$0xff] }
  0xc5   : > { %v1425_v2 = vpop.permute.xlu0 %1424  ;;  %v1432_v9 = vunpack.i.h.bf16 %v1430_v62  ;;  %v1431_v10 = vunpack.i.l.bf16 %v1430_v62  ;;  %v948_v4 = vld [vmem:[%s1838_s25 + $0x10] sm:$0xff] }
  0xc6   : > { %v1427_v7 = vunpack.i.h.bf16 %v1425_v2  ;;  %v1426_v8 = vunpack.i.l.bf16 %v1425_v2 }
  0xc7   : > { %v710_v26 = vsel %vm705_vm3, %v699_v22, %v1431_v10  ;;  %v715_v27 = vsel %vm705_vm3, %v704_v23, %v1432_v9 }
  0xc8   : > { %v742_v14 = vsel %vm738_vm6, %v731_v1, %v1426_v8  ;;  %v747_v16 = vsel %vm738_vm6, %v736_v11, %v1427_v7  ;;  %v1440_v17 = vpop.permute.xlu1 %1439 }
  0xc9   : > { %v1435_v21 = vpop.permute.xlu0 %1434  ;;  %877 = vmatmul.mubr.f32.gmra.mxu0 %v742_v14  ;;  %902 = vmatmul.mubr.f32.gmra.mxu1 %v747_v16  ;;  %v1442_v28 = vunpack.i.h.bf16 %v1440_v17  ;;  %v1441_v29 = vunpack.i.l.bf16 %v1440_v17  ;;  %v949_v16 = vld [vmem:[%s1838_s25 + $0x18] sm:$0xff]  ;;  %v954_v17 = vld [vmem:[%s1838_s25 + $0x40] sm:$0xff] }
  0xca   : > { %v1437_v24 = vunpack.i.h.bf16 %v1435_v21  ;;  %v1436_v25 = vunpack.i.l.bf16 %v1435_v21  ;;  %1193 = vmatprep.mubr.msk.f32.mxu0 %vm672_vm0, %v1183_v12  ;;  %1198 = vmatprep.mubr.msk.f32.mxu1 %vm672_vm0, %v1188_v13 }
  0xcc   : > { %v721_v30 = vsel %vm716_vm4, %v710_v26, %v1436_v25  ;;  %v726_v31 = vsel %vm716_vm4, %v715_v27, %v1437_v24 }
  0xcd   : > { %v1445_v32 = vpop.permute.xlu0 %1444  ;;  %v732_v34 = vsel %vm727_vm5, %v721_v30, %v1441_v29  ;;  %v737_v35 = vsel %vm727_vm5, %v726_v31, %v1442_v28  ;;  %v950_v29 = vld [vmem:[%s1838_s25 + $0x20] sm:$0xff]  ;;  %v955_v30 = vld [vmem:[%s1838_s25 + $0x48] sm:$0xff] }
  0xce   : > { %v1447_v33 = vunpack.i.h.bf16 %v1445_v32  ;;  %v1446_v15 = vunpack.i.l.bf16 %v1445_v32 }
  0xd0   : > { %v743_v36 = vsel %vm738_vm6, %v732_v34, %v1446_v15  ;;  %v748_v37 = vsel %vm738_vm6, %v737_v35, %v1447_v33 }
  0xd1   : > { %882 = vmatmul.mubr.f32.gmra.mxu0 %v743_v36  ;;  %907 = vmatmul.mubr.f32.gmra.mxu1 %v748_v37 }
 0x15c   : > { %v863_v39 = vpop.f32.mrf.mxu0  ;;  %v888_v41 = vpop.f32.mrf.mxu1 }
 0x15d   : > { %v919_v42 = vmul.f32 %v1833_v38, %v863_v39  ;;  %v924_v43 = vmul.f32 %v1833_v38, %v888_v41 }
 0x15e   : > { %v865_v45 = vpop.f32.mrf.mxu0  ;;  %v890_v46 = vpop.f32.mrf.mxu1 }
 0x15f   : > { %v936_v47 = vadd.f32 %v1843_v40, %v919_v42  ;;  %v941_v48 = vadd.f32 %v1843_v40, %v924_v43 }
 0x161   : > { %v956_v49 = vadd.f32 %v946_v20, %v936_v47  ;;  %v961_v50 = vadd.f32 %v951_v44, %v941_v48 }
 0x163   : > { %966 = vst.msk [vmem:[%s1854_s13] sm:$0xff] %vm672_vm0, %v956_v49  ;;  %971 = vst.msk [vmem:[%s1854_s13 + $0x28] sm:$0xff] %vm672_vm0, %v961_v50 }
 0x16d   : > { %v868_v51 = vpop.f32.mrf.mxu0  ;;  %v893_v52 = vpop.f32.mrf.mxu1 }
 0x16e   : > { %v920_v53 = vmul.f32 %v1833_v38, %v868_v51  ;;  %v925_v54 = vmul.f32 %v1833_v38, %v893_v52 }
 0x16f   : > { %v870_v57 = vpop.f32.mrf.mxu0  ;;  %v895_v58 = vpop.f32.mrf.mxu1 }
 0x170   : > { %v937_v59 = vadd.f32 %v1843_v40, %v920_v53  ;;  %v942_v60 = vadd.f32 %v1843_v40, %v925_v54 }
 0x172   : > { %v957_v61 = vadd.f32 %v947_v55, %v937_v59  ;;  %v962_v62 = vadd.f32 %v952_v56, %v942_v60 }
 0x174   : > { %967 = vst.msk [vmem:[%s1854_s13 + $0x8] sm:$0xff] %vm672_vm0, %v957_v61  ;;  %972 = vst.msk [vmem:[%s1854_s13 + $0x30] sm:$0xff] %vm672_vm0, %v962_v62 }
 0x178   : > { %v873_v63 = vpop.f32.mrf.mxu0  ;;  %v898_v0 = vpop.f32.mrf.mxu1 }
 0x179   : > { %v921_v2 = vmul.f32 %v1833_v38, %v873_v63  ;;  %v926_v3 = vmul.f32 %v1833_v38, %v898_v0 }
 0x17a   : > { %v875_v6 = vpop.f32.mrf.mxu0  ;;  %v900_v7 = vpop.f32.mrf.mxu1 }
 0x17b   : > { %v938_v8 = vadd.f32 %v1843_v40, %v921_v2  ;;  %v943_v9 = vadd.f32 %v1843_v40, %v926_v3 }
 0x17d   : > { %v958_v10 = vadd.f32 %v948_v4, %v938_v8  ;;  %v963_v1 = vadd.f32 %v953_v5, %v943_v9 }
 0x17f   : > { %968 = vst.msk [vmem:[%s1854_s13 + $0x10] sm:$0xff] %vm672_vm0, %v958_v10  ;;  %973 = vst.msk [vmem:[%s1854_s13 + $0x38] sm:$0xff] %vm672_vm0, %v963_v1 }
 0x189   : > { %v878_v11 = vpop.f32.mrf.mxu0  ;;  %v903_v12 = vpop.f32.mrf.mxu1 }
 0x18a   : > { %v922_v13 = vmul.f32 %v1833_v38, %v878_v11  ;;  %v927_v14 = vmul.f32 %v1833_v38, %v903_v12 }
 0x18b   : > { %v880_v18 = vpop.f32.mrf.mxu0  ;;  %v905_v19 = vpop.f32.mrf.mxu1 }
 0x18c   : > { %v939_v21 = vadd.f32 %v1843_v40, %v922_v13  ;;  %v944_v22 = vadd.f32 %v1843_v40, %v927_v14 }
 0x18e   : > { %v959_v23 = vadd.f32 %v949_v16, %v939_v21  ;;  %v964_v24 = vadd.f32 %v954_v17, %v944_v22 }
 0x190   : > { %969 = vst.msk [vmem:[%s1854_s13 + $0x18] sm:$0xff] %vm672_vm0, %v959_v23  ;;  %974 = vst.msk [vmem:[%s1854_s13 + $0x40] sm:$0xff] %vm672_vm0, %v964_v24 }
 0x191   : > { %v883_v25 = vpop.f32.mrf.mxu0  ;;  %v908_v26 = vpop.f32.mrf.mxu1 }
 0x192   : > { %v923_v27 = vmul.f32 %v1833_v38, %v883_v25  ;;  %v928_v28 = vmul.f32 %v1833_v38, %v908_v26 }
 0x193   : > { %v885_v31 = vpop.f32.mrf.mxu0  ;;  %v910_v32 = vpop.f32.mrf.mxu1 }
 0x194   : > { %v940_v33 = vadd.f32 %v1843_v40, %v923_v27  ;;  %v945_v15 = vadd.f32 %v1843_v40, %v928_v28 }
 0x196   : > { %v960_v34 = vadd.f32 %v950_v29, %v940_v33  ;;  %v965_v35 = vadd.f32 %v955_v30, %v945_v15 }
 0x198   : > { %970 = vst.msk [vmem:[%s1854_s13 + $0x20] sm:$0xff] %vm672_vm0, %v960_v34  ;;  %975 = vst.msk [vmem:[%s1854_s13 + $0x48] sm:$0xff] %vm672_vm0, %v965_v35 }
 0x199 PF: > { %s15_s20 = sadd.s32 1, %s1470_s20   ;;  %s1915_s18 = smov %s1466_s19 }
 0x19a   : > { %p12_p5 = scmp.ge.s32.totalorder %s15_s20, 4   ;;  %s1916_s19 = smov %s1918_s21 }
 0x19c   :  { %14 = sbr.rel (!%p12_p5) target bundleno = 2 (0x2), region = 82 }

// kernel: resunet_encoder.12
= control target key start
LH: loop header
LB: loop body
LE: loop exit
PB: predicated region body
PF: predicated region fallthrough
CT: control target
= control target key end

     0   :  { %s992_s15 = smov 0   ;;  %s994_s16 = smov 0   ;;  %s1192_s0 = inlined_call_operand.vmem [shape: f32[2,96,32], index: 0, kind: input, shape index: {}]   ;;  %s1193_s1 = inlined_call_operand.vmem [shape: f32[128,16], index: 1, kind: input, shape index: {}]   ;;  %s1194_s2 = inlined_call_operand.vmem [shape: f32[1,16], index: 2, kind: input, shape index: {}]   ;;  %s1195_s3 = inlined_call_operand.vmem [shape: f32[1,16], index: 3, kind: input, shape index: {}]   ;;  %s1196_s4 = inlined_call_operand.vmem [shape: f32[2,80,16], index: 4, kind: output, shape index: {}]  }
   0x1   :  { %s996_s17 = smov 0  }
   0x2 LB: > { %s26_s18 = sadd.s32 1, %s958_s16  ;;  %p694_p0 = scmp.ge.s32.totalorder %s962_s17, 1  ;;  %s962_s17 = sphi %s996_s17, %s14_s17   ;;  %s958_s16 = sphi %s994_s16, %s1198_s16   ;;  %s954_s15 = sphi %s992_s15, %s1197_s15  }
   0x3   : > { %p28_p1 = scmp.ge.s32.totalorder %s26_s18, 2  ;;  %p176_p2 = scmp.lt.s32.totalorder %s962_s17, 3 }
   0x5   : > { %s1200_s18 = smov (%p28_p1, %s26_s18), 0  ;;  %p177_p3 = pnand %p694_p0, %p176_p2 }
   0x6   : > { %p206_p4 = scmp.lt.s32.totalorder (!%p177_p3), %s954_s15, 1  ;;  %s964_s9 = smov (!%p177_p3), 96  }
   0x7   : > { %180 = sbr.rel (%p177_p3) target bundleno = 369 (0x171), region = 36  ;;  %s965_s12 = smov (!%p177_p3), 32  }
   0x8   : > { %s966_s21 = smov (!%p177_p3), 64  }
   0xc   : > { %v437_v0 = vld [vmem:[%s1193_s1 + $0x78] sm:$0xff]  ;;  %v436_v1 = vld [vmem:[%s1193_s1 + $0x70] sm:$0xff]  ;;  %s1202_s15 = smov (!%p206_p4, %s954_s15), 1  ;;  %v435_v2 = vld [vmem:[%s1193_s1 + $0x68] sm:$0xff]  ;;  %vm389_vm0 = vcmask 261120   ;;  %vm400_vm1 = vcmask 523264  }
   0xd   : > { %757 = vmatprep.subr.mxu0 %v437_v0  ;;  %804 = vmatprep.subr.mxu1 %v437_v0  ;;  %s836_s25 = smul.u32 96, %s1202_s15  ;;  %v434_v3 = vld [vmem:[%s1193_s1 + $0x60] sm:$0xff]  ;;  %v433_v4 = vld [vmem:[%s1193_s1 + $0x58] sm:$0xff]  ;;  %v432_v5 = vld [vmem:[%s1193_s1 + $0x50] sm:$0xff]  ;;  %vm411_vm2 = vcmask 785408   ;;  %vm587_vm3 = vcmask 130048  }
   0xe   : > { %758 = vmatpush3.msra.mxu0 %v437_v0  ;;  %820 = vmatpush3.msra.mxu1 %v437_v0  ;;  %v431_v17 = vld [vmem:[%s1193_s1 + $0x48] sm:$0xff]  ;;  %v430_v23 = vld [vmem:[%s1193_s1 + $0x40] sm:$0xff]  ;;  %v429_v25 = vld [vmem:[%s1193_s1 + $0x38] sm:$0xff] }
   0xf   : > { %759 = vmatprep.subr.mxu0 %v436_v1  ;;  %805 = vmatprep.subr.mxu1 %v436_v1  ;;  %s1028_s30 = scalar_lea.vmem %s1192_s0, %s836_s25  ;;  %v428_v31 = vld [vmem:[%s1193_s1 + $0x30] sm:$0xff]  ;;  %v427_v33 = vld [vmem:[%s1193_s1 + $0x28] sm:$0xff]  ;;  %v426_v39 = vld [vmem:[%s1193_s1 + $0x20] sm:$0xff] }
  0x10   : > { %760 = vmatpush3.msra.mxu0 %v436_v1  ;;  %821 = vmatpush3.msra.mxu1 %v436_v1  ;;  %v717_v6 = vld [vmem:[%s1028_s30 + $0xb] sm:$0xff]  ;;  %v718_v7 = vld [vmem:[%s1028_s30 + $0x13] sm:$0xff]  ;;  %v697_v8 = vld [vmem:[%s1028_s30 + $0x1] sm:$0xff] }
  0x11   : > { %761 = vmatprep.subr.mxu0 %v435_v2  ;;  %806 = vmatprep.subr.mxu1 %v435_v2  ;;  %v875_v9 = vpack.i.bf16 %v718_v7, %v717_v6  ;;  %v698_v10 = vld [vmem:[%s1028_s30 + $0x9] sm:$0xff]  ;;  %v699_v11 = vld [vmem:[%s1028_s30 + $0x11] sm:$0xff]  ;;  %v709_v19 = vld [vmem:[%s1028_s30 + $0x1a] sm:$0xff] }
  0x12   : > { %762 = vmatpush3.msra.mxu0 %v435_v2  ;;  %822 = vmatpush3.msra.mxu1 %v435_v2  ;;  %v703_v12 = vld [vmem:[%s1028_s30 + $0x31] sm:$0xff]  ;;  %v865_v13 = vpack.i.bf16 %v698_v10, %v697_v8  ;;  %v713_v20 = vld [vmem:[%s1028_s30 + $0x3a] sm:$0xff]  ;;  %v710_v29 = vld [vmem:[%s1028_s30 + $0x22] sm:$0xff] }
  0x13   : > { %763 = vmatprep.subr.mxu0 %v434_v3  ;;  %807 = vmatprep.subr.mxu1 %v434_v3  ;;  %v707_v14 = vld [vmem:[%s1028_s30 + $0xa] sm:$0xff]  ;;  %v708_v15 = vld [vmem:[%s1028_s30 + $0x12] sm:$0xff]  ;;  %v880_v16 = vpack.i.bf16 %v703_v12, %v699_v11  ;;  %v890_v24 = vpack.i.bf16 %v713_v20, %v709_v19  ;;  %v719_v27 = vld [vmem:[%s1028_s30 + $0x1b] sm:$0xff] }
  0x14   : > { %764 = vmatpush3.msra.mxu0 %v434_v3  ;;  %823 = vmatpush3.msra.mxu1 %v434_v3  ;;  %v870_v18 = vpack.i.bf16 %v708_v15, %v707_v14  ;;  %v700_v21 = vld [vmem:[%s1028_s30 + $0x19] sm:$0xff]  ;;  %v714_v30 = vld [vmem:[%s1028_s30 + $0x42] sm:$0xff]  ;;  %v711_v43 = vld [vmem:[%s1028_s30 + $0x2a] sm:$0xff] }
  0x15   : > { %765 = vmatprep.subr.mxu0 %v433_v4  ;;  %808 = vmatprep.subr.mxu1 %v433_v4  ;;  %v704_v22 = vld [vmem:[%s1028_s30 + $0x39] sm:$0xff]  ;;  %v895_v34 = vpack.i.bf16 %v714_v30, %v710_v29  ;;  %v701_v35 = vld [vmem:[%s1028_s30 + $0x21] sm:$0xff]  ;;  %v715_v44 = vld [vmem:[%s1028_s30 + $0x4a] sm:$0xff] }
  0x16   : > { %876 = vrot.lane.b32.xlu1 %v875_v9, %s964_s9  ;;  %766 = vmatpush3.msra.mxu0 %v433_v4  ;;  %v885_v26 = vpack.i.bf16 %v704_v22, %v700_v21  ;;  %v723_v28 = vld [vmem:[%s1028_s30 + $0x3b] sm:$0xff]  ;;  %v720_v37 = vld [vmem:[%s1028_s30 + $0x23] sm:$0xff]  ;;  %v424_v47 = vld [vmem:[%s1193_s1 + $0x10] sm:$0xff]  ;;  %v920_v48 = vpack.i.bf16 %v715_v44, %v711_v43 }
  0x17   : > { %866 = vrot.lane.b32.xlu0 %v865_v13, %s965_s12  ;;  %767 = vmatprep.subr.mxu0 %v432_v5  ;;  %v900_v32 = vpack.i.bf16 %v723_v28, %v719_v27  ;;  %v705_v36 = vld [vmem:[%s1028_s30 + $0x41] sm:$0xff]  ;;  %v425_v41 = vld [vmem:[%s1193_s1 + $0x18] sm:$0xff]  ;;  %v702_v45 = vld [vmem:[%s1028_s30 + $0x29] sm:$0xff] }
  0x18   : > { %768 = vmatpush3.msra.mxu0 %v432_v5  ;;  %824 = vmatpush3.msra.mxu1 %v433_v4  ;;  %v724_v38 = vld [vmem:[%s1028_s30 + $0x43] sm:$0xff]  ;;  %v910_v40 = vpack.i.bf16 %v705_v36, %v701_v35  ;;  %v721_v51 = vld [vmem:[%s1028_s30 + $0x2b] sm:$0xff]  ;;  %v722_v58 = vld [vmem:[%s1028_s30 + $0x33] sm:$0xff] }
  0x19   : > { %769 = vmatprep.subr.mxu0 %v431_v17  ;;  %809 = vmatprep.subr.mxu1 %v432_v5  ;;  %v905_v42 = vpack.i.bf16 %v724_v38, %v720_v37  ;;  %v706_v46 = vld [vmem:[%s1028_s30 + $0x49] sm:$0xff]  ;;  %v712_v53 = vld [vmem:[%s1028_s30 + $0x32] sm:$0xff]  ;;  %v422_v55 = vld [vmem:[%s1193_s1] sm:$0xff] }
  0x1a   : > { %881 = vrot.lane.b32.xlu1 %v880_v16, %s965_s12  ;;  %770 = vmatpush3.msra.mxu0 %v431_v17  ;;  %v423_v49 = vld [vmem:[%s1193_s1 + $0x8] sm:$0xff]  ;;  %v915_v50 = vpack.i.bf16 %v706_v46, %v702_v45  ;;  %v716_v54 = vld [vmem:[%s1028_s30 + $0x52] sm:$0xff]  ;;  %v223_v2 = vld [vmem:[%s1028_s30] sm:$0xff] }
  0x1b   : > { %871 = vrot.lane.b32.xlu0 %v870_v18, %s966_s21  ;;  %771 = vmatprep.subr.mxu0 %v430_v23  ;;  %v725_v52 = vld [vmem:[%s1028_s30 + $0x4b] sm:$0xff]  ;;  %v925_v57 = vpack.i.bf16 %v716_v54, %v712_v53  ;;  %v726_v59 = vld [vmem:[%s1028_s30 + $0x53] sm:$0xff]  ;;  %v231_v53 = vld [vmem:[%s1028_s30 + $0x40] sm:$0xff] }
  0x1c   : > { %772 = vmatpush3.msra.mxu0 %v430_v23  ;;  %825 = vmatpush3.msra.mxu1 %v432_v5  ;;  %v930_v56 = vpack.i.bf16 %v725_v52, %v721_v51  ;;  %v935_v60 = vpack.i.bf16 %v726_v59, %v722_v58  ;;  %v224_v3 = vld [vmem:[%s1028_s30 + $0x8] sm:$0xff]  ;;  %v225_v16 = vld [vmem:[%s1028_s30 + $0x10] sm:$0xff]  ;;  %v226_v37 = vld [vmem:[%s1028_s30 + $0x18] sm:$0xff] }
  0x1d   : > { %773 = vmatprep.subr.mxu0 %v429_v25  ;;  %810 = vmatprep.subr.mxu1 %v431_v17  ;;  %v230_v38 = vld [vmem:[%s1028_s30 + $0x38] sm:$0xff]  ;;  %v227_v52 = vld [vmem:[%s1028_s30 + $0x20] sm:$0xff] }
  0x1e   : > { %891 = vrot.lane.b32.xlu1 %v890_v24, %s966_s21  ;;  %774 = vmatpush3.msra.mxu0 %v429_v25 }
  0x1f   : > { %886 = vrot.lane.b32.xlu0 %v885_v26, %s965_s12  ;;  %775 = vmatprep.subr.mxu0 %v428_v31 }
  0x20   : > { %776 = vmatpush3.msra.mxu0 %v428_v31  ;;  %826 = vmatpush3.msra.mxu1 %v431_v17  ;;  %v229_v17 = vld [vmem:[%s1028_s30 + $0x30] sm:$0xff] }
  0x21   : > { %777 = vmatprep.subr.mxu0 %v427_v33  ;;  %811 = vmatprep.subr.mxu1 %v430_v23 }
  0x22   : > { %901 = vrot.lane.b32.xlu1 %v900_v32, %s964_s9  ;;  %778 = vmatpush3.msra.mxu0 %v427_v33 }
  0x23   : > { %896 = vrot.lane.b32.xlu0 %v895_v34, %s966_s21  ;;  %779 = vmatprep.subr.mxu0 %v426_v39 }
  0x24   : > { %780 = vmatpush3.msra.mxu0 %v426_v39  ;;  %827 = vmatpush3.msra.mxu1 %v430_v23 }
  0x25   : > { %781 = vmatprep.subr.mxu0 %v425_v41  ;;  %812 = vmatprep.subr.mxu1 %v429_v25 }
  0x26   : > { %911 = vrot.lane.b32.xlu1 %v910_v40, %s965_s12  ;;  %782 = vmatpush3.msra.mxu0 %v425_v41 }
  0x27   : > { %906 = vrot.lane.b32.xlu0 %v905_v42, %s964_s9  ;;  %783 = vmatprep.subr.mxu0 %v424_v47 }
  0x28   : > { %828 = vmatpush3.msra.mxu1 %v429_v25  ;;  %784 = vmatpush3.msra.mxu0 %v424_v47 }
  0x29   : > { %813 = vmatprep.subr.mxu1 %v428_v31  ;;  %785 = vmatprep.subr.mxu0 %v423_v49 }
  0x2a   : > { %921 = vrot.lane.b32.xlu1 %v920_v48, %s966_s21  ;;  %829 = vmatpush3.msra.mxu1 %v428_v31 }
  0x2b   : > { %916 = vrot.lane.b32.xlu0 %v915_v50, %s965_s12  ;;  %786 = vmatpush3.msra.mxu0 %v423_v49 }
  0x2c   : > { %814 = vmatprep.subr.mxu1 %v427_v33  ;;  %787 = vmatprep.subr.mxu0 %v422_v55 }
  0x2d   : > { %830 = vmatpush3.msra.mxu1 %v427_v33  ;;  %788 = vmatpush3.msra.mxu0 %v422_v55 }
  0x2e   : > { %931 = vrot.lane.b32.xlu1 %v930_v56, %s964_s9  ;;  %815 = vmatprep.subr.mxu1 %v426_v39 }
  0x2f   : > { %926 = vrot.lane.b32.xlu0 %v925_v57, %s966_s21  ;;  %831 = vmatpush3.msra.mxu1 %v426_v39 }
  0x30   : > { %816 = vmatprep.subr.mxu1 %v425_v41 }
  0x31   : > { %832 = vmatpush3.msra.mxu1 %v425_v41 }
  0x32   : > { %817 = vmatprep.subr.mxu1 %v424_v47 }
  0x33   : > { %936 = vrot.lane.b32.xlu0 %v935_v60, %s964_s9  ;;  %833 = vmatpush3.msra.mxu1 %v424_v47 }
  0x34   : > { %818 = vmatprep.subr.mxu1 %v423_v49 }
  0x35   : > { %834 = vmatpush3.msra.mxu1 %v423_v49 }
  0x36   : > { %819 = vmatprep.subr.mxu1 %v422_v55 }
  0x37   : > { %835 = vmatpush3.msra.mxu1 %v422_v55 }
  0x88   : > { %v877_v61 = vpop.permute.xlu1 %876 }
  0x89   : > { %v867_v62 = vpop.permute.xlu0 %866  ;;  %v879_v5 = vunpack.i.h.bf16 %v877_v61  ;;  %v878_v6 = vunpack.i.l.bf16 %v877_v61 }
  0x8a   : > { %v869_v63 = vunpack.i.h.bf16 %v867_v62  ;;  %v868_v0 = vunpack.i.l.bf16 %v867_v62 }
  0x8c   : > { %v882_v1 = vpop.permute.xlu1 %881  ;;  %v390_v11 = vsel %vm389_vm0, %v223_v2, %v868_v0  ;;  %v391_v12 = vsel %vm389_vm0, %v224_v3, %v869_v63 }
  0x8d   : > { %v872_v4 = vpop.permute.xlu0 %871  ;;  %v884_v9 = vunpack.i.h.bf16 %v882_v1  ;;  %v883_v10 = vunpack.i.l.bf16 %v882_v1 }
  0x8e   : > { %v874_v7 = vunpack.i.h.bf16 %v872_v4  ;;  %v873_v8 = vunpack.i.l.bf16 %v872_v4 }
  0x8f   : > { %v392_v23 = vsel %vm389_vm0, %v225_v16, %v883_v10  ;;  %v396_v24 = vsel %vm389_vm0, %v229_v17, %v884_v9 }
  0x90   : > { %v892_v13 = vpop.permute.xlu1 %891  ;;  %v401_v14 = vsel %vm400_vm1, %v390_v11, %v873_v8  ;;  %v402_v15 = vsel %vm400_vm1, %v391_v12, %v874_v7  ;;  %v228_v7 = vld [vmem:[%s1028_s30 + $0x28] sm:$0xff] }
  0x91   : > { %v887_v18 = vpop.permute.xlu0 %886  ;;  %v412_v19 = vsel %vm411_vm2, %v401_v14, %v878_v6  ;;  %v413_v20 = vsel %vm411_vm2, %v402_v15, %v879_v5  ;;  %v894_v21 = vunpack.i.h.bf16 %v892_v13  ;;  %v893_v22 = vunpack.i.l.bf16 %v892_v13  ;;  %v232_v8 = vld [vmem:[%s1028_s30 + $0x48] sm:$0xff]  ;;  %s837_s30 = smul.u32 80, %s1202_s15 }
  0x92   : > { %789 = vmatprep.mubr.f32.mxu0 %v412_v19  ;;  %v889_v29 = vunpack.i.h.bf16 %v887_v18  ;;  %v888_v30 = vunpack.i.l.bf16 %v887_v18  ;;  %v727_v18 = vld [vmem:[%s1194_s2] ss:$0 sm:$0xff] }
  0x93   : > { %790 = vmatmul.mubr.f32.vlgmr.msra.gmra.mxu0 %v413_v20  ;;  %v403_v31 = vsel %vm400_vm1, %v392_v23, %v893_v22  ;;  %v407_v32 = vsel %vm400_vm1, %v396_v24, %v894_v21  ;;  %v728_v20 = vld [vmem:[%s1195_s3] ss:$0 sm:$0xff]  ;;  %s1161_s21 = scalar_lea.vmem %s1196_s4, %s837_s30 }
  0x94   : > { %v902_v25 = vpop.permute.xlu1 %901  ;;  %v393_v43 = vsel %vm389_vm0, %v226_v37, %v888_v30  ;;  %v397_v44 = vsel %vm389_vm0, %v230_v38, %v889_v29 }
  0x95   : > { %v904_v26 = vunpack.i.h.bf16 %v902_v25  ;;  %v903_v27 = vunpack.i.l.bf16 %v902_v25  ;;  %v897_v28 = vpop.permute.xlu0 %896 }
  0x96   : > { %v899_v33 = vunpack.i.h.bf16 %v897_v28  ;;  %v898_v34 = vunpack.i.l.bf16 %v897_v28 }
  0x97   : > { %v414_v35 = vsel %vm411_vm2, %v403_v31, %v903_v27  ;;  %v418_v36 = vsel %vm411_vm2, %v407_v32, %v904_v26 }
  0x98   : > { %v912_v39 = vpop.permute.xlu1 %911  ;;  %792 = vmatprep.mubr.f32.mxu0 %v414_v35  ;;  %798 = vmatprep.mubr.f32.mxu1 %v418_v36  ;;  %v404_v47 = vsel %vm400_vm1, %v393_v43, %v898_v34  ;;  %v408_v48 = vsel %vm400_vm1, %v397_v44, %v899_v33 }
  0x99   : > { %v907_v40 = vpop.permute.xlu0 %906  ;;  %v914_v45 = vunpack.i.h.bf16 %v912_v39  ;;  %v913_v46 = vunpack.i.l.bf16 %v912_v39 }
  0x9a   : > { %v909_v41 = vunpack.i.h.bf16 %v907_v40  ;;  %v908_v42 = vunpack.i.l.bf16 %v907_v40 }
  0x9b   : > { %v394_v57 = vsel %vm389_vm0, %v227_v52, %v913_v46  ;;  %v398_v58 = vsel %vm389_vm0, %v231_v53, %v914_v45 }
  0x9c   : > { %v922_v49 = vpop.permute.xlu1 %921  ;;  %v415_v50 = vsel %vm411_vm2, %v404_v47, %v908_v42  ;;  %v419_v51 = vsel %vm411_vm2, %v408_v48, %v909_v41 }
  0x9d   : > { %v917_v54 = vpop.permute.xlu0 %916  ;;  %793 = vmatmul.mubr.f32.gmra.mxu0 %v415_v50  ;;  %799 = vmatmul.mubr.f32.vlgmr.msra.gmra.mxu1 %v419_v51  ;;  %v924_v55 = vunpack.i.h.bf16 %v922_v49  ;;  %v923_v56 = vunpack.i.l.bf16 %v922_v49 }
  0x9e   : > { %v919_v63 = vunpack.i.h.bf16 %v917_v54  ;;  %v918_v0 = vunpack.i.l.bf16 %v917_v54 }
  0x9f   : > { %v405_v1 = vsel %vm400_vm1, %v394_v57, %v923_v56  ;;  %v409_v2 = vsel %vm400_vm1, %v398_v58, %v924_v55 }
  0xa0   : > { %v932_v59 = vpop.permute.xlu1 %931  ;;  %v395_v12 = vsel %vm389_vm0, %v228_v7, %v918_v0  ;;  %v399_v13 = vsel %vm389_vm0, %v232_v8, %v919_v63 }
  0xa1   : > { %v934_v60 = vunpack.i.h.bf16 %v932_v59  ;;  %v933_v61 = vunpack.i.l.bf16 %v932_v59  ;;  %v927_v62 = vpop.permute.xlu0 %926 }
  0xa2   : > { %v929_v3 = vunpack.i.h.bf16 %v927_v62  ;;  %v928_v4 = vunpack.i.l.bf16 %v927_v62 }
  0xa3   : > { %v416_v5 = vsel %vm411_vm2, %v405_v1, %v933_v61  ;;  %v420_v6 = vsel %vm411_vm2, %v409_v2, %v934_v60 }
  0xa4   : > { %795 = vmatprep.mubr.f32.mxu0 %v416_v5  ;;  %801 = vmatprep.mubr.f32.mxu1 %v420_v6  ;;  %v406_v14 = vsel %vm400_vm1, %v395_v12, %v928_v4  ;;  %v410_v15 = vsel %vm400_vm1, %v399_v13, %v929_v3 }
  0xa5   : > { %v937_v9 = vpop.permute.xlu0 %936 }
  0xa6   : > { %v939_v10 = vunpack.i.h.bf16 %v937_v9  ;;  %v938_v11 = vunpack.i.l.bf16 %v937_v9 }
  0xa8   : > { %v417_v16 = vsel %vm411_vm2, %v406_v14, %v938_v11  ;;  %v421_v17 = vsel %vm411_vm2, %v410_v15, %v939_v10 }
  0xa9   : > { %796 = vmatmul.mubr.f32.gmra.mxu0 %v417_v16  ;;  %802 = vmatmul.mubr.f32.gmra.mxu1 %v421_v17 }
 0x153   : > { %v791_v19 = vpop.f32.mrf.mxu0 }
 0x154   : > { %v561_v21 = vmul.f32 %v791_v19, %v727_v18 }
 0x155   : > { %v504_v22 = vpop.f32.mrf.mxu0 }
 0x156   : > { %v578_v23 = vadd.f32 %v728_v20, %v561_v21  ;;  %v560_v24 = vmul.f32 %v727_v18, %v504_v22 }
 0x158   : > { %589 = vst.msk [vmem:[%s1161_s21 + $0x8] sm:$0xff] %vm587_vm3, %v578_v23  ;;  %v577_v25 = vadd.f32 %v728_v20, %v560_v24 }
 0x15a   : > { %588 = vst.msk [vmem:[%s1161_s21] sm:$0xff] %vm587_vm3, %v577_v25 }
 0x15d   : > { %v794_v26 = vpop.f32.mrf.mxu0  ;;  %v800_v27 = vpop.f32.mrf.mxu1 }
 0x15e   : > { %v563_v28 = vmul.f32 %v794_v26, %v727_v18  ;;  %v567_v29 = vmul.f32 %v800_v27, %v727_v18 }
 0x15f   : > { %v514_v30 = vpop.f32.mrf.mxu0  ;;  %v534_v31 = vpop.f32.mrf.mxu1 }
 0x160   : > { %v580_v32 = vadd.f32 %v728_v20, %v563_v28  ;;  %v584_v33 = vadd.f32 %v728_v20, %v567_v29  ;;  %v562_v34 = vmul.f32 %v727_v18, %v514_v30  ;;  %v566_v35 = vmul.f32 %v727_v18, %v534_v31 }
 0x162   : > { %591 = vst.msk [vmem:[%s1161_s21 + $0x18] sm:$0xff] %vm587_vm3, %v580_v32  ;;  %595 = vst.msk [vmem:[%s1161_s21 + $0x38] sm:$0xff] %vm587_vm3, %v584_v33  ;;  %v579_v36 = vadd.f32 %v728_v20, %v562_v34  ;;  %v583_v37 = vadd.f32 %v728_v20, %v566_v35 }
 0x164   : > { %590 = vst.msk [vmem:[%s1161_s21 + $0x10] sm:$0xff] %vm587_vm3, %v579_v36  ;;  %594 = vst.msk [vmem:[%s1161_s21 + $0x30] sm:$0xff] %vm587_vm3, %v583_v37 }
 0x169   : > { %v797_v38 = vpop.f32.mrf.mxu0  ;;  %v803_v39 = vpop.f32.mrf.mxu1 }
 0x16a   : > { %v565_v40 = vmul.f32 %v797_v38, %v727_v18  ;;  %v569_v41 = vmul.f32 %v803_v39, %v727_v18 }
 0x16b   : > { %v524_v42 = vpop.f32.mrf.mxu0  ;;  %v544_v43 = vpop.f32.mrf.mxu1 }
 0x16c   : > { %v582_v44 = vadd.f32 %v728_v20, %v565_v40  ;;  %v586_v45 = vadd.f32 %v728_v20, %v569_v41  ;;  %v564_v46 = vmul.f32 %v727_v18, %v524_v42  ;;  %v568_v47 = vmul.f32 %v727_v18, %v544_v43 }
 0x16e   : > { %593 = vst.msk [vmem:[%s1161_s21 + $0x28] sm:$0xff] %vm587_vm3, %v582_v44  ;;  %597 = vst.msk [vmem:[%s1161_s21 + $0x48] sm:$0xff] %vm587_vm3, %v586_v45  ;;  %v581_v48 = vadd.f32 %v728_v20, %v564_v46  ;;  %v585_v49 = vadd.f32 %v728_v20, %v568_v47 }
 0x170   : > { %592 = vst.msk [vmem:[%s1161_s21 + $0x20] sm:$0xff] %vm587_vm3, %v581_v48  ;;  %596 = vst.msk [vmem:[%s1161_s21 + $0x40] sm:$0xff] %vm587_vm3, %v585_v49 }
 0x171 PF: > { %s14_s17 = sadd.s32 1, %s962_s17   ;;  %s1197_s15 = smov %s958_s16 }
 0x172   : > { %p11_p5 = scmp.ge.s32.totalorder %s14_s17, 4   ;;  %s1198_s16 = smov %s1200_s18 }
 0x174   :  { %13 = sbr.rel (!%p11_p5) target bundleno = 2 (0x2), region = 70 }

// kernel: resunet_encoder.18
= control target key start
LH: loop header
LB: loop body
LE: loop exit
PB: predicated region body
PF: predicated region fallthrough
CT: control target
= control target key end

     0   :  { %s689_s15 = smov 0   ;;  %s691_s16 = smov 0   ;;  %s848_s0 = inlined_call_operand.vmem [shape: f32[2,32,64], index: 0, kind: input, shape index: {}]   ;;  %s849_s1 = inlined_call_operand.vmem [shape: f32[256,32], index: 1, kind: input, shape index: {}]   ;;  %s850_s2 = inlined_call_operand.vmem [shape: f32[1,32], index: 2, kind: input, shape index: {}]   ;;  %s851_s3 = inlined_call_operand.vmem [shape: f32[1,32], index: 3, kind: input, shape index: {}]   ;;  %s852_s4 = inlined_call_operand.vmem [shape: f32[2,24,32], index: 4, kind: output, shape index: {}]  }
   0x1   :  { %s693_s17 = smov 0  }
   0x2 LB: > { %s26_s18 = sadd.s32 1, %s657_s16  ;;  %p507_p0 = scmp.ge.s32.totalorder %s661_s17, 1  ;;  %s661_s17 = sphi %s693_s17, %s14_s17   ;;  %s657_s16 = sphi %s691_s16, %s854_s16   ;;  %s653_s15 = sphi %s689_s15, %s853_s15  }
   0x3   : > { %p28_p1 = scmp.ge.s32.totalorder %s26_s18, 2  ;;  %p176_p2 = scmp.lt.s32.totalorder %s661_s17, 3 }
   0x5   : > { %s856_s18 = smov (%p28_p1, %s26_s18), 0  ;;  %p177_p3 = pnand %p507_p0, %p176_p2 }
   0x6   : > { %p206_p4 = scmp.lt.s32.totalorder (!%p177_p3), %s653_s15, 1  ;;  %s663_s23 = smov (!%p177_p3), 64  }
   0x7   : > { %180 = sbr.rel (%p177_p3) target bundleno = 348 (0x15c), region = 36 }
   0xc   : > { %v303_v0 = vld [vmem:[%s849_s1 + $0xf8] sm:$0xff]  ;;  %v302_v2 = vld [vmem:[%s849_s1 + $0xf0] sm:$0xff]  ;;  %s858_s15 = smov (!%p206_p4, %s653_s15), 1  ;;  %v301_v4 = vld [vmem:[%s849_s1 + $0xe8] sm:$0xff]  ;;  %vm265_vm0 = vcmask 523264   ;;  %vm407_vm1 = vcmask 261120  }
   0xd   : > { %v287_v1 = vld [vmem:[%s849_s1 + $0x78] sm:$0xff]  ;;  %566 = vmatprep.subr.mxu1 %v303_v0  ;;  %v286_v3 = vld [vmem:[%s849_s1 + $0x70] sm:$0xff]  ;;  %525 = vmatprep.subr.mxu0 %v303_v0  ;;  %v285_v5 = vld [vmem:[%s849_s1 + $0x68] sm:$0xff]  ;;  %s524_s5 = sshll.u32 %s858_s15, 5  ;;  %s598_s25 = smul.u32 24, %s858_s15 }
   0xe   : > { %582 = vmatpush3.msra.mxu1 %v287_v1  ;;  %526 = vmatpush3.msra.mxu0 %v287_v1  ;;  %v300_v6 = vld [vmem:[%s849_s1 + $0xe0] sm:$0xff]  ;;  %s734_s10 = scalar_lea.vmem %s848_s0, %s524_s5  ;;  %v299_v8 = vld [vmem:[%s849_s1 + $0xd8] sm:$0xff]  ;;  %v298_v18 = vld [vmem:[%s849_s1 + $0xd0] sm:$0xff] }
   0xf   : > { %567 = vmatprep.subr.mxu1 %v302_v2  ;;  %527 = vmatprep.subr.mxu0 %v302_v2  ;;  %v284_v7 = vld [vmem:[%s849_s1 + $0x60] sm:$0xff]  ;;  %v283_v9 = vld [vmem:[%s849_s1 + $0x58] sm:$0xff]  ;;  %v512_v10 = vld [vmem:[%s734_s10 + $0x9] sm:$0xff]  ;;  %s219_s30 = scalar_lea.vmem %s852_s4, %s598_s25 }
  0x10   : > { %583 = vmatpush3.msra.mxu1 %v286_v3  ;;  %528 = vmatpush3.msra.mxu0 %v286_v3  ;;  %v518_v11 = vld [vmem:[%s734_s10 + $0xe] sm:$0xff]  ;;  %v517_v12 = vld [vmem:[%s734_s10 + $0x6] sm:$0xff]  ;;  %v519_v14 = vld [vmem:[%s734_s10 + $0x16] sm:$0xff] }
  0x11   : > { %568 = vmatprep.subr.mxu1 %v301_v4  ;;  %529 = vmatprep.subr.mxu0 %v301_v4  ;;  %v624_v13 = vpack.i.bf16 %v512_v10, %v518_v11  ;;  %v511_v15 = vld [vmem:[%s734_s10 + $0x1] sm:$0xff]  ;;  %v513_v16 = vld [vmem:[%s734_s10 + $0x11] sm:$0xff]  ;;  %v629_v19 = vpack.i.bf16 %v519_v14, %v517_v12  ;;  %v520_v0 = vld [vmem:[%s850_s2] ss:$0 sm:$0xff] }
  0x12   : > { %584 = vmatpush3.msra.mxu1 %v285_v5  ;;  %530 = vmatpush3.msra.mxu0 %v285_v5  ;;  %v634_v17 = vpack.i.bf16 %v513_v16, %v511_v15  ;;  %v282_v20 = vld [vmem:[%s849_s1 + $0x50] sm:$0xff]  ;;  %v297_v21 = vld [vmem:[%s849_s1 + $0xc8] sm:$0xff]  ;;  %v296_v23 = vld [vmem:[%s849_s1 + $0xc0] sm:$0xff] }
  0x13   : > { %569 = vmatprep.subr.mxu1 %v300_v6  ;;  %531 = vmatprep.subr.mxu0 %v300_v6  ;;  %v281_v22 = vld [vmem:[%s849_s1 + $0x48] sm:$0xff]  ;;  %v280_v24 = vld [vmem:[%s849_s1 + $0x40] sm:$0xff]  ;;  %v295_v25 = vld [vmem:[%s849_s1 + $0xb8] sm:$0xff] }
  0x14   : > { %585 = vmatpush3.msra.mxu1 %v284_v7  ;;  %532 = vmatpush3.msra.mxu0 %v284_v7  ;;  %v279_v26 = vld [vmem:[%s849_s1 + $0x38] sm:$0xff]  ;;  %v294_v27 = vld [vmem:[%s849_s1 + $0xb0] sm:$0xff]  ;;  %v293_v29 = vld [vmem:[%s849_s1 + $0xa8] sm:$0xff] }
  0x15   : > { %625 = vrot.lane.b32.xlu0 %v624_v13, %s663_s23  ;;  %570 = vmatprep.subr.mxu1 %v299_v8  ;;  %v278_v28 = vld [vmem:[%s849_s1 + $0x30] sm:$0xff]  ;;  %v277_v30 = vld [vmem:[%s849_s1 + $0x28] sm:$0xff]  ;;  %v292_v31 = vld [vmem:[%s849_s1 + $0xa0] sm:$0xff] }
  0x16   : > { %635 = vrot.lane.b32.xlu1 %v634_v17, %s663_s23  ;;  %586 = vmatpush3.msra.mxu1 %v283_v9  ;;  %v276_v32 = vld [vmem:[%s849_s1 + $0x20] sm:$0xff]  ;;  %v291_v33 = vld [vmem:[%s849_s1 + $0x98] sm:$0xff]  ;;  %v290_v35 = vld [vmem:[%s849_s1 + $0x90] sm:$0xff] }
  0x17   : > { %571 = vmatprep.subr.mxu1 %v298_v18  ;;  %533 = vmatprep.subr.mxu0 %v299_v8  ;;  %v275_v34 = vld [vmem:[%s849_s1 + $0x18] sm:$0xff]  ;;  %v274_v36 = vld [vmem:[%s849_s1 + $0x10] sm:$0xff]  ;;  %v289_v37 = vld [vmem:[%s849_s1 + $0x88] sm:$0xff] }
  0x18   : > { %587 = vmatpush3.msra.mxu1 %v282_v20  ;;  %534 = vmatpush3.msra.mxu0 %v283_v9  ;;  %v273_v38 = vld [vmem:[%s849_s1 + $0x8] sm:$0xff]  ;;  %v288_v39 = vld [vmem:[%s849_s1 + $0x80] sm:$0xff]  ;;  %v225_v52 = vld [vmem:[%s734_s10 + $0x10] sm:$0xff] }
  0x19   : > { %630 = vrot.lane.b32.xlu0 %v629_v19, %s663_s23  ;;  %572 = vmatprep.subr.mxu1 %v297_v21  ;;  %v272_v40 = vld [vmem:[%s849_s1] sm:$0xff]  ;;  %v515_v42 = vld [vmem:[%s734_s10 + $0xd] sm:$0xff]  ;;  %v516_v55 = vld [vmem:[%s734_s10 + $0x15] sm:$0xff] }
  0x1a   : > { %588 = vmatpush3.msra.mxu1 %v281_v22  ;;  %535 = vmatprep.subr.mxu0 %v298_v18  ;;  %v224_v43 = vld [vmem:[%s734_s10 + $0x8] sm:$0xff]  ;;  %v223_v51 = vld [vmem:[%s734_s10] sm:$0xff] }
  0x1b   : > { %573 = vmatprep.subr.mxu1 %v296_v23  ;;  %536 = vmatpush3.msra.mxu0 %v282_v20  ;;  %v514_v54 = vld [vmem:[%s734_s10 + $0x5] sm:$0xff]  ;;  %v521_v2 = vld [vmem:[%s851_s3] ss:$0 sm:$0xff] }
  0x1c   : > { %589 = vmatpush3.msra.mxu1 %v280_v24  ;;  %537 = vmatprep.subr.mxu0 %v297_v21 }
  0x1d   : > { %574 = vmatprep.subr.mxu1 %v295_v25  ;;  %538 = vmatpush3.msra.mxu0 %v281_v22 }
  0x1e   : > { %590 = vmatpush3.msra.mxu1 %v279_v26  ;;  %539 = vmatprep.subr.mxu0 %v296_v23 }
  0x1f   : > { %575 = vmatprep.subr.mxu1 %v294_v27  ;;  %540 = vmatpush3.msra.mxu0 %v280_v24 }
  0x20   : > { %591 = vmatpush3.msra.mxu1 %v278_v28  ;;  %541 = vmatprep.subr.mxu0 %v295_v25 }
  0x21   : > { %576 = vmatprep.subr.mxu1 %v293_v29  ;;  %542 = vmatpush3.msra.mxu0 %v279_v26 }
  0x22   : > { %592 = vmatpush3.msra.mxu1 %v277_v30  ;;  %543 = vmatprep.subr.mxu0 %v294_v27 }
  0x23   : > { %577 = vmatprep.subr.mxu1 %v292_v31  ;;  %544 = vmatpush3.msra.mxu0 %v278_v28 }
  0x24   : > { %593 = vmatpush3.msra.mxu1 %v276_v32  ;;  %545 = vmatprep.subr.mxu0 %v293_v29 }
  0x25   : > { %578 = vmatprep.subr.mxu1 %v291_v33  ;;  %546 = vmatpush3.msra.mxu0 %v277_v30 }
  0x26   : > { %594 = vmatpush3.msra.mxu1 %v275_v34  ;;  %547 = vmatprep.subr.mxu0 %v292_v31 }
  0x27   : > { %579 = vmatprep.subr.mxu1 %v290_v35  ;;  %548 = vmatpush3.msra.mxu0 %v276_v32 }
  0x28   : > { %595 = vmatpush3.msra.mxu1 %v274_v36  ;;  %549 = vmatprep.subr.mxu0 %v291_v33 }
  0x29   : > { %580 = vmatprep.subr.mxu1 %v289_v37  ;;  %550 = vmatpush3.msra.mxu0 %v275_v34 }
  0x2a   : > { %596 = vmatpush3.msra.mxu1 %v273_v38  ;;  %551 = vmatprep.subr.mxu0 %v290_v35 }
  0x2b   : > { %581 = vmatprep.subr.mxu1 %v288_v39  ;;  %552 = vmatpush3.msra.mxu0 %v274_v36 }
  0x2c   : > { %597 = vmatpush3.msra.mxu1 %v272_v40  ;;  %553 = vmatprep.subr.mxu0 %v289_v37 }
  0x2d   : > { %554 = vmatpush3.msra.mxu0 %v273_v38 }
  0x2e   : > { %555 = vmatprep.subr.mxu0 %v288_v39 }
  0x2f   : > { %556 = vmatpush3.msra.mxu0 %v272_v40 }
  0x87   : > { %v626_v41 = vpop.permute.xlu0 %625 }
  0x88   : > { %v628_v44 = vunpack.i.h.bf16 %v626_v41  ;;  %v627_v45 = vunpack.i.l.bf16 %v626_v41  ;;  %v636_v46 = vpop.permute.xlu1 %635 }
  0x89   : > { %v638_v47 = vunpack.i.h.bf16 %v636_v46  ;;  %v637_v48 = vunpack.i.l.bf16 %v636_v46 }
  0x8a   : > { %v270_v49 = vsel %vm265_vm0, %v515_v42, %v627_v45  ;;  %v267_v50 = vsel %vm265_vm0, %v224_v43, %v628_v44 }
  0x8b   : > { %v631_v53 = vpop.permute.xlu0 %630  ;;  %373 = vmatprep.mubr.f32.mxu1 %v270_v49  ;;  %v266_v58 = vsel %vm265_vm0, %v223_v51, %v637_v48  ;;  %v268_v59 = vsel %vm265_vm0, %v225_v52, %v638_v47 }
  0x8c   : > { %v633_v56 = vunpack.i.h.bf16 %v631_v53  ;;  %v632_v57 = vunpack.i.l.bf16 %v631_v53  ;;  %374 = vmatmul.mubr.f32.vlgmr.msra.gmra.mxu1 %v267_v50 }
  0x8e   : > { %v269_v60 = vsel %vm265_vm0, %v514_v54, %v632_v57  ;;  %v271_v61 = vsel %vm265_vm0, %v516_v55, %v633_v56 }
  0x8f   : > { %368 = vmatprep.mubr.f32.mxu0 %v269_v60  ;;  %378 = vmatprep.mubr.f32.mxu1 %v271_v61 }
  0x90   : > { %369 = vmatmul.mubr.f32.vlgmr.msra.gmra.mxu0 %v266_v58  ;;  %379 = vmatmul.mubr.f32.gmra.mxu1 %v268_v59 }
 0x14c   : > { %v560_v62 = vpop.f32.mrf.mxu1 }
 0x14e   : > { %v561_v63 = vpop.f32.mrf.mxu1 }
 0x14f   : > { %v562_v1 = vadd.f32 %v561_v63, %v560_v62 }
 0x150   : > { %v557_v3 = vpop.f32.mrf.mxu0  ;;  %v563_v4 = vpop.f32.mrf.mxu1 }
 0x151   : > { %v392_v5 = vmul.f32 %v562_v1, %v520_v0 }
 0x152   : > { %v558_v6 = vpop.f32.mrf.mxu0  ;;  %v564_v7 = vpop.f32.mrf.mxu1 }
 0x153   : > { %v402_v8 = vadd.f32 %v521_v2, %v392_v5  ;;  %v559_v9 = vadd.f32 %v558_v6, %v557_v3  ;;  %v565_v10 = vadd.f32 %v564_v7, %v563_v4 }
 0x155   : > { %v405_v11 = vmax.f32 %v402_v8, 0.0  ;;  %v391_v12 = vmul.f32 %v559_v9, %v520_v0  ;;  %v393_v13 = vmul.f32 %v565_v10, %v520_v0 }
 0x157   : > { %409 = vst.msk [vmem:[%s219_s30 + $0x8] sm:$0xff] %vm407_vm1, %v405_v11  ;;  %v401_v14 = vadd.f32 %v521_v2, %v391_v12  ;;  %v403_v15 = vadd.f32 %v521_v2, %v393_v13 }
 0x159   : > { %v404_v16 = vmax.f32 %v401_v14, 0.0  ;;  %v406_v17 = vmax.f32 %v403_v15, 0.0 }
 0x15b   : > { %408 = vst.msk [vmem:[%s219_s30] sm:$0xff] %vm407_vm1, %v404_v16  ;;  %410 = vst.msk [vmem:[%s219_s30 + $0x10] sm:$0xff] %vm407_vm1, %v406_v17 }
 0x15c PF: > { %s14_s17 = sadd.s32 1, %s661_s17   ;;  %s853_s15 = smov %s657_s16 }
 0x15d   : > { %p11_p5 = scmp.ge.s32.totalorder %s14_s17, 4   ;;  %s854_s16 = smov %s856_s18 }
 0x15f   :  { %13 = sbr.rel (!%p11_p5) target bundleno = 2 (0x2), region = 70 }

// kernel: resunet_encoder.16
= control target key start
LH: loop header
LB: loop body
LE: loop exit
PB: predicated region body
PF: predicated region fallthrough
CT: control target
= control target key end

     0   :  { %s686_s15 = smov 0   ;;  %s688_s16 = smov 0   ;;  %s845_s0 = inlined_call_operand.vmem [shape: f32[2,32,64], index: 0, kind: input, shape index: {}]   ;;  %s846_s1 = inlined_call_operand.vmem [shape: f32[256,32], index: 1, kind: input, shape index: {}]   ;;  %s847_s2 = inlined_call_operand.vmem [shape: f32[1,32], index: 2, kind: input, shape index: {}]   ;;  %s848_s3 = inlined_call_operand.vmem [shape: f32[1,32], index: 3, kind: input, shape index: {}]   ;;  %s849_s4 = inlined_call_operand.vmem [shape: f32[2,24,32], index: 4, kind: output, shape index: {}]  }
   0x1   :  { %s690_s17 = smov 0  }
   0x2 LB: > { %s26_s18 = sadd.s32 1, %s654_s16  ;;  %p504_p0 = scmp.ge.s32.totalorder %s658_s17, 1  ;;  %s658_s17 = sphi %s690_s17, %s14_s17   ;;  %s654_s16 = sphi %s688_s16, %s851_s16   ;;  %s650_s15 = sphi %s686_s15, %s850_s15  }
   0x3   : > { %p28_p1 = scmp.ge.s32.totalorder %s26_s18, 2  ;;  %p176_p2 = scmp.lt.s32.totalorder %s658_s17, 3 }
   0x5   : > { %s853_s18 = smov (%p28_p1, %s26_s18), 0  ;;  %p177_p3 = pnand %p504_p0, %p176_p2 }
   0x6   : > { %p206_p4 = scmp.lt.s32.totalorder (!%p177_p3), %s650_s15, 1  ;;  %s660_s23 = smov (!%p177_p3), 64  }
   0x7   : > { %180 = sbr.rel (%p177_p3) target bundleno = 346 (0x15a), region = 36 }
   0xc   : > { %v303_v0 = vld [vmem:[%s846_s1 + $0xf8] sm:$0xff]  ;;  %v302_v2 = vld [vmem:[%s846_s1 + $0xf0] sm:$0xff]  ;;  %s855_s15 = smov (!%p206_p4, %s650_s15), 1  ;;  %v301_v4 = vld [vmem:[%s846_s1 + $0xe8] sm:$0xff]  ;;  %vm265_vm0 = vcmask 523264   ;;  %vm404_vm1 = vcmask 261120  }
   0xd   : > { %v287_v1 = vld [vmem:[%s846_s1 + $0x78] sm:$0xff]  ;;  %563 = vmatprep.subr.mxu1 %v303_v0  ;;  %v286_v3 = vld [vmem:[%s846_s1 + $0x70] sm:$0xff]  ;;  %522 = vmatprep.subr.mxu0 %v303_v0  ;;  %v285_v5 = vld [vmem:[%s846_s1 + $0x68] sm:$0xff]  ;;  %s521_s5 = sshll.u32 %s855_s15, 5  ;;  %s595_s24 = smul.u32 24, %s855_s15 }
   0xe   : > { %579 = vmatpush3.msra.mxu1 %v287_v1  ;;  %523 = vmatpush3.msra.mxu0 %v287_v1  ;;  %v300_v6 = vld [vmem:[%s846_s1 + $0xe0] sm:$0xff]  ;;  %s731_s10 = scalar_lea.vmem %s845_s0, %s521_s5  ;;  %v299_v8 = vld [vmem:[%s846_s1 + $0xd8] sm:$0xff]  ;;  %v298_v18 = vld [vmem:[%s846_s1 + $0xd0] sm:$0xff] }
   0xf   : > { %564 = vmatprep.subr.mxu1 %v302_v2  ;;  %524 = vmatprep.subr.mxu0 %v302_v2  ;;  %v284_v7 = vld [vmem:[%s846_s1 + $0x60] sm:$0xff]  ;;  %v283_v9 = vld [vmem:[%s846_s1 + $0x58] sm:$0xff]  ;;  %v509_v10 = vld [vmem:[%s731_s10 + $0x9] sm:$0xff]  ;;  %s219_s30 = scalar_lea.vmem %s849_s4, %s595_s24 }
  0x10   : > { %580 = vmatpush3.msra.mxu1 %v286_v3  ;;  %525 = vmatpush3.msra.mxu0 %v286_v3  ;;  %v515_v11 = vld [vmem:[%s731_s10 + $0xf] sm:$0xff]  ;;  %v514_v12 = vld [vmem:[%s731_s10 + $0x7] sm:$0xff]  ;;  %v516_v14 = vld [vmem:[%s731_s10 + $0x17] sm:$0xff] }
  0x11   : > { %565 = vmatprep.subr.mxu1 %v301_v4  ;;  %526 = vmatprep.subr.mxu0 %v301_v4  ;;  %v621_v13 = vpack.i.bf16 %v509_v10, %v515_v11  ;;  %v508_v15 = vld [vmem:[%s731_s10 + $0x1] sm:$0xff]  ;;  %v510_v16 = vld [vmem:[%s731_s10 + $0x11] sm:$0xff]  ;;  %v626_v19 = vpack.i.bf16 %v516_v14, %v514_v12  ;;  %v517_v0 = vld [vmem:[%s847_s2] ss:$0 sm:$0xff] }
  0x12   : > { %581 = vmatpush3.msra.mxu1 %v285_v5  ;;  %527 = vmatpush3.msra.mxu0 %v285_v5  ;;  %v631_v17 = vpack.i.bf16 %v510_v16, %v508_v15  ;;  %v282_v20 = vld [vmem:[%s846_s1 + $0x50] sm:$0xff]  ;;  %v297_v21 = vld [vmem:[%s846_s1 + $0xc8] sm:$0xff]  ;;  %v296_v23 = vld [vmem:[%s846_s1 + $0xc0] sm:$0xff] }
  0x13   : > { %566 = vmatprep.subr.mxu1 %v300_v6  ;;  %528 = vmatprep.subr.mxu0 %v300_v6  ;;  %v281_v22 = vld [vmem:[%s846_s1 + $0x48] sm:$0xff]  ;;  %v280_v24 = vld [vmem:[%s846_s1 + $0x40] sm:$0xff]  ;;  %v295_v25 = vld [vmem:[%s846_s1 + $0xb8] sm:$0xff] }
  0x14   : > { %582 = vmatpush3.msra.mxu1 %v284_v7  ;;  %529 = vmatpush3.msra.mxu0 %v284_v7  ;;  %v279_v26 = vld [vmem:[%s846_s1 + $0x38] sm:$0xff]  ;;  %v294_v27 = vld [vmem:[%s846_s1 + $0xb0] sm:$0xff]  ;;  %v293_v29 = vld [vmem:[%s846_s1 + $0xa8] sm:$0xff] }
  0x15   : > { %622 = vrot.lane.b32.xlu0 %v621_v13, %s660_s23  ;;  %567 = vmatprep.subr.mxu1 %v299_v8  ;;  %v278_v28 = vld [vmem:[%s846_s1 + $0x30] sm:$0xff]  ;;  %v277_v30 = vld [vmem:[%s846_s1 + $0x28] sm:$0xff]  ;;  %v292_v31 = vld [vmem:[%s846_s1 + $0xa0] sm:$0xff] }
  0x16   : > { %632 = vrot.lane.b32.xlu1 %v631_v17, %s660_s23  ;;  %583 = vmatpush3.msra.mxu1 %v283_v9  ;;  %v276_v32 = vld [vmem:[%s846_s1 + $0x20] sm:$0xff]  ;;  %v291_v33 = vld [vmem:[%s846_s1 + $0x98] sm:$0xff]  ;;  %v290_v35 = vld [vmem:[%s846_s1 + $0x90] sm:$0xff] }
  0x17   : > { %568 = vmatprep.subr.mxu1 %v298_v18  ;;  %530 = vmatprep.subr.mxu0 %v299_v8  ;;  %v275_v34 = vld [vmem:[%s846_s1 + $0x18] sm:$0xff]  ;;  %v274_v36 = vld [vmem:[%s846_s1 + $0x10] sm:$0xff]  ;;  %v289_v37 = vld [vmem:[%s846_s1 + $0x88] sm:$0xff] }
  0x18   : > { %584 = vmatpush3.msra.mxu1 %v282_v20  ;;  %531 = vmatpush3.msra.mxu0 %v283_v9  ;;  %v273_v38 = vld [vmem:[%s846_s1 + $0x8] sm:$0xff]  ;;  %v288_v39 = vld [vmem:[%s846_s1 + $0x80] sm:$0xff]  ;;  %v225_v52 = vld [vmem:[%s731_s10 + $0x10] sm:$0xff] }
  0x19   : > { %627 = vrot.lane.b32.xlu0 %v626_v19, %s660_s23  ;;  %569 = vmatprep.subr.mxu1 %v297_v21  ;;  %v272_v40 = vld [vmem:[%s846_s1] sm:$0xff]  ;;  %v512_v42 = vld [vmem:[%s731_s10 + $0xe] sm:$0xff]  ;;  %v513_v55 = vld [vmem:[%s731_s10 + $0x16] sm:$0xff] }
  0x1a   : > { %585 = vmatpush3.msra.mxu1 %v281_v22  ;;  %532 = vmatprep.subr.mxu0 %v298_v18  ;;  %v224_v43 = vld [vmem:[%s731_s10 + $0x8] sm:$0xff]  ;;  %v223_v51 = vld [vmem:[%s731_s10] sm:$0xff] }
  0x1b   : > { %570 = vmatprep.subr.mxu1 %v296_v23  ;;  %533 = vmatpush3.msra.mxu0 %v282_v20  ;;  %v511_v54 = vld [vmem:[%s731_s10 + $0x6] sm:$0xff]  ;;  %v518_v2 = vld [vmem:[%s848_s3] ss:$0 sm:$0xff] }
  0x1c   : > { %586 = vmatpush3.msra.mxu1 %v280_v24  ;;  %534 = vmatprep.subr.mxu0 %v297_v21 }
  0x1d   : > { %571 = vmatprep.subr.mxu1 %v295_v25  ;;  %535 = vmatpush3.msra.mxu0 %v281_v22 }
  0x1e   : > { %587 = vmatpush3.msra.mxu1 %v279_v26  ;;  %536 = vmatprep.subr.mxu0 %v296_v23 }
  0x1f   : > { %572 = vmatprep.subr.mxu1 %v294_v27  ;;  %537 = vmatpush3.msra.mxu0 %v280_v24 }
  0x20   : > { %588 = vmatpush3.msra.mxu1 %v278_v28  ;;  %538 = vmatprep.subr.mxu0 %v295_v25 }
  0x21   : > { %573 = vmatprep.subr.mxu1 %v293_v29  ;;  %539 = vmatpush3.msra.mxu0 %v279_v26 }
  0x22   : > { %589 = vmatpush3.msra.mxu1 %v277_v30  ;;  %540 = vmatprep.subr.mxu0 %v294_v27 }
  0x23   : > { %574 = vmatprep.subr.mxu1 %v292_v31  ;;  %541 = vmatpush3.msra.mxu0 %v278_v28 }
  0x24   : > { %590 = vmatpush3.msra.mxu1 %v276_v32  ;;  %542 = vmatprep.subr.mxu0 %v293_v29 }
  0x25   : > { %575 = vmatprep.subr.mxu1 %v291_v33  ;;  %543 = vmatpush3.msra.mxu0 %v277_v30 }
  0x26   : > { %591 = vmatpush3.msra.mxu1 %v275_v34  ;;  %544 = vmatprep.subr.mxu0 %v292_v31 }
  0x27   : > { %576 = vmatprep.subr.mxu1 %v290_v35  ;;  %545 = vmatpush3.msra.mxu0 %v276_v32 }
  0x28   : > { %592 = vmatpush3.msra.mxu1 %v274_v36  ;;  %546 = vmatprep.subr.mxu0 %v291_v33 }
  0x29   : > { %577 = vmatprep.subr.mxu1 %v289_v37  ;;  %547 = vmatpush3.msra.mxu0 %v275_v34 }
  0x2a   : > { %593 = vmatpush3.msra.mxu1 %v273_v38  ;;  %548 = vmatprep.subr.mxu0 %v290_v35 }
  0x2b   : > { %578 = vmatprep.subr.mxu1 %v288_v39  ;;  %549 = vmatpush3.msra.mxu0 %v274_v36 }
  0x2c   : > { %594 = vmatpush3.msra.mxu1 %v272_v40  ;;  %550 = vmatprep.subr.mxu0 %v289_v37 }
  0x2d   : > { %551 = vmatpush3.msra.mxu0 %v273_v38 }
  0x2e   : > { %552 = vmatprep.subr.mxu0 %v288_v39 }
  0x2f   : > { %553 = vmatpush3.msra.mxu0 %v272_v40 }
  0x87   : > { %v623_v41 = vpop.permute.xlu0 %622 }
  0x88   : > { %v625_v44 = vunpack.i.h.bf16 %v623_v41  ;;  %v624_v45 = vunpack.i.l.bf16 %v623_v41  ;;  %v633_v46 = vpop.permute.xlu1 %632 }
  0x89   : > { %v635_v47 = vunpack.i.h.bf16 %v633_v46  ;;  %v634_v48 = vunpack.i.l.bf16 %v633_v46 }
  0x8a   : > { %v270_v49 = vsel %vm265_vm0, %v512_v42, %v624_v45  ;;  %v267_v50 = vsel %vm265_vm0, %v224_v43, %v625_v44 }
  0x8b   : > { %v628_v53 = vpop.permute.xlu0 %627  ;;  %373 = vmatprep.mubr.f32.mxu1 %v270_v49  ;;  %v266_v58 = vsel %vm265_vm0, %v223_v51, %v634_v48  ;;  %v268_v59 = vsel %vm265_vm0, %v225_v52, %v635_v47 }
  0x8c   : > { %v630_v56 = vunpack.i.h.bf16 %v628_v53  ;;  %v629_v57 = vunpack.i.l.bf16 %v628_v53  ;;  %374 = vmatmul.mubr.f32.vlgmr.msra.gmra.mxu1 %v267_v50 }
  0x8e   : > { %v269_v60 = vsel %vm265_vm0, %v511_v54, %v629_v57  ;;  %v271_v61 = vsel %vm265_vm0, %v513_v55, %v630_v56 }
  0x8f   : > { %368 = vmatprep.mubr.f32.mxu0 %v269_v60  ;;  %378 = vmatprep.mubr.f32.mxu1 %v271_v61 }
  0x90   : > { %369 = vmatmul.mubr.f32.vlgmr.msra.gmra.mxu0 %v266_v58  ;;  %379 = vmatmul.mubr.f32.gmra.mxu1 %v268_v59 }
 0x14c   : > { %v557_v62 = vpop.f32.mrf.mxu1 }
 0x14e   : > { %v558_v63 = vpop.f32.mrf.mxu1 }
 0x14f   : > { %v559_v1 = vadd.f32 %v558_v63, %v557_v62 }
 0x150   : > { %v554_v3 = vpop.f32.mrf.mxu0  ;;  %v560_v4 = vpop.f32.mrf.mxu1 }
 0x151   : > { %v392_v5 = vmul.f32 %v559_v1, %v517_v0 }
 0x152   : > { %v555_v6 = vpop.f32.mrf.mxu0  ;;  %v561_v7 = vpop.f32.mrf.mxu1 }
 0x153   : > { %v402_v8 = vadd.f32 %v518_v2, %v392_v5  ;;  %v556_v9 = vadd.f32 %v555_v6, %v554_v3  ;;  %v562_v10 = vadd.f32 %v561_v7, %v560_v4 }
 0x155   : > { %406 = vst.msk [vmem:[%s219_s30 + $0x8] sm:$0xff] %vm404_vm1, %v402_v8  ;;  %v391_v11 = vmul.f32 %v556_v9, %v517_v0  ;;  %v393_v12 = vmul.f32 %v562_v10, %v517_v0 }
 0x157   : > { %v401_v13 = vadd.f32 %v518_v2, %v391_v11  ;;  %v403_v14 = vadd.f32 %v518_v2, %v393_v12 }
 0x159   : > { %405 = vst.msk [vmem:[%s219_s30] sm:$0xff] %vm404_vm1, %v401_v13  ;;  %407 = vst.msk [vmem:[%s219_s30 + $0x10] sm:$0xff] %vm404_vm1, %v403_v14 }
 0x15a PF: > { %s14_s17 = sadd.s32 1, %s658_s17   ;;  %s850_s15 = smov %s654_s16 }
 0x15b   : > { %p11_p5 = scmp.ge.s32.totalorder %s14_s17, 4   ;;  %s851_s16 = smov %s853_s18 }
 0x15d   :  { %13 = sbr.rel (!%p11_p5) target bundleno = 2 (0x2), region = 70 }

// kernel: resunet_encoder.19
= control target key start
LH: loop header
LB: loop body
LE: loop exit
PB: predicated region body
PF: predicated region fallthrough
CT: control target
= control target key end

     0   :  { %s1020_s18 = smov 0   ;;  %s1022_s19 = smov 0   ;;  %s1254_s0 = inlined_call_operand.vmem [shape: f32[2,40,32], index: 0, kind: input, shape index: {}]   ;;  %s1255_s1 = inlined_call_operand.vmem [shape: f32[288,32], index: 1, kind: input, shape index: {}]   ;;  %s1256_s2 = inlined_call_operand.vmem [shape: f32[1,32], index: 2, kind: input, shape index: {}]   ;;  %s1257_s3 = inlined_call_operand.vmem [shape: f32[1,32], index: 3, kind: input, shape index: {}]   ;;  %s1258_s4 = inlined_call_operand.vmem [shape: f32[2,24,32], index: 4, kind: input, shape index: {}]   ;;  %s1259_s5 = inlined_call_operand.vmem [shape: f32[2,24,32], index: 5, kind: output, shape index: {}]  }
   0x1   :  { %s1024_s20 = smov 0  }
   0x2 LB: > { %s27_s21 = sadd.s32 1, %s979_s19  ;;  %p785_p0 = scmp.ge.s32.totalorder %s983_s20, 1  ;;  %s983_s20 = sphi %s1024_s20, %s15_s20   ;;  %s979_s19 = sphi %s1022_s19, %s1261_s19   ;;  %s975_s18 = sphi %s1020_s18, %s1260_s18  }
   0x3   : > { %p29_p1 = scmp.ge.s32.totalorder %s27_s21, 2  ;;  %p218_p2 = scmp.lt.s32.totalorder %s983_s20, 3 }
   0x5   : > { %s1263_s21 = smov (%p29_p1, %s27_s21), 0  ;;  %p219_p3 = pnand %p785_p0, %p218_p2 }
   0x6   : > { %p259_p4 = scmp.lt.s32.totalorder (!%p219_p3), %s975_s18, 1  ;;  %s987_s29 = smov (!%p219_p3), 32  }
   0x7   : > { %222 = sbr.rel (%p219_p3) target bundleno = 361 (0x169), region = 40  ;;  %s988_s7 = smov (!%p219_p3), 96  }
   0x8   : > { %s989_s14 = smov (!%p219_p3), 64  }
   0xc   : > { %v453_v0 = vld [vmem:[%s1255_s1 + $0xf8] sm:$0xff]  ;;  %v452_v2 = vld [vmem:[%s1255_s1 + $0xf0] sm:$0xff]  ;;  %s1265_s18 = smov (!%p259_p4, %s975_s18), 1  ;;  %v451_v4 = vld [vmem:[%s1255_s1 + $0xe8] sm:$0xff]  ;;  %v985_v5 = vmov 0.0   ;;  %vm986_vm0 = vmmov 0  }
   0xd   : > { %v437_v1 = vld [vmem:[%s1255_s1 + $0x78] sm:$0xff]  ;;  %820 = vmatprep.subr.mxu0 %v453_v0  ;;  %v436_v3 = vld [vmem:[%s1255_s1 + $0x70] sm:$0xff]  ;;  %868 = vmatprep.subr.mxu1 %v985_v5  ;;  %v435_v6 = vld [vmem:[%s1255_s1 + $0x68] sm:$0xff]  ;;  %s885_s9 = smul.u32 40, %s1265_s18  ;;  %vm401_vm1 = vcmask 261120   ;;  %vm405_vm2 = vcmask 523264  }
   0xe   : > { %821 = vmatpush3.msra.mxu0 %v437_v1  ;;  %v450_v7 = vld [vmem:[%s1255_s1 + $0xe0] sm:$0xff]  ;;  %v449_v9 = vld [vmem:[%s1255_s1 + $0xd8] sm:$0xff]  ;;  %v448_v11 = vld [vmem:[%s1255_s1 + $0xd0] sm:$0xff]  ;;  %876 = vmatprep.mubr.msk.f32.mxu1 %vm986_vm0, %v985_v5  ;;  %vm409_vm3 = vcmask 785408  }
   0xf   : > { %822 = vmatprep.subr.mxu0 %v452_v2  ;;  %v434_v8 = vld [vmem:[%s1255_s1 + $0x60] sm:$0xff]  ;;  %s1069_s16 = scalar_lea.vmem %s1254_s0, %s885_s9  ;;  %v433_v10 = vld [vmem:[%s1255_s1 + $0x58] sm:$0xff]  ;;  %v432_v22 = vld [vmem:[%s1255_s1 + $0x50] sm:$0xff] }
  0x10   : > { %823 = vmatpush3.msra.mxu0 %v436_v3  ;;  %v789_v12 = vld [vmem:[%s1069_s16 + $0x1] sm:$0xff]  ;;  %v807_v16 = vld [vmem:[%s1069_s16 + $0xd] sm:$0xff]  ;;  %v808_v30 = vld [vmem:[%s1069_s16 + $0x15] sm:$0xff] }
  0x11   : > { %824 = vmatprep.subr.mxu0 %v451_v4  ;;  %v1082_v13 = vld [vmem:[%s1069_s16 + $0x8] sm:$0xff]  ;;  %v1091_v21 = vld [vmem:[%s1069_s16 + $0x10] sm:$0xff]  ;;  %v446_v31 = vld [vmem:[%s1255_s1 + $0xc0] sm:$0xff] }
  0x12   : > { %825 = vmatpush3.msra.mxu0 %v435_v6  ;;  %v795_v14 = vld [vmem:[%s1069_s16 + $0x6] sm:$0xff]  ;;  %v916_v15 = vpack.i.bf16 %v789_v12, %v1082_v13  ;;  %v805_v27 = vld [vmem:[%s1069_s16 + $0x14] sm:$0xff]  ;;  %v806_v41 = vld [vmem:[%s1069_s16 + $0x1c] sm:$0xff] }
  0x13   : > { %826 = vmatprep.subr.mxu0 %v450_v7  ;;  %v792_v17 = vld [vmem:[%s1069_s16 + $0x2] sm:$0xff]  ;;  %v804_v18 = vld [vmem:[%s1069_s16 + $0xc] sm:$0xff]  ;;  %v926_v19 = vpack.i.bf16 %v795_v14, %v807_v16  ;;  %v445_v34 = vld [vmem:[%s1255_s1 + $0xb8] sm:$0xff] }
  0x14   : > { %827 = vmatpush3.msra.mxu0 %v434_v8  ;;  %v790_v20 = vld [vmem:[%s1069_s16 + $0x9] sm:$0xff]  ;;  %917 = vrot.lane.b32.xlu0 %v916_v15, %s987_s29  ;;  %v921_v23 = vpack.i.bf16 %v792_v17, %v804_v18  ;;  %v430_v32 = vld [vmem:[%s1255_s1 + $0x40] sm:$0xff]  ;;  %v429_v35 = vld [vmem:[%s1255_s1 + $0x38] sm:$0xff] }
  0x15   : > { %828 = vmatprep.subr.mxu0 %v449_v9  ;;  %v447_v24 = vld [vmem:[%s1255_s1 + $0xc8] sm:$0xff]  ;;  %927 = vrot.lane.b32.xlu1 %v926_v19, %s988_s7  ;;  %v931_v25 = vpack.i.bf16 %v790_v20, %v1091_v21  ;;  %v791_v37 = vld [vmem:[%s1069_s16 + $0x11] sm:$0xff]  ;;  %v809_v49 = vld [vmem:[%s1069_s16 + $0x1d] sm:$0xff] }
  0x16   : > { %829 = vmatpush3.msra.mxu0 %v433_v10  ;;  %v793_v26 = vld [vmem:[%s1069_s16 + $0xa] sm:$0xff]  ;;  %v803_v38 = vld [vmem:[%s1069_s16 + $0x18] sm:$0xff]  ;;  %v442_v51 = vld [vmem:[%s1255_s1 + $0xa0] sm:$0xff] }
  0x17   : > { %830 = vmatprep.subr.mxu0 %v448_v11  ;;  %v431_v28 = vld [vmem:[%s1255_s1 + $0x48] sm:$0xff]  ;;  %v936_v33 = vpack.i.bf16 %v793_v26, %v805_v27  ;;  %v444_v39 = vld [vmem:[%s1255_s1 + $0xb0] sm:$0xff]  ;;  %v457_v42 = vld [vmem:[%s1255_s1 + $0x118] sm:$0xff]  ;;  %v946_v44 = vpack.i.bf16 %v791_v37, %v803_v38 }
  0x18   : > { %v1110_v29 = vld [vmem:[%s1069_s16 + $0xe] sm:$0xff]  ;;  %831 = vmatpush3.msra.mxu0 %v432_v22  ;;  %922 = vrot.lane.b32.xlu0 %v921_v23, %s989_s14  ;;  %v797_v48 = vld [vmem:[%s1069_s16 + $0x16] sm:$0xff]  ;;  %v426_v52 = vld [vmem:[%s1255_s1 + $0x20] sm:$0xff] }
  0x19   : > { %832 = vmatprep.subr.mxu0 %v447_v24  ;;  %932 = vrot.lane.b32.xlu1 %v931_v25, %s987_s29  ;;  %v941_v36 = vpack.i.bf16 %v1110_v29, %v808_v30  ;;  %v794_v40 = vld [vmem:[%s1069_s16 + $0x12] sm:$0xff]  ;;  %v443_v45 = vld [vmem:[%s1255_s1 + $0xa8] sm:$0xff]  ;;  %v956_v53 = vpack.i.bf16 %v797_v48, %v809_v49  ;;  %v454_v59 = vld [vmem:[%s1255_s1 + $0x100] sm:$0xff] }
  0x1a   : > { %833 = vmatpush3.msra.mxu0 %v431_v28  ;;  %v428_v43 = vld [vmem:[%s1255_s1 + $0x30] sm:$0xff]  ;;  %869 = vmatpush3.msra.mxu1 %v457_v42  ;;  %v951_v47 = vpack.i.bf16 %v794_v40, %v806_v41  ;;  %v427_v50 = vld [vmem:[%s1255_s1 + $0x28] sm:$0xff]  ;;  %v441_v54 = vld [vmem:[%s1255_s1 + $0x98] sm:$0xff] }
  0x1b   : > { %834 = vmatprep.subr.mxu0 %v446_v31  ;;  %v456_v46 = vld [vmem:[%s1255_s1 + $0x110] sm:$0xff]  ;;  %870 = vmatprep.subr.mxu1 %v985_v5  ;;  %v455_v55 = vld [vmem:[%s1255_s1 + $0x108] sm:$0xff]  ;;  %v425_v56 = vld [vmem:[%s1255_s1 + $0x18] sm:$0xff] }
  0x1c   : > { %835 = vmatpush3.msra.mxu0 %v430_v32  ;;  %937 = vrot.lane.b32.xlu0 %v936_v33, %s989_s14  ;;  %v440_v57 = vld [vmem:[%s1255_s1 + $0x90] sm:$0xff]  ;;  %v439_v60 = vld [vmem:[%s1255_s1 + $0x88] sm:$0xff]  ;;  %v438_v62 = vld [vmem:[%s1255_s1 + $0x80] sm:$0xff] }
  0x1d   : > { %836 = vmatprep.subr.mxu0 %v445_v34  ;;  %942 = vrot.lane.b32.xlu1 %v941_v36, %s988_s7  ;;  %v424_v58 = vld [vmem:[%s1255_s1 + $0x10] sm:$0xff]  ;;  %v423_v61 = vld [vmem:[%s1255_s1 + $0x8] sm:$0xff]  ;;  %v422_v63 = vld [vmem:[%s1255_s1] sm:$0xff] }
  0x1e   : > { %837 = vmatpush3.msra.mxu0 %v429_v35  ;;  %871 = vmatpush3.msra.mxu1 %v456_v46  ;;  %v812_v0 = vld [vmem:[%s1069_s16 + $0x1e] sm:$0xff]  ;;  %v798_v6 = vld [vmem:[%s1069_s16 + $0x7] sm:$0xff]  ;;  %v799_v15 = vld [vmem:[%s1069_s16 + $0xf] sm:$0xff] }
  0x1f   : > { %838 = vmatprep.subr.mxu0 %v444_v39  ;;  %872 = vmatprep.subr.mxu1 %v985_v5  ;;  %v286_v7 = vld [vmem:[%s1069_s16] sm:$0xff]  ;;  %v800_v37 = vld [vmem:[%s1069_s16 + $0x17] sm:$0xff]  ;;  %s886_s16 = smul.u32 24, %s1265_s18 }
  0x20   : > { %839 = vmatpush3.msra.mxu0 %v428_v43  ;;  %947 = vrot.lane.b32.xlu0 %v946_v44, %s987_s29 }
  0x21   : > { %840 = vmatprep.subr.mxu0 %v443_v45  ;;  %952 = vrot.lane.b32.xlu1 %v951_v47, %s989_s14  ;;  %s272_s27 = scalar_lea.vmem %s1258_s4, %s886_s16  ;;  %s282_s6 = scalar_lea.vmem %s1259_s5, %s886_s16 }
  0x22   : > { %841 = vmatpush3.msra.mxu0 %v427_v50  ;;  %873 = vmatpush3.msra.mxu1 %v455_v55 }
  0x23   : > { %842 = vmatprep.subr.mxu0 %v442_v51  ;;  %874 = vmatprep.subr.mxu1 %v985_v5 }
  0x24   : > { %843 = vmatpush3.msra.mxu0 %v426_v52  ;;  %957 = vrot.lane.b32.xlu0 %v956_v53, %s988_s7 }
  0x25   : > { %844 = vmatprep.subr.mxu0 %v441_v54  ;;  %875 = vmatpush3.msra.mxu1 %v454_v59 }
  0x26   : > { %845 = vmatpush3.msra.mxu0 %v425_v56  ;;  %877 = vmatmul.mubr.msk.f32.vlgmr.msra.gmra.mxu1 %vm401_vm1, %v1110_v29 }
  0x27   : > { %846 = vmatprep.subr.mxu0 %v440_v57  ;;  %879 = vmatprep.mubr.msk.f32.mxu1 %vm986_vm0, %v985_v5 }
  0x28   : > { %847 = vmatpush3.msra.mxu0 %v424_v58 }
  0x29   : > { %848 = vmatprep.subr.mxu0 %v439_v60  ;;  %v816_v60 = vld [vmem:[%s1256_s2] ss:$0 sm:$0xff] }
  0x2a   : > { %849 = vmatpush3.msra.mxu0 %v423_v61  ;;  %880 = vmatmul.mubr.msk.f32.gmra.mxu1 %vm401_vm1, %v797_v48 }
  0x2b   : > { %850 = vmatprep.subr.mxu0 %v438_v62  ;;  %882 = vmatprep.mubr.msk.f32.mxu1 %vm986_vm0, %v985_v5  ;;  %v817_v62 = vld [vmem:[%s1257_s3] ss:$0 sm:$0xff] }
  0x2c   : > { %851 = vmatpush3.msra.mxu0 %v422_v63 }
  0x2e   : > { %883 = vmatmul.mubr.msk.f32.gmra.mxu1 %vm401_vm1, %v812_v0 }
  0x86   : > { %v918_v1 = vpop.permute.xlu0 %917 }
  0x87   : > { %v928_v2 = vpop.permute.xlu1 %927  ;;  %v920_v3 = vunpack.i.h.bf16 %v918_v1  ;;  %v919_v4 = vunpack.i.l.bf16 %v918_v1 }
  0x88   : > { %v930_v9 = vunpack.i.h.bf16 %v928_v2  ;;  %v929_v10 = vunpack.i.l.bf16 %v928_v2  ;;  %v647_v2 = vld [vmem:[%s272_s27] sm:$0xff] }
  0x89   : > { %v413_v17 = vsel %vm401_vm1, %v798_v6, %v919_v4  ;;  %v402_v18 = vsel %vm401_vm1, %v286_v7, %v920_v3 }
  0x8a   : > { %v923_v8 = vpop.permute.xlu0 %922 }
  0x8b   : > { %v925_v11 = vunpack.i.h.bf16 %v923_v8  ;;  %v924_v12 = vunpack.i.l.bf16 %v923_v8  ;;  %v933_v14 = vpop.permute.xlu1 %932 }
  0x8c   : > { %v935_v5 = vunpack.i.h.bf16 %v933_v14  ;;  %v934_v16 = vunpack.i.l.bf16 %v933_v14 }
  0x8d   : > { %v416_v19 = vsel %vm405_vm2, %v413_v17, %v924_v12  ;;  %v406_v20 = vsel %vm405_vm2, %v402_v18, %v925_v11 }
  0x8e   : > { %v938_v22 = vpop.permute.xlu0 %937  ;;  %v419_v23 = vsel %vm409_vm3, %v416_v19, %v929_v10  ;;  %v410_v24 = vsel %vm409_vm3, %v406_v20, %v930_v9  ;;  %v414_v25 = vsel %vm401_vm1, %v799_v15, %v934_v16  ;;  %v403_v26 = vsel %vm401_vm1, %v1082_v13, %v935_v5  ;;  %v648_v9 = vld [vmem:[%s272_s27 + $0x8] sm:$0xff]  ;;  %v649_v16 = vld [vmem:[%s272_s27 + $0x10] sm:$0xff] }
  0x8f   : > { %v940_v27 = vunpack.i.h.bf16 %v938_v22  ;;  %v939_v28 = vunpack.i.l.bf16 %v938_v22  ;;  %v943_v29 = vpop.permute.xlu1 %942  ;;  %531 = vmatprep.mubr.f32.mxu0 %v419_v23 }
  0x90   : > { %v945_v30 = vunpack.i.h.bf16 %v943_v29  ;;  %v944_v31 = vunpack.i.l.bf16 %v943_v29  ;;  %532 = vmatmul.mubr.f32.vlgmr.msra.gmra.mxu0 %v410_v24 }
  0x91   : > { %v417_v32 = vsel %vm405_vm2, %v414_v25, %v939_v28  ;;  %v407_v33 = vsel %vm405_vm2, %v403_v26, %v940_v27 }
  0x92   : > { %v948_v34 = vpop.permute.xlu0 %947  ;;  %v420_v35 = vsel %vm409_vm3, %v417_v32, %v944_v31  ;;  %v411_v36 = vsel %vm409_vm3, %v407_v33, %v945_v30 }
  0x93   : > { %v950_v38 = vunpack.i.h.bf16 %v948_v34  ;;  %v949_v39 = vunpack.i.l.bf16 %v948_v34  ;;  %v953_v13 = vpop.permute.xlu1 %952  ;;  %536 = vmatprep.mubr.f32.mxu0 %v420_v35 }
  0x94   : > { %v955_v40 = vunpack.i.h.bf16 %v953_v13  ;;  %v954_v41 = vunpack.i.l.bf16 %v953_v13  ;;  %537 = vmatmul.mubr.f32.gmra.mxu0 %v411_v36 }
  0x95   : > { %v415_v42 = vsel %vm401_vm1, %v800_v37, %v949_v39  ;;  %v404_v43 = vsel %vm401_vm1, %v1091_v21, %v950_v38 }
  0x96   : > { %v958_v44 = vpop.permute.xlu0 %957  ;;  %v418_v47 = vsel %vm405_vm2, %v415_v42, %v954_v41  ;;  %v408_v48 = vsel %vm405_vm2, %v404_v43, %v955_v40 }
  0x97   : > { %v960_v45 = vunpack.i.h.bf16 %v958_v44  ;;  %v959_v46 = vunpack.i.l.bf16 %v958_v44 }
  0x99   : > { %v421_v49 = vsel %vm409_vm3, %v418_v47, %v959_v46  ;;  %v412_v50 = vsel %vm409_vm3, %v408_v48, %v960_v45 }
  0x9a   : > { %541 = vmatprep.mubr.f32.mxu0 %v421_v49 }
  0x9b   : > { %542 = vmatmul.mubr.f32.gmra.mxu0 %v412_v50 }
  0xe6   : > { %v613_v51 = vpop.f32.mrf.mxu1 }
  0xe8   : > { %v878_v52 = vpop.f32.mrf.mxu1 }
  0xea   : > { %v618_v53 = vpop.f32.mrf.mxu1 }
  0xec   : > { %v881_v54 = vpop.f32.mrf.mxu1 }
  0xee   : > { %v623_v55 = vpop.f32.mrf.mxu1 }
  0xf0   : > { %v884_v21 = vpop.f32.mrf.mxu1 }
 0x150   : > { %v852_v56 = vpop.f32.mrf.mxu0 }
 0x152   : > { %v853_v57 = vpop.f32.mrf.mxu0 }
 0x153   : > { %v854_v58 = vadd.f32 %v853_v57, %v852_v56 }
 0x154   : > { %v855_v59 = vpop.f32.mrf.mxu0 }
 0x155   : > { %v614_v61 = vadd.f32 %v854_v58, %v613_v51 }
 0x156   : > { %v856_v63 = vpop.f32.mrf.mxu0 }
 0x157   : > { %v634_v0 = vmul.f32 %v816_v60, %v614_v61  ;;  %v857_v1 = vadd.f32 %v856_v63, %v855_v59 }
 0x159   : > { %v644_v3 = vadd.f32 %v817_v62, %v634_v0  ;;  %v619_v4 = vadd.f32 %v857_v1, %v618_v53 }
 0x15b   : > { %v650_v6 = vadd.f32 %v647_v2, %v644_v3  ;;  %v635_v7 = vmul.f32 %v816_v60, %v619_v4  ;;  %v858_v8 = vpop.f32.mrf.mxu0 }
 0x15d   : > { %653 = vst.msk [vmem:[%s282_s6] sm:$0xff] %vm401_vm1, %v650_v6  ;;  %v645_v10 = vadd.f32 %v817_v62, %v635_v7  ;;  %v859_v11 = vpop.f32.mrf.mxu0 }
 0x15e   : > { %v860_v12 = vadd.f32 %v859_v11, %v858_v8 }
 0x15f   : > { %v651_v14 = vadd.f32 %v648_v9, %v645_v10 }
 0x160   : > { %v624_v15 = vadd.f32 %v860_v12, %v623_v55 }
 0x161   : > { %654 = vst.msk [vmem:[%s282_s6 + $0x8] sm:$0xff] %vm401_vm1, %v651_v14 }
 0x162   : > { %v636_v5 = vmul.f32 %v816_v60, %v624_v15 }
 0x164   : > { %v646_v17 = vadd.f32 %v817_v62, %v636_v5 }
 0x166   : > { %v652_v18 = vadd.f32 %v649_v16, %v646_v17 }
 0x168   : > { %655 = vst.msk [vmem:[%s282_s6 + $0x10] sm:$0xff] %vm401_vm1, %v652_v18 }
 0x169 PF: > { %s15_s20 = sadd.s32 1, %s983_s20   ;;  %s1260_s18 = smov %s979_s19 }
 0x16a   : > { %p12_p5 = scmp.ge.s32.totalorder %s15_s20, 4   ;;  %s1261_s19 = smov %s1263_s21 }
 0x16c   :  { %14 = sbr.rel (!%p12_p5) target bundleno = 2 (0x2), region = 82 }

</bundles_post_ra>
